<compile_context>
chip_gen: v5e
topology: v5e:2x2
jax: 0.10.0
libtpu: 0.0.40
codegen_flags: <defaults>
</compile_context>

<pallas_src>
import jax
import jax.numpy as jnp
from jax.experimental import pallas as pl
from jax.experimental.pallas import tpu as pltpu

_BN_EPS = 1e-5


# ----------------------------------------------------------------------------
# Kernel
# ----------------------------------------------------------------------------
def _cdecoder_kernel(z_ref,
                     w1_ref, wa1_ref, wb1_ref,
                     wab2_ref, wb2_ref,
                     wa3_ref, wb3_ref,
                     w2_ref, bias_ref,
                     o_ref):
    f32 = jnp.float32
    h2 = w1_ref.shape[1]        # hidden // 2
    hidden = wb2_ref.shape[1]   # hidden
    dout = w2_ref.shape[1]      # output_dim

    def dot(a, w_ref):
        # weights carry the compute dtype (f32 or bf16); accumulate in f32.
        return jnp.dot(a.astype(w_ref.dtype), w_ref[...],
                       preferred_element_type=f32)

    def bias(row, width):
        # packed (1, width) f32 row; broadcasts against (tb, width).
        return bias_ref[row:row + 1, :width]

    # fc1 on the pre-concatenated (B, latent+n_classes) input, + ReLU.
    a = jnp.maximum(dot(z_ref[...], w1_ref) + bias(0, h2), 0.0)

    # res_block1: identity shortcut (h/2 -> h/2); BN folded, dropout p=0.
    t = jnp.maximum(dot(a, wa1_ref) + bias(1, h2), 0.0)
    a = jnp.maximum(dot(t, wb1_ref) + bias(2, h2) + a, 0.0)

    # res_block2: projection shortcut fused into the first matmul.
    # wab2 = [wa2 | ws2] : (h/2, 2*hidden); split -> branch / shortcut.
    c = dot(a, wab2_ref) + bias(3, 2 * hidden)
    t = jnp.maximum(c[:, :hidden], 0.0)      # ReLU only on the branch half
    sc = c[:, hidden:]                       # shortcut (Linear+BN, no ReLU)
    a = jnp.maximum(dot(t, wb2_ref) + bias(4, hidden) + sc, 0.0)

    # res_block3: identity shortcut (hidden -> hidden).
    t = jnp.maximum(dot(a, wa3_ref) + bias(5, hidden), 0.0)
    a = jnp.maximum(dot(t, wb3_ref) + bias(6, hidden) + a, 0.0)

    # fc2 + sigmoid.
    logits = dot(a, w2_ref) + bias(7, dout)
    o_ref[...] = jax.nn.sigmoid(logits).astype(o_ref.dtype)


# ----------------------------------------------------------------------------
# Host-side glue: BN folding, weight fusion, bias packing, pallas_call
# ----------------------------------------------------------------------------
def _fold_bn(w, b, bn):
    """Fold eval-mode BatchNorm1d into the preceding Linear (w: (in, out))."""
    scale = bn["gamma"] / jnp.sqrt(bn["var"] + _BN_EPS)
    return w * scale[None, :], (b - bn["mean"]) * scale + bn["beta"]


def _pack_biases(biases):
    """Pack 1-D f32 bias vectors into one padded (n_rows, padw) array."""
    max_len = max(int(b.shape[0]) for b in biases)
    padw = ((max_len + 127) // 128) * 128
    rows = [jnp.pad(b.reshape(-1).astype(jnp.float32),
                    (0, padw - b.shape[0])) for b in biases]
    return jnp.stack(rows, axis=0)


def cdecoder_forward(x, y, params, *, block_b=512, compute_dtype=jnp.float32):
    """x: (B, latent_dim), y: (B, n_classes) -> (B, output_dim)."""
    B = x.shape[0]
    # Pre-concatenate on the host: one lane-dense input stream, one K=32 matmul.
    z = jnp.concatenate([x, y], axis=-1).astype(compute_dtype)
    zdim = z.shape[-1]

    # ---- parameter prep (constant-folds under jit; not in the hot path) ----
    w1, b1 = params["fc1"]["w"], params["fc1"]["b"]

    def folded(p, name_w, name_bn):
        return _fold_bn(p[name_w]["w"], p[name_w]["b"], p[name_bn])

    wa1, ba1 = folded(params["res1"], "fc1", "bn1")
    wb1, bb1 = folded(params["res1"], "fc2", "bn2")

    wa2, ba2 = folded(params["res2"], "fc1", "bn1")
    wb2, bb2 = folded(params["res2"], "fc2", "bn2")
    ws2, bs2 = folded(params["res2"], "sc_fc", "sc_bn")
    # Fuse branch + projection shortcut into one (h/2, 2*hidden) matmul.
    wab2 = jnp.concatenate([wa2, ws2], axis=1)
    bab2 = jnp.concatenate([ba2, bs2], axis=0)

    wa3, ba3 = folded(params["res3"], "fc1", "bn1")
    wb3, bb3 = folded(params["res3"], "fc2", "bn2")

    w2, b2 = params["fc2"]["w"], params["fc2"]["b"]
    dout = w2.shape[1]

    cd = compute_dtype
    weights = [w1.astype(cd), wa1.astype(cd), wb1.astype(cd),
               wab2.astype(cd), wb2.astype(cd),
               wa3.astype(cd), wb3.astype(cd), w2.astype(cd)]
    bias_pack = _pack_biases([b1, ba1, bb1, bab2, bb2, ba3, bb3, b2])

    # ---- grid / specs ----
    tb = min(block_b, B)
    while B % tb != 0:
        tb //= 2
        if tb < 8:
            tb = B
            break
    grid = (B // tb,)

    def resident(arr):
        return pl.BlockSpec(arr.shape, lambda i: (0, 0))

    in_specs = ([pl.BlockSpec((tb, zdim), lambda i: (i, 0))]
                + [resident(w) for w in weights]
                + [resident(bias_pack)])
    out_spec = pl.BlockSpec((tb, dout), lambda i: (i, 0))

    # Raise the scoped VMEM limit only when tuning very tall tiles
    # (matters for v5e's 16 MiB default; v6e/v7x have headroom).
    vmem_limit = (100 * 1024 * 1024) if tb >= 2048 else None

    return pl.pallas_call(
        _cdecoder_kernel,
        out_shape=jax.ShapeDtypeStruct((B, dout), x.dtype),
        grid=grid,
        in_specs=in_specs,
        out_specs=out_spec,
        compiler_params=pltpu.CompilerParams(
            dimension_semantics=("parallel",),
            vmem_limit_bytes=vmem_limit),
    )(z, *weights, bias_pack)


# ----------------------------------------------------------------------------
# Parameter init (matches nn.Linear / nn.BatchNorm1d shapes; (in, out) weights)
# ----------------------------------------------------------------------------
def init_params(key, latent_dim, hidden_dim, output_dim, n_classes,
                dtype=jnp.float32):
    h2 = hidden_dim // 2
    keys = iter(jax.random.split(key, 64))

    def linear(din, dout):
        s = 1.0 / (din ** 0.5)
        return {"w": jax.random.uniform(next(keys), (din, dout), dtype, -s, s),
                "b": jax.random.uniform(next(keys), (dout,), dtype, -s, s)}

    def bn(d):
        return {"gamma": 1.0 + 0.1 * jax.random.normal(next(keys), (d,), dtype),
                "beta": 0.1 * jax.random.normal(next(keys), (d,), dtype),
                "mean": 0.1 * jax.random.normal(next(keys), (d,), dtype),
                "var": 1.0 + 0.2 * jax.random.uniform(next(keys), (d,), dtype)}

    def res(din, dout):
        p = {"fc1": linear(din, dout), "bn1": bn(dout),
             "fc2": linear(dout, dout), "bn2": bn(dout)}
        if din != dout:
            p["sc_fc"] = linear(din, dout)
            p["sc_bn"] = bn(dout)
        return p

    din = latent_dim + n_classes
    return {"fc1": linear(din, h2),
            "res1": res(h2, h2),
            "res2": res(h2, hidden_dim),
            "res3": res(hidden_dim, hidden_dim),
            "fc2": linear(hidden_dim, output_dim)}


# ----------------------------------------------------------------------------
# Pure-JAX reference (explicit concat + explicit eval-mode BN, no folding)
# ----------------------------------------------------------------------------
def _reference_forward(x, y, params):
    def linear(h, p):
        return h @ p["w"] + p["b"]

    def bnorm(h, p):
        return (h - p["mean"]) / jnp.sqrt(p["var"] + _BN_EPS) * p["gamma"] + p["beta"]

    def res_block(h, p):
        out = jax.nn.relu(bnorm(linear(h, p["fc1"]), p["bn1"]))
        out = bnorm(linear(out, p["fc2"]), p["bn2"])
        sc = bnorm(linear(h, p["sc_fc"]), p["sc_bn"]) if "sc_fc" in p else h
        return jax.nn.relu(out + sc)

    z = jnp.concatenate([x, y], axis=-1)
    h = jax.nn.relu(linear(z, params["fc1"]))
    h = res_block(h, params["res1"])
    h = res_block(h, params["res2"])
    h = res_block(h, params["res3"])
    return jax.nn.sigmoid(linear(h, params["fc2"]))


if __name__ == "__main__":
    latent_dim, n_classes, hidden_dim, output_dim = 24, 8, 128, 128
    batch = 4096   # 8 batch tiles of 512 -> >=4 pipelined steps per v7x core

    key = jax.random.PRNGKey(0)
    kx, ky, kp = jax.random.split(key, 3)
    x = jax.random.normal(kx, (batch, latent_dim), jnp.float32)
    labels = jax.random.randint(ky, (batch,), 0, n_classes)
    y = jax.nn.one_hot(labels, n_classes, dtype=jnp.float32)

    params = init_params(kp, latent_dim, hidden_dim, output_dim, n_classes)

    ref = _reference_forward(x, y, params)

    # f32 path: must match the reference tightly.
    out_f32 = jax.block_until_ready(
        cdecoder_forward(x, y, params, block_b=512, compute_dtype=jnp.float32))
    assert out_f32.shape == (batch, output_dim)
    assert jnp.allclose(out_f32, ref, atol=1e-4, rtol=1e-4), "f32 mismatch"

    # bf16 path: weights/activations bf16, f32 accumulation; looser tolerance.
    out_bf16 = jax.block_until_ready(
        cdecoder_forward(x, y, params, block_b=512, compute_dtype=jnp.bfloat16))
    assert out_bf16.shape == (batch, output_dim)
    assert jnp.allclose(out_bf16, ref, atol=2e-2, rtol=2e-2), "bf16 mismatch"

    print("KERNEL_OK")
</pallas_src>

<mosaic_0001>
module attributes {stable_mosaic.version = 11 : i64} {
  func.func @_cdecoder_kernel(%arg0: i32, %arg1: memref<512x32xf32, #tpu.memory_space<vmem>>, %arg2: memref<32x64xf32, #tpu.memory_space<vmem>>, %arg3: memref<64x64xf32, #tpu.memory_space<vmem>>, %arg4: memref<64x64xf32, #tpu.memory_space<vmem>>, %arg5: memref<64x256xf32, #tpu.memory_space<vmem>>, %arg6: memref<128x128xf32, #tpu.memory_space<vmem>>, %arg7: memref<128x128xf32, #tpu.memory_space<vmem>>, %arg8: memref<128x128xf32, #tpu.memory_space<vmem>>, %arg9: memref<128x128xf32, #tpu.memory_space<vmem>>, %arg10: memref<8x256xf32, #tpu.memory_space<vmem>>, %arg11: memref<512x128xf32, #tpu.memory_space<vmem>>) attributes {dimension_semantics = [#tpu.dimension_semantics<parallel>], iteration_bounds = array<i64: 8>, scalar_prefetch = 0 : i64, scratch_operands = 0 : i64, tpu.core_type = #tpu.core_type<tc>, window_params = [{transform_indices = @transform_0, window_bounds = array<i64: 512, 32>}, {pipeline_mode = #tpu.pipeline_mode<synchronous>, transform_indices = @transform_1, window_bounds = array<i64: 32, 64>}, {pipeline_mode = #tpu.pipeline_mode<synchronous>, transform_indices = @transform_2, window_bounds = array<i64: 64, 64>}, {pipeline_mode = #tpu.pipeline_mode<synchronous>, transform_indices = @transform_3, window_bounds = array<i64: 64, 64>}, {pipeline_mode = #tpu.pipeline_mode<synchronous>, transform_indices = @transform_4, window_bounds = array<i64: 64, 256>}, {pipeline_mode = #tpu.pipeline_mode<synchronous>, transform_indices = @transform_5, window_bounds = array<i64: 128, 128>}, {pipeline_mode = #tpu.pipeline_mode<synchronous>, transform_indices = @transform_6, window_bounds = array<i64: 128, 128>}, {pipeline_mode = #tpu.pipeline_mode<synchronous>, transform_indices = @transform_7, window_bounds = array<i64: 128, 128>}, {pipeline_mode = #tpu.pipeline_mode<synchronous>, transform_indices = @transform_8, window_bounds = array<i64: 128, 128>}, {pipeline_mode = #tpu.pipeline_mode<synchronous>, transform_indices = @transform_9, window_bounds = array<i64: 8, 256>}, {transform_indices = @transform_10, window_bounds = array<i64: 512, 128>}]} {
    %c0 = arith.constant 0 : index
    %c0_0 = arith.constant 0 : index
    %0 = vector.load %arg1[%c0, %c0_0] : memref<512x32xf32, #tpu.memory_space<vmem>>, vector<512x32xf32>
    %c0_1 = arith.constant 0 : index
    %c0_2 = arith.constant 0 : index
    %1 = vector.load %arg2[%c0_1, %c0_2] : memref<32x64xf32, #tpu.memory_space<vmem>>, vector<32x64xf32>
    %cst = arith.constant dense<0.000000e+00> : vector<512x64xf32>
    %2 = tpu.matmul %0, %1, %cst {dimension_numbers = #tpu.dot_dimension_numbers<[1], [0], [0], [1], [0, 0, 1, 1], [], []>} : vector<512x32xf32>, vector<32x64xf32>, vector<512x64xf32> -> vector<512x64xf32>
    %c0_3 = arith.constant 0 : index
    %c0_4 = arith.constant 0 : index
    %3 = vector.load %arg10[%c0_3, %c0_4] : memref<8x256xf32, #tpu.memory_space<vmem>>, vector<1x64xf32>
    %4 = vector.broadcast %3 : vector<1x64xf32> to vector<512x64xf32>
    %5 = arith.addf %2, %4 : vector<512x64xf32>
    %cst_5 = arith.constant 0.000000e+00 : f32
    %6 = vector.broadcast %cst_5 : f32 to vector<512x64xf32>
    %7 = arith.maximumf %5, %6 : vector<512x64xf32>
    %c0_6 = arith.constant 0 : index
    %c0_7 = arith.constant 0 : index
    %8 = vector.load %arg3[%c0_6, %c0_7] : memref<64x64xf32, #tpu.memory_space<vmem>>, vector<64x64xf32>
    %cst_8 = arith.constant dense<0.000000e+00> : vector<512x64xf32>
    %9 = tpu.matmul %7, %8, %cst_8 {dimension_numbers = #tpu.dot_dimension_numbers<[1], [0], [0], [1], [0, 0, 1, 1], [], []>} : vector<512x64xf32>, vector<64x64xf32>, vector<512x64xf32> -> vector<512x64xf32>
    %c1 = arith.constant 1 : index
    %c0_9 = arith.constant 0 : index
    %10 = vector.load %arg10[%c1, %c0_9] : memref<8x256xf32, #tpu.memory_space<vmem>>, vector<1x64xf32>
    %11 = vector.broadcast %10 : vector<1x64xf32> to vector<512x64xf32>
    %12 = arith.addf %9, %11 : vector<512x64xf32>
    %cst_10 = arith.constant 0.000000e+00 : f32
    %13 = vector.broadcast %cst_10 : f32 to vector<512x64xf32>
    %14 = arith.maximumf %12, %13 : vector<512x64xf32>
    %c0_11 = arith.constant 0 : index
    %c0_12 = arith.constant 0 : index
    %15 = vector.load %arg4[%c0_11, %c0_12] : memref<64x64xf32, #tpu.memory_space<vmem>>, vector<64x64xf32>
    %cst_13 = arith.constant dense<0.000000e+00> : vector<512x64xf32>
    %16 = tpu.matmul %14, %15, %cst_13 {dimension_numbers = #tpu.dot_dimension_numbers<[1], [0], [0], [1], [0, 0, 1, 1], [], []>} : vector<512x64xf32>, vector<64x64xf32>, vector<512x64xf32> -> vector<512x64xf32>
    %c2 = arith.constant 2 : index
    %c0_14 = arith.constant 0 : index
    %17 = vector.load %arg10[%c2, %c0_14] : memref<8x256xf32, #tpu.memory_space<vmem>>, vector<1x64xf32>
    %18 = vector.broadcast %17 : vector<1x64xf32> to vector<512x64xf32>
    %19 = arith.addf %16, %18 : vector<512x64xf32>
    %20 = arith.addf %19, %7 : vector<512x64xf32>
    %cst_15 = arith.constant 0.000000e+00 : f32
    %21 = vector.broadcast %cst_15 : f32 to vector<512x64xf32>
    %22 = arith.maximumf %20, %21 : vector<512x64xf32>
    %c0_16 = arith.constant 0 : index
    %c0_17 = arith.constant 0 : index
    %23 = vector.load %arg5[%c0_16, %c0_17] : memref<64x256xf32, #tpu.memory_space<vmem>>, vector<64x256xf32>
    %cst_18 = arith.constant dense<0.000000e+00> : vector<512x256xf32>
    %24 = tpu.matmul %22, %23, %cst_18 {dimension_numbers = #tpu.dot_dimension_numbers<[1], [0], [0], [1], [0, 0, 1, 1], [], []>} : vector<512x64xf32>, vector<64x256xf32>, vector<512x256xf32> -> vector<512x256xf32>
    %c3 = arith.constant 3 : index
    %c0_19 = arith.constant 0 : index
    %25 = vector.load %arg10[%c3, %c0_19] : memref<8x256xf32, #tpu.memory_space<vmem>>, vector<1x256xf32>
    %26 = vector.broadcast %25 : vector<1x256xf32> to vector<512x256xf32>
    %27 = arith.addf %24, %26 : vector<512x256xf32>
    %28 = vector.extract_strided_slice %27 {offsets = [0, 0], sizes = [512, 128], strides = [1, 1]} : vector<512x256xf32> to vector<512x128xf32>
    %cst_20 = arith.constant 0.000000e+00 : f32
    %29 = vector.broadcast %cst_20 : f32 to vector<512x128xf32>
    %30 = arith.maximumf %28, %29 : vector<512x128xf32>
    %31 = vector.extract_strided_slice %27 {offsets = [0, 128], sizes = [512, 128], strides = [1, 1]} : vector<512x256xf32> to vector<512x128xf32>
    %c0_21 = arith.constant 0 : index
    %c0_22 = arith.constant 0 : index
    %32 = vector.load %arg6[%c0_21, %c0_22] : memref<128x128xf32, #tpu.memory_space<vmem>>, vector<128x128xf32>
    %cst_23 = arith.constant dense<0.000000e+00> : vector<512x128xf32>
    %33 = tpu.matmul %30, %32, %cst_23 {dimension_numbers = #tpu.dot_dimension_numbers<[1], [0], [0], [1], [0, 0, 1, 1], [], []>} : vector<512x128xf32>, vector<128x128xf32>, vector<512x128xf32> -> vector<512x128xf32>
    %c4 = arith.constant 4 : index
    %c0_24 = arith.constant 0 : index
    %34 = vector.load %arg10[%c4, %c0_24] : memref<8x256xf32, #tpu.memory_space<vmem>>, vector<1x128xf32>
    %35 = vector.broadcast %34 : vector<1x128xf32> to vector<512x128xf32>
    %36 = arith.addf %33, %35 : vector<512x128xf32>
    %37 = arith.addf %36, %31 : vector<512x128xf32>
    %cst_25 = arith.constant 0.000000e+00 : f32
    %38 = vector.broadcast %cst_25 : f32 to vector<512x128xf32>
    %39 = arith.maximumf %37, %38 : vector<512x128xf32>
    %c0_26 = arith.constant 0 : index
    %c0_27 = arith.constant 0 : index
    %40 = vector.load %arg7[%c0_26, %c0_27] : memref<128x128xf32, #tpu.memory_space<vmem>>, vector<128x128xf32>
    %cst_28 = arith.constant dense<0.000000e+00> : vector<512x128xf32>
    %41 = tpu.matmul %39, %40, %cst_28 {dimension_numbers = #tpu.dot_dimension_numbers<[1], [0], [0], [1], [0, 0, 1, 1], [], []>} : vector<512x128xf32>, vector<128x128xf32>, vector<512x128xf32> -> vector<512x128xf32>
    %c5 = arith.constant 5 : index
    %c0_29 = arith.constant 0 : index
    %42 = vector.load %arg10[%c5, %c0_29] : memref<8x256xf32, #tpu.memory_space<vmem>>, vector<1x128xf32>
    %43 = vector.broadcast %42 : vector<1x128xf32> to vector<512x128xf32>
    %44 = arith.addf %41, %43 : vector<512x128xf32>
    %cst_30 = arith.constant 0.000000e+00 : f32
    %45 = vector.broadcast %cst_30 : f32 to vector<512x128xf32>
    %46 = arith.maximumf %44, %45 : vector<512x128xf32>
    %c0_31 = arith.constant 0 : index
    %c0_32 = arith.constant 0 : index
    %47 = vector.load %arg8[%c0_31, %c0_32] : memref<128x128xf32, #tpu.memory_space<vmem>>, vector<128x128xf32>
    %cst_33 = arith.constant dense<0.000000e+00> : vector<512x128xf32>
    %48 = tpu.matmul %46, %47, %cst_33 {dimension_numbers = #tpu.dot_dimension_numbers<[1], [0], [0], [1], [0, 0, 1, 1], [], []>} : vector<512x128xf32>, vector<128x128xf32>, vector<512x128xf32> -> vector<512x128xf32>
    %c6 = arith.constant 6 : index
    %c0_34 = arith.constant 0 : index
    %49 = vector.load %arg10[%c6, %c0_34] : memref<8x256xf32, #tpu.memory_space<vmem>>, vector<1x128xf32>
    %50 = vector.broadcast %49 : vector<1x128xf32> to vector<512x128xf32>
    %51 = arith.addf %48, %50 : vector<512x128xf32>
    %52 = arith.addf %51, %39 : vector<512x128xf32>
    %cst_35 = arith.constant 0.000000e+00 : f32
    %53 = vector.broadcast %cst_35 : f32 to vector<512x128xf32>
    %54 = arith.maximumf %52, %53 : vector<512x128xf32>
    %c0_36 = arith.constant 0 : index
    %c0_37 = arith.constant 0 : index
    %55 = vector.load %arg9[%c0_36, %c0_37] : memref<128x128xf32, #tpu.memory_space<vmem>>, vector<128x128xf32>
    %cst_38 = arith.constant dense<0.000000e+00> : vector<512x128xf32>
    %56 = tpu.matmul %54, %55, %cst_38 {dimension_numbers = #tpu.dot_dimension_numbers<[1], [0], [0], [1], [0, 0, 1, 1], [], []>} : vector<512x128xf32>, vector<128x128xf32>, vector<512x128xf32> -> vector<512x128xf32>
    %c7 = arith.constant 7 : index
    %c0_39 = arith.constant 0 : index
    %57 = vector.load %arg10[%c7, %c0_39] : memref<8x256xf32, #tpu.memory_space<vmem>>, vector<1x128xf32>
    %58 = vector.broadcast %57 : vector<1x128xf32> to vector<512x128xf32>
    %59 = arith.addf %56, %58 : vector<512x128xf32>
    %60 = arith.negf %59 : vector<512x128xf32>
    %61 = math.exp %60 : vector<512x128xf32>
    %cst_40 = arith.constant 1.000000e+00 : f32
    %62 = vector.broadcast %cst_40 : f32 to vector<512x128xf32>
    %63 = arith.addf %62, %61 : vector<512x128xf32>
    %64 = arith.divf %62, %63 : vector<512x128xf32>
    %c0_41 = arith.constant 0 : index
    %c0_42 = arith.constant 0 : index
    %65 = vector.load %arg11[%c0_41, %c0_42] : memref<512x128xf32, #tpu.memory_space<vmem>>, vector<512x128xf32>
    tpu.vector_store %arg11[%c0_41, %c0_42], %64 {strides = array<i32>} : memref<512x128xf32, #tpu.memory_space<vmem>>, vector<512x128xf32>,
    return
  }
  func.func @transform_0(%arg0: i32) -> (i32, i32) {
    %c0_i32 = arith.constant 0 : i32
    %c0_i32_0 = arith.constant 0 : i32
    return %arg0, %c0_i32 : i32, i32
  }
  func.func @transform_1(%arg0: i32) -> (i32, i32) {
    %c0_i32 = arith.constant 0 : i32
    %c0_i32_0 = arith.constant 0 : i32
    %c0_i32_1 = arith.constant 0 : i32
    return %c0_i32, %c0_i32_0 : i32, i32
  }
  func.func @transform_2(%arg0: i32) -> (i32, i32) {
    %c0_i32 = arith.constant 0 : i32
    %c0_i32_0 = arith.constant 0 : i32
    %c0_i32_1 = arith.constant 0 : i32
    return %c0_i32, %c0_i32_0 : i32, i32
  }
  func.func @transform_3(%arg0: i32) -> (i32, i32) {
    %c0_i32 = arith.constant 0 : i32
    %c0_i32_0 = arith.constant 0 : i32
    %c0_i32_1 = arith.constant 0 : i32
    return %c0_i32, %c0_i32_0 : i32, i32
  }
  func.func @transform_4(%arg0: i32) -> (i32, i32) {
    %c0_i32 = arith.constant 0 : i32
    %c0_i32_0 = arith.constant 0 : i32
    %c0_i32_1 = arith.constant 0 : i32
    return %c0_i32, %c0_i32_0 : i32, i32
  }
  func.func @transform_5(%arg0: i32) -> (i32, i32) {
    %c0_i32 = arith.constant 0 : i32
    %c0_i32_0 = arith.constant 0 : i32
    %c0_i32_1 = arith.constant 0 : i32
    return %c0_i32, %c0_i32_0 : i32, i32
  }
  func.func @transform_6(%arg0: i32) -> (i32, i32) {
    %c0_i32 = arith.constant 0 : i32
    %c0_i32_0 = arith.constant 0 : i32
    %c0_i32_1 = arith.constant 0 : i32
    return %c0_i32, %c0_i32_0 : i32, i32
  }
  func.func @transform_7(%arg0: i32) -> (i32, i32) {
    %c0_i32 = arith.constant 0 : i32
    %c0_i32_0 = arith.constant 0 : i32
    %c0_i32_1 = arith.constant 0 : i32
    return %c0_i32, %c0_i32_0 : i32, i32
  }
  func.func @transform_8(%arg0: i32) -> (i32, i32) {
    %c0_i32 = arith.constant 0 : i32
    %c0_i32_0 = arith.constant 0 : i32
    %c0_i32_1 = arith.constant 0 : i32
    return %c0_i32, %c0_i32_0 : i32, i32
  }
  func.func @transform_9(%arg0: i32) -> (i32, i32) {
    %c0_i32 = arith.constant 0 : i32
    %c0_i32_0 = arith.constant 0 : i32
    %c0_i32_1 = arith.constant 0 : i32
    return %c0_i32, %c0_i32_0 : i32, i32
  }
  func.func @transform_10(%arg0: i32) -> (i32, i32) {
    %c0_i32 = arith.constant 0 : i32
    %c0_i32_0 = arith.constant 0 : i32
    return %arg0, %c0_i32 : i32, i32
  }
}

</mosaic_0001>

<bundles_post_ra>
// kernel: tpu_custom_call.1
= control target key start
LH: loop header
LB: loop body
LE: loop exit
PB: predicated region body
PF: predicated region fallthrough
CT: control target
= control target key end

     0   :  { %15 = vsyncpa [#allocation3], 0  ;;  %s9225_s0 = inlined_call_operand.vmem [shape: f32[4096,32], index: 0, kind: input, shape index: {}]   ;;  %s9226_s1 = inlined_call_operand.vmem [shape: f32[32,64], index: 1, kind: input, shape index: {}]   ;;  %s9227_s2 = inlined_call_operand.vmem [shape: f32[64,64], index: 2, kind: input, shape index: {}]   ;;  %s9228_s3 = inlined_call_operand.vmem [shape: f32[64,64], index: 3, kind: input, shape index: {}]   ;;  %s9229_s4 = inlined_call_operand.vmem [shape: f32[64,256], index: 4, kind: input, shape index: {}]   ;;  %s9230_s5 = inlined_call_operand.vmem [shape: f32[128,128], index: 5, kind: input, shape index: {}]   ;;  %s9231_s6 = inlined_call_operand.vmem [shape: f32[128,128], index: 6, kind: input, shape index: {}]   ;;  %s9232_s7 = inlined_call_operand.vmem [shape: f32[128,128], index: 7, kind: input, shape index: {}]   ;;  %s9233_s8 = inlined_call_operand.vmem [shape: f32[128,128], index: 8, kind: input, shape index: {}]   ;;  %s9234_s9 = inlined_call_operand.vmem [shape: f32[8,256], index: 9, kind: input, shape index: {}]   ;;  %s9235_s10 = inlined_call_operand.hbm [shape: f32[4096,128], index: 10, kind: output, shape index: {}]  }
   0x1   :  { %17 = vsyncpa [#allocation3 + $0x1], 0  ;;  %s6050_s13 = smov 0   ;;  %s6052_s14 = smov 0  }
   0x2   :  { %s6054_s15 = smov 0   ;;  %s6056_s16 = smov 0  }
   0x3 LB: > { %s6071_s17 = sadd.s32 4294967295, %s5991_s16   ;;  %s5188_s18 = sadd.s32 4294967294, %s5991_s16   ;;  %s5991_s16 = sphi %s6056_s16, %s9578_s16   ;;  %s5987_s15 = sphi %s6054_s15, %s9577_s15   ;;  %s5983_s14 = sphi %s6052_s14, %s9576_s14   ;;  %s5979_s13 = sphi %s6050_s13, %s9575_s13  }
   0x4   : > { %s6075_s19 = sadd.s32 1, %s5991_s16   ;;  %s245_s20 = sadd.s32 1, %s5987_s15 }
   0x5   : > { %s242_s21 = ssub.s32 %s5991_s16, %s6075_s19  ;;  %p255_p0 = scmp.ne.s32.totalorder %s5987_s15, %s5983_s14 }
   0x6   : > { %p243_p1 = scmp.eq.s32.totalorder %s242_s21, 0  ;;  %p256_p2 = scmp.eq.s32.totalorder %s6071_s17, 7 }
   0x7   : > { %p261_p3 = scmp.ne.s32.totalorder %s5983_s14, %s5979_s13  ;;  %p262_p4 = scmp.eq.s32.totalorder %s5188_s18, 7 }
   0x8   : > { %s6086_s22 = scalar_select %p243_p1, %s5987_s15, %s245_s20  }
   0x9   : > { %p6088_p5 = por %p256_p2, %p255_p0  ;;  %p6092_p6 = por %p262_p4, %p261_p3 }
   0xa   : > { %p5191_p7 = scmp.ge.s32.totalorder %s5991_s16, 1  ;;  %p316_p8 = scmp.lt.s32.totalorder %s5991_s16, 9 }
   0xc   : > { %p317_p9 = pnand %p5191_p7, %p316_p8 }
   0xe   : > { %320 = sbr.rel (%p317_p9) target bundleno = 1753 (0x6d9), region = 60 }
  0x13   : > { %v428_v0 = vld [vmem:[%s9226_s1 + $0x18] sm:$0xff]  ;;  %v427_v1 = vld [vmem:[%s9226_s1 + $0x10] sm:$0xff]  ;;  %s5193_s29 = sshll.u32 %s6071_s17, 6  ;;  %v426_v2 = vld [vmem:[%s9226_s1 + $0x8] sm:$0xff]  ;;  %vm430_vm0 = vcmask 261120   ;;  %vm905_vm1 = vcmask 523264  }
  0x14   : > { %5586 = vmatpush.msra.mxu1 %v428_v0  ;;  %635 = vmatpush.msra.mxu0 %v428_v0  ;;  %p355_p10 = scmp.lt.s32.totalorder %s5193_s29, 511  ;;  %v425_v3 = vld [vmem:[%s9226_s1] sm:$0xff]  ;;  %v903_v4 = vld [vmem:[%s9227_s2 + $0x38] sm:$0xff]  ;;  %v902_v7 = vld [vmem:[%s9227_s2 + $0x30] sm:$0xff]  ;;  %s351_s12 = sand.u32 1, %s5983_s14  }
  0x15   : > { %5587 = vmatpush.msra.mxu2 %v428_v0  ;;  %5588 = vmatpush.msra.mxu3 %v428_v0  ;;  %v901_v8 = vld [vmem:[%s9227_s2 + $0x28] sm:$0xff]  ;;  %v900_v13 = vld [vmem:[%s9227_s2 + $0x20] sm:$0xff]  ;;  %v899_v18 = vld [vmem:[%s9227_s2 + $0x18] sm:$0xff]  ;;  %s5192_s18 = sshll.u32 %s351_s12, 9  ;;  %s5585_s11 = sshll.u32 %s6071_s17, 9 }
  0x16   : > { %5589 = vmatpush.msra.mxu1 %v427_v1  ;;  %s9580_s29 = smov (!%p355_p10, %s5193_s29), 511  ;;  %636 = vmatpush.msra.mxu0 %v427_v1  ;;  %v898_v23 = vld [vmem:[%s9227_s2 + $0x10] sm:$0xff]  ;;  %v897_v28 = vld [vmem:[%s9227_s2 + $0x8] sm:$0xff]  ;;  %v896_v33 = vld [vmem:[%s9227_s2] sm:$0xff]  ;;  %s5122_s25 = scalar_lea.hbm %s9235_s10, %s5585_s11 }
  0x17   : > { %5590 = vmatpush.msra.mxu2 %v427_v1  ;;  %5591 = vmatpush.msra.mxu3 %v427_v1  ;;  %s5194_s20 = sshll.u32 %s9580_s29, 3  ;;  %v2621_v40 = vld [vmem:[%s9230_s5 + $0x78] sm:$0xff]  ;;  %v1377_v49 = vld [vmem:[%s9228_s3 + $0x30] sm:$0xff]  ;;  %v6226_v54 = vld [vmem:[%s9234_s9] ss:$0 sm:$0xff]  ;;  %s5111_s17 = scalar_lea.sflag [#allocation3], %s351_s12 }
  0x18   : > { %5592 = vmatpush.msra.mxu1 %v426_v2  ;;  %637 = vmatpush.msra.mxu0 %v426_v2  ;;  %s6114_s26 = scalar_lea.vmem %s9225_s0, %s5194_s20  ;;  %v1378_v42 = vld [vmem:[%s9228_s3 + $0x38] sm:$0xff]  ;;  %v2620_v61 = vld [vmem:[%s9230_s5 + $0x70] sm:$0xff]  ;;  %v1376_v63 = vld [vmem:[%s9228_s3 + $0x28] sm:$0xff]  ;;  %s8620_s20 = scalar_lea.vmem [#allocation2], %s5192_s18 }
  0x19   : > { %5593 = vmatpush.msra.mxu2 %v426_v2  ;;  %5594 = vmatpush.msra.mxu3 %v426_v2  ;;  %v378_v5 = vld [vmem:[%s6114_s26 + $0x88] sm:$0xff]  ;;  %v361_v6 = vld [vmem:[%s6114_s26] sm:$0xff]  ;;  %v379_v9 = vld [vmem:[%s6114_s26 + $0x90] sm:$0xff]  ;;  %s5123_s27 = sshll.u32 %s8620_s20, 4  ;;  %s5949_s18 = scalar_lea.hbm %s9235_s10, 4096  ;;  %s5124_s27 = int_to_ptr.vmem [resolvable:$true] %s5123_s27 }
  0x1a   : > { %5595 = vmatpush.msra.mxu1 %v425_v3  ;;  %638 = vmatpush.msra.mxu0 %v425_v3  ;;  %v362_v10 = vld [vmem:[%s6114_s26 + $0x8] sm:$0xff]  ;;  %v380_v11 = vld [vmem:[%s6114_s26 + $0x98] sm:$0xff]  ;;  %v363_v12 = vld [vmem:[%s6114_s26 + $0x10] sm:$0xff] }
  0x1b   : > { %5212 = vmatmul.msk.f32.vlgmr.msra.gmra.mxu1 %vm430_vm0, %v378_v5  ;;  %5195 = vmatmul.msk.f32.vlgmr.msra.gmra.mxu0 %vm430_vm0, %v361_v6  ;;  %v381_v14 = vld [vmem:[%s6114_s26 + $0xa0] sm:$0xff]  ;;  %v364_v15 = vld [vmem:[%s6114_s26 + $0x18] sm:$0xff]  ;;  %v382_v16 = vld [vmem:[%s6114_s26 + $0xa8] sm:$0xff] }
  0x1c   : > { %1106 = vmatpush.msrb.mxu1 %v903_v4  ;;  %5596 = vmatpush.msra.mxu2 %v425_v3  ;;  %v365_v17 = vld [vmem:[%s6114_s26 + $0x20] sm:$0xff]  ;;  %v383_v19 = vld [vmem:[%s6114_s26 + $0xb0] sm:$0xff]  ;;  %v366_v20 = vld [vmem:[%s6114_s26 + $0x28] sm:$0xff] }
  0x1d   : > { %5597 = vmatpush.msra.mxu3 %v425_v3  ;;  %v384_v21 = vld [vmem:[%s6114_s26 + $0xb8] sm:$0xff]  ;;  %v367_v22 = vld [vmem:[%s6114_s26 + $0x30] sm:$0xff]  ;;  %v385_v24 = vld [vmem:[%s6114_s26 + $0xc0] sm:$0xff] }
  0x1e   : > { %1107 = vmatpush.msrb.mxu1 %v902_v7  ;;  %v368_v25 = vld [vmem:[%s6114_s26 + $0x38] sm:$0xff]  ;;  %v386_v26 = vld [vmem:[%s6114_s26 + $0xc8] sm:$0xff]  ;;  %v369_v27 = vld [vmem:[%s6114_s26 + $0x40] sm:$0xff]  ;;  %1580 = vmatpush.msrb.mxu2 %v1378_v42 }
  0x1f   : > { %v387_v29 = vld [vmem:[%s6114_s26 + $0xd0] sm:$0xff]  ;;  %v370_v30 = vld [vmem:[%s6114_s26 + $0x48] sm:$0xff]  ;;  %v388_v31 = vld [vmem:[%s6114_s26 + $0xd8] sm:$0xff] }
  0x20   : > { %1108 = vmatpush.msrb.mxu1 %v901_v8  ;;  %v371_v32 = vld [vmem:[%s6114_s26 + $0x50] sm:$0xff]  ;;  %v389_v34 = vld [vmem:[%s6114_s26 + $0xe0] sm:$0xff]  ;;  %v372_v35 = vld [vmem:[%s6114_s26 + $0x58] sm:$0xff]  ;;  %1581 = vmatpush.msrb.mxu2 %v1377_v49 }
  0x21   : > { %v390_v36 = vld [vmem:[%s6114_s26 + $0xe8] sm:$0xff]  ;;  %v373_v37 = vld [vmem:[%s6114_s26 + $0x60] sm:$0xff]  ;;  %v391_v38 = vld [vmem:[%s6114_s26 + $0xf0] sm:$0xff] }
  0x22   : > { %1109 = vmatpush.msrb.mxu1 %v900_v13  ;;  %v374_v39 = vld [vmem:[%s6114_s26 + $0x68] sm:$0xff]  ;;  %v395_v41 = vld [vmem:[%s6114_s26 + $0x110] sm:$0xff]  ;;  %v392_v43 = vld [vmem:[%s6114_s26 + $0xf8] sm:$0xff]  ;;  %1582 = vmatpush.msrb.mxu2 %v1376_v63 }
  0x23   : > { %5213 = vmatmul.msk.f32.gmra.mxu1 %vm430_vm0, %v379_v9  ;;  %5196 = vmatmul.msk.f32.gmra.mxu0 %vm430_vm0, %v362_v10  ;;  %v375_v44 = vld [vmem:[%s6114_s26 + $0x70] sm:$0xff]  ;;  %v396_v45 = vld [vmem:[%s6114_s26 + $0x118] sm:$0xff]  ;;  %v393_v46 = vld [vmem:[%s6114_s26 + $0x100] sm:$0xff] }
  0x24   : > { %1110 = vmatpush.msrb.mxu1 %v899_v18  ;;  %5229 = vmatmul.msk.f32.vlgmr.msra.gmra.mxu2 %vm430_vm0, %v395_v41  ;;  %v376_v47 = vld [vmem:[%s6114_s26 + $0x78] sm:$0xff]  ;;  %v397_v48 = vld [vmem:[%s6114_s26 + $0x120] sm:$0xff]  ;;  %v394_v51 = vld [vmem:[%s6114_s26 + $0x108] sm:$0xff] }
  0x25   : > { %v377_v53 = vld [vmem:[%s6114_s26 + $0x80] sm:$0xff]  ;;  %v398_v56 = vld [vmem:[%s6114_s26 + $0x128] sm:$0xff]  ;;  %v399_v62 = vld [vmem:[%s6114_s26 + $0x130] sm:$0xff] }
  0x26   : > { %1111 = vmatpush.msrb.mxu1 %v898_v23  ;;  %v400_v4 = vld [vmem:[%s6114_s26 + $0x138] sm:$0xff]  ;;  %v401_v9 = vld [vmem:[%s6114_s26 + $0x140] sm:$0xff] }
  0x27   : > { %v1375_v10 = vld [vmem:[%s9228_s3 + $0x20] sm:$0xff] }
  0x28   : > { %1112 = vmatpush.msrb.mxu1 %v897_v28  ;;  %1583 = vmatpush.msrb.mxu2 %v1375_v10 }
  0x2a   : > { %1113 = vmatpush.msrb.mxu1 %v896_v33  ;;  %v1373_v33 = vld [vmem:[%s9228_s3 + $0x10] sm:$0xff] }
  0x2b   : > { %5214 = vmatmul.msk.f32.gmra.mxu1 %vm430_vm0, %v380_v11  ;;  %5197 = vmatmul.msk.f32.gmra.mxu0 %vm430_vm0, %v363_v12 }
  0x2c   : > { %2623 = vmatpush.msra.mxu1 %v2621_v40  ;;  %5230 = vmatmul.msk.f32.gmra.mxu2 %vm430_vm0, %v396_v45  ;;  %v1372_v45 = vld [vmem:[%s9228_s3 + $0x8] sm:$0xff] }
  0x2e   : > { %2624 = vmatpush.msra.mxu1 %v2620_v61  ;;  %v409_v61 = vld [vmem:[%s6114_s26 + $0x180] sm:$0xff] }
  0x33   : > { %5215 = vmatmul.msk.f32.gmra.mxu1 %vm430_vm0, %v381_v14  ;;  %5198 = vmatmul.msk.f32.gmra.mxu0 %vm430_vm0, %v364_v15  ;;  %v402_v15 = vld [vmem:[%s6114_s26 + $0x148] sm:$0xff] }
  0x34   : > { %5231 = vmatmul.msk.f32.gmra.mxu2 %vm430_vm0, %v397_v48 }
  0x3b   : > { %5216 = vmatmul.msk.f32.gmra.mxu1 %vm430_vm0, %v382_v16  ;;  %5199 = vmatmul.msk.f32.gmra.mxu0 %vm430_vm0, %v365_v17 }
  0x3c   : > { %5232 = vmatmul.msk.f32.gmra.mxu2 %vm430_vm0, %v398_v56 }
  0x43   : > { %5217 = vmatmul.msk.f32.gmra.mxu1 %vm430_vm0, %v383_v19  ;;  %5200 = vmatmul.msk.f32.gmra.mxu0 %vm430_vm0, %v366_v20  ;;  %v2619_v20 = vld [vmem:[%s9230_s5 + $0x68] sm:$0xff] }
  0x44   : > { %5233 = vmatmul.msk.f32.gmra.mxu2 %vm430_vm0, %v399_v62  ;;  %2625 = vmatpush.msra.mxu1 %v2619_v20  ;;  %v1371_v62 = vld [vmem:[%s9228_s3] sm:$0xff]  ;;  %v2617_v20 = vld [vmem:[%s9230_s5 + $0x58] sm:$0xff] }
  0x4b   : > { %5218 = vmatmul.msk.f32.gmra.mxu1 %vm430_vm0, %v384_v21  ;;  %5201 = vmatmul.msk.f32.gmra.mxu0 %vm430_vm0, %v367_v22  ;;  %v403_v21 = vld [vmem:[%s6114_s26 + $0x150] sm:$0xff]  ;;  %v1374_v22 = vld [vmem:[%s9228_s3 + $0x18] sm:$0xff] }
  0x4c   : > { %5234 = vmatmul.msk.f32.gmra.mxu2 %vm430_vm0, %v400_v4 }
  0x4d   : > { %1584 = vmatpush.msrb.mxu2 %v1374_v22 }
  0x4f   : > { %1585 = vmatpush.msrb.mxu2 %v1373_v33 }
  0x51   : > { %1586 = vmatpush.msrb.mxu2 %v1372_v45 }
  0x53   : > { %5219 = vmatmul.msk.f32.gmra.mxu1 %vm430_vm0, %v385_v24  ;;  %5202 = vmatmul.msk.f32.gmra.mxu0 %vm430_vm0, %v368_v25 }
  0x54   : > { %5235 = vmatmul.msk.f32.gmra.mxu2 %vm430_vm0, %v401_v9  ;;  %v410_v9 = vld [vmem:[%s6114_s26 + $0x188] sm:$0xff] }
  0x55   : > { %1587 = vmatpush.msrb.mxu2 %v1371_v62  ;;  %v1923_v62 = vld [vmem:[%s9229_s4 + $0x70] sm:$0xff] }
  0x56   : > { %2132 = vmatpush.msrb.mxu3 %v1923_v62 }
  0x5b   : > { %5220 = vmatmul.msk.f32.gmra.mxu1 %vm430_vm0, %v386_v26  ;;  %5203 = vmatmul.msk.f32.gmra.mxu0 %vm430_vm0, %v369_v27  ;;  %v404_v27 = vld [vmem:[%s6114_s26 + $0x158] sm:$0xff] }
  0x5c   : > { %5236 = vmatmul.msk.f32.gmra.mxu2 %vm430_vm0, %v402_v15 }
  0x63   : > { %5221 = vmatmul.msk.f32.gmra.mxu1 %vm430_vm0, %v387_v29  ;;  %5204 = vmatmul.msk.f32.gmra.mxu0 %vm430_vm0, %v370_v30 }
  0x64   : > { %5237 = vmatmul.msk.f32.gmra.mxu2 %vm430_vm0, %v403_v21  ;;  %v2975_v21 = vld [vmem:[%s9231_s6 + $0x78] sm:$0xff] }
  0x65   : > { %2977 = vmatpush.msra.mxu2 %v2975_v21 }
  0x6b   : > { %5222 = vmatmul.msk.f32.gmra.mxu1 %vm430_vm0, %v388_v31  ;;  %5205 = vmatmul.msk.f32.gmra.mxu0 %vm430_vm0, %v371_v32  ;;  %v405_v32 = vld [vmem:[%s6114_s26 + $0x160] sm:$0xff] }
  0x6c   : > { %5238 = vmatmul.msk.f32.gmra.mxu2 %vm430_vm0, %v404_v27 }
  0x73   : > { %5223 = vmatmul.msk.f32.gmra.mxu1 %vm430_vm0, %v389_v34  ;;  %5206 = vmatmul.msk.f32.gmra.mxu0 %vm430_vm0, %v372_v35 }
  0x74   : > { %5239 = vmatmul.msk.f32.gmra.mxu2 %vm430_vm0, %v405_v32 }
  0x7b   : > { %5224 = vmatmul.msk.f32.gmra.mxu1 %vm430_vm0, %v390_v36  ;;  %5207 = vmatmul.msk.f32.gmra.mxu0 %vm430_vm0, %v373_v37 }
  0x83   : > { %5225 = vmatmul.msk.f32.gmra.mxu1 %vm430_vm0, %v391_v38  ;;  %5208 = vmatmul.msk.f32.gmra.mxu0 %vm430_vm0, %v374_v39  ;;  %v406_v38 = vld [vmem:[%s6114_s26 + $0x168] sm:$0xff] }
  0x84   : > { %5240 = vmatmul.msk.f32.gmra.mxu2 %vm430_vm0, %v406_v38 }
  0x8b   : > { %5226 = vmatmul.msk.f32.gmra.mxu1 %vm430_vm0, %v392_v43  ;;  %5209 = vmatmul.msk.f32.gmra.mxu0 %vm430_vm0, %v375_v44  ;;  %v2618_v43 = vld [vmem:[%s9230_s5 + $0x60] sm:$0xff]  ;;  %v407_v44 = vld [vmem:[%s6114_s26 + $0x170] sm:$0xff] }
  0x8c   : > { %2626 = vmatpush.msra.mxu1 %v2618_v43  ;;  %5241 = vmatmul.msk.f32.gmra.mxu2 %vm430_vm0, %v407_v44 }
  0x8e   : > { %2627 = vmatpush.msra.mxu1 %v2617_v20 }
  0x93   : > { %5227 = vmatmul.msk.f32.gmra.mxu1 %vm430_vm0, %v393_v46  ;;  %5210 = vmatmul.msk.f32.gmra.mxu0 %vm430_vm0, %v376_v47 }
  0x98   : > { %v6219_v50 = vpop.f32.mrf.mxu1  ;;  %v640_v52 = vpop.f32.mrf.mxu0 }
  0x99   : > { %v6230_v55 = vadd.f32 %v640_v52, %v6226_v54 }
  0x9b   : > { %5228 = vmatmul.msk.f32.gmra.mxu1 %vm430_vm0, %v394_v51  ;;  %5211 = vmatmul.msk.f32.gmra.mxu0 %vm430_vm0, %v377_v53  ;;  %v832_v57 = vmax.f32 %v6230_v55, 0.0  ;;  %v408_v51 = vld [vmem:[%s6114_s26 + $0x178] sm:$0xff]  ;;  %v3264_v55 = vld [vmem:[%s9232_s7 + $0x70] sm:$0xff] }
  0x9c   : > { %5242 = vmatmul.msk.f32.gmra.mxu2 %vm430_vm0, %v408_v51 }
  0xa0   : > { %v6236_v58 = vpop.f32.mrf.mxu1  ;;  %v643_v59 = vpop.f32.mrf.mxu0 }
  0xa1   : > { %v6242_v60 = vadd.f32 %v643_v59, %v6226_v54 }
  0xa3   : > { %5259 = vmatmul.msk.f32.vlgmr.msrb.gmra.mxu1 %vm905_vm1, %v832_v57  ;;  %v9267_v0 = vmax.f32 %v6242_v60, 0.0 }
  0xa4   : > { %5243 = vmatmul.msk.f32.gmra.mxu2 %vm430_vm0, %v409_v61  ;;  %v411_v61 = vld [vmem:[%s6114_s26 + $0x190] sm:$0xff] }
  0xa5   : > { %5245 = vmatmul.msk.f32.vlgmr.msra.gmra.mxu3 %vm430_vm0, %v411_v61  ;;  %v2974_v61 = vld [vmem:[%s9231_s6 + $0x70] sm:$0xff] }
  0xa6   : > { %2978 = vmatpush.msra.mxu2 %v2974_v61 }
  0xa8   : > { %v6253_v1 = vpop.f32.mrf.mxu1  ;;  %v646_v2 = vpop.f32.mrf.mxu0 }
  0xa9   : > { %v6259_v3 = vadd.f32 %v646_v2, %v6226_v54 }
  0xab   : > { %5260 = vmatmul.msk.f32.gmra.mxu1 %vm905_vm1, %v9267_v0  ;;  %v9266_v5 = vmax.f32 %v6259_v3, 0.0 }
  0xac   : > { %5244 = vmatmul.msk.f32.gmra.mxu2 %vm430_vm0, %v410_v9 }
  0xb0   : > { %v6264_v6 = vpop.f32.mrf.mxu1  ;;  %v649_v7 = vpop.f32.mrf.mxu0 }
  0xb1   : > { %v6270_v8 = vadd.f32 %v649_v7, %v6226_v54 }
  0xb3   : > { %5261 = vmatmul.msk.f32.gmra.mxu1 %vm905_vm1, %v9266_v5  ;;  %v9263_v11 = vmax.f32 %v6270_v8, 0.0 }
  0xb8   : > { %v6278_v12 = vpop.f32.mrf.mxu1  ;;  %v652_v13 = vpop.f32.mrf.mxu0 }
  0xb9   : > { %v6284_v14 = vadd.f32 %v652_v13, %v6226_v54 }
  0xbb   : > { %5262 = vmatmul.msk.f32.gmra.mxu1 %vm905_vm1, %v9263_v11  ;;  %v9261_v16 = vmax.f32 %v6284_v14, 0.0 }
  0xc0   : > { %v6289_v17 = vpop.f32.mrf.mxu1  ;;  %v655_v18 = vpop.f32.mrf.mxu0 }
  0xc1   : > { %v6295_v19 = vadd.f32 %v655_v18, %v6226_v54 }
  0xc3   : > { %5263 = vmatmul.msk.f32.gmra.mxu1 %vm905_vm1, %v9261_v16  ;;  %v9260_v23 = vmax.f32 %v6295_v19, 0.0 }
  0xc8   : > { %v6306_v24 = vpop.f32.mrf.mxu1  ;;  %v658_v25 = vpop.f32.mrf.mxu0 }
  0xc9   : > { %v6312_v26 = vadd.f32 %v658_v25, %v6226_v54  ;;  %v6410_v25 = vpop.f32.mrf.mxu2 }
  0xca   : > { %v6769_v0 = vadd.f32 %v6410_v25, %v6226_v54 }
  0xcb   : > { %5264 = vmatmul.msk.f32.gmra.mxu1 %vm905_vm1, %v9260_v23  ;;  %v9258_v28 = vmax.f32 %v6312_v26, 0.0 }
  0xd0   : > { %v6317_v29 = vpop.f32.mrf.mxu1  ;;  %v661_v30 = vpop.f32.mrf.mxu0 }
  0xd1   : > { %v6323_v31 = vadd.f32 %v661_v30, %v6226_v54 }
  0xd3   : > { %5265 = vmatmul.msk.f32.gmra.mxu1 %vm905_vm1, %v9258_v28  ;;  %v9257_v34 = vmax.f32 %v6323_v31, 0.0 }
  0xd8   : > { %v6331_v35 = vpop.f32.mrf.mxu1  ;;  %v664_v36 = vpop.f32.mrf.mxu0 }
  0xd9   : > { %v6337_v37 = vadd.f32 %v664_v36, %v6226_v54 }
  0xdb   : > { %5266 = vmatmul.msk.f32.gmra.mxu1 %vm905_vm1, %v9257_v34  ;;  %v9254_v39 = vmax.f32 %v6337_v37, 0.0  ;;  %v2971_v34 = vld [vmem:[%s9231_s6 + $0x58] sm:$0xff] }
  0xe0   : > { %v6342_v40 = vpop.f32.mrf.mxu1  ;;  %v667_v41 = vpop.f32.mrf.mxu0 }
  0xe1   : > { %v6348_v42 = vadd.f32 %v667_v41, %v6226_v54  ;;  %v6423_v41 = vpop.f32.mrf.mxu2 }
  0xe3   : > { %5267 = vmatmul.msk.f32.gmra.mxu1 %vm905_vm1, %v9254_v39  ;;  %v9251_v46 = vmax.f32 %v6348_v42, 0.0 }
  0xe8   : > { %v6359_v47 = vpop.f32.mrf.mxu1  ;;  %v670_v48 = vpop.f32.mrf.mxu0 }
  0xe9   : > { %v6365_v49 = vadd.f32 %v670_v48, %v6226_v54 }
  0xeb   : > { %5268 = vmatmul.msk.f32.gmra.mxu1 %vm905_vm1, %v9251_v46  ;;  %v9248_v52 = vmax.f32 %v6365_v49, 0.0  ;;  %v6616_v46 = vadd.f32 %v6342_v40, %v6226_v54  ;;  %v1911_v40 = vld [vmem:[%s9229_s4 + $0x10] sm:$0xff] }
  0xf0   : > { %v6370_v53 = vpop.f32.mrf.mxu1  ;;  %v673_v56 = vpop.f32.mrf.mxu0 }
  0xf1   : > { %v6376_v59 = vadd.f32 %v673_v56, %v6226_v54  ;;  %v6440_v56 = vpop.f32.mrf.mxu2 }
  0xf3   : > { %5269 = vmatmul.msk.f32.gmra.mxu1 %vm905_vm1, %v9248_v52  ;;  %v9247_v63 = vmax.f32 %v6376_v59, 0.0 }
  0xf8   : > { %v6384_v2 = vpop.f32.mrf.mxu1  ;;  %v676_v4 = vpop.f32.mrf.mxu0 }
  0xf9   : > { %v6390_v7 = vadd.f32 %v676_v4, %v6226_v54  ;;  %v6449_v4 = vld [vmem:[%s9234_s9 + $0x1] ss:$0 sm:$0xff]  ;;  %v6469_v62 = vpop.f32.mrf.mxu2 }
  0xfb   : > { %5270 = vmatmul.msk.f32.gmra.mxu1 %vm905_vm1, %v9247_v63  ;;  %v9245_v10 = vmax.f32 %v6390_v7, 0.0 }
 0x100   : > { %v6395_v13 = vpop.f32.mrf.mxu1  ;;  %v679_v15 = vpop.f32.mrf.mxu0 }
 0x101   : > { %v6401_v18 = vadd.f32 %v679_v15, %v6226_v54 }
 0x103   : > { %5271 = vmatmul.msk.f32.gmra.mxu1 %vm905_vm1, %v9245_v10  ;;  %v9243_v22 = vmax.f32 %v6401_v18, 0.0 }
 0x108   : > { %v6412_v27 = vpop.f32.mrf.mxu1  ;;  %v682_v30 = vpop.f32.mrf.mxu0 }
 0x109   : > { %v6418_v32 = vadd.f32 %v682_v30, %v6226_v54  ;;  %v2616_v30 = vld [vmem:[%s9230_s5 + $0x50] sm:$0xff] }
 0x10a   : > { %2628 = vmatpush.msra.mxu1 %v2616_v30 }
 0x10b   : > { %5272 = vmatmul.msk.f32.gmra.mxu1 %vm905_vm1, %v9243_v22  ;;  %v9239_v33 = vmax.f32 %v6418_v32, 0.0 }
 0x110   : > { %v6421_v36 = vpop.f32.mrf.mxu1  ;;  %v685_v38 = vpop.f32.mrf.mxu0 }
 0x111   : > { %v6429_v43 = vadd.f32 %v685_v38, %v6226_v54  ;;  %v6462_v38 = vadd.f32 %v6219_v50, %v6226_v54  ;;  %v6479_v50 = vadd.f32 %v6236_v58, %v6226_v54  ;;  %v6496_v58 = vadd.f32 %v6253_v1, %v6226_v54  ;;  %v1919_v1 = vld [vmem:[%s9229_s4 + $0x50] sm:$0xff] }
 0x113   : > { %5273 = vmatmul.msk.f32.gmra.mxu1 %vm905_vm1, %v9239_v33  ;;  %v9238_v44 = vmax.f32 %v6429_v43, 0.0 }
 0x118   : > { %v6432_v45 = vpop.f32.mrf.mxu1  ;;  %v688_v48 = vpop.f32.mrf.mxu0 }
 0x119   : > { %v6438_v51 = vadd.f32 %v688_v48, %v6226_v54  ;;  %v412_v48 = vld [vmem:[%s6114_s26 + $0x198] sm:$0xff] }
 0x11a   : > { %5246 = vmatmul.msk.f32.gmra.mxu3 %vm430_vm0, %v412_v48  ;;  %v413_v48 = vld [vmem:[%s6114_s26 + $0x1a0] sm:$0xff] }
 0x11b   : > { %5274 = vmatmul.msk.f32.gmra.mxu1 %vm905_vm1, %v9238_v44  ;;  %v9236_v9 = vmax.f32 %v6438_v51, 0.0 }
 0x120   : > { %v1115_v15 = vpop.f32.mrf.mxu1 }
 0x121   : > { %v1116_v20 = vadd.f32 %v1115_v15, %v6449_v4 }
 0x122   : > { %5247 = vmatmul.msk.f32.gmra.mxu3 %vm430_vm0, %v413_v48  ;;  %v9240_v48 = vmax.f32 %v6496_v58, 0.0 }
 0x123   : > { %v1307_v21 = vmax.f32 %v1116_v20, 0.0  ;;  %5275 = vmatmul.msk.f32.gmra.mxu1 %vm905_vm1, %v9236_v9  ;;  %v9237_v20 = vmax.f32 %v6462_v38, 0.0 }
 0x125   : > { %5323 = vmatmul.msk.f32.vlgmr.msrb.gmra.mxu2 %vm905_vm1, %v1307_v21  ;;  %v1921_v21 = vld [vmem:[%s9229_s4 + $0x60] sm:$0xff] }
 0x126   : > { %2133 = vmatpush.msrb.mxu3 %v1921_v21 }
 0x128   : > { %v1118_v15 = vpop.f32.mrf.mxu1  ;;  %2134 = vmatpush.msrb.mxu3 %v1919_v1 }
 0x129   : > { %v1119_v30 = vadd.f32 %v1118_v15, %v6449_v4  ;;  %v6487_v15 = vpop.f32.mrf.mxu2 }
 0x12b   : > { %v1308_v9 = vmax.f32 %v1119_v30, 0.0  ;;  %5276 = vmatmul.msk.f32.gmra.mxu1 %vm905_vm1, %v9237_v20  ;;  %v9241_v30 = vmax.f32 %v6479_v50, 0.0 }
 0x12d   : > { %5324 = vmatmul.msk.f32.gmra.mxu2 %vm905_vm1, %v1308_v9  ;;  %v414_v9 = vld [vmem:[%s6114_s26 + $0x1a8] sm:$0xff] }
 0x12e   : > { %5248 = vmatmul.msk.f32.gmra.mxu3 %vm430_vm0, %v414_v9  ;;  %v415_v9 = vld [vmem:[%s6114_s26 + $0x1b0] sm:$0xff] }
 0x130   : > { %v1121_v61 = vpop.f32.mrf.mxu1 }
 0x131   : > { %v1122_v20 = vadd.f32 %v1121_v61, %v6449_v4 }
 0x133   : > { %v1309_v44 = vmax.f32 %v1122_v20, 0.0  ;;  %5277 = vmatmul.msk.f32.gmra.mxu1 %vm905_vm1, %v9241_v30  ;;  %v6503_v20 = vpop.f32.mrf.mxu2 }
 0x135   : > { %5325 = vmatmul.msk.f32.gmra.mxu2 %vm905_vm1, %v1309_v44  ;;  %v6513_v44 = vadd.f32 %v6264_v6, %v6226_v54  ;;  %v2615_v6 = vld [vmem:[%s9230_s5 + $0x48] sm:$0xff] }
 0x136   : > { %5249 = vmatmul.msk.f32.gmra.mxu3 %vm430_vm0, %v415_v9  ;;  %2629 = vmatpush.msra.mxu1 %v2615_v6  ;;  %v416_v9 = vld [vmem:[%s6114_s26 + $0x1b8] sm:$0xff] }
 0x138   : > { %v1124_v21 = vpop.f32.mrf.mxu1 }
 0x139   : > { %v1125_v61 = vadd.f32 %v1124_v21, %v6449_v4 }
 0x13b   : > { %v1310_v33 = vmax.f32 %v1125_v61, 0.0  ;;  %5278 = vmatmul.msk.f32.gmra.mxu1 %vm905_vm1, %v9240_v48  ;;  %v9242_v61 = vmax.f32 %v6513_v44, 0.0  ;;  %v6526_v1 = vpop.f32.mrf.mxu2 }
 0x13d   : > { %5326 = vmatmul.msk.f32.gmra.mxu2 %vm905_vm1, %v1310_v33  ;;  %v6530_v33 = vadd.f32 %v6278_v12, %v6226_v54  ;;  %v1917_v12 = vld [vmem:[%s9229_s4 + $0x40] sm:$0xff] }
 0x13e   : > { %5250 = vmatmul.msk.f32.gmra.mxu3 %vm430_vm0, %v416_v9  ;;  %v417_v9 = vld [vmem:[%s6114_s26 + $0x1c0] sm:$0xff] }
 0x13f   : > { %2135 = vmatpush.msrb.mxu3 %v1917_v12  ;;  %v1915_v12 = vld [vmem:[%s9229_s4 + $0x30] sm:$0xff] }
 0x140   : > { %v1127_v21 = vpop.f32.mrf.mxu1 }
 0x141   : > { %v1128_v48 = vadd.f32 %v1127_v21, %v6449_v4  ;;  %2136 = vmatpush.msrb.mxu3 %v1915_v12 }
 0x143   : > { %v1311_v30 = vmax.f32 %v1128_v48, 0.0  ;;  %5279 = vmatmul.msk.f32.gmra.mxu1 %vm905_vm1, %v9242_v61  ;;  %v2973_v48 = vld [vmem:[%s9231_s6 + $0x68] sm:$0xff]  ;;  %v9244_v61 = vmax.f32 %v6530_v33, 0.0 }
 0x144   : > { %2979 = vmatpush.msra.mxu2 %v2973_v48  ;;  %v6552_v48 = vpop.f32.mrf.mxu2 }
 0x145   : > { %5327 = vmatmul.msk.f32.gmra.mxu2 %vm905_vm1, %v1311_v30  ;;  %v6548_v30 = vadd.f32 %v6289_v17, %v6226_v54  ;;  %v6562_v17 = vadd.f32 %v6306_v24, %v6226_v54  ;;  %v6579_v24 = vadd.f32 %v6317_v29, %v6226_v54  ;;  %v2614_v29 = vld [vmem:[%s9230_s5 + $0x40] sm:$0xff] }
 0x146   : > { %5251 = vmatmul.msk.f32.gmra.mxu3 %vm430_vm0, %v417_v9  ;;  %2630 = vmatpush.msra.mxu1 %v2614_v29 }
 0x147   : > { %v9249_v12 = vmax.f32 %v6579_v24, 0.0 }
 0x148   : > { %v1130_v21 = vpop.f32.mrf.mxu1 }
 0x149   : > { %v1131_v6 = vadd.f32 %v1130_v21, %v6449_v4 }
 0x14b   : > { %v1312_v22 = vmax.f32 %v1131_v6, 0.0  ;;  %5280 = vmatmul.msk.f32.gmra.mxu1 %vm905_vm1, %v9244_v61  ;;  %v9246_v6 = vmax.f32 %v6548_v30, 0.0 }
 0x14c   : > { %v6570_v9 = vpop.f32.mrf.mxu2 }
 0x14d   : > { %5328 = vmatmul.msk.f32.gmra.mxu2 %vm905_vm1, %v1312_v22  ;;  %v418_v22 = vld [vmem:[%s6114_s26 + $0x1c8] sm:$0xff] }
 0x14e   : > { %5252 = vmatmul.msk.f32.gmra.mxu3 %vm430_vm0, %v418_v22 }
 0x150   : > { %v1133_v21 = vpop.f32.mrf.mxu1 }
 0x151   : > { %v1134_v61 = vadd.f32 %v1133_v21, %v6449_v4  ;;  %v9250_v21 = vmax.f32 %v6562_v17, 0.0 }
 0x153   : > { %v1313_v10 = vmax.f32 %v1134_v61, 0.0  ;;  %5281 = vmatmul.msk.f32.gmra.mxu1 %vm905_vm1, %v9246_v6 }
 0x155   : > { %5329 = vmatmul.msk.f32.gmra.mxu2 %vm905_vm1, %v1313_v10  ;;  %v419_v10 = vld [vmem:[%s6114_s26 + $0x1d0] sm:$0xff] }
 0x156   : > { %5253 = vmatmul.msk.f32.gmra.mxu3 %vm430_vm0, %v419_v10  ;;  %v1913_v10 = vld [vmem:[%s9229_s4 + $0x20] sm:$0xff] }
 0x157   : > { %2137 = vmatpush.msrb.mxu3 %v1913_v10  ;;  %v421_v10 = vld [vmem:[%s6114_s26 + $0x1e0] sm:$0xff] }
 0x158   : > { %v1136_v61 = vpop.f32.mrf.mxu1 }
 0x159   : > { %v1137_v6 = vadd.f32 %v1136_v61, %v6449_v4  ;;  %2138 = vmatpush.msrb.mxu3 %v1911_v40  ;;  %v1924_v40 = vld [vmem:[%s9229_s4 + $0x78] sm:$0xff] }
 0x15a   : > { %2341 = vmatpush.msrb.mxu0 %v1924_v40  ;;  %v2613_v40 = vld [vmem:[%s9230_s5 + $0x38] sm:$0xff] }
 0x15b   : > { %v1314_v63 = vmax.f32 %v1137_v6, 0.0  ;;  %5282 = vmatmul.msk.f32.gmra.mxu1 %vm905_vm1, %v9250_v21  ;;  %v6586_v6 = vpop.f32.mrf.mxu2 }
 0x15c   : > { %2631 = vmatpush.msra.mxu1 %v2613_v40 }
 0x15d   : > { %5330 = vmatmul.msk.f32.gmra.mxu2 %vm905_vm1, %v1314_v63  ;;  %v6596_v63 = vadd.f32 %v6331_v35, %v6226_v54 }
 0x15f   : > { %v9252_v35 = vmax.f32 %v6596_v63, 0.0 }
 0x160   : > { %v1139_v22 = vpop.f32.mrf.mxu1 }
 0x161   : > { %v1140_v61 = vadd.f32 %v1139_v22, %v6449_v4  ;;  %v420_v22 = vld [vmem:[%s6114_s26 + $0x1d8] sm:$0xff] }
 0x162   : > { %5254 = vmatmul.msk.f32.gmra.mxu3 %vm430_vm0, %v420_v22 }
 0x163   : > { %v1315_v52 = vmax.f32 %v1140_v61, 0.0  ;;  %5283 = vmatmul.msk.f32.gmra.mxu1 %vm905_vm1, %v9249_v12  ;;  %v2972_v61 = vld [vmem:[%s9231_s6 + $0x60] sm:$0xff] }
 0x164   : > { %2980 = vmatpush.msra.mxu2 %v2972_v61  ;;  %v9253_v61 = vmax.f32 %v6616_v46, 0.0 }
 0x165   : > { %5331 = vmatmul.msk.f32.gmra.mxu2 %vm905_vm1, %v1315_v52  ;;  %v6612_v52 = vpop.f32.mrf.mxu2 }
 0x166   : > { %2981 = vmatpush.msra.mxu2 %v2971_v34 }
 0x168   : > { %v1142_v29 = vpop.f32.mrf.mxu1 }
 0x169   : > { %v1143_v12 = vadd.f32 %v1142_v29, %v6449_v4 }
 0x16a   : > { %5255 = vmatmul.msk.f32.gmra.mxu3 %vm430_vm0, %v421_v10  ;;  %v422_v10 = vld [vmem:[%s6114_s26 + $0x1e8] sm:$0xff] }
 0x16b   : > { %v1316_v21 = vmax.f32 %v1143_v12, 0.0  ;;  %5284 = vmatmul.msk.f32.gmra.mxu1 %vm905_vm1, %v9252_v35 }
 0x16d   : > { %5332 = vmatmul.msk.f32.gmra.mxu2 %vm905_vm1, %v1316_v21  ;;  %v6631_v21 = vadd.f32 %v6359_v47, %v6226_v54  ;;  %v6635_v35 = vpop.f32.mrf.mxu2  ;;  %v6645_v47 = vadd.f32 %v6370_v53, %v6226_v54 }
 0x170   : > { %v1145_v22 = vpop.f32.mrf.mxu1 }
 0x171   : > { %v1146_v12 = vadd.f32 %v1145_v22, %v6449_v4 }
 0x172   : > { %5256 = vmatmul.msk.f32.gmra.mxu3 %vm430_vm0, %v422_v10 }
 0x173   : > { %v1317_v29 = vmax.f32 %v1146_v12, 0.0  ;;  %5285 = vmatmul.msk.f32.gmra.mxu1 %vm905_vm1, %v9253_v61  ;;  %v9255_v12 = vmax.f32 %v6631_v21, 0.0 }
 0x175   : > { %5333 = vmatmul.msk.f32.gmra.mxu2 %vm905_vm1, %v1317_v29  ;;  %v423_v29 = vld [vmem:[%s6114_s26 + $0x1f0] sm:$0xff] }
 0x178   : > { %v1148_v22 = vpop.f32.mrf.mxu1 }
 0x179   : > { %v1149_v61 = vadd.f32 %v1148_v22, %v6449_v4  ;;  %v6653_v22 = vpop.f32.mrf.mxu2 }
 0x17a   : > { %5257 = vmatmul.msk.f32.gmra.mxu3 %vm430_vm0, %v423_v29  ;;  %v1909_v29 = vld [vmem:[%s9229_s4] sm:$0xff] }
 0x17b   : > { %v1318_v39 = vmax.f32 %v1149_v61, 0.0  ;;  %5286 = vmatmul.msk.f32.gmra.mxu1 %vm905_vm1, %v9255_v12  ;;  %v9256_v61 = vmax.f32 %v6645_v47, 0.0  ;;  %2139 = vmatpush.msrb.mxu3 %v1909_v29 }
 0x17d   : > { %5334 = vmatmul.msk.f32.gmra.mxu2 %vm905_vm1, %v1318_v39  ;;  %v1922_v39 = vld [vmem:[%s9229_s4 + $0x68] sm:$0xff] }
 0x17e   : > { %2342 = vmatpush.msrb.mxu0 %v1922_v39  ;;  %v1918_v39 = vld [vmem:[%s9229_s4 + $0x48] sm:$0xff] }
 0x180   : > { %v1151_v10 = vpop.f32.mrf.mxu1 }
 0x181   : > { %v1152_v12 = vadd.f32 %v1151_v10, %v6449_v4  ;;  %v1920_v10 = vld [vmem:[%s9229_s4 + $0x58] sm:$0xff]  ;;  %v6693_v28 = vpop.f32.mrf.mxu2 }
 0x182   : > { %2343 = vmatpush.msrb.mxu0 %v1920_v10  ;;  %v1914_v10 = vld [vmem:[%s9229_s4 + $0x28] sm:$0xff] }
 0x183   : > { %v1319_v53 = vmax.f32 %v1152_v12, 0.0  ;;  %5287 = vmatmul.msk.f32.gmra.mxu1 %vm905_vm1, %v9256_v61  ;;  %v6674_v12 = vadd.f32 %v6384_v2, %v6226_v54  ;;  %v424_v61 = vld [vmem:[%s6114_s26 + $0x1f8] sm:$0xff]  ;;  %s5125_s26 = sshll.u32 %s5122_s25, 4  ;;  %s5126_s26 = int_to_ptr.hbm [resolvable:$true] %s5125_s26 }
 0x184   : > { %2344 = vmatpush.msrb.mxu0 %v1918_v39  ;;  %5258 = vmatmul.msk.f32.gmra.mxu3 %vm430_vm0, %v424_v61  ;;  %v1916_v2 = vld [vmem:[%s9229_s4 + $0x38] sm:$0xff]  ;;  %v6703_v39 = vadd.f32 %v6395_v13, %v6226_v54  ;;  %s5943_s28 = sshra.s32 %s5126_s26, 4  ;;  %s5944_s28 = int_to_ptr.hbm [resolvable:$true] %s5943_s28 }
 0x185   : > { %5335 = vmatmul.msk.f32.gmra.mxu2 %vm905_vm1, %v1319_v53  ;;  %v9259_v53 = vmax.f32 %v6674_v12, 0.0  ;;  %v1912_v61 = vld [vmem:[%s9229_s4 + $0x18] sm:$0xff]  ;;  %s5945_s29 = scalar_lea.hbm %s5944_s28, 512  ;;  %p5950_p0 = scmp.lt.s32.totalorder %s5944_s28, %s9235_s10 }
 0x186   : > { %2345 = vmatpush.msrb.mxu0 %v1916_v2  ;;  %v1910_v2 = vld [vmem:[%s9229_s4 + $0x8] sm:$0xff]  ;;  %p5946_p11 = scmp.ne.s32.totalorder %s5944_s28, %s5945_s29  ;;  %p5951_p1 = scmp.lt.s32.totalorder %s5949_s18, %s5945_s29 }
 0x188   : > { %v1154_v29 = vpop.f32.mrf.mxu1  ;;  %2346 = vmatpush.msrb.mxu0 %v1914_v10  ;;  %v9262_v10 = vmax.f32 %v6703_v39, 0.0  ;;  %p5947_p12 = pnand %p5946_p11, %p6088_p5  ;;  %p5952_p2 = por %p5951_p1, %p5950_p0 }
 0x189   : > { %v1155_v40 = vadd.f32 %v1154_v29, %v6449_v4  ;;  %v3265_v29 = vld [vmem:[%s9232_s7 + $0x78] sm:$0xff] }
 0x18a   : > { %2347 = vmatpush.msrb.mxu0 %v1912_v61  ;;  %3267 = vmatpush.msra.mxu3 %v3265_v29  ;;  %v6721_v61 = vadd.f32 %v6412_v27, %v6226_v54  ;;  %p5948_p13 = pneg %p5947_p12 }
 0x18b   : > { %v1320_v34 = vmax.f32 %v1155_v40, 0.0  ;;  %5288 = vmatmul.msk.f32.gmra.mxu1 %vm905_vm1, %v9259_v53 }
 0x18c   : > { %2348 = vmatpush.msrb.mxu0 %v1910_v2  ;;  %v9265_v29 = vmax.f32 %v6721_v61, 0.0  ;;  %3268 = vmatpush.msra.mxu3 %v3264_v55  ;;  %p5953_p3 = pnand %p5952_p2, %p5948_p13 }
 0x18d   : > { %5336 = vmatmul.msk.f32.gmra.mxu2 %vm905_vm1, %v1320_v34  ;;  %v6717_v34 = vpop.f32.mrf.mxu2 }
 0x190   : > { %v1157_v40 = vpop.f32.mrf.mxu1 }
 0x191   : > { %v1158_v53 = vadd.f32 %v1157_v40, %v6449_v4 }
 0x193   : > { %v1321_v13 = vmax.f32 %v1158_v53, 0.0  ;;  %5289 = vmatmul.msk.f32.gmra.mxu1 %vm905_vm1, %v9262_v10  ;;  %v6731_v53 = vadd.f32 %v6421_v36, %v6226_v54  ;;  %v6749_v36 = vpop.f32.mrf.mxu3 }
 0x195   : > { %5337 = vmatmul.msk.f32.gmra.mxu2 %vm905_vm1, %v1321_v13  ;;  %9388 = vst [vmem:[#allocation5_spill] sm:$0xff] %v6731_v53  ;;  %v6734_v27 = vpop.f32.mrf.mxu2  ;;  %v9264_v13 = vmax.f32 %v6731_v53, 0.0 }
 0x198   : > { %v1160_v2 = vpop.f32.mrf.mxu1 }
 0x199   : > { %v1161_v23 = vadd.f32 %v1160_v2, %v6449_v4  ;;  %v2970_v2 = vld [vmem:[%s9231_s6 + $0x50] sm:$0xff] }
 0x19a   : > { %2982 = vmatpush.msra.mxu2 %v2970_v2 }
 0x19b   : > { %v1322_v16 = vmax.f32 %v1161_v23, 0.0  ;;  %5290 = vmatmul.msk.f32.gmra.mxu1 %vm905_vm1, %v9265_v29  ;;  %v2612_v23 = vld [vmem:[%s9230_s5 + $0x30] sm:$0xff] }
 0x19c   : > { %2632 = vmatpush.msra.mxu1 %v2612_v23 }
 0x19d   : > { %5338 = vmatmul.msk.f32.gmra.mxu2 %vm905_vm1, %v1322_v16  ;;  %v6746_v16 = vadd.f32 %v6432_v45, %v6226_v54 }
 0x19f   : > { %v9270_v23 = vmax.f32 %v6746_v16, 0.0 }
 0x1a0   : > { %v1163_v40 = vpop.f32.mrf.mxu1 }
 0x1a1   : > { %v1164_v10 = vadd.f32 %v1163_v40, %v6449_v4 }
 0x1a3   : > { %v1323_v11 = vmax.f32 %v1164_v10, 0.0  ;;  %5291 = vmatmul.msk.f32.gmra.mxu1 %vm905_vm1, %v9264_v13  ;;  %v6754_v10 = vld [vmem:[%s9234_s9 + $0x2] ss:$0 sm:$0xff] }
 0x1a5   : > { %5339 = vmatmul.msk.f32.gmra.mxu2 %vm905_vm1, %v1323_v11 }
 0x1a8   : > { %v1166_v40 = vpop.f32.mrf.mxu1  ;;  %v1589_v13 = vpop.f32.mrf.mxu2 }
 0x1a9   : > { %v1167_v45 = vadd.f32 %v1166_v40, %v6449_v4  ;;  %v1590_v11 = vadd.f32 %v1589_v13, %v6754_v10  ;;  %v6774_v13 = vpop.f32.mrf.mxu3  ;;  %v9269_v40 = vmax.f32 %v6769_v0, 0.0 }
 0x1ab   : > { %v1324_v29 = vmax.f32 %v1167_v45, 0.0  ;;  %v1781_v5 = vadd.f32 %v1590_v11, %v832_v57  ;;  %5292 = vmatmul.msk.f32.gmra.mxu1 %vm905_vm1, %v9270_v23  ;;  %v9389_v45 = vmax.f32 %v6242_v60, 0.0 }
 0x1ad   : > { %v1845_v53 = vmax.f32 %v1781_v5, 0.0  ;;  %5340 = vmatmul.msk.f32.gmra.mxu2 %vm905_vm1, %v1324_v29 }
 0x1af   : > { %5388 = vmatmul.msk.f32.vlgmr.msrb.gmra.mxu3 %vm905_vm1, %v1845_v53  ;;  %5452 = vmatmul.msk.f32.vlgmr.msrb.gmra.mxu0 %vm905_vm1, %v1845_v53  ;;  %v6789_v53 = vadd.f32 %v6423_v41, %v6226_v54  ;;  %v9390_v41 = vmax.f32 %v6259_v3, 0.0 }
 0x1b0   : > { %v1169_v57 = vpop.f32.mrf.mxu1  ;;  %v1592_v2 = vpop.f32.mrf.mxu2 }
 0x1b1   : > { %v1170_v25 = vadd.f32 %v1169_v57, %v6449_v4  ;;  %v1593_v5 = vadd.f32 %v1592_v2, %v6754_v10  ;;  %v9287_v60 = vmax.f32 %v6789_v53, 0.0 }
 0x1b3   : > { %v1325_v29 = vmax.f32 %v1170_v25, 0.0  ;;  %v1782_v11 = vadd.f32 %v1593_v5, %v9389_v45  ;;  %5293 = vmatmul.msk.f32.gmra.mxu1 %vm905_vm1, %v9269_v40  ;;  %v6797_v45 = vpop.f32.mrf.mxu3 }
 0x1b5   : > { %5341 = vmatmul.msk.f32.gmra.mxu2 %vm905_vm1, %v1325_v29  ;;  %v1846_v55 = vmax.f32 %v1782_v11, 0.0  ;;  %v6806_v29 = vadd.f32 %v6440_v56, %v6226_v54 }
 0x1b7   : > { %5389 = vmatmul.msk.f32.gmra.mxu3 %vm905_vm1, %v1846_v55  ;;  %5453 = vmatmul.msk.f32.gmra.mxu0 %vm905_vm1, %v1846_v55  ;;  %v9271_v3 = vmax.f32 %v6806_v29, 0.0 }
 0x1b8   : > { %v1172_v57 = vpop.f32.mrf.mxu1  ;;  %v1595_v2 = vpop.f32.mrf.mxu2 }
 0x1b9   : > { %v1173_v25 = vadd.f32 %v1172_v57, %v6449_v4  ;;  %v1596_v5 = vadd.f32 %v1595_v2, %v6754_v10 }
 0x1bb   : > { %v1326_v40 = vmax.f32 %v1173_v25, 0.0  ;;  %v1783_v23 = vadd.f32 %v1596_v5, %v9390_v41  ;;  %5294 = vmatmul.msk.f32.gmra.mxu1 %vm905_vm1, %v9287_v60  ;;  %v9391_v41 = vmax.f32 %v6270_v8, 0.0  ;;  %v2969_v8 = vld [vmem:[%s9231_s6 + $0x48] sm:$0xff] }
 0x1bc   : > { %2983 = vmatpush.msra.mxu2 %v2969_v8 }
 0x1bd   : > { %5342 = vmatmul.msk.f32.gmra.mxu2 %vm905_vm1, %v1326_v40  ;;  %v1847_v11 = vmax.f32 %v1783_v23, 0.0  ;;  %v6819_v23 = vpop.f32.mrf.mxu3  ;;  %v2611_v40 = vld [vmem:[%s9230_s5 + $0x28] sm:$0xff] }
 0x1be   : > { %2633 = vmatpush.msra.mxu1 %v2611_v40 }
 0x1bf   : > { %5390 = vmatmul.msk.f32.gmra.mxu3 %vm905_vm1, %v1847_v11  ;;  %5454 = vmatmul.msk.f32.gmra.mxu0 %vm905_vm1, %v1847_v11  ;;  %v6826_v11 = vadd.f32 %v6469_v62, %v6226_v54 }
 0x1c0   : > { %v1175_v55 = vpop.f32.mrf.mxu1  ;;  %v1598_v57 = vpop.f32.mrf.mxu2 }
 0x1c1   : > { %v1176_v2 = vadd.f32 %v1175_v55, %v6449_v4  ;;  %v1599_v25 = vadd.f32 %v1598_v57, %v6754_v10 }
 0x1c3   : > { %v1327_v5 = vmax.f32 %v1176_v2, 0.0  ;;  %v1784_v56 = vadd.f32 %v1599_v25, %v9391_v41  ;;  %5295 = vmatmul.msk.f32.gmra.mxu1 %vm905_vm1, %v9271_v3  ;;  %v9273_v25 = vmax.f32 %v6826_v11, 0.0 }
 0x1c5   : > { %5343 = vmatmul.msk.f32.gmra.mxu2 %vm905_vm1, %v1327_v5  ;;  %v1848_v55 = vmax.f32 %v1784_v56, 0.0  ;;  %v9392_v5 = vmax.f32 %v6284_v14, 0.0  ;;  %v6847_v3 = vpop.f32.mrf.mxu3  ;;  %v3263_v14 = vld [vmem:[%s9232_s7 + $0x68] sm:$0xff] }
 0x1c6   : > { %3269 = vmatpush.msra.mxu3 %v3263_v14 }
 0x1c7   : > { %5391 = vmatmul.msk.f32.gmra.mxu3 %vm905_vm1, %v1848_v55  ;;  %5455 = vmatmul.msk.f32.gmra.mxu0 %vm905_vm1, %v1848_v55  ;;  %v6844_v55 = vadd.f32 %v6487_v15, %v6226_v54 }
 0x1c8   : > { %v1178_v57 = vpop.f32.mrf.mxu1  ;;  %v1601_v2 = vpop.f32.mrf.mxu2 }
 0x1c9   : > { %v1179_v41 = vadd.f32 %v1178_v57, %v6449_v4  ;;  %v1602_v62 = vadd.f32 %v1601_v2, %v6754_v10 }
 0x1cb   : > { %v1328_v40 = vmax.f32 %v1179_v41, 0.0  ;;  %v1785_v56 = vadd.f32 %v1602_v62, %v9392_v5  ;;  %5296 = vmatmul.msk.f32.gmra.mxu1 %vm905_vm1, %v9273_v25  ;;  %v9272_v41 = vmax.f32 %v6844_v55, 0.0  ;;  %v9393_v5 = vmax.f32 %v6295_v19, 0.0 }
 0x1cd   : > { %5344 = vmatmul.msk.f32.gmra.mxu2 %vm905_vm1, %v1328_v40  ;;  %v1849_v8 = vmax.f32 %v1785_v56, 0.0 }
 0x1cf   : > { %5392 = vmatmul.msk.f32.gmra.mxu3 %vm905_vm1, %v1849_v8  ;;  %5456 = vmatmul.msk.f32.gmra.mxu0 %vm905_vm1, %v1849_v8  ;;  %v6864_v8 = vadd.f32 %v6503_v20, %v6226_v54  ;;  %v9394_v20 = vmax.f32 %v6312_v26, 0.0 }
 0x1d0   : > { %v1181_v57 = vpop.f32.mrf.mxu1  ;;  %v1604_v2 = vpop.f32.mrf.mxu2 }
 0x1d1   : > { %v1182_v15 = vadd.f32 %v1181_v57, %v6449_v4  ;;  %v1605_v62 = vadd.f32 %v1604_v2, %v6754_v10  ;;  %v6869_v57 = vpop.f32.mrf.mxu3 }
 0x1d3   : > { %v1329_v40 = vmax.f32 %v1182_v15, 0.0  ;;  %v1786_v56 = vadd.f32 %v1605_v62, %v9393_v5  ;;  %5297 = vmatmul.msk.f32.gmra.mxu1 %vm905_vm1, %v9272_v41  ;;  %v9274_v15 = vmax.f32 %v6864_v8, 0.0 }
 0x1d5   : > { %5345 = vmatmul.msk.f32.gmra.mxu2 %vm905_vm1, %v1329_v40  ;;  %v1850_v14 = vmax.f32 %v1786_v56, 0.0  ;;  %v6881_v40 = vadd.f32 %v6526_v1, %v6226_v54  ;;  %v9395_v1 = vmax.f32 %v6323_v31, 0.0  ;;  %v2968_v31 = vld [vmem:[%s9231_s6 + $0x40] sm:$0xff] }
 0x1d6   : > { %2984 = vmatpush.msra.mxu2 %v2968_v31 }
 0x1d7   : > { %5393 = vmatmul.msk.f32.gmra.mxu3 %vm905_vm1, %v1850_v14  ;;  %5457 = vmatmul.msk.f32.gmra.mxu0 %vm905_vm1, %v1850_v14  ;;  %v9285_v26 = vmax.f32 %v6881_v40, 0.0 }
 0x1d8   : > { %v1184_v2 = vpop.f32.mrf.mxu1  ;;  %v1607_v19 = vpop.f32.mrf.mxu2 }
 0x1d9   : > { %v1185_v62 = vadd.f32 %v1184_v2, %v6449_v4  ;;  %v1608_v5 = vadd.f32 %v1607_v19, %v6754_v10 }
 0x1db   : > { %v1330_v41 = vmax.f32 %v1185_v62, 0.0  ;;  %v1787_v25 = vadd.f32 %v1608_v5, %v9394_v20  ;;  %5298 = vmatmul.msk.f32.gmra.mxu1 %vm905_vm1, %v9274_v15  ;;  %v6889_v5 = vpop.f32.mrf.mxu3 }
 0x1dd   : > { %5346 = vmatmul.msk.f32.gmra.mxu2 %vm905_vm1, %v1330_v41  ;;  %v1851_v56 = vmax.f32 %v1787_v25, 0.0  ;;  %v6898_v25 = vadd.f32 %v6552_v48, %v6226_v54 }
 0x1df   : > { %5394 = vmatmul.msk.f32.gmra.mxu3 %vm905_vm1, %v1851_v56  ;;  %5458 = vmatmul.msk.f32.gmra.mxu0 %vm905_vm1, %v1851_v56  ;;  %v2610_v56 = vld [vmem:[%s9230_s5 + $0x20] sm:$0xff]  ;;  %v9275_v48 = vmax.f32 %v6898_v25, 0.0 }
 0x1e0   : > { %v1187_v14 = vpop.f32.mrf.mxu1  ;;  %v1610_v2 = vpop.f32.mrf.mxu2  ;;  %2634 = vmatpush.msra.mxu1 %v2610_v56  ;;  %v6921_v56 = vadd.f32 %v6570_v9, %v6226_v54 }
 0x1e1   : > { %v1188_v19 = vadd.f32 %v1187_v14, %v6449_v4  ;;  %v1611_v62 = vadd.f32 %v1610_v2, %v6754_v10 }
 0x1e3   : > { %v1331_v20 = vmax.f32 %v1188_v19, 0.0  ;;  %v1788_v15 = vadd.f32 %v1611_v62, %v9395_v1  ;;  %5299 = vmatmul.msk.f32.gmra.mxu1 %vm905_vm1, %v9285_v26 }
 0x1e5   : > { %5347 = vmatmul.msk.f32.gmra.mxu2 %vm905_vm1, %v1331_v20  ;;  %v1852_v41 = vmax.f32 %v1788_v15, 0.0  ;;  %v9396_v20 = vmax.f32 %v6337_v37, 0.0  ;;  %v3262_v37 = vld [vmem:[%s9232_s7 + $0x60] sm:$0xff] }
 0x1e6   : > { %3270 = vmatpush.msra.mxu3 %v3262_v37 }
 0x1e7   : > { %5395 = vmatmul.msk.f32.gmra.mxu3 %vm905_vm1, %v1852_v41  ;;  %5459 = vmatmul.msk.f32.gmra.mxu0 %vm905_vm1, %v1852_v41  ;;  %v6917_v41 = vpop.f32.mrf.mxu3 }
 0x1e8   : > { %v1190_v14 = vpop.f32.mrf.mxu1  ;;  %v1613_v2 = vpop.f32.mrf.mxu2 }
 0x1e9   : > { %v1191_v15 = vadd.f32 %v1190_v14, %v6449_v4  ;;  %v1614_v19 = vadd.f32 %v1613_v2, %v6754_v10 }
 0x1eb   : > { %v1332_v62 = vmax.f32 %v1191_v15, 0.0  ;;  %v1789_v1 = vadd.f32 %v1614_v19, %v9396_v20  ;;  %5300 = vmatmul.msk.f32.gmra.mxu1 %vm905_vm1, %v9275_v48  ;;  %v9283_v15 = vmax.f32 %v6921_v56, 0.0 }
 0x1ed   : > { %5348 = vmatmul.msk.f32.gmra.mxu2 %vm905_vm1, %v1332_v62  ;;  %v1853_v31 = vmax.f32 %v1789_v1, 0.0  ;;  %v9397_v62 = vmax.f32 %v6348_v42, 0.0 }
 0x1ef   : > { %5396 = vmatmul.msk.f32.gmra.mxu3 %vm905_vm1, %v1853_v31  ;;  %5460 = vmatmul.msk.f32.gmra.mxu0 %vm905_vm1, %v1853_v31  ;;  %v6939_v31 = vadd.f32 %v6586_v6, %v6226_v54  ;;  %v6942_v48 = vpop.f32.mrf.mxu3  ;;  %v9398_v54 = vmax.f32 %v6365_v49, 0.0 }
 0x1f0   : > { %v1193_v14 = vpop.f32.mrf.mxu1  ;;  %v1616_v2 = vpop.f32.mrf.mxu2 }
 0x1f1   : > { %v1194_v19 = vadd.f32 %v1193_v14, %v6449_v4  ;;  %v1617_v9 = vadd.f32 %v1616_v2, %v6754_v10  ;;  %v9276_v2 = vmax.f32 %v6939_v31, 0.0 }
 0x1f3   : > { %v1333_v20 = vmax.f32 %v1194_v19, 0.0  ;;  %v1790_v1 = vadd.f32 %v1617_v9, %v9397_v62  ;;  %5301 = vmatmul.msk.f32.gmra.mxu1 %vm905_vm1, %v9283_v15 }
 0x1f5   : > { %5349 = vmatmul.msk.f32.gmra.mxu2 %vm905_vm1, %v1333_v20  ;;  %v1854_v37 = vmax.f32 %v1790_v1, 0.0  ;;  %v6957_v20 = vld [vmem:[%s9234_s9] ss:$0 sm:$0xff] }
 0x1f6   : > { %v6961_v1 = vadd.f32 %v6957_v20, %v6612_v52  ;;  %v9399_v52 = vmax.f32 %v6376_v59, 0.0  ;;  %v2967_v59 = vld [vmem:[%s9231_s6 + $0x38] sm:$0xff] }
 0x1f7   : > { %5397 = vmatmul.msk.f32.gmra.mxu3 %vm905_vm1, %v1854_v37  ;;  %5461 = vmatmul.msk.f32.gmra.mxu0 %vm905_vm1, %v1854_v37  ;;  %v6966_v49 = vpop.f32.mrf.mxu3 }
 0x1f8   : > { %v1196_v14 = vpop.f32.mrf.mxu1  ;;  %v1619_v42 = vpop.f32.mrf.mxu2  ;;  %2985 = vmatpush.msra.mxu2 %v2967_v59 }
 0x1f9   : > { %v1197_v19 = vadd.f32 %v1196_v14, %v6449_v4  ;;  %v1620_v9 = vadd.f32 %v1619_v42, %v6754_v10 }
 0x1fb   : > { %v1334_v62 = vmax.f32 %v1197_v19, 0.0  ;;  %v1791_v6 = vadd.f32 %v1620_v9, %v9398_v54  ;;  %5302 = vmatmul.msk.f32.gmra.mxu1 %vm905_vm1, %v9276_v2  ;;  %v9277_v19 = vmax.f32 %v6961_v1, 0.0 }
 0x1fd   : > { %v1855_v37 = vmax.f32 %v1791_v6, 0.0  ;;  %5350 = vmatmul.msk.f32.gmra.mxu2 %vm905_vm1, %v1334_v62  ;;  %v6978_v62 = vadd.f32 %v6957_v20, %v6635_v35 }
 0x1ff   : > { %5398 = vmatmul.msk.f32.gmra.mxu3 %vm905_vm1, %v1855_v37  ;;  %5462 = vmatmul.msk.f32.gmra.mxu0 %vm905_vm1, %v1855_v37  ;;  %v9278_v35 = vmax.f32 %v6978_v62, 0.0 }
 0x200   : > { %v1199_v14 = vpop.f32.mrf.mxu1  ;;  %v1622_v42 = vpop.f32.mrf.mxu2 }
 0x201   : > { %v1200_v9 = vadd.f32 %v1199_v14, %v6449_v4  ;;  %v1623_v54 = vadd.f32 %v1622_v42, %v6754_v10  ;;  %v2609_v14 = vld [vmem:[%s9230_s5 + $0x18] sm:$0xff] }
 0x202   : > { %2635 = vmatpush.msra.mxu1 %v2609_v14  ;;  %v9400_v14 = vmax.f32 %v6390_v7, 0.0  ;;  %v3261_v7 = vld [vmem:[%s9232_s7 + $0x58] sm:$0xff] }
 0x203   : > { %v1335_v2 = vmax.f32 %v1200_v9, 0.0  ;;  %v1792_v6 = vadd.f32 %v1623_v54, %v9399_v52  ;;  %5303 = vmatmul.msk.f32.gmra.mxu1 %vm905_vm1, %v9277_v19  ;;  %v6992_v52 = vpop.f32.mrf.mxu3  ;;  %3271 = vmatpush.msra.mxu3 %v3261_v7 }
 0x205   : > { %v1856_v37 = vmax.f32 %v1792_v6, 0.0  ;;  %5351 = vmatmul.msk.f32.gmra.mxu2 %vm905_vm1, %v1335_v2 }
 0x207   : > { %5399 = vmatmul.msk.f32.gmra.mxu3 %vm905_vm1, %v1856_v37  ;;  %5463 = vmatmul.msk.f32.gmra.mxu0 %vm905_vm1, %v1856_v37  ;;  %v7001_v37 = vadd.f32 %v6957_v20, %v6653_v22 }
 0x208   : > { %v1202_v42 = vpop.f32.mrf.mxu1  ;;  %v1625_v9 = vpop.f32.mrf.mxu2 }
 0x209   : > { %v1203_v2 = vadd.f32 %v1202_v42, %v6449_v4  ;;  %v1626_v54 = vadd.f32 %v1625_v9, %v6754_v10 }
 0x20b   : > { %v1336_v6 = vmax.f32 %v1203_v2, 0.0  ;;  %v1793_v19 = vadd.f32 %v1626_v54, %v9400_v14  ;;  %5304 = vmatmul.msk.f32.gmra.mxu1 %vm905_vm1, %v9278_v35  ;;  %v9279_v2 = vmax.f32 %v7001_v37, 0.0  ;;  %v7021_v35 = vadd.f32 %v6957_v20, %v6693_v28 }
 0x20d   : > { %v1857_v59 = vmax.f32 %v1793_v19, 0.0  ;;  %5352 = vmatmul.msk.f32.gmra.mxu2 %vm905_vm1, %v1336_v6  ;;  %v9401_v6 = vmax.f32 %v6401_v18, 0.0 }
 0x20f   : > { %5400 = vmatmul.msk.f32.gmra.mxu3 %vm905_vm1, %v1857_v59  ;;  %5464 = vmatmul.msk.f32.gmra.mxu0 %vm905_vm1, %v1857_v59  ;;  %v7017_v59 = vpop.f32.mrf.mxu3 }
 0x210   : > { %v1205_v42 = vpop.f32.mrf.mxu1  ;;  %v1628_v9 = vpop.f32.mrf.mxu2 }
 0x211   : > { %v1206_v54 = vadd.f32 %v1205_v42, %v6449_v4  ;;  %v1629_v22 = vadd.f32 %v1628_v9, %v6754_v10  ;;  %v9281_v9 = vmax.f32 %v7021_v35, 0.0 }
 0x213   : > { %v1337_v19 = vmax.f32 %v1206_v54, 0.0  ;;  %v1794_v14 = vadd.f32 %v1629_v22, %v9401_v6  ;;  %5305 = vmatmul.msk.f32.gmra.mxu1 %vm905_vm1, %v9279_v2  ;;  %v9402_v2 = vmax.f32 %v6418_v32, 0.0 }
 0x215   : > { %v1858_v7 = vmax.f32 %v1794_v14, 0.0  ;;  %5353 = vmatmul.msk.f32.gmra.mxu2 %vm905_vm1, %v1337_v19  ;;  %v7036_v19 = vadd.f32 %v6957_v20, %v6717_v34  ;;  %v9403_v34 = vmax.f32 %v6429_v43, 0.0 }
 0x217   : > { %5401 = vmatmul.msk.f32.gmra.mxu3 %vm905_vm1, %v1858_v7  ;;  %5465 = vmatmul.msk.f32.gmra.mxu0 %vm905_vm1, %v1858_v7  ;;  %v7039_v7 = vpop.f32.mrf.mxu3 }
 0x218   : > { %v1208_v42 = vpop.f32.mrf.mxu1  ;;  %v1631_v18 = vpop.f32.mrf.mxu2 }
 0x219   : > { %v1209_v54 = vadd.f32 %v1208_v42, %v6449_v4  ;;  %v1632_v22 = vadd.f32 %v1631_v18, %v6754_v10 }
 0x21b   : > { %v1338_v6 = vmax.f32 %v1209_v54, 0.0  ;;  %v1795_v28 = vadd.f32 %v1632_v22, %v9402_v2  ;;  %5306 = vmatmul.msk.f32.gmra.mxu1 %vm905_vm1, %v9281_v9  ;;  %v9280_v2 = vmax.f32 %v7036_v19, 0.0 }
 0x21d   : > { %v1859_v14 = vmax.f32 %v1795_v28, 0.0  ;;  %5354 = vmatmul.msk.f32.gmra.mxu2 %vm905_vm1, %v1338_v6  ;;  %v7053_v6 = vadd.f32 %v6957_v20, %v6734_v27  ;;  %v3619_v27 = vld [vmem:[%s9233_s8 + $0x78] sm:$0xff] }
 0x21e   : > { %3621 = vmatpush.msra.mxu0 %v3619_v27 }
 0x21f   : > { %5402 = vmatmul.msk.f32.gmra.mxu3 %vm905_vm1, %v1859_v14  ;;  %5466 = vmatmul.msk.f32.gmra.mxu0 %vm905_vm1, %v1859_v14  ;;  %v7061_v43 = vpop.f32.mrf.mxu3 }
 0x220   : > { %v1211_v42 = vpop.f32.mrf.mxu1  ;;  %v1634_v32 = vpop.f32.mrf.mxu2 }
 0x221   : > { %v1212_v18 = vadd.f32 %v1211_v42, %v6449_v4  ;;  %v1635_v54 = vadd.f32 %v1634_v32, %v6754_v10  ;;  %v2608_v42 = vld [vmem:[%s9230_s5 + $0x10] sm:$0xff] }
 0x222   : > { %2636 = vmatpush.msra.mxu1 %v2608_v42  ;;  %v2966_v32 = vld [vmem:[%s9231_s6 + $0x30] sm:$0xff]  ;;  %v9404_v42 = vmax.f32 %v6438_v51, 0.0 }
 0x223   : > { %v1339_v22 = vmax.f32 %v1212_v18, 0.0  ;;  %v1796_v28 = vadd.f32 %v1635_v54, %v9403_v34  ;;  %5307 = vmatmul.msk.f32.gmra.mxu1 %vm905_vm1, %v9280_v2  ;;  %2986 = vmatpush.msra.mxu2 %v2966_v32  ;;  %v7081_v32 = vadd.f32 %v6957_v20, %v6749_v36  ;;  %v3260_v51 = vld [vmem:[%s9232_s7 + $0x50] sm:$0xff] }
 0x224   : > { %3272 = vmatpush.msra.mxu3 %v3260_v51  ;;  %v7103_v51 = vadd.f32 %v6957_v20, %v6774_v13  ;;  %v9406_v13 = vmax.f32 %v6479_v50, 0.0 }
 0x225   : > { %v1860_v14 = vmax.f32 %v1796_v28, 0.0  ;;  %5355 = vmatmul.msk.f32.gmra.mxu2 %vm905_vm1, %v1339_v22  ;;  %v9282_v22 = vmax.f32 %v7053_v6, 0.0 }
 0x227   : > { %5403 = vmatmul.msk.f32.gmra.mxu3 %vm905_vm1, %v1860_v14  ;;  %5467 = vmatmul.msk.f32.gmra.mxu0 %vm905_vm1, %v1860_v14 }
 0x228   : > { %v1214_v18 = vpop.f32.mrf.mxu1  ;;  %v1637_v54 = vpop.f32.mrf.mxu2 }
 0x229   : > { %v1215_v34 = vadd.f32 %v1214_v18, %v6449_v4  ;;  %v1638_v28 = vadd.f32 %v1637_v54, %v6754_v10 }
 0x22b   : > { %v1340_v14 = vmax.f32 %v1215_v34, 0.0  ;;  %v1797_v2 = vadd.f32 %v1638_v28, %v9404_v42  ;;  %5308 = vmatmul.msk.f32.gmra.mxu1 %vm905_vm1, %v9282_v22  ;;  %v9284_v34 = vmax.f32 %v7081_v32, 0.0  ;;  %v9405_v42 = vmax.f32 %v6462_v38, 0.0 }
 0x22c   : > { %v7077_v9 = vpop.f32.mrf.mxu0 }
 0x22d   : > { %v1861_v27 = vmax.f32 %v1797_v2, 0.0  ;;  %5356 = vmatmul.msk.f32.gmra.mxu2 %vm905_vm1, %v1340_v14 }
 0x22f   : > { %5404 = vmatmul.msk.f32.gmra.mxu3 %vm905_vm1, %v1861_v27  ;;  %5468 = vmatmul.msk.f32.gmra.mxu0 %vm905_vm1, %v1861_v27 }
 0x230   : > { %v1217_v18 = vpop.f32.mrf.mxu1  ;;  %v1640_v54 = vpop.f32.mrf.mxu2 }
 0x231   : > { %v1218_v28 = vadd.f32 %v1217_v18, %v6449_v4  ;;  %v1641_v36 = vadd.f32 %v1640_v54, %v6754_v10  ;;  %v9286_v54 = vmax.f32 %v7103_v51, 0.0 }
 0x232   : > { %v7092_v2 = vpop.f32.mrf.mxu3 }
 0x233   : > { %v1341_v14 = vmax.f32 %v1218_v28, 0.0  ;;  %v1798_v22 = vadd.f32 %v1641_v36, %v9405_v42  ;;  %5309 = vmatmul.msk.f32.gmra.mxu1 %vm905_vm1, %v9284_v34 }
 0x234   : > { %v7099_v27 = vpop.f32.mrf.mxu0 }
 0x235   : > { %v1862_v15 = vmax.f32 %v1798_v22, 0.0  ;;  %5357 = vmatmul.msk.f32.gmra.mxu2 %vm905_vm1, %v1341_v14 }
 0x237   : > { %5405 = vmatmul.msk.f32.gmra.mxu3 %vm905_vm1, %v1862_v15  ;;  %5469 = vmatmul.msk.f32.gmra.mxu0 %vm905_vm1, %v1862_v15  ;;  %v7122_v15 = vadd.f32 %v6957_v20, %v6797_v45  ;;  %v9408_v45 = vmax.f32 %v6496_v58, 0.0  ;;  %v2965_v58 = vld [vmem:[%s9231_s6 + $0x28] sm:$0xff] }
 0x238   : > { %v1220_v18 = vpop.f32.mrf.mxu1  ;;  %v1643_v38 = vpop.f32.mrf.mxu2  ;;  %2987 = vmatpush.msra.mxu2 %v2965_v58 }
 0x239   : > { %v1221_v28 = vadd.f32 %v1220_v18, %v6449_v4  ;;  %v1644_v36 = vadd.f32 %v1643_v38, %v6754_v10  ;;  %9407 = vst [vmem:[#allocation6_spill] sm:$0xff] %v7122_v15  ;;  %v9288_v38 = vmax.f32 %v7122_v15, 0.0 }
 0x23a   : > { %v7111_v42 = vpop.f32.mrf.mxu3 }
 0x23b   : > { %v1342_v34 = vmax.f32 %v1221_v28, 0.0  ;;  %v1799_v22 = vadd.f32 %v1644_v36, %v9406_v13  ;;  %5310 = vmatmul.msk.f32.gmra.mxu1 %vm905_vm1, %v9286_v54 }
 0x23c   : > { %v7118_v14 = vpop.f32.mrf.mxu0 }
 0x23d   : > { %v1863_v26 = vmax.f32 %v1799_v22, 0.0  ;;  %5358 = vmatmul.msk.f32.gmra.mxu2 %vm905_vm1, %v1342_v34 }
 0x23f   : > { %5406 = vmatmul.msk.f32.gmra.mxu3 %vm905_vm1, %v1863_v26  ;;  %5470 = vmatmul.msk.f32.gmra.mxu0 %vm905_vm1, %v1863_v26  ;;  %v7141_v26 = vadd.f32 %v6957_v20, %v6819_v23  ;;  %v3618_v23 = vld [vmem:[%s9233_s8 + $0x70] sm:$0xff] }
 0x240   : > { %v1223_v18 = vpop.f32.mrf.mxu1  ;;  %v1646_v50 = vpop.f32.mrf.mxu2  ;;  %3622 = vmatpush.msra.mxu0 %v3618_v23  ;;  %v7174_v23 = vadd.f32 %v6957_v20, %v6847_v3 }
 0x241   : > { %v1224_v28 = vadd.f32 %v1223_v18, %v6449_v4  ;;  %v1647_v36 = vadd.f32 %v1646_v50, %v6754_v10  ;;  %9409 = vst [vmem:[#allocation7_spill] sm:$0xff] %v7141_v26  ;;  %v2607_v4 = vld [vmem:[%s9230_s5 + $0x8] sm:$0xff] }
 0x242   : > { %v7130_v13 = vpop.f32.mrf.mxu3  ;;  %2637 = vmatpush.msra.mxu1 %v2607_v4  ;;  %v9410_v4 = vmax.f32 %v6513_v44, 0.0  ;;  %9411 = vst [vmem:[#allocation8_spill] sm:$0xff] %v7174_v23  ;;  %v3259_v44 = vld [vmem:[%s9232_s7 + $0x48] sm:$0xff] }
 0x243   : > { %v1343_v54 = vmax.f32 %v1224_v28, 0.0  ;;  %v1800_v22 = vadd.f32 %v1647_v36, %v9408_v45  ;;  %5311 = vmatmul.msk.f32.gmra.mxu1 %vm905_vm1, %v9288_v38  ;;  %v7159_v28 = vld [vmem:[%s9234_s9 + $0x1] ss:$0 sm:$0xff]  ;;  %3273 = vmatpush.msra.mxu3 %v3259_v44  ;;  %v7196_v44 = vadd.f32 %v6957_v20, %v6869_v57  ;;  %v9413_v57 = vmax.f32 %v6548_v30, 0.0 }
 0x244   : > { %v7137_v34 = vpop.f32.mrf.mxu0 }
 0x245   : > { %v1864_v60 = vmax.f32 %v1800_v22, 0.0  ;;  %5359 = vmatmul.msk.f32.gmra.mxu2 %vm905_vm1, %v1343_v54  ;;  %v9290_v54 = vmax.f32 %v7141_v26, 0.0 }
 0x247   : > { %5407 = vmatmul.msk.f32.gmra.mxu3 %vm905_vm1, %v1864_v60  ;;  %5471 = vmatmul.msk.f32.gmra.mxu0 %vm905_vm1, %v1864_v60 }
 0x248   : > { %v1226_v18 = vpop.f32.mrf.mxu1  ;;  %v1649_v50 = vpop.f32.mrf.mxu2 }
 0x249   : > { %v1227_v60 = vadd.f32 %v7159_v28, %v1226_v18  ;;  %v1650_v36 = vadd.f32 %v1649_v50, %v6754_v10 }
 0x24a   : > { %v7163_v45 = vpop.f32.mrf.mxu3 }
 0x24b   : > { %v1344_v22 = vmax.f32 %v1227_v60, 0.0  ;;  %v1801_v38 = vadd.f32 %v1650_v36, %v9410_v4  ;;  %5312 = vmatmul.msk.f32.gmra.mxu1 %vm905_vm1, %v9290_v54  ;;  %v9292_v60 = vmax.f32 %v7174_v23, 0.0  ;;  %v9412_v4 = vmax.f32 %v6530_v33, 0.0 }
 0x24c   : > { %v7170_v58 = vpop.f32.mrf.mxu0 }
 0x24d   : > { %v1865_v15 = vmax.f32 %v1801_v38, 0.0  ;;  %5360 = vmatmul.msk.f32.gmra.mxu2 %vm905_vm1, %v1344_v22 }
 0x24f   : > { %5408 = vmatmul.msk.f32.gmra.mxu3 %vm905_vm1, %v1865_v15  ;;  %5472 = vmatmul.msk.f32.gmra.mxu0 %vm905_vm1, %v1865_v15 }
 0x250   : > { %v1229_v18 = vpop.f32.mrf.mxu1  ;;  %v1652_v50 = vpop.f32.mrf.mxu2 }
 0x251   : > { %v1230_v36 = vadd.f32 %v7159_v28, %v1229_v18  ;;  %v1653_v3 = vadd.f32 %v1652_v50, %v6754_v10  ;;  %v9294_v50 = vmax.f32 %v7196_v44, 0.0 }
 0x252   : > { %v7185_v38 = vpop.f32.mrf.mxu3 }
 0x253   : > { %v1345_v22 = vmax.f32 %v1230_v36, 0.0  ;;  %v1802_v54 = vadd.f32 %v1653_v3, %v9412_v4  ;;  %5313 = vmatmul.msk.f32.gmra.mxu1 %vm905_vm1, %v9292_v60 }
 0x254   : > { %v7192_v15 = vpop.f32.mrf.mxu0 }
 0x255   : > { %v1866_v26 = vmax.f32 %v1802_v54, 0.0  ;;  %5361 = vmatmul.msk.f32.gmra.mxu2 %vm905_vm1, %v1345_v22 }
 0x257   : > { %5409 = vmatmul.msk.f32.gmra.mxu3 %vm905_vm1, %v1866_v26  ;;  %5473 = vmatmul.msk.f32.gmra.mxu0 %vm905_vm1, %v1866_v26  ;;  %v7213_v26 = vadd.f32 %v6957_v20, %v6889_v5 }
 0x258   : > { %v1232_v18 = vpop.f32.mrf.mxu1  ;;  %v1655_v33 = vpop.f32.mrf.mxu2 }
 0x259   : > { %v1233_v36 = vadd.f32 %v7159_v28, %v1232_v18  ;;  %v1656_v3 = vadd.f32 %v1655_v33, %v6754_v10  ;;  %9414 = vst [vmem:[#allocation9_spill] sm:$0xff] %v7213_v26  ;;  %v9295_v33 = vmax.f32 %v7213_v26, 0.0 }
 0x25a   : > { %v7204_v4 = vpop.f32.mrf.mxu3 }
 0x25b   : > { %v1346_v60 = vmax.f32 %v1233_v36, 0.0  ;;  %v1803_v54 = vadd.f32 %v1656_v3, %v9413_v57  ;;  %5314 = vmatmul.msk.f32.gmra.mxu1 %vm905_vm1, %v9294_v50 }
 0x25c   : > { %v7215_v23 = vpop.f32.mrf.mxu0 }
 0x25d   : > { %v1867_v22 = vmax.f32 %v1803_v54, 0.0  ;;  %5362 = vmatmul.msk.f32.gmra.mxu2 %vm905_vm1, %v1346_v60  ;;  %v9415_v54 = vmax.f32 %v6562_v17, 0.0  ;;  %v7232_v60 = vadd.f32 %v6957_v20, %v6917_v41  ;;  %v2964_v17 = vld [vmem:[%s9231_s6 + $0x20] sm:$0xff]  ;;  %v3617_v41 = vld [vmem:[%s9233_s8 + $0x68] sm:$0xff] }
 0x25e   : > { %2988 = vmatpush.msra.mxu2 %v2964_v17  ;;  %3623 = vmatpush.msra.mxu0 %v3617_v41  ;;  %v7260_v17 = vadd.f32 %v6957_v20, %v6942_v48 }
 0x25f   : > { %5410 = vmatmul.msk.f32.gmra.mxu3 %vm905_vm1, %v1867_v22  ;;  %5474 = vmatmul.msk.f32.gmra.mxu0 %vm905_vm1, %v1867_v22  ;;  %9416 = vst [vmem:[#allocation10_spill] sm:$0xff] %v7232_v60 }
 0x260   : > { %v1235_v18 = vpop.f32.mrf.mxu1  ;;  %v1658_v30 = vpop.f32.mrf.mxu2  ;;  %9418 = vst [vmem:[#allocation11_spill] sm:$0xff] %v7260_v17 }
 0x261   : > { %v1236_v36 = vadd.f32 %v7159_v28, %v1235_v18  ;;  %v1659_v3 = vadd.f32 %v1658_v30, %v6754_v10  ;;  %v2606_v18 = vld [vmem:[%s9230_s5] sm:$0xff] }
 0x262   : > { %v7223_v57 = vpop.f32.mrf.mxu3  ;;  %2638 = vmatpush.msra.mxu1 %v2606_v18 }
 0x263   : > { %v1347_v5 = vmax.f32 %v1236_v36, 0.0  ;;  %v1804_v50 = vadd.f32 %v1659_v3, %v9415_v54  ;;  %5315 = vmatmul.msk.f32.gmra.mxu1 %vm905_vm1, %v9295_v33  ;;  %v9297_v3 = vmax.f32 %v7232_v60, 0.0  ;;  %v9417_v33 = vmax.f32 %v6579_v24, 0.0  ;;  %v3258_v24 = vld [vmem:[%s9232_s7 + $0x40] sm:$0xff] }
 0x264   : > { %v7238_v30 = vpop.f32.mrf.mxu0  ;;  %3274 = vmatpush.msra.mxu3 %v3258_v24  ;;  %v7282_v24 = vadd.f32 %v6957_v20, %v6966_v49 }
 0x265   : > { %v1868_v22 = vmax.f32 %v1804_v50, 0.0  ;;  %5363 = vmatmul.msk.f32.gmra.mxu2 %vm905_vm1, %v1347_v5 }
 0x266   : > { %9420 = vst [vmem:[#allocation12_spill] sm:$0xff] %v7282_v24 }
 0x267   : > { %5411 = vmatmul.msk.f32.gmra.mxu3 %vm905_vm1, %v1868_v22  ;;  %5475 = vmatmul.msk.f32.gmra.mxu0 %vm905_vm1, %v1868_v22 }
 0x268   : > { %v1238_v50 = vpop.f32.mrf.mxu1  ;;  %v1661_v36 = vpop.f32.mrf.mxu2 }
 0x269   : > { %v1239_v5 = vadd.f32 %v7159_v28, %v1238_v50  ;;  %v1662_v54 = vadd.f32 %v1661_v36, %v6754_v10  ;;  %v9299_v36 = vmax.f32 %v7260_v17, 0.0 }
 0x26a   : > { %v7251_v18 = vpop.f32.mrf.mxu3 }
 0x26b   : > { %v1348_v22 = vmax.f32 %v1239_v5, 0.0  ;;  %v1805_v26 = vadd.f32 %v1662_v54, %v9417_v33  ;;  %5316 = vmatmul.msk.f32.gmra.mxu1 %vm905_vm1, %v9297_v3 }
 0x26c   : > { %v7269_v5 = vpop.f32.mrf.mxu0 }
 0x26d   : > { %v1869_v41 = vmax.f32 %v1805_v26, 0.0  ;;  %5364 = vmatmul.msk.f32.gmra.mxu2 %vm905_vm1, %v1348_v22 }
 0x26f   : > { %5412 = vmatmul.msk.f32.gmra.mxu3 %vm905_vm1, %v1869_v41  ;;  %5476 = vmatmul.msk.f32.gmra.mxu0 %vm905_vm1, %v1869_v41  ;;  %v9419_v41 = vmax.f32 %v6596_v63, 0.0  ;;  %v9301_v63 = vmax.f32 %v7282_v24, 0.0 }
 0x270   : > { %v1241_v33 = vpop.f32.mrf.mxu1  ;;  %v1664_v50 = vpop.f32.mrf.mxu2 }
 0x271   : > { %v1242_v48 = vadd.f32 %v7159_v28, %v1241_v33  ;;  %v1665_v26 = vadd.f32 %v1664_v50, %v6754_v10 }
 0x272   : > { %v7273_v54 = vpop.f32.mrf.mxu3 }
 0x273   : > { %v1349_v22 = vmax.f32 %v1242_v48, 0.0  ;;  %v1806_v3 = vadd.f32 %v1665_v26, %v9419_v41  ;;  %5317 = vmatmul.msk.f32.gmra.mxu1 %vm905_vm1, %v9299_v36 }
 0x274   : > { %v7292_v36 = vpop.f32.mrf.mxu0 }
 0x275   : > { %v1870_v60 = vmax.f32 %v1806_v3, 0.0  ;;  %5365 = vmatmul.msk.f32.gmra.mxu2 %vm905_vm1, %v1349_v22  ;;  %v9421_v3 = vmax.f32 %v6616_v46, 0.0 }
 0x277   : > { %5413 = vmatmul.msk.f32.gmra.mxu3 %vm905_vm1, %v1870_v60  ;;  %5477 = vmatmul.msk.f32.gmra.mxu0 %vm905_vm1, %v1870_v60  ;;  %v7301_v60 = vadd.f32 %v6957_v20, %v6992_v52  ;;  %v9423_v52 = vmax.f32 %v6631_v21, 0.0  ;;  %v2963_v21 = vld [vmem:[%s9231_s6 + $0x18] sm:$0xff] }
 0x278   : > { %v1244_v33 = vpop.f32.mrf.mxu1  ;;  %v1667_v50 = vpop.f32.mrf.mxu2  ;;  %2989 = vmatpush.msra.mxu2 %v2963_v21  ;;  %v7343_v21 = vadd.f32 %v6957_v20, %v7039_v7 }
 0x279   : > { %v1245_v48 = vadd.f32 %v7159_v28, %v1244_v33  ;;  %v1668_v26 = vadd.f32 %v1667_v50, %v6754_v10  ;;  %9422 = vst [vmem:[#allocation13_spill] sm:$0xff] %v7301_v60  ;;  %v9303_v46 = vmax.f32 %v7301_v60, 0.0 }
 0x27a   : > { %v7290_v41 = vpop.f32.mrf.mxu3  ;;  %9426 = vst [vmem:[#allocation15_spill] sm:$0xff] %v7343_v21 }
 0x27b   : > { %v1350_v49 = vmax.f32 %v1245_v48, 0.0  ;;  %v1807_v22 = vadd.f32 %v1668_v26, %v9421_v3  ;;  %5318 = vmatmul.msk.f32.gmra.mxu1 %vm905_vm1, %v9301_v63 }
 0x27d   : > { %v1871_v17 = vmax.f32 %v1807_v22, 0.0  ;;  %5366 = vmatmul.msk.f32.gmra.mxu2 %vm905_vm1, %v1350_v49  ;;  %v7320_v49 = vpop.f32.mrf.mxu0 }
 0x27f   : > { %5414 = vmatmul.msk.f32.gmra.mxu3 %vm905_vm1, %v1871_v17  ;;  %5478 = vmatmul.msk.f32.gmra.mxu0 %vm905_vm1, %v1871_v17  ;;  %v7318_v17 = vadd.f32 %v6957_v20, %v7017_v59 }
 0x280   : > { %v1247_v33 = vpop.f32.mrf.mxu1  ;;  %v1670_v50 = vpop.f32.mrf.mxu2 }
 0x281   : > { %v1248_v48 = vadd.f32 %v7159_v28, %v1247_v33  ;;  %v1671_v26 = vadd.f32 %v1670_v50, %v6754_v10  ;;  %9424 = vst [vmem:[#allocation14_spill] sm:$0xff] %v7318_v17  ;;  %v3616_v33 = vld [vmem:[%s9233_s8 + $0x60] sm:$0xff] }
 0x282   : > { %v7309_v3 = vpop.f32.mrf.mxu3  ;;  %3624 = vmatpush.msra.mxu0 %v3616_v33 }
 0x283   : > { %v1351_v63 = vmax.f32 %v1248_v48, 0.0  ;;  %v1808_v22 = vadd.f32 %v1671_v26, %v9423_v52  ;;  %5319 = vmatmul.msk.f32.gmra.mxu1 %vm905_vm1, %v9303_v46  ;;  %v9304_v48 = vmax.f32 %v7318_v17, 0.0 }
 0x285   : > { %v1872_v24 = vmax.f32 %v1808_v22, 0.0  ;;  %5367 = vmatmul.msk.f32.gmra.mxu2 %vm905_vm1, %v1351_v63  ;;  %v9425_v22 = vmax.f32 %v6645_v47, 0.0  ;;  %v3257_v47 = vld [vmem:[%s9232_s7 + $0x38] sm:$0xff] }
 0x286   : > { %3275 = vmatpush.msra.mxu3 %v3257_v47 }
 0x287   : > { %5415 = vmatmul.msk.f32.gmra.mxu3 %vm905_vm1, %v1872_v24  ;;  %5479 = vmatmul.msk.f32.gmra.mxu0 %vm905_vm1, %v1872_v24 }
 0x288   : > { %v1250_v50 = vpop.f32.mrf.mxu1  ;;  %v1673_v59 = vpop.f32.mrf.mxu2 }
 0x289   : > { %v1251_v63 = vadd.f32 %v7159_v28, %v1250_v50  ;;  %v1674_v26 = vadd.f32 %v1673_v59, %v6754_v10  ;;  %v7346_v50 = vpop.f32.mrf.mxu0 }
 0x28a   : > { %v7334_v52 = vpop.f32.mrf.mxu3 }
 0x28b   : > { %v1352_v24 = vmax.f32 %v1251_v63, 0.0  ;;  %v1809_v46 = vadd.f32 %v1674_v26, %v9425_v22  ;;  %5320 = vmatmul.msk.f32.gmra.mxu1 %vm905_vm1, %v9304_v48  ;;  %v9306_v26 = vmax.f32 %v7343_v21, 0.0  ;;  %v9427_v48 = vmax.f32 %v6674_v12, 0.0  ;;  %v7373_v12 = vld [vmem:[%s9234_s9 + $0x3] ss:$8 sm:$0x3] }
 0x28d   : > { %v1873_v33 = vmax.f32 %v1809_v46, 0.0  ;;  %5368 = vmatmul.msk.f32.gmra.mxu2 %vm905_vm1, %v1352_v24 }
 0x28f   : > { %5416 = vmatmul.msk.f32.gmra.mxu3 %vm905_vm1, %v1873_v33  ;;  %5480 = vmatmul.msk.f32.gmra.mxu0 %vm905_vm1, %v1873_v33  ;;  %v7365_v33 = vadd.f32 %v6957_v20, %v7061_v43 }
 0x290   : > { %v1253_v59 = vpop.f32.mrf.mxu1  ;;  %v1676_v63 = vpop.f32.mrf.mxu2 }
 0x291   : > { %v1254_v7 = vadd.f32 %v7159_v28, %v1253_v59  ;;  %v1677_v46 = vadd.f32 %v1676_v63, %v6754_v10  ;;  %9428 = vst [vmem:[#allocation16_spill] sm:$0xff] %v7365_v33  ;;  %v9309_v63 = vmax.f32 %v7365_v33, 0.0  ;;  %v7379_v20 = vpop.f32.mrf.mxu0 }
 0x292   : > { %v7356_v24 = vpop.f32.mrf.mxu3  ;;  %9429 = vst [vmem:[#allocation17_spill] sm:$0xff] %v7379_v20 }
 0x293   : > { %v1353_v22 = vmax.f32 %v1254_v7, 0.0  ;;  %v1810_v17 = vadd.f32 %v1677_v46, %v9427_v48  ;;  %5321 = vmatmul.msk.f32.gmra.mxu1 %vm905_vm1, %v9306_v26  ;;  %v7377_v7 = vperm.slane %v7373_v12, 0 }
 0x295   : > { %v1874_v47 = vmax.f32 %v1810_v17, 0.0  ;;  %5369 = vmatmul.msk.f32.gmra.mxu2 %vm905_vm1, %v1353_v22  ;;  %v2142_v21 = vadd.f32 %v7092_v2, %v7377_v7  ;;  %v9432_v2 = vmax.f32 %v6721_v61, 0.0  ;;  %v7414_v61 = vld [vmem:[%s9233_s8 + $0x58] sm:$0xff] }
 0x296   : > { %3625 = vmatpush.msra.mxu0 %v7414_v61 }
 0x297   : > { %5417 = vmatmul.msk.f32.gmra.mxu3 %vm905_vm1, %v1874_v47  ;;  %5481 = vmatmul.msk.f32.gmra.mxu0 %vm905_vm1, %v1874_v47  ;;  %v9430_v47 = vmax.f32 %v6703_v39, 0.0 }
 0x298   : > { %v1256_v48 = vpop.f32.mrf.mxu1  ;;  %v1679_v59 = vpop.f32.mrf.mxu2 }
 0x299   : > { %v1257_v43 = vadd.f32 %v7159_v28, %v1256_v48  ;;  %v1680_v17 = vadd.f32 %v1679_v59, %v6754_v10 }
 0x29a   : > { %v7383_v46 = vpop.f32.mrf.mxu3 }
 0x29b   : > { %v1354_v22 = vmax.f32 %v1257_v43, 0.0  ;;  %v1811_v26 = vadd.f32 %v1680_v17, %v9430_v47  ;;  %5322 = vmatmul.msk.f32.gmra.mxu1 %vm905_vm1, %v9309_v63  ;;  %v2542_v43 = vmax.f32 %v2142_v21, 0.0  ;;  %v7399_v63 = vpop.f32.mrf.mxu0 }
 0x29c   : > { %9431 = vst [vmem:[#allocation18_spill] sm:$0xff] %v7399_v63 }
 0x29d   : > { %v1875_v60 = vmax.f32 %v1811_v26, 0.0  ;;  %5370 = vmatmul.msk.f32.gmra.mxu2 %vm905_vm1, %v1354_v22  ;;  %v2145_v22 = vadd.f32 %v7111_v42, %v7377_v7 }
 0x29f   : > { %5418 = vmatmul.msk.f32.gmra.mxu3 %vm905_vm1, %v1875_v60  ;;  %5482 = vmatmul.msk.f32.gmra.mxu0 %vm905_vm1, %v1875_v60  ;;  %v2543_v42 = vmax.f32 %v2145_v22, 0.0 }
 0x2a0   : > { %v1259_v48 = vpop.f32.mrf.mxu1  ;;  %v1682_v59 = vpop.f32.mrf.mxu2 }
 0x2a1   : > { %v1260_v39 = vadd.f32 %v7159_v28, %v1259_v48  ;;  %v1683_v17 = vadd.f32 %v1682_v59, %v6754_v10  ;;  %v2962_v10 = vld [vmem:[%s9231_s6 + $0x10] sm:$0xff]  ;;  %v7421_v59 = vld [vmem:[%s9234_s9 + $0x2] ss:$0 sm:$0xff] }
 0x2a2   : > { %v7397_v47 = vpop.f32.mrf.mxu3  ;;  %2990 = vmatpush.msra.mxu2 %v2962_v10  ;;  %v2148_v10 = vadd.f32 %v7130_v13, %v7377_v7 }
 0x2a3   : > { %v1355_v33 = vmax.f32 %v1260_v39, 0.0  ;;  %v1812_v26 = vadd.f32 %v1683_v17, %v9432_v2  ;;  %2639 = vmatmul.f32.vlgmr.msra.gmra.mxu1 %v2542_v43  ;;  %v9433_v2 = vld [vmem:[#allocation5_spill] sm:$0xff]  ;;  %v7430_v22 = vpop.f32.mrf.mxu0 }
 0x2a4   : > { %9435 = vst [vmem:[#allocation5_spill] sm:$0xff] %v7430_v22 }
 0x2a5   : > { %v1876_v60 = vmax.f32 %v1812_v26, 0.0  ;;  %5371 = vmatmul.msk.f32.gmra.mxu2 %vm905_vm1, %v1355_v33  ;;  %v9434_v26 = vmax.f32 %v9433_v2, 0.0 }
 0x2a7   : > { %5419 = vmatmul.msk.f32.gmra.mxu3 %vm905_vm1, %v1876_v60  ;;  %5483 = vmatmul.msk.f32.gmra.mxu0 %vm905_vm1, %v1876_v60 }
 0x2a8   : > { %v1262_v21 = vpop.f32.mrf.mxu1  ;;  %v1685_v48 = vpop.f32.mrf.mxu2 }
 0x2a9   : > { %v1263_v33 = vadd.f32 %v7159_v28, %v1262_v21  ;;  %v1686_v43 = vadd.f32 %v7421_v59, %v1685_v48  ;;  %v3256_v48 = vld [vmem:[%s9232_s7 + $0x30] sm:$0xff] }
 0x2aa   : > { %v7424_v39 = vpop.f32.mrf.mxu3  ;;  %3276 = vmatpush.msra.mxu3 %v3256_v48 }
 0x2ab   : > { %v1356_v17 = vmax.f32 %v1263_v33, 0.0  ;;  %v1813_v60 = vadd.f32 %v1686_v43, %v9434_v26  ;;  %2642 = vmatmul.f32.gmra.mxu1 %v2543_v42  ;;  %v2544_v42 = vmax.f32 %v2148_v10, 0.0  ;;  %v7447_v20 = vpop.f32.mrf.mxu0 }
 0x2ad   : > { %v1877_v21 = vmax.f32 %v1813_v60, 0.0  ;;  %5372 = vmatmul.msk.f32.gmra.mxu2 %vm905_vm1, %v1356_v17  ;;  %v9436_v17 = vmax.f32 %v6746_v16, 0.0 }
 0x2af   : > { %5420 = vmatmul.msk.f32.gmra.mxu3 %vm905_vm1, %v1877_v21  ;;  %5484 = vmatmul.msk.f32.gmra.mxu0 %vm905_vm1, %v1877_v21  ;;  %v2151_v21 = vadd.f32 %v7163_v45, %v7377_v7  ;;  %v9437_v45 = vmax.f32 %v6769_v0, 0.0 }
 0x2b0   : > { %v1265_v33 = vpop.f32.mrf.mxu1  ;;  %v1688_v2 = vpop.f32.mrf.mxu2 }
 0x2b1   : > { %v1266_v43 = vadd.f32 %v7159_v28, %v1265_v33  ;;  %v1689_v13 = vadd.f32 %v7421_v59, %v1688_v2  ;;  %v2545_v33 = vmax.f32 %v2151_v21, 0.0 }
 0x2b2   : > { %v7440_v26 = vpop.f32.mrf.mxu3 }
 0x2b3   : > { %v1357_v60 = vmax.f32 %v1266_v43, 0.0  ;;  %v1814_v22 = vadd.f32 %v1689_v13, %v9436_v17  ;;  %2645 = vmatmul.f32.gmra.mxu1 %v2544_v42  ;;  %v2154_v13 = vadd.f32 %v7185_v38, %v7377_v7  ;;  %v9438_v38 = vmax.f32 %v6789_v53, 0.0  ;;  %v7481_v53 = vld [vmem:[%s9233_s8 + $0x50] sm:$0xff] }
 0x2b4   : > { %3626 = vmatpush.msra.mxu0 %v7481_v53 }
 0x2b5   : > { %v1878_v63 = vmax.f32 %v1814_v22, 0.0  ;;  %5373 = vmatmul.msk.f32.gmra.mxu2 %vm905_vm1, %v1357_v60  ;;  %v2546_v21 = vmax.f32 %v2154_v13, 0.0 }
 0x2b7   : > { %5421 = vmatmul.msk.f32.gmra.mxu3 %vm905_vm1, %v1878_v63  ;;  %5485 = vmatmul.msk.f32.gmra.mxu0 %vm905_vm1, %v1878_v63 }
 0x2b8   : > { %v1268_v10 = vpop.f32.mrf.mxu1  ;;  %v1691_v48 = vpop.f32.mrf.mxu2 }
 0x2b9   : > { %v1269_v2 = vadd.f32 %v7159_v28, %v1268_v10  ;;  %v1692_v16 = vadd.f32 %v7421_v59, %v1691_v48  ;;  %v7462_v10 = vpop.f32.mrf.mxu0 }
 0x2ba   : > { %v7453_v42 = vpop.f32.mrf.mxu3 }
 0x2bb   : > { %v1358_v43 = vmax.f32 %v1269_v2, 0.0  ;;  %v1815_v22 = vadd.f32 %v1692_v16, %v9437_v45  ;;  %2648 = vmatmul.f32.gmra.mxu1 %v2545_v33 }
 0x2bd   : > { %v1879_v60 = vmax.f32 %v1815_v22, 0.0  ;;  %5374 = vmatmul.msk.f32.gmra.mxu2 %vm905_vm1, %v1358_v43  ;;  %v2157_v43 = vadd.f32 %v7204_v4, %v7377_v7  ;;  %v2961_v22 = vld [vmem:[%s9231_s6 + $0x8] sm:$0xff] }
 0x2be   : > { %2991 = vmatpush.msra.mxu2 %v2961_v22 }
 0x2bf   : > { %5422 = vmatmul.msk.f32.gmra.mxu3 %vm905_vm1, %v1879_v60  ;;  %5486 = vmatmul.msk.f32.gmra.mxu0 %vm905_vm1, %v1879_v60  ;;  %v2547_v4 = vmax.f32 %v2157_v43, 0.0  ;;  %v3255_v43 = vld [vmem:[%s9232_s7 + $0x28] sm:$0xff] }
 0x2c0   : > { %v1271_v63 = vpop.f32.mrf.mxu1  ;;  %v1694_v17 = vpop.f32.mrf.mxu2  ;;  %3277 = vmatpush.msra.mxu3 %v3255_v43 }
 0x2c1   : > { %v1272_v48 = vadd.f32 %v7159_v28, %v1271_v63  ;;  %v1695_v0 = vadd.f32 %v7421_v59, %v1694_v17 }
 0x2c2   : > { %v7466_v33 = vpop.f32.mrf.mxu3 }
 0x2c3   : > { %v1359_v2 = vmax.f32 %v1272_v48, 0.0  ;;  %v1816_v16 = vadd.f32 %v1695_v0, %v9438_v38  ;;  %2651 = vmatmul.f32.gmra.mxu1 %v2546_v21  ;;  %v7488_v48 = vpop.f32.mrf.mxu0 }
 0x2c5   : > { %v1880_v45 = vmax.f32 %v1816_v16, 0.0  ;;  %5375 = vmatmul.msk.f32.gmra.mxu2 %vm905_vm1, %v1359_v2  ;;  %v9439_v2 = vmax.f32 %v6806_v29, 0.0  ;;  %v2160_v16 = vadd.f32 %v7223_v57, %v7377_v7 }
 0x2c7   : > { %5423 = vmatmul.msk.f32.gmra.mxu3 %vm905_vm1, %v1880_v45  ;;  %5487 = vmatmul.msk.f32.gmra.mxu0 %vm905_vm1, %v1880_v45  ;;  %v2548_v29 = vmax.f32 %v2160_v16, 0.0 }
 0x2c8   : > { %v1274_v13 = vpop.f32.mrf.mxu1  ;;  %v1697_v60 = vpop.f32.mrf.mxu2 }
 0x2c9   : > { %v1275_v63 = vadd.f32 %v7159_v28, %v1274_v13  ;;  %v1698_v17 = vadd.f32 %v7421_v59, %v1697_v60 }
 0x2ca   : > { %v7486_v21 = vpop.f32.mrf.mxu3 }
 0x2cb   : > { %v1360_v0 = vmax.f32 %v1275_v63, 0.0  ;;  %v1817_v38 = vadd.f32 %v1698_v17, %v9439_v2  ;;  %2654 = vmatmul.f32.gmra.mxu1 %v2547_v4  ;;  %v9440_v17 = vmax.f32 %v6826_v11, 0.0  ;;  %v2163_v2 = vadd.f32 %v7251_v18, %v7377_v7 }
 0x2cc   : > { %v9441_v18 = vmax.f32 %v6844_v55, 0.0 }
 0x2cd   : > { %v1881_v45 = vmax.f32 %v1817_v38, 0.0  ;;  %5376 = vmatmul.msk.f32.gmra.mxu2 %vm905_vm1, %v1360_v0  ;;  %v7508_v38 = vpop.f32.mrf.mxu0 }
 0x2cf   : > { %5424 = vmatmul.msk.f32.gmra.mxu3 %vm905_vm1, %v1881_v45  ;;  %5488 = vmatmul.msk.f32.gmra.mxu0 %vm905_vm1, %v1881_v45 }
 0x2d0   : > { %v1277_v22 = vpop.f32.mrf.mxu1  ;;  %v1700_v13 = vpop.f32.mrf.mxu2 }
 0x2d1   : > { %v1278_v60 = vadd.f32 %v7159_v28, %v1277_v22  ;;  %v1701_v4 = vadd.f32 %v7421_v59, %v1700_v13  ;;  %v2549_v22 = vmax.f32 %v2163_v2, 0.0 }
 0x2d2   : > { %v7502_v57 = vpop.f32.mrf.mxu3 }
 0x2d3   : > { %v1361_v63 = vmax.f32 %v1278_v60, 0.0  ;;  %v1818_v0 = vadd.f32 %v1701_v4, %v9440_v17  ;;  %2657 = vmatmul.f32.gmra.mxu1 %v2548_v29 }
 0x2d5   : > { %v1882_v45 = vmax.f32 %v1818_v0, 0.0  ;;  %5377 = vmatmul.msk.f32.gmra.mxu2 %vm905_vm1, %v1361_v63  ;;  %v2166_v63 = vadd.f32 %v7273_v54, %v7377_v7  ;;  %v7522_v0 = vpop.f32.mrf.mxu0  ;;  %v9442_v54 = vmax.f32 %v6864_v8, 0.0  ;;  %v7543_v8 = vld [vmem:[%s9233_s8 + $0x48] sm:$0xff] }
 0x2d6   : > { %3627 = vmatpush.msra.mxu0 %v7543_v8 }
 0x2d7   : > { %5425 = vmatmul.msk.f32.gmra.mxu3 %vm905_vm1, %v1882_v45  ;;  %5489 = vmatmul.msk.f32.gmra.mxu0 %vm905_vm1, %v1882_v45 }
 0x2d8   : > { %v1280_v16 = vpop.f32.mrf.mxu1  ;;  %v1703_v43 = vpop.f32.mrf.mxu2 }
 0x2d9   : > { %v1281_v13 = vadd.f32 %v7159_v28, %v1280_v16  ;;  %v1704_v11 = vadd.f32 %v7421_v59, %v1703_v43  ;;  %v2550_v16 = vmax.f32 %v2166_v63, 0.0 }
 0x2da   : > { %v7515_v29 = vpop.f32.mrf.mxu3 }
 0x2db   : > { %v1362_v60 = vmax.f32 %v1281_v13, 0.0  ;;  %v1819_v4 = vadd.f32 %v1704_v11, %v9441_v18  ;;  %2660 = vmatmul.f32.gmra.mxu1 %v2549_v22 }
 0x2dd   : > { %v1883_v17 = vmax.f32 %v1819_v4, 0.0  ;;  %5378 = vmatmul.msk.f32.gmra.mxu2 %vm905_vm1, %v1362_v60  ;;  %v2169_v60 = vadd.f32 %v7290_v41, %v7377_v7  ;;  %v2960_v4 = vld [vmem:[%s9231_s6] sm:$0xff] }
 0x2de   : > { %2992 = vmatpush.msra.mxu2 %v2960_v4 }
 0x2df   : > { %5426 = vmatmul.msk.f32.gmra.mxu3 %vm905_vm1, %v1883_v17  ;;  %5490 = vmatmul.msk.f32.gmra.mxu0 %vm905_vm1, %v1883_v17  ;;  %v2551_v41 = vmax.f32 %v2169_v60, 0.0  ;;  %v3254_v60 = vld [vmem:[%s9232_s7 + $0x20] sm:$0xff] }
 0x2e0   : > { %v1283_v2 = vpop.f32.mrf.mxu1  ;;  %v1706_v45 = vpop.f32.mrf.mxu2  ;;  %3278 = vmatpush.msra.mxu3 %v3254_v60 }
 0x2e1   : > { %v1284_v43 = vadd.f32 %v7159_v28, %v1283_v2  ;;  %v1707_v55 = vadd.f32 %v7421_v59, %v1706_v45  ;;  %v7546_v2 = vpop.f32.mrf.mxu0 }
 0x2e2   : > { %v7528_v22 = vpop.f32.mrf.mxu3 }
 0x2e3   : > { %v1363_v13 = vmax.f32 %v1284_v43, 0.0  ;;  %v1820_v11 = vadd.f32 %v1707_v55, %v9442_v54  ;;  %2663 = vmatmul.f32.gmra.mxu1 %v2550_v16 }
 0x2e5   : > { %v1884_v18 = vmax.f32 %v1820_v11, 0.0  ;;  %5379 = vmatmul.msk.f32.gmra.mxu2 %vm905_vm1, %v1363_v13  ;;  %v9443_v13 = vmax.f32 %v6881_v40, 0.0  ;;  %v2172_v11 = vadd.f32 %v7309_v3, %v7377_v7 }
 0x2e7   : > { %5427 = vmatmul.msk.f32.gmra.mxu3 %vm905_vm1, %v1884_v18  ;;  %5491 = vmatmul.msk.f32.gmra.mxu0 %vm905_vm1, %v1884_v18  ;;  %v2552_v40 = vmax.f32 %v2172_v11, 0.0 }
 0x2e8   : > { %v1286_v63 = vpop.f32.mrf.mxu1  ;;  %v1709_v17 = vpop.f32.mrf.mxu2 }
 0x2e9   : > { %v1287_v45 = vadd.f32 %v7159_v28, %v1286_v63  ;;  %v1710_v16 = vadd.f32 %v7421_v59, %v1709_v17 }
 0x2ea   : > { %v7550_v43 = vpop.f32.mrf.mxu3 }
 0x2eb   : > { %v1364_v55 = vmax.f32 %v1287_v45, 0.0  ;;  %v1821_v54 = vadd.f32 %v1710_v16, %v9443_v13  ;;  %2666 = vmatmul.f32.gmra.mxu1 %v2551_v41  ;;  %v7566_v45 = vpop.f32.mrf.mxu0 }
 0x2ed   : > { %v1885_v18 = vmax.f32 %v1821_v54, 0.0  ;;  %5380 = vmatmul.msk.f32.gmra.mxu2 %vm905_vm1, %v1364_v55  ;;  %v9444_v55 = vmax.f32 %v6898_v25, 0.0  ;;  %v2175_v54 = vadd.f32 %v7334_v52, %v7377_v7 }
 0x2ef   : > { %5428 = vmatmul.msk.f32.gmra.mxu3 %vm905_vm1, %v1885_v18  ;;  %5492 = vmatmul.msk.f32.gmra.mxu0 %vm905_vm1, %v1885_v18 }
 0x2f0   : > { %v1289_v4 = vpop.f32.mrf.mxu1  ;;  %v1712_v63 = vpop.f32.mrf.mxu2 }
 0x2f1   : > { %v1290_v17 = vadd.f32 %v7159_v28, %v1289_v4  ;;  %v1713_v41 = vadd.f32 %v7421_v59, %v1712_v63  ;;  %v2553_v4 = vmax.f32 %v2175_v54, 0.0 }
 0x2f2   : > { %v7564_v3 = vpop.f32.mrf.mxu3 }
 0x2f3   : > { %v1365_v16 = vmax.f32 %v1290_v17, 0.0  ;;  %v1822_v13 = vadd.f32 %v1713_v41, %v9444_v55  ;;  %2669 = vmatmul.f32.gmra.mxu1 %v2552_v40  ;;  %v9445_v41 = vmax.f32 %v6921_v56, 0.0  ;;  %v7583_v55 = vpop.f32.mrf.mxu0 }
 0x2f5   : > { %v1886_v18 = vmax.f32 %v1822_v13, 0.0  ;;  %5381 = vmatmul.msk.f32.gmra.mxu2 %vm905_vm1, %v1365_v16  ;;  %v2178_v16 = vadd.f32 %v7356_v24, %v7377_v7  ;;  %v9446_v24 = vmax.f32 %v6939_v31, 0.0  ;;  %v7604_v31 = vld [vmem:[%s9233_s8 + $0x40] sm:$0xff] }
 0x2f6   : > { %3628 = vmatpush.msra.mxu0 %v7604_v31 }
 0x2f7   : > { %5429 = vmatmul.msk.f32.gmra.mxu3 %vm905_vm1, %v1886_v18  ;;  %5493 = vmatmul.msk.f32.gmra.mxu0 %vm905_vm1, %v1886_v18 }
 0x2f8   : > { %v1292_v11 = vpop.f32.mrf.mxu1  ;;  %v1715_v60 = vpop.f32.mrf.mxu2 }
 0x2f9   : > { %v1293_v63 = vadd.f32 %v7159_v28, %v1292_v11  ;;  %v1716_v17 = vadd.f32 %v7421_v59, %v1715_v60  ;;  %v2554_v11 = vmax.f32 %v2178_v16, 0.0 }
 0x2fa   : > { %v7577_v25 = vpop.f32.mrf.mxu3 }
 0x2fb   : > { %v1366_v40 = vmax.f32 %v1293_v63, 0.0  ;;  %v1823_v52 = vadd.f32 %v1716_v17, %v9445_v41  ;;  %2672 = vmatmul.f32.gmra.mxu1 %v2553_v4 }
 0x2fd   : > { %v1887_v13 = vmax.f32 %v1823_v52, 0.0  ;;  %5382 = vmatmul.msk.f32.gmra.mxu2 %vm905_vm1, %v1366_v40  ;;  %v2181_v40 = vadd.f32 %v7383_v46, %v7377_v7  ;;  %v7597_v52 = vpop.f32.mrf.mxu0 }
 0x2ff   : > { %5430 = vmatmul.msk.f32.gmra.mxu3 %vm905_vm1, %v1887_v13  ;;  %5494 = vmatmul.msk.f32.gmra.mxu0 %vm905_vm1, %v1887_v13 }
 0x300   : > { %v1295_v54 = vpop.f32.mrf.mxu1  ;;  %v1718_v18 = vpop.f32.mrf.mxu2 }
 0x301   : > { %v1296_v60 = vadd.f32 %v7159_v28, %v1295_v54  ;;  %v1719_v56 = vadd.f32 %v7421_v59, %v1718_v18  ;;  %v2555_v54 = vmax.f32 %v2181_v40, 0.0 }
 0x302   : > { %v7590_v4 = vpop.f32.mrf.mxu3 }
 0x303   : > { %v1367_v63 = vmax.f32 %v1296_v60, 0.0  ;;  %v1824_v17 = vadd.f32 %v1719_v56, %v9446_v24  ;;  %2675 = vmatmul.f32.gmra.mxu1 %v2554_v11  ;;  %v9447_v56 = vmax.f32 %v6961_v1, 0.0  ;;  %v2184_v24 = vadd.f32 %v7397_v47, %v7377_v7 }
 0x305   : > { %v1888_v41 = vmax.f32 %v1824_v17, 0.0  ;;  %5383 = vmatmul.msk.f32.gmra.mxu2 %vm905_vm1, %v1367_v63  ;;  %v7621_v1 = vpop.f32.mrf.mxu0 }
 0x307   : > { %5431 = vmatmul.msk.f32.gmra.mxu3 %vm905_vm1, %v1888_v41  ;;  %5495 = vmatmul.msk.f32.gmra.mxu0 %vm905_vm1, %v1888_v41 }
 0x308   : > { %v1298_v16 = vpop.f32.mrf.mxu1  ;;  %v1721_v13 = vpop.f32.mrf.mxu2 }
 0x309   : > { %v1299_v18 = vadd.f32 %v7159_v28, %v1298_v16  ;;  %v1722_v46 = vadd.f32 %v7421_v59, %v1721_v13  ;;  %v3253_v16 = vld [vmem:[%s9232_s7 + $0x18] sm:$0xff]  ;;  %v2556_v13 = vmax.f32 %v2184_v24, 0.0 }
 0x30a   : > { %v7609_v11 = vpop.f32.mrf.mxu3  ;;  %3279 = vmatpush.msra.mxu3 %v3253_v16 }
 0x30b   : > { %v1368_v60 = vmax.f32 %v1299_v18, 0.0  ;;  %v1825_v63 = vadd.f32 %v1722_v46, %v9447_v56  ;;  %2678 = vmatmul.f32.gmra.mxu1 %v2555_v54 }
 0x30d   : > { %v1889_v17 = vmax.f32 %v1825_v63, 0.0  ;;  %5384 = vmatmul.msk.f32.gmra.mxu2 %vm905_vm1, %v1368_v60  ;;  %v9448_v60 = vmax.f32 %v6978_v62, 0.0  ;;  %v2187_v63 = vadd.f32 %v7424_v39, %v7377_v7  ;;  %v9449_v39 = vmax.f32 %v7001_v37, 0.0 }
 0x30f   : > { %5432 = vmatmul.msk.f32.gmra.mxu3 %vm905_vm1, %v1889_v17  ;;  %5496 = vmatmul.msk.f32.gmra.mxu0 %vm905_vm1, %v1889_v17 }
 0x310   : > { %v1301_v40 = vpop.f32.mrf.mxu1  ;;  %v1724_v41 = vpop.f32.mrf.mxu2 }
 0x311   : > { %v1302_v54 = vadd.f32 %v7159_v28, %v1301_v40  ;;  %v1725_v47 = vadd.f32 %v7421_v59, %v1724_v41  ;;  %v2557_v41 = vmax.f32 %v2187_v63, 0.0 }
 0x312   : > { %v7625_v18 = vpop.f32.mrf.mxu3 }
 0x313   : > { %v1369_v46 = vmax.f32 %v1302_v54, 0.0  ;;  %v1826_v56 = vadd.f32 %v1725_v47, %v9448_v60  ;;  %2681 = vmatmul.f32.gmra.mxu1 %v2556_v13  ;;  %v7638_v13 = vpop.f32.mrf.mxu0 }
 0x315   : > { %v1890_v17 = vmax.f32 %v1826_v56, 0.0  ;;  %5385 = vmatmul.msk.f32.gmra.mxu2 %vm905_vm1, %v1369_v46  ;;  %v7643_v46 = vperm.slane %v7373_v12, 1  ;;  %v2190_v56 = vadd.f32 %v7440_v26, %v7377_v7 }
 0x317   : > { %5433 = vmatmul.msk.f32.gmra.mxu3 %vm905_vm1, %v1890_v17  ;;  %5497 = vmatmul.msk.f32.gmra.mxu0 %vm905_vm1, %v1890_v17  ;;  %v2351_v12 = vadd.f32 %v7077_v9, %v7643_v46 }
 0x318   : > { %v1304_v24 = vpop.f32.mrf.mxu1  ;;  %v1727_v40 = vpop.f32.mrf.mxu2 }
 0x319   : > { %v1305_v16 = vadd.f32 %v7159_v28, %v1304_v24  ;;  %v1728_v54 = vadd.f32 %v7421_v59, %v1727_v40  ;;  %v7651_v28 = vld [vmem:[%s9234_s9 + $0x4] ss:$0 sm:$0xff]  ;;  %v2558_v24 = vmax.f32 %v2190_v56, 0.0 }
 0x31a   : > { %v7636_v62 = vpop.f32.mrf.mxu3 }
 0x31b   : > { %v1370_v47 = vmax.f32 %v1305_v16, 0.0  ;;  %v1827_v60 = vadd.f32 %v1728_v54, %v9449_v39  ;;  %2684 = vmatmul.f32.gmra.mxu1 %v2557_v41  ;;  %v9450_v16 = vmax.f32 %v7021_v35, 0.0  ;;  %v2193_v39 = vadd.f32 %v7453_v42, %v7377_v7 }
 0x31c   : > { %v2354_v42 = vadd.f32 %v7099_v27, %v7643_v46 }
 0x31d   : > { %v1891_v63 = vmax.f32 %v1827_v60, 0.0  ;;  %5386 = vmatmul.msk.f32.gmra.mxu2 %vm905_vm1, %v1370_v47  ;;  %v7667_v60 = vpop.f32.mrf.mxu0 }
 0x31f   : > { %5434 = vmatmul.msk.f32.gmra.mxu3 %vm905_vm1, %v1891_v63  ;;  %5498 = vmatmul.msk.f32.gmra.mxu0 %vm905_vm1, %v1891_v63 }
 0x320   : > { %v1730_v37 = vpop.f32.mrf.mxu2  ;;  %v2640_v17 = vpop.f32.mrf.mxu1 }
 0x321   : > { %v1731_v26 = vadd.f32 %v7421_v59, %v1730_v37  ;;  %v2641_v40 = vadd.f32 %v2640_v17, %v7651_v28  ;;  %v7677_v37 = vld [vmem:[%s9233_s8 + $0x38] sm:$0xff]  ;;  %v2559_v17 = vmax.f32 %v2193_v39, 0.0 }
 0x322   : > { %v7659_v41 = vpop.f32.mrf.mxu3  ;;  %3629 = vmatpush.msra.mxu0 %v7677_v37 }
 0x323   : > { %v1828_v54 = vadd.f32 %v1731_v26, %v9450_v16  ;;  %v7663_v47 = vadd.f32 %v2641_v40, %v2351_v12  ;;  %2687 = vmatmul.f32.gmra.mxu1 %v2558_v24  ;;  %v9451_v40 = vmax.f32 %v7036_v19, 0.0 }
 0x325   : > { %v1892_v63 = vmax.f32 %v1828_v54, 0.0  ;;  %v9311_v9 = vmax.f32 %v7663_v47, 0.0  ;;  %v7693_v39 = vpop.f32.mrf.mxu0 }
 0x327   : > { %5435 = vmatmul.msk.f32.gmra.mxu3 %vm905_vm1, %v1892_v63  ;;  %5499 = vmatmul.msk.f32.gmra.mxu0 %vm905_vm1, %v1892_v63  ;;  %v2196_v63 = vadd.f32 %v7466_v33, %v7377_v7  ;;  %v2357_v33 = vadd.f32 %v7118_v14, %v7643_v46 }
 0x328   : > { %2993 = vmatmul.f32.vlgmr.msra.gmra.mxu2 %v9311_v9  ;;  %v1733_v35 = vpop.f32.mrf.mxu2  ;;  %v2643_v56 = vpop.f32.mrf.mxu1 }
 0x329   : > { %v1734_v12 = vadd.f32 %v7421_v59, %v1733_v35  ;;  %v2644_v24 = vadd.f32 %v2643_v56, %v7651_v28  ;;  %v3252_v56 = vld [vmem:[%s9232_s7 + $0x10] sm:$0xff] }
 0x32a   : > { %v7684_v26 = vpop.f32.mrf.mxu3  ;;  %3280 = vmatpush.msra.mxu3 %v3252_v56 }
 0x32b   : > { %v1829_v16 = vadd.f32 %v1734_v12, %v9451_v40  ;;  %v7688_v54 = vadd.f32 %v2644_v24, %v2354_v42  ;;  %2690 = vmatmul.f32.gmra.mxu1 %v2559_v17  ;;  %v2560_v42 = vmax.f32 %v2196_v63, 0.0 }
 0x32d   : > { %9452 = vst [vmem:[#allocation19_spill] sm:$0xff] %v7688_v54  ;;  %v1893_v9 = vmax.f32 %v1829_v16, 0.0  ;;  %v9312_v27 = vmax.f32 %v7688_v54, 0.0  ;;  %v7721_v56 = vpop.f32.mrf.mxu0 }
 0x32f   : > { %5436 = vmatmul.msk.f32.gmra.mxu3 %vm905_vm1, %v1893_v9  ;;  %5500 = vmatmul.msk.f32.gmra.mxu0 %vm905_vm1, %v1893_v9  ;;  %v9453_v9 = vmax.f32 %v7053_v6, 0.0  ;;  %v2360_v6 = vadd.f32 %v7137_v34, %v7643_v46 }
 0x330   : > { %2996 = vmatmul.f32.gmra.mxu2 %v9312_v27  ;;  %v1736_v19 = vpop.f32.mrf.mxu2  ;;  %v2646_v35 = vpop.f32.mrf.mxu1  ;;  %v2199_v27 = vadd.f32 %v7486_v21, %v7377_v7 }
 0x331   : > { %v1737_v17 = vadd.f32 %v7421_v59, %v1736_v19  ;;  %v2647_v12 = vadd.f32 %v2646_v35, %v7651_v28 }
 0x332   : > { %v7706_v24 = vpop.f32.mrf.mxu3  ;;  %v2561_v35 = vmax.f32 %v2199_v27, 0.0 }
 0x333   : > { %v1830_v40 = vadd.f32 %v1737_v17, %v9453_v9  ;;  %v7710_v16 = vadd.f32 %v2647_v12, %v2357_v33  ;;  %2693 = vmatmul.f32.gmra.mxu1 %v2560_v42  ;;  %v9454_v17 = vmax.f32 %v7081_v32, 0.0  ;;  %v2202_v9 = vadd.f32 %v7502_v57, %v7377_v7 }
 0x334   : > { %v2363_v32 = vadd.f32 %v7170_v58, %v7643_v46 }
 0x335   : > { %v1894_v54 = vmax.f32 %v1830_v40, 0.0  ;;  %v9316_v14 = vmax.f32 %v7710_v16, 0.0 }
 0x337   : > { %5437 = vmatmul.msk.f32.gmra.mxu3 %vm905_vm1, %v1894_v54  ;;  %5501 = vmatmul.msk.f32.gmra.mxu0 %vm905_vm1, %v1894_v54 }
 0x338   : > { %2999 = vmatmul.f32.gmra.mxu2 %v9316_v14  ;;  %v1739_v63 = vpop.f32.mrf.mxu2  ;;  %v2649_v19 = vpop.f32.mrf.mxu1 }
 0x339   : > { %v1740_v21 = vadd.f32 %v7421_v59, %v1739_v63  ;;  %v2650_v33 = vadd.f32 %v2649_v19, %v7651_v28  ;;  %v2562_v19 = vmax.f32 %v2202_v9, 0.0 }
 0x33a   : > { %v7725_v42 = vpop.f32.mrf.mxu3 }
 0x33b   : > { %v1831_v54 = vadd.f32 %v1740_v21, %v9454_v17  ;;  %v7729_v12 = vadd.f32 %v2650_v33, %v2360_v6  ;;  %2696 = vmatmul.f32.gmra.mxu1 %v2561_v35  ;;  %v7744_v21 = vpop.f32.mrf.mxu0  ;;  %v9455_v33 = vmax.f32 %v7103_v51, 0.0  ;;  %v7760_v51 = vld [vmem:[%s9233_s8 + $0x30] sm:$0xff] }
 0x33c   : > { %3630 = vmatpush.msra.mxu0 %v7760_v51 }
 0x33d   : > { %v1895_v40 = vmax.f32 %v1831_v54, 0.0  ;;  %v9314_v34 = vmax.f32 %v7729_v12, 0.0 }
 0x33f   : > { %5438 = vmatmul.msk.f32.gmra.mxu3 %vm905_vm1, %v1895_v40  ;;  %5502 = vmatmul.msk.f32.gmra.mxu0 %vm905_vm1, %v1895_v40  ;;  %v2205_v40 = vadd.f32 %v7515_v29, %v7377_v7  ;;  %v2366_v29 = vadd.f32 %v7192_v15, %v7643_v46 }
 0x340   : > { %3002 = vmatmul.f32.gmra.mxu2 %v9314_v34  ;;  %v1742_v27 = vpop.f32.mrf.mxu2  ;;  %v2652_v63 = vpop.f32.mrf.mxu1 }
 0x341   : > { %v1743_v6 = vadd.f32 %v7421_v59, %v1742_v27  ;;  %v2653_v57 = vadd.f32 %v2652_v63, %v7651_v28  ;;  %v2563_v63 = vmax.f32 %v2205_v40, 0.0 }
 0x342   : > { %v7742_v35 = vpop.f32.mrf.mxu3 }
 0x343   : > { %v1832_v17 = vadd.f32 %v1743_v6, %v9455_v33  ;;  %v7748_v54 = vadd.f32 %v2653_v57, %v2363_v32  ;;  %2699 = vmatmul.f32.gmra.mxu1 %v2562_v19  ;;  %v9457_v6 = vld [vmem:[#allocation6_spill] sm:$0xff]  ;;  %v7775_v14 = vpop.f32.mrf.mxu0 }
 0x344   : > { %v9458_v57 = vmax.f32 %v9457_v6, 0.0 }
 0x345   : > { %9456 = vst [vmem:[#allocation20_spill] sm:$0xff] %v7748_v54  ;;  %v1896_v34 = vmax.f32 %v1832_v17, 0.0  ;;  %v9315_v58 = vmax.f32 %v7748_v54, 0.0 }
 0x347   : > { %5439 = vmatmul.msk.f32.gmra.mxu3 %vm905_vm1, %v1896_v34  ;;  %5503 = vmatmul.msk.f32.gmra.mxu0 %vm905_vm1, %v1896_v34 }
 0x348   : > { %3005 = vmatmul.f32.gmra.mxu2 %v9315_v58  ;;  %v1745_v9 = vpop.f32.mrf.mxu2  ;;  %v2655_v27 = vpop.f32.mrf.mxu1  ;;  %v2208_v58 = vadd.f32 %v7528_v22, %v7377_v7  ;;  %v2369_v22 = vadd.f32 %v7215_v23, %v7643_v46 }
 0x349   : > { %v1746_v32 = vadd.f32 %v7421_v59, %v1745_v9  ;;  %v2656_v19 = vadd.f32 %v2655_v27, %v7651_v28 }
 0x34a   : > { %v7767_v34 = vpop.f32.mrf.mxu3 }
 0x34b   : > { %v1833_v33 = vadd.f32 %v1746_v32, %v9458_v57  ;;  %v7771_v17 = vadd.f32 %v2656_v19, %v2366_v29  ;;  %2702 = vmatmul.f32.gmra.mxu1 %v2563_v63  ;;  %v3251_v29 = vld [vmem:[%s9232_s7 + $0x8] sm:$0xff]  ;;  %v2564_v63 = vmax.f32 %v2208_v58, 0.0  ;;  %v9460_v57 = vld [vmem:[#allocation7_spill] sm:$0xff]  ;;  %v7798_v58 = vpop.f32.mrf.mxu0 }
 0x34c   : > { %3281 = vmatpush.msra.mxu3 %v3251_v29  ;;  %v2372_v29 = vadd.f32 %v7238_v30, %v7643_v46 }
 0x34d   : > { %9459 = vst [vmem:[#allocation6_spill] sm:$0xff] %v7771_v17  ;;  %v1897_v15 = vmax.f32 %v1833_v33, 0.0  ;;  %v9317_v40 = vmax.f32 %v7771_v17, 0.0  ;;  %v9461_v33 = vmax.f32 %v9460_v57, 0.0  ;;  %v2211_v17 = vadd.f32 %v7550_v43, %v7377_v7 }
 0x34f   : > { %5440 = vmatmul.msk.f32.gmra.mxu3 %vm905_vm1, %v1897_v15  ;;  %5504 = vmatmul.msk.f32.gmra.mxu0 %vm905_vm1, %v1897_v15 }
 0x350   : > { %3008 = vmatmul.f32.gmra.mxu2 %v9317_v40  ;;  %v1748_v9 = vpop.f32.mrf.mxu2  ;;  %v2658_v27 = vpop.f32.mrf.mxu1 }
 0x351   : > { %v1749_v32 = vadd.f32 %v7421_v59, %v1748_v9  ;;  %v2659_v19 = vadd.f32 %v2658_v27, %v7651_v28 }
 0x352   : > { %v7789_v6 = vpop.f32.mrf.mxu3 }
 0x353   : > { %v1834_v15 = vadd.f32 %v1749_v32, %v9461_v33  ;;  %v7793_v40 = vadd.f32 %v2659_v19, %v2369_v22  ;;  %2705 = vmatmul.f32.gmra.mxu1 %v2564_v63  ;;  %v2565_v22 = vmax.f32 %v2211_v17, 0.0  ;;  %v9463_v19 = vld [vmem:[#allocation8_spill] sm:$0xff] }
 0x354   : > { %v9464_v57 = vmax.f32 %v9463_v19, 0.0 }
 0x355   : > { %9462 = vst [vmem:[#allocation7_spill] sm:$0xff] %v7793_v40  ;;  %v1898_v54 = vmax.f32 %v1834_v15, 0.0  ;;  %v9320_v23 = vmax.f32 %v7793_v40, 0.0 }
 0x357   : > { %5441 = vmatmul.msk.f32.gmra.mxu3 %vm905_vm1, %v1898_v54  ;;  %5505 = vmatmul.msk.f32.gmra.mxu0 %vm905_vm1, %v1898_v54  ;;  %v2214_v54 = vadd.f32 %v7564_v3, %v7377_v7 }
 0x358   : > { %3011 = vmatmul.f32.gmra.mxu2 %v9320_v23  ;;  %v1751_v9 = vpop.f32.mrf.mxu2  ;;  %v2661_v27 = vpop.f32.mrf.mxu1 }
 0x359   : > { %v1752_v43 = vadd.f32 %v7421_v59, %v1751_v9  ;;  %v2662_v63 = vadd.f32 %v2661_v27, %v7651_v28  ;;  %v2375_v9 = vadd.f32 %v7269_v5, %v7643_v46  ;;  %v2566_v27 = vmax.f32 %v2214_v54, 0.0 }
 0x35a   : > { %v7808_v32 = vpop.f32.mrf.mxu3 }
 0x35b   : > { %v1835_v33 = vadd.f32 %v1752_v43, %v9464_v57  ;;  %v7812_v15 = vadd.f32 %v2662_v63, %v2372_v29  ;;  %2708 = vmatmul.f32.gmra.mxu1 %v2565_v22  ;;  %v7823_v29 = vpop.f32.mrf.mxu0  ;;  %v9465_v63 = vmax.f32 %v7196_v44, 0.0  ;;  %v2217_v57 = vadd.f32 %v7577_v25, %v7377_v7  ;;  %v7843_v44 = vld [vmem:[%s9233_s8 + $0x28] sm:$0xff] }
 0x35c   : > { %v2378_v25 = vadd.f32 %v7292_v36, %v7643_v46  ;;  %3631 = vmatpush.msra.mxu0 %v7843_v44  ;;  %v2220_v36 = vadd.f32 %v7590_v4, %v7377_v7 }
 0x35d   : > { %v1899_v23 = vmax.f32 %v1835_v33, 0.0  ;;  %v9323_v40 = vmax.f32 %v7812_v15, 0.0 }
 0x35e   : > { %v2568_v4 = vmax.f32 %v2220_v36, 0.0 }
 0x35f   : > { %5442 = vmatmul.msk.f32.gmra.mxu3 %vm905_vm1, %v1899_v23  ;;  %5506 = vmatmul.msk.f32.gmra.mxu0 %vm905_vm1, %v1899_v23 }
 0x360   : > { %3014 = vmatmul.f32.gmra.mxu2 %v9323_v40  ;;  %v1754_v30 = vpop.f32.mrf.mxu2  ;;  %v2664_v17 = vpop.f32.mrf.mxu1 }
 0x361   : > { %v1755_v3 = vadd.f32 %v7421_v59, %v1754_v30  ;;  %v2665_v22 = vadd.f32 %v2664_v17, %v7651_v28  ;;  %v2567_v17 = vmax.f32 %v2217_v57, 0.0 }
 0x362   : > { %v7827_v43 = vpop.f32.mrf.mxu3 }
 0x363   : > { %v1836_v23 = vadd.f32 %v1755_v3, %v9465_v63  ;;  %v7831_v19 = vadd.f32 %v2665_v22, %v2375_v9  ;;  %2711 = vmatmul.f32.gmra.mxu1 %v2566_v27  ;;  %v7852_v22 = vpop.f32.mrf.mxu0  ;;  %v9466_v63 = vld [vmem:[#allocation9_spill] sm:$0xff] }
 0x365   : > { %v1900_v33 = vmax.f32 %v1836_v23, 0.0  ;;  %v9322_v5 = vmax.f32 %v7831_v19, 0.0  ;;  %v9467_v23 = vmax.f32 %v9466_v63, 0.0 }
 0x367   : > { %5443 = vmatmul.msk.f32.gmra.mxu3 %vm905_vm1, %v1900_v33  ;;  %5507 = vmatmul.msk.f32.gmra.mxu0 %vm905_vm1, %v1900_v33 }
 0x368   : > { %3017 = vmatmul.f32.gmra.mxu2 %v9322_v5  ;;  %v1757_v54 = vpop.f32.mrf.mxu2  ;;  %v2667_v30 = vpop.f32.mrf.mxu1 }
 0x369   : > { %v1758_v9 = vadd.f32 %v7421_v59, %v1757_v54  ;;  %v2668_v27 = vadd.f32 %v2667_v30, %v7651_v28 }
 0x36a   : > { %v7850_v3 = vpop.f32.mrf.mxu3 }
 0x36b   : > { %v1837_v33 = vadd.f32 %v1758_v9, %v9467_v23  ;;  %v7856_v5 = vadd.f32 %v2668_v27, %v2378_v25  ;;  %2714 = vmatmul.f32.gmra.mxu1 %v2567_v17  ;;  %v3250_v25 = vld [vmem:[%s9232_s7] sm:$0xff]  ;;  %v2381_v17 = vadd.f32 %v7320_v49, %v7643_v46  ;;  %v5914_v23 = vld [vmem:[%s9233_s8 + $0x78] sm:$0xff]  ;;  %v5915_v49 = vld [vmem:[%s9233_s8 + $0x70] sm:$0xff]  ;;  %v7886_v36 = vpop.f32.mrf.mxu0 }
 0x36c   : > { %3282 = vmatpush.msra.mxu3 %v3250_v25 }
 0x36d   : > { %9468 = vst [vmem:[#allocation8_spill] sm:$0xff] %v7856_v5  ;;  %v1901_v57 = vmax.f32 %v1837_v33, 0.0  ;;  %v9324_v54 = vmax.f32 %v7856_v5, 0.0  ;;  %v9469_v33 = vld [vmem:[#allocation10_spill] sm:$0xff] }
 0x36e   : > { %5598 = vmatpush.msrb.mxu3 %v5914_v23 }
 0x36f   : > { %5444 = vmatmul.msk.f32.gmra.mxu3 %vm905_vm1, %v1901_v57  ;;  %5508 = vmatmul.msk.f32.gmra.mxu0 %vm905_vm1, %v1901_v57  ;;  %v9470_v57 = vmax.f32 %v9469_v33, 0.0 }
 0x370   : > { %3020 = vmatmul.f32.gmra.mxu2 %v9324_v54  ;;  %v1760_v30 = vpop.f32.mrf.mxu2  ;;  %v2670_v40 = vpop.f32.mrf.mxu1  ;;  %5599 = vmatpush.msrb.mxu3 %v5915_v49  ;;  %v9471_v49 = vld [vmem:[#allocation11_spill] sm:$0xff] }
 0x371   : > { %v1761_v9 = vadd.f32 %v7421_v59, %v1760_v30  ;;  %v2671_v27 = vadd.f32 %v2670_v40, %v7651_v28  ;;  %v2223_v40 = vadd.f32 %v7609_v11, %v7377_v7  ;;  %v5917_v11 = vld [vmem:[%s9233_s8 + $0x60] sm:$0xff] }
 0x372   : > { %v7872_v63 = vpop.f32.mrf.mxu3 }
 0x373   : > { %v1838_v54 = vadd.f32 %v1761_v9, %v9470_v57  ;;  %v7879_v5 = vadd.f32 %v2671_v27, %v2381_v17  ;;  %2717 = vmatmul.f32.gmra.mxu1 %v2568_v4  ;;  %v5916_v9 = vld [vmem:[%s9233_s8 + $0x68] sm:$0xff]  ;;  %v2569_v27 = vmax.f32 %v2223_v40, 0.0 }
 0x374   : > { %5600 = vmatpush.msrb.mxu3 %v5916_v9 }
 0x375   : > { %v1902_v30 = vmax.f32 %v1838_v54, 0.0  ;;  %v9326_v25 = vmax.f32 %v7879_v5, 0.0  ;;  %v2384_v54 = vadd.f32 %v7346_v50, %v7643_v46  ;;  %v2226_v50 = vadd.f32 %v7625_v18, %v7377_v7 }
 0x376   : > { %5601 = vmatpush.msrb.mxu3 %v5917_v11 }
 0x377   : > { %5445 = vmatmul.msk.f32.gmra.mxu3 %vm905_vm1, %v1902_v30  ;;  %5509 = vmatmul.msk.f32.gmra.mxu0 %vm905_vm1, %v1902_v30  ;;  %v9472_v30 = vmax.f32 %v9471_v49, 0.0 }
 0x378   : > { %3023 = vmatmul.f32.gmra.mxu2 %v9326_v25  ;;  %v1763_v17 = vpop.f32.mrf.mxu2  ;;  %v2673_v4 = vpop.f32.mrf.mxu1  ;;  %5602 = vmatpush.msrb.mxu3 %v7414_v61 }
 0x379   : > { %v1764_v23 = vadd.f32 %v7421_v59, %v1763_v17  ;;  %v2674_v33 = vadd.f32 %v2673_v4, %v7651_v28  ;;  %v7915_v4 = vpop.f32.mrf.mxu0 }
 0x37a   : > { %v7903_v57 = vpop.f32.mrf.mxu3  ;;  %5603 = vmatpush.msrb.mxu3 %v7481_v53  ;;  %v9473_v53 = vld [vmem:[#allocation17_spill] sm:$0xff] }
 0x37b   : > { %v1839_v9 = vadd.f32 %v1764_v23, %v9472_v30  ;;  %v7908_v25 = vadd.f32 %v2674_v33, %v2384_v54  ;;  %2720 = vmatmul.f32.gmra.mxu1 %v2569_v27  ;;  %v2387_v18 = vadd.f32 %v9473_v53, %v7643_v46  ;;  %v2570_v54 = vmax.f32 %v2226_v50, 0.0  ;;  %v9474_v33 = vld [vmem:[#allocation12_spill] sm:$0xff] }
 0x37c   : > { %5604 = vmatpush.msrb.mxu3 %v7543_v8  ;;  %v9475_v49 = vmax.f32 %v9474_v33, 0.0 }
 0x37d   : > { %v1903_v40 = vmax.f32 %v1839_v9, 0.0  ;;  %v9329_v17 = vmax.f32 %v7908_v25, 0.0 }
 0x37e   : > { %5605 = vmatpush.msrb.mxu3 %v7604_v31  ;;  %v2229_v31 = vadd.f32 %v7636_v62, %v7377_v7  ;;  %v9476_v62 = vld [vmem:[#allocation18_spill] sm:$0xff] }
 0x37f   : > { %5446 = vmatmul.msk.f32.gmra.mxu3 %vm905_vm1, %v1903_v40  ;;  %5510 = vmatmul.msk.f32.gmra.mxu0 %vm905_vm1, %v1903_v40 }
 0x380   : > { %3026 = vmatmul.f32.gmra.mxu2 %v9329_v17  ;;  %v1766_v61 = vpop.f32.mrf.mxu2  ;;  %v2676_v11 = vpop.f32.mrf.mxu1  ;;  %5606 = vmatpush.msrb.mxu3 %v7677_v37  ;;  %v2571_v53 = vmax.f32 %v2229_v31, 0.0 }
 0x381   : > { %v1767_v27 = vadd.f32 %v7421_v59, %v1766_v61  ;;  %v2677_v8 = vadd.f32 %v2676_v11, %v7651_v28  ;;  %v2390_v11 = vadd.f32 %v9476_v62, %v7643_v46 }
 0x382   : > { %v7926_v23 = vpop.f32.mrf.mxu3  ;;  %5607 = vmatpush.msrb.mxu3 %v7760_v51  ;;  %v3608_v51 = vld [vmem:[%s9233_s8 + $0x20] sm:$0xff] }
 0x383   : > { %v1840_v30 = vadd.f32 %v1767_v27, %v9475_v49  ;;  %v7931_v9 = vadd.f32 %v2677_v8, %v2387_v18  ;;  %2723 = vmatmul.f32.gmra.mxu1 %v2570_v54  ;;  %v7947_v18 = vpop.f32.mrf.mxu0  ;;  %3632 = vmatpush.msra.mxu0 %v3608_v51  ;;  %v9477_v8 = vld [vmem:[#allocation13_spill] sm:$0xff] }
 0x384   : > { %5608 = vmatpush.msrb.mxu3 %v7843_v44  ;;  %v9478_v33 = vmax.f32 %v9477_v8, 0.0 }
 0x385   : > { %v1904_v50 = vmax.f32 %v1840_v30, 0.0  ;;  %v9327_v40 = vmax.f32 %v7931_v9, 0.0 }
 0x386   : > { %5609 = vmatpush.msrb.mxu3 %v3608_v51  ;;  %v9480_v51 = vld [vmem:[#allocation5_spill] sm:$0xff] }
 0x387   : > { %5447 = vmatmul.msk.f32.gmra.mxu3 %vm905_vm1, %v1904_v50  ;;  %5511 = vmatmul.msk.f32.gmra.mxu0 %vm905_vm1, %v1904_v50  ;;  %v2232_v50 = vadd.f32 %v7659_v41, %v7377_v7 }
 0x388   : > { %3029 = vmatmul.f32.gmra.mxu2 %v9327_v40  ;;  %v1769_v37 = vpop.f32.mrf.mxu2  ;;  %v2679_v61 = vpop.f32.mrf.mxu1 }
 0x389   : > { %v1770_v44 = vadd.f32 %v7421_v59, %v1769_v37  ;;  %v2680_v54 = vadd.f32 %v2679_v61, %v7651_v28 }
 0x38a   : > { %v7951_v27 = vpop.f32.mrf.mxu3 }
 0x38b   : > { %v1841_v49 = vadd.f32 %v1770_v44, %v9478_v33  ;;  %v7955_v30 = vadd.f32 %v2680_v54, %v2390_v11  ;;  %2726 = vmatmul.f32.gmra.mxu1 %v2571_v53  ;;  %v2393_v11 = vadd.f32 %v9480_v51, %v7643_v46  ;;  %v2572_v44 = vmax.f32 %v2232_v50, 0.0  ;;  %v7970_v8 = vpop.f32.mrf.mxu0  ;;  %v9481_v33 = vld [vmem:[#allocation14_spill] sm:$0xff] }
 0x38d   : > { %9479 = vst [vmem:[#allocation9_spill] sm:$0xff] %v7955_v30  ;;  %v1905_v31 = vmax.f32 %v1841_v49, 0.0  ;;  %v9328_v62 = vmax.f32 %v7955_v30, 0.0  ;;  %v9482_v49 = vmax.f32 %v9481_v33, 0.0 }
 0x38f   : > { %5448 = vmatmul.msk.f32.gmra.mxu3 %vm905_vm1, %v1905_v31  ;;  %5512 = vmatmul.msk.f32.gmra.mxu0 %vm905_vm1, %v1905_v31 }
 0x390   : > { %3032 = vmatmul.f32.gmra.mxu2 %v9328_v62  ;;  %v1772_v37 = vpop.f32.mrf.mxu2  ;;  %v2682_v61 = vpop.f32.mrf.mxu1  ;;  %v2235_v62 = vadd.f32 %v7684_v26, %v7377_v7  ;;  %v5918_v26 = vld [vmem:[%s9234_s9 + $0x2] ss:$0 sm:$0xff] }
 0x391   : > { %v1773_v53 = vadd.f32 %v7421_v59, %v1772_v37  ;;  %v2683_v41 = vadd.f32 %v2682_v61, %v7651_v28  ;;  %v2396_v61 = vadd.f32 %v7447_v20, %v7643_v46 }
 0x392   : > { %v7968_v54 = vpop.f32.mrf.mxu3  ;;  %v2573_v51 = vmax.f32 %v2235_v62, 0.0 }
 0x393   : > { %v1842_v31 = vadd.f32 %v1773_v53, %v9482_v49  ;;  %v7974_v40 = vadd.f32 %v2683_v41, %v2393_v11  ;;  %2729 = vmatmul.f32.gmra.mxu1 %v2572_v44  ;;  %v9484_v41 = vld [vmem:[#allocation15_spill] sm:$0xff]  ;;  %v7997_v20 = vpop.f32.mrf.mxu0 }
 0x395   : > { %9483 = vst [vmem:[#allocation10_spill] sm:$0xff] %v7974_v40  ;;  %v1906_v17 = vmax.f32 %v1842_v31, 0.0  ;;  %v9330_v50 = vmax.f32 %v7974_v40, 0.0  ;;  %v2238_v31 = vadd.f32 %v7706_v24, %v7377_v7 }
 0x397   : > { %5449 = vmatmul.msk.f32.gmra.mxu3 %vm905_vm1, %v1906_v17  ;;  %5513 = vmatmul.msk.f32.gmra.mxu0 %vm905_vm1, %v1906_v17  ;;  %v9485_v17 = vmax.f32 %v9484_v41, 0.0  ;;  %v9487_v41 = vld [vmem:[#allocation16_spill] sm:$0xff] }
 0x398   : > { %3035 = vmatmul.f32.gmra.mxu2 %v9330_v50  ;;  %v1775_v59 = vpop.f32.mrf.mxu2  ;;  %v2685_v37 = vpop.f32.mrf.mxu1 }
 0x399   : > { %v1776_v11 = vadd.f32 %v5918_v26, %v1775_v59  ;;  %v2686_v44 = vadd.f32 %v2685_v37, %v7651_v28 }
 0x39a   : > { %v7989_v53 = vpop.f32.mrf.mxu3 }
 0x39b   : > { %v1843_v33 = vadd.f32 %v1776_v11, %v9485_v17  ;;  %v7993_v49 = vadd.f32 %v2686_v44, %v2396_v61  ;;  %2732 = vmatmul.f32.gmra.mxu1 %v2573_v51  ;;  %v2399_v61 = vadd.f32 %v7462_v10, %v7643_v46  ;;  %v2574_v51 = vmax.f32 %v2238_v31, 0.0  ;;  %v8016_v30 = vpop.f32.mrf.mxu0 }
 0x39c   : > { %v9488_v17 = vmax.f32 %v9487_v41, 0.0 }
 0x39d   : > { %9486 = vst [vmem:[#allocation11_spill] sm:$0xff] %v7993_v49  ;;  %v1907_v62 = vmax.f32 %v1843_v33, 0.0  ;;  %v9332_v50 = vmax.f32 %v7993_v49, 0.0 }
 0x39f   : > { %5450 = vmatmul.msk.f32.gmra.mxu3 %vm905_vm1, %v1907_v62  ;;  %5514 = vmatmul.msk.f32.gmra.mxu0 %vm905_vm1, %v1907_v62  ;;  %v2241_v62 = vadd.f32 %v7725_v42, %v7377_v7  ;;  %v2402_v42 = vadd.f32 %v7488_v48, %v7643_v46  ;;  %v2244_v48 = vadd.f32 %v7742_v35, %v7377_v7 }
 0x3a0   : > { %3038 = vmatmul.f32.gmra.mxu2 %v9332_v50  ;;  %v1778_v59 = vpop.f32.mrf.mxu2  ;;  %v2688_v37 = vpop.f32.mrf.mxu1 }
 0x3a1   : > { %v1779_v11 = vadd.f32 %v5918_v26, %v1778_v59  ;;  %v2689_v24 = vadd.f32 %v2688_v37, %v7651_v28  ;;  %v3607_v26 = vld [vmem:[%s9233_s8 + $0x18] sm:$0xff]  ;;  %v2575_v31 = vmax.f32 %v2241_v62, 0.0  ;;  %v8031_v37 = vld [vmem:[%s9234_s9 + $0x5] ss:$0 sm:$0xff]  ;;  %v2576_v62 = vmax.f32 %v2244_v48, 0.0 }
 0x3a2   : > { %v8007_v44 = vpop.f32.mrf.mxu3  ;;  %3633 = vmatpush.msra.mxu0 %v3607_v26  ;;  %5610 = vmatpush.msrb.mxu3 %v3607_v26  ;;  %v2408_v48 = vadd.f32 %v7522_v0, %v7643_v46 }
 0x3a3   : > { %v1844_v33 = vadd.f32 %v1779_v11, %v9488_v17  ;;  %v8011_v40 = vadd.f32 %v2689_v24, %v2399_v61  ;;  %2735 = vmatmul.f32.gmra.mxu1 %v2574_v51 }
 0x3a5   : > { %v1908_v50 = vmax.f32 %v1844_v33, 0.0  ;;  %v9341_v49 = vmax.f32 %v8011_v40, 0.0  ;;  %v2405_v33 = vadd.f32 %v7508_v38, %v7643_v46 }
 0x3a7   : > { %5451 = vmatmul.msk.f32.gmra.mxu3 %vm905_vm1, %v1908_v50  ;;  %5515 = vmatmul.msk.f32.gmra.mxu0 %vm905_vm1, %v1908_v50 }
 0x3a8   : > { %3041 = vmatmul.f32.gmra.mxu2 %v9341_v49  ;;  %v2691_v10 = vpop.f32.mrf.mxu1 }
 0x3a9   : > { %v2692_v59 = vadd.f32 %v2691_v10, %v7651_v28 }
 0x3aa   : > { %v8033_v50 = vpop.f32.mrf.mxu3 }
 0x3ab   : > { %v8035_v61 = vadd.f32 %v2692_v59, %v2402_v42  ;;  %v2994_v51 = vpop.f32.mrf.mxu2  ;;  %2738 = vmatmul.f32.gmra.mxu1 %v2575_v31  ;;  %v2247_v59 = vadd.f32 %v7767_v34, %v7377_v7 }
 0x3ac   : > { %v2995_v11 = vadd.f32 %v2994_v51, %v8031_v37 }
 0x3ad   : > { %v9338_v24 = vmax.f32 %v8035_v61, 0.0 }
 0x3ae   : > { %v3186_v41 = vmax.f32 %v2995_v11, 0.0 }
 0x3b0   : > { %3044 = vmatmul.f32.gmra.mxu2 %v9338_v24  ;;  %3283 = vmatmul.f32.vlgmr.msra.gmra.mxu3 %v3186_v41  ;;  %v2694_v17 = vpop.f32.mrf.mxu1  ;;  %v2577_v41 = vmax.f32 %v2247_v59, 0.0  ;;  %v2411_v59 = vadd.f32 %v7546_v2, %v7643_v46 }
 0x3b1   : > { %v2695_v10 = vadd.f32 %v2694_v17, %v7651_v28 }
 0x3b2   : > { %v8046_v26 = vpop.f32.mrf.mxu3 }
 0x3b3   : > { %v8048_v42 = vadd.f32 %v2695_v10, %v2405_v33  ;;  %v2997_v31 = vpop.f32.mrf.mxu2  ;;  %2741 = vmatmul.f32.gmra.mxu1 %v2576_v62 }
 0x3b4   : > { %v2998_v35 = vadd.f32 %v2997_v31, %v8031_v37  ;;  %v2250_v31 = vadd.f32 %v7789_v6, %v7377_v7 }
 0x3b5   : > { %v9336_v51 = vmax.f32 %v8048_v42, 0.0 }
 0x3b6   : > { %v3187_v11 = vmax.f32 %v2998_v35, 0.0 }
 0x3b8   : > { %3047 = vmatmul.f32.gmra.mxu2 %v9336_v51  ;;  %3286 = vmatmul.f32.gmra.mxu3 %v3187_v11  ;;  %v2697_v38 = vpop.f32.mrf.mxu1  ;;  %v8080_v51 = vpop.f32.mrf.mxu0 }
 0x3b9   : > { %v2698_v17 = vadd.f32 %v2697_v38, %v7651_v28  ;;  %v2578_v38 = vmax.f32 %v2250_v31, 0.0  ;;  %v3606_v31 = vld [vmem:[%s9233_s8 + $0x10] sm:$0xff] }
 0x3ba   : > { %v8059_v33 = vpop.f32.mrf.mxu3  ;;  %3634 = vmatpush.msra.mxu0 %v3606_v31  ;;  %5611 = vmatpush.msrb.mxu3 %v3606_v31 }
 0x3bb   : > { %v8061_v62 = vadd.f32 %v2698_v17, %v2408_v48  ;;  %v3000_v10 = vpop.f32.mrf.mxu2  ;;  %2744 = vmatmul.f32.gmra.mxu1 %v2577_v41 }
 0x3bc   : > { %v3001_v34 = vadd.f32 %v3000_v10, %v8031_v37 }
 0x3bd   : > { %v9335_v35 = vmax.f32 %v8061_v62, 0.0 }
 0x3be   : > { %v3188_v11 = vmax.f32 %v3001_v34, 0.0  ;;  %v2253_v34 = vadd.f32 %v7808_v32, %v7377_v7 }
 0x3c0   : > { %3050 = vmatmul.f32.gmra.mxu2 %v9335_v35  ;;  %3289 = vmatmul.f32.gmra.mxu3 %v3188_v11  ;;  %v2700_v0 = vpop.f32.mrf.mxu1 }
 0x3c1   : > { %v2701_v48 = vadd.f32 %v2700_v0, %v7651_v28  ;;  %v2414_v0 = vadd.f32 %v7566_v45, %v7643_v46 }
 0x3c2   : > { %v8072_v41 = vpop.f32.mrf.mxu3 }
 0x3c3   : > { %v8074_v17 = vadd.f32 %v2701_v48, %v2411_v59  ;;  %v3003_v10 = vpop.f32.mrf.mxu2  ;;  %2747 = vmatmul.f32.gmra.mxu1 %v2578_v38  ;;  %v2579_v59 = vmax.f32 %v2253_v34, 0.0  ;;  %v2417_v34 = vadd.f32 %v7583_v55, %v7643_v46 }
 0x3c4   : > { %v3004_v6 = vadd.f32 %v3003_v10, %v8031_v37 }
 0x3c5   : > { %v9337_v11 = vmax.f32 %v8074_v17, 0.0 }
 0x3c6   : > { %v3189_v35 = vmax.f32 %v3004_v6, 0.0  ;;  %v2256_v6 = vadd.f32 %v7827_v43, %v7377_v7 }
 0x3c8   : > { %3053 = vmatmul.f32.gmra.mxu2 %v9337_v11  ;;  %3292 = vmatmul.f32.gmra.mxu3 %v3189_v35  ;;  %v2703_v2 = vpop.f32.mrf.mxu1 }
 0x3c9   : > { %v2704_v32 = vadd.f32 %v2703_v2, %v7651_v28  ;;  %v2580_v2 = vmax.f32 %v2256_v6, 0.0  ;;  %v2420_v6 = vadd.f32 %v7597_v52, %v7643_v46 }
 0x3ca   : > { %v8090_v38 = vpop.f32.mrf.mxu3 }
 0x3cb   : > { %v8092_v48 = vadd.f32 %v2704_v32, %v2414_v0  ;;  %v3006_v10 = vpop.f32.mrf.mxu2  ;;  %2750 = vmatmul.f32.gmra.mxu1 %v2579_v59  ;;  %v8103_v0 = vpop.f32.mrf.mxu0 }
 0x3cc   : > { %v3007_v35 = vadd.f32 %v3006_v10, %v8031_v37 }
 0x3cd   : > { %v9339_v11 = vmax.f32 %v8092_v48, 0.0 }
 0x3ce   : > { %v3190_v24 = vmax.f32 %v3007_v35, 0.0 }
 0x3d0   : > { %3056 = vmatmul.f32.gmra.mxu2 %v9339_v11  ;;  %3295 = vmatmul.f32.gmra.mxu3 %v3190_v24  ;;  %v2706_v45 = vpop.f32.mrf.mxu1  ;;  %v2259_v24 = vadd.f32 %v7850_v3, %v7377_v7 }
 0x3d1   : > { %v2707_v31 = vadd.f32 %v2706_v45, %v7651_v28 }
 0x3d2   : > { %v8105_v59 = vpop.f32.mrf.mxu3  ;;  %v2581_v45 = vmax.f32 %v2259_v24, 0.0  ;;  %v2423_v24 = vadd.f32 %v7621_v1, %v7643_v46 }
 0x3d3   : > { %v8107_v32 = vadd.f32 %v2707_v31, %v2417_v34  ;;  %v3009_v43 = vpop.f32.mrf.mxu2  ;;  %2753 = vmatmul.f32.gmra.mxu1 %v2580_v2  ;;  %v8122_v3 = vpop.f32.mrf.mxu0 }
 0x3d4   : > { %v3010_v10 = vadd.f32 %v3009_v43, %v8031_v37 }
 0x3d5   : > { %v9340_v35 = vmax.f32 %v8107_v32, 0.0 }
 0x3d6   : > { %v3191_v11 = vmax.f32 %v3010_v10, 0.0 }
 0x3d8   : > { %3059 = vmatmul.f32.gmra.mxu2 %v9340_v35  ;;  %3298 = vmatmul.f32.gmra.mxu3 %v3191_v11  ;;  %v2709_v55 = vpop.f32.mrf.mxu1  ;;  %v2262_v11 = vadd.f32 %v7872_v63, %v7377_v7 }
 0x3d9   : > { %v2710_v34 = vadd.f32 %v2709_v55, %v7651_v28 }
 0x3da   : > { %v8118_v2 = vpop.f32.mrf.mxu3  ;;  %v2582_v55 = vmax.f32 %v2262_v11, 0.0  ;;  %v3605_v11 = vld [vmem:[%s9233_s8 + $0x8] sm:$0xff] }
 0x3db   : > { %v8120_v31 = vadd.f32 %v2710_v34, %v2420_v6  ;;  %v3012_v43 = vpop.f32.mrf.mxu2  ;;  %2756 = vmatmul.f32.gmra.mxu1 %v2581_v45  ;;  %3635 = vmatpush.msra.mxu0 %v3605_v11 }
 0x3dc   : > { %v3013_v10 = vadd.f32 %v3012_v43, %v8031_v37  ;;  %5612 = vmatpush.msrb.mxu3 %v3605_v11 }
 0x3dd   : > { %9489 = vst [vmem:[#allocation17_spill] sm:$0xff] %v8120_v31  ;;  %v9342_v35 = vmax.f32 %v8120_v31, 0.0 }
 0x3de   : > { %v3192_v49 = vmax.f32 %v3013_v10, 0.0  ;;  %v2265_v10 = vadd.f32 %v7903_v57, %v7377_v7 }
 0x3e0   : > { %3062 = vmatmul.f32.gmra.mxu2 %v9342_v35  ;;  %3301 = vmatmul.f32.gmra.mxu3 %v3192_v49  ;;  %v2712_v52 = vpop.f32.mrf.mxu1  ;;  %v8141_v35 = vpop.f32.mrf.mxu0 }
 0x3e1   : > { %v2713_v6 = vadd.f32 %v2712_v52, %v7651_v28  ;;  %v2426_v52 = vadd.f32 %v7638_v13, %v7643_v46 }
 0x3e2   : > { %v8133_v45 = vpop.f32.mrf.mxu3 }
 0x3e3   : > { %v8135_v34 = vadd.f32 %v2713_v6, %v2423_v24  ;;  %v3015_v43 = vpop.f32.mrf.mxu2  ;;  %2759 = vmatmul.f32.gmra.mxu1 %v2582_v55  ;;  %v2583_v24 = vmax.f32 %v2265_v10, 0.0 }
 0x3e4   : > { %v3016_v63 = vadd.f32 %v3015_v43, %v8031_v37 }
 0x3e5   : > { %9490 = vst [vmem:[#allocation12_spill] sm:$0xff] %v8135_v34  ;;  %v9344_v49 = vmax.f32 %v8135_v34, 0.0 }
 0x3e6   : > { %v3193_v31 = vmax.f32 %v3016_v63, 0.0  ;;  %v2268_v63 = vadd.f32 %v7926_v23, %v7377_v7 }
 0x3e8   : > { %3065 = vmatmul.f32.gmra.mxu2 %v9344_v49  ;;  %3304 = vmatmul.f32.gmra.mxu3 %v3193_v31  ;;  %v2715_v1 = vpop.f32.mrf.mxu1  ;;  %v8159_v13 = vpop.f32.mrf.mxu0  ;;  %v2584_v11 = vmax.f32 %v2268_v63, 0.0  ;;  %v2432_v63 = vadd.f32 %v7693_v39, %v7643_v46 }
 0x3e9   : > { %v2716_v57 = vadd.f32 %v2715_v1, %v7651_v28  ;;  %v2429_v1 = vadd.f32 %v7667_v60, %v7643_v46 }
 0x3ea   : > { %v8151_v55 = vpop.f32.mrf.mxu3 }
 0x3eb   : > { %v8153_v6 = vadd.f32 %v2716_v57, %v2426_v52  ;;  %v3018_v43 = vpop.f32.mrf.mxu2  ;;  %2762 = vmatmul.f32.gmra.mxu1 %v2583_v24 }
 0x3ec   : > { %v3019_v31 = vadd.f32 %v3018_v43, %v8031_v37 }
 0x3ed   : > { %9491 = vst [vmem:[#allocation18_spill] sm:$0xff] %v8153_v6  ;;  %v9346_v49 = vmax.f32 %v8153_v6, 0.0 }
 0x3ee   : > { %v3194_v34 = vmax.f32 %v3019_v31, 0.0  ;;  %v2271_v31 = vadd.f32 %v7951_v27, %v7377_v7 }
 0x3f0   : > { %3068 = vmatmul.f32.gmra.mxu2 %v9346_v49  ;;  %3307 = vmatmul.f32.gmra.mxu3 %v3194_v34  ;;  %v2718_v10 = vpop.f32.mrf.mxu1 }
 0x3f1   : > { %v2719_v52 = vadd.f32 %v2718_v10, %v7651_v28  ;;  %v2585_v10 = vmax.f32 %v2271_v31, 0.0  ;;  %v2435_v31 = vadd.f32 %v7721_v56, %v7643_v46 }
 0x3f2   : > { %v8166_v24 = vpop.f32.mrf.mxu3 }
 0x3f3   : > { %v8168_v57 = vadd.f32 %v2719_v52, %v2429_v1  ;;  %v3021_v23 = vpop.f32.mrf.mxu2  ;;  %2765 = vmatmul.f32.gmra.mxu1 %v2584_v11  ;;  %v8179_v11 = vpop.f32.mrf.mxu0 }
 0x3f4   : > { %v3022_v43 = vadd.f32 %v3021_v23, %v8031_v37 }
 0x3f5   : > { %9492 = vst [vmem:[#allocation13_spill] sm:$0xff] %v8168_v57  ;;  %v9347_v34 = vmax.f32 %v8168_v57, 0.0 }
 0x3f6   : > { %v3195_v49 = vmax.f32 %v3022_v43, 0.0 }
 0x3f8   : > { %3071 = vmatmul.f32.gmra.mxu2 %v9347_v34  ;;  %3310 = vmatmul.f32.gmra.mxu3 %v3195_v49  ;;  %v2721_v60 = vpop.f32.mrf.mxu1  ;;  %v2274_v49 = vadd.f32 %v7968_v54, %v7377_v7 }
 0x3f9   : > { %v2722_v1 = vadd.f32 %v2721_v60, %v7651_v28 }
 0x3fa   : > { %v8181_v52 = vpop.f32.mrf.mxu3  ;;  %v2586_v60 = vmax.f32 %v2274_v49, 0.0  ;;  %v3604_v49 = vld [vmem:[%s9233_s8] sm:$0xff] }
 0x3fb   : > { %v8183_v23 = vadd.f32 %v2722_v1, %v2432_v63  ;;  %v3024_v27 = vpop.f32.mrf.mxu2  ;;  %2768 = vmatmul.f32.gmra.mxu1 %v2585_v10  ;;  %v8198_v54 = vpop.f32.mrf.mxu0  ;;  %3636 = vmatpush.msra.mxu0 %v3604_v49 }
 0x3fc   : > { %v3025_v43 = vadd.f32 %v3024_v27, %v8031_v37  ;;  %5613 = vmatpush.msrb.mxu3 %v3604_v49  ;;  %v8229_v49 = vld [vmem:[%s9234_s9 + $0x4] ss:$0 sm:$0xff] }
 0x3fd   : > { %9493 = vst [vmem:[#allocation5_spill] sm:$0xff] %v8183_v23  ;;  %v9349_v34 = vmax.f32 %v8183_v23, 0.0 }
 0x3fe   : > { %v3196_v57 = vmax.f32 %v3025_v43, 0.0 }
 0x400   : > { %3074 = vmatmul.f32.gmra.mxu2 %v9349_v34  ;;  %3313 = vmatmul.f32.gmra.mxu3 %v3196_v57  ;;  %v2724_v39 = vpop.f32.mrf.mxu1  ;;  %v2277_v57 = vadd.f32 %v7989_v53, %v7377_v7 }
 0x401   : > { %v2725_v63 = vadd.f32 %v2724_v39, %v7651_v28  ;;  %v2438_v39 = vadd.f32 %v7744_v21, %v7643_v46 }
 0x402   : > { %v8194_v10 = vpop.f32.mrf.mxu3 }
 0x403   : > { %v8196_v1 = vadd.f32 %v2725_v63, %v2435_v31  ;;  %v3027_v27 = vpop.f32.mrf.mxu2  ;;  %2771 = vmatmul.f32.gmra.mxu1 %v2586_v60  ;;  %v2587_v31 = vmax.f32 %v2277_v57, 0.0  ;;  %v2441_v57 = vadd.f32 %v7775_v14, %v7643_v46 }
 0x404   : > { %v3028_v43 = vadd.f32 %v3027_v27, %v8031_v37 }
 0x405   : > { %9494 = vst [vmem:[#allocation14_spill] sm:$0xff] %v8196_v1  ;;  %v9351_v34 = vmax.f32 %v8196_v1, 0.0  ;;  %v8220_v1 = vpop.f32.mrf.mxu0 }
 0x406   : > { %v3197_v23 = vmax.f32 %v3028_v43, 0.0  ;;  %v2280_v43 = vadd.f32 %v8007_v44, %v7377_v7 }
 0x408   : > { %3077 = vmatmul.f32.gmra.mxu2 %v9351_v34  ;;  %3316 = vmatmul.f32.gmra.mxu3 %v3197_v23  ;;  %v2727_v56 = vpop.f32.mrf.mxu1 }
 0x409   : > { %v2728_v60 = vadd.f32 %v2727_v56, %v7651_v28  ;;  %v2588_v56 = vmax.f32 %v2280_v43, 0.0 }
 0x40a   : > { %v8212_v53 = vpop.f32.mrf.mxu3 }
 0x40b   : > { %v8214_v63 = vadd.f32 %v2728_v60, %v2438_v39  ;;  %v3030_v27 = vpop.f32.mrf.mxu2  ;;  %2774 = vmatmul.f32.gmra.mxu1 %v2587_v31 }
 0x40c   : > { %v3031_v23 = vadd.f32 %v3030_v27, %v8031_v37 }
 0x40d   : > { %9495 = vst [vmem:[#allocation15_spill] sm:$0xff] %v8214_v63  ;;  %v9353_v34 = vmax.f32 %v8214_v63, 0.0 }
 0x40e   : > { %v3198_v21 = vmax.f32 %v3031_v23, 0.0  ;;  %v2283_v23 = vadd.f32 %v8033_v50, %v7377_v7 }
 0x410   : > { %3080 = vmatmul.f32.gmra.mxu2 %v9353_v34  ;;  %3319 = vmatmul.f32.gmra.mxu3 %v3198_v21  ;;  %v2730_v28 = vpop.f32.mrf.mxu1  ;;  %v8240_v21 = vpop.f32.mrf.mxu0 }
 0x411   : > { %v2731_v44 = vadd.f32 %v8229_v49, %v2730_v28 }
 0x412   : > { %v8232_v39 = vpop.f32.mrf.mxu3 }
 0x413   : > { %v8234_v31 = vadd.f32 %v2731_v44, %v2441_v57  ;;  %v3033_v60 = vpop.f32.mrf.mxu2  ;;  %2777 = vmatmul.f32.gmra.mxu1 %v2588_v56  ;;  %v2444_v57 = vadd.f32 %v7798_v58, %v7643_v46  ;;  %v2589_v44 = vmax.f32 %v2283_v23, 0.0  ;;  %v2447_v23 = vadd.f32 %v7823_v29, %v7643_v46 }
 0x414   : > { %v3034_v27 = vadd.f32 %v3033_v60, %v8031_v37 }
 0x415   : > { %9496 = vst [vmem:[#allocation16_spill] sm:$0xff] %v8234_v31  ;;  %v9355_v14 = vmax.f32 %v8234_v31, 0.0  ;;  %v2286_v31 = vadd.f32 %v8046_v26, %v7377_v7 }
 0x416   : > { %v3199_v43 = vmax.f32 %v3034_v27, 0.0 }
 0x418   : > { %3083 = vmatmul.f32.gmra.mxu2 %v9355_v14  ;;  %3322 = vmatmul.f32.gmra.mxu3 %v3199_v43  ;;  %v2733_v28 = vpop.f32.mrf.mxu1 }
 0x419   : > { %v2734_v56 = vadd.f32 %v8229_v49, %v2733_v28  ;;  %v2590_v28 = vmax.f32 %v2286_v31, 0.0  ;;  %v2450_v31 = vadd.f32 %v7852_v22, %v7643_v46 }
 0x41a   : > { %v8247_v60 = vpop.f32.mrf.mxu3 }
 0x41b   : > { %v8249_v34 = vadd.f32 %v2734_v56, %v2444_v57  ;;  %v3036_v50 = vpop.f32.mrf.mxu2  ;;  %2780 = vmatmul.f32.gmra.mxu1 %v2589_v44  ;;  %v8260_v44 = vpop.f32.mrf.mxu0 }
 0x41c   : > { %v3037_v27 = vadd.f32 %v3036_v50, %v8031_v37 }
 0x41d   : > { %9497 = vst [vmem:[#allocation21_spill] sm:$0xff] %v8249_v34  ;;  %v9356_v43 = vmax.f32 %v8249_v34, 0.0 }
 0x41e   : > { %v3200_v14 = vmax.f32 %v3037_v27, 0.0 }
 0x420   : > { %3086 = vmatmul.f32.gmra.mxu2 %v9356_v43  ;;  %3325 = vmatmul.f32.gmra.mxu3 %v3200_v14  ;;  %v2736_v58 = vpop.f32.mrf.mxu1  ;;  %v2289_v14 = vadd.f32 %v8059_v33, %v7377_v7 }
 0x421   : > { %v2737_v57 = vadd.f32 %v8229_v49, %v2736_v58 }
 0x422   : > { %v8262_v56 = vpop.f32.mrf.mxu3  ;;  %v2591_v58 = vmax.f32 %v2289_v14, 0.0  ;;  %v2453_v14 = vadd.f32 %v7886_v36, %v7643_v46  ;;  %v2295_v36 = vadd.f32 %v8090_v38, %v7377_v7 }
 0x423   : > { %v8264_v50 = vadd.f32 %v2737_v57, %v2447_v23  ;;  %v3039_v26 = vpop.f32.mrf.mxu2  ;;  %2783 = vmatmul.f32.gmra.mxu1 %v2590_v28  ;;  %v8279_v33 = vpop.f32.mrf.mxu0 }
 0x424   : > { %v3040_v27 = vadd.f32 %v3039_v26, %v8031_v37 }
 0x425   : > { %9498 = vst [vmem:[#allocation22_spill] sm:$0xff] %v8264_v50  ;;  %v9358_v43 = vmax.f32 %v8264_v50, 0.0 }
 0x426   : > { %v3201_v34 = vmax.f32 %v3040_v27, 0.0 }
 0x428   : > { %3089 = vmatmul.f32.gmra.mxu2 %v9358_v43  ;;  %3328 = vmatmul.f32.gmra.mxu3 %v3201_v34  ;;  %v2739_v29 = vpop.f32.mrf.mxu1  ;;  %v2292_v34 = vadd.f32 %v8072_v41, %v7377_v7 }
 0x429   : > { %v2740_v23 = vadd.f32 %v8229_v49, %v2739_v29 }
 0x42a   : > { %v8275_v28 = vpop.f32.mrf.mxu3  ;;  %v2592_v29 = vmax.f32 %v2292_v34, 0.0 }
 0x42b   : > { %v8277_v57 = vadd.f32 %v2740_v23, %v2450_v31  ;;  %v3042_v26 = vpop.f32.mrf.mxu2  ;;  %2786 = vmatmul.f32.gmra.mxu1 %v2591_v58  ;;  %v8293_v58 = vld [vmem:[%s9234_s9 + $0x6] ss:$0 sm:$0xff] }
 0x42c   : > { %v3043_v27 = vadd.f32 %v3042_v26, %v8031_v37 }
 0x42d   : > { %9499 = vst [vmem:[#allocation23_spill] sm:$0xff] %v8277_v57  ;;  %v9360_v43 = vmax.f32 %v8277_v57, 0.0  ;;  %v9500_v57 = vmax.f32 %v7663_v47, 0.0 }
 0x42e   : > { %v3202_v50 = vmax.f32 %v3043_v27, 0.0 }
 0x430   : > { %3092 = vmatmul.f32.gmra.mxu2 %v9360_v43  ;;  %3331 = vmatmul.f32.gmra.mxu3 %v3202_v50  ;;  %v2742_v22 = vpop.f32.mrf.mxu1 }
 0x431   : > { %v2743_v31 = vadd.f32 %v8229_v49, %v2742_v22  ;;  %v8302_v22 = vpop.f32.mrf.mxu0 }
 0x433   : > { %v8295_v41 = vadd.f32 %v2743_v31, %v2453_v14  ;;  %v3045_v23 = vpop.f32.mrf.mxu2  ;;  %v3284_v26 = vpop.f32.mrf.mxu3  ;;  %2789 = vmatmul.f32.gmra.mxu1 %v2592_v29  ;;  %v2456_v31 = vadd.f32 %v7915_v4, %v7643_v46  ;;  %v9501_v4 = vld [vmem:[#allocation19_spill] sm:$0xff] }
 0x434   : > { %v3046_v27 = vadd.f32 %v3045_v23, %v8031_v37  ;;  %v3285_v50 = vadd.f32 %v3284_v26, %v8293_v58  ;;  %v2593_v23 = vmax.f32 %v2295_v36, 0.0  ;;  %v9502_v36 = vmax.f32 %v9501_v4, 0.0 }
 0x435   : > { %v9364_v34 = vmax.f32 %v8295_v41, 0.0 }
 0x436   : > { %v3203_v43 = vmax.f32 %v3046_v27, 0.0  ;;  %v3476_v63 = vadd.f32 %v3285_v50, %v9500_v57 }
 0x438   : > { %v3540_v14 = vmax.f32 %v3476_v63, 0.0  ;;  %3095 = vmatmul.f32.gmra.mxu2 %v9364_v34  ;;  %3334 = vmatmul.f32.gmra.mxu3 %v3203_v43  ;;  %v2745_v29 = vpop.f32.mrf.mxu1  ;;  %v2298_v43 = vadd.f32 %v8105_v59, %v7377_v7 }
 0x439   : > { %v2746_v38 = vadd.f32 %v8229_v49, %v2745_v29  ;;  %v8320_v29 = vpop.f32.mrf.mxu0 }
 0x43a   : > { %3637 = vmatmul.f32.vlgmr.msra.gmra.mxu0 %v3540_v14 }
 0x43b   : > { %v8311_v26 = vadd.f32 %v2746_v38, %v2456_v31  ;;  %v3048_v6 = vpop.f32.mrf.mxu2  ;;  %v3287_v27 = vpop.f32.mrf.mxu3  ;;  %2792 = vmatmul.f32.gmra.mxu1 %v2593_v23  ;;  %v2594_v23 = vmax.f32 %v2298_v43, 0.0 }
 0x43c   : > { %v3049_v47 = vadd.f32 %v3048_v6, %v8031_v37  ;;  %v3288_v63 = vadd.f32 %v3287_v27, %v8293_v58  ;;  %v2459_v6 = vadd.f32 %v7947_v18, %v7643_v46  ;;  %v9503_v18 = vmax.f32 %v7710_v16, 0.0 }
 0x43d   : > { %v2931_v57 = vmax.f32 %v8311_v26, 0.0 }
 0x43e   : > { %v3204_v50 = vmax.f32 %v3049_v47, 0.0  ;;  %v3477_v34 = vadd.f32 %v3288_v63, %v9502_v36 }
 0x440   : > { %3098 = vmatmul.f32.gmra.mxu2 %v2931_v57  ;;  %3337 = vmatmul.f32.gmra.mxu3 %v3204_v50  ;;  %v2748_v14 = vpop.f32.mrf.mxu1  ;;  %v3541_v31 = vmax.f32 %v3477_v34, 0.0  ;;  %v2301_v50 = vadd.f32 %v8118_v2, %v7377_v7 }
 0x441   : > { %v2749_v59 = vadd.f32 %v8229_v49, %v2748_v14 }
 0x442   : > { %3640 = vmatmul.f32.gmra.mxu0 %v3541_v31 }
 0x443   : > { %v8327_v38 = vadd.f32 %v2749_v59, %v2459_v6  ;;  %v3051_v27 = vpop.f32.mrf.mxu2  ;;  %v3290_v47 = vpop.f32.mrf.mxu3  ;;  %2795 = vmatmul.f32.gmra.mxu1 %v2594_v23  ;;  %v2462_v6 = vadd.f32 %v7970_v8, %v7643_v46  ;;  %v2595_v23 = vmax.f32 %v2301_v50, 0.0 }
 0x444   : > { %v3052_v63 = vadd.f32 %v3051_v27, %v8031_v37  ;;  %v3291_v4 = vadd.f32 %v3290_v47, %v8293_v58  ;;  %v8341_v27 = vpop.f32.mrf.mxu0 }
 0x445   : > { %v2932_v34 = vmax.f32 %v8327_v38, 0.0 }
 0x446   : > { %v3205_v36 = vmax.f32 %v3052_v63, 0.0  ;;  %v3478_v43 = vadd.f32 %v3291_v4, %v9503_v18  ;;  %v9504_v18 = vmax.f32 %v7729_v12, 0.0 }
 0x448   : > { %3101 = vmatmul.f32.gmra.mxu2 %v2932_v34  ;;  %3340 = vmatmul.f32.gmra.mxu3 %v3205_v36  ;;  %v2751_v14 = vpop.f32.mrf.mxu1  ;;  %v3542_v31 = vmax.f32 %v3478_v43, 0.0  ;;  %v2304_v36 = vadd.f32 %v8133_v45, %v7377_v7 }
 0x449   : > { %v2752_v59 = vadd.f32 %v8229_v49, %v2751_v14 }
 0x44a   : > { %3643 = vmatmul.f32.gmra.mxu0 %v3542_v31 }
 0x44b   : > { %v8343_v2 = vadd.f32 %v2752_v59, %v2462_v6  ;;  %v3054_v47 = vpop.f32.mrf.mxu2  ;;  %v3293_v16 = vpop.f32.mrf.mxu3  ;;  %2798 = vmatmul.f32.gmra.mxu1 %v2595_v23  ;;  %v2465_v6 = vadd.f32 %v7997_v20, %v7643_v46  ;;  %v2596_v23 = vmax.f32 %v2304_v36, 0.0 }
 0x44c   : > { %v3055_v63 = vadd.f32 %v3054_v47, %v8031_v37  ;;  %v3294_v4 = vadd.f32 %v3293_v16, %v8293_v58  ;;  %v8359_v12 = vpop.f32.mrf.mxu0 }
 0x44d   : > { %v2933_v8 = vmax.f32 %v8343_v2, 0.0 }
 0x44e   : > { %v3206_v50 = vmax.f32 %v3055_v63, 0.0  ;;  %v3479_v43 = vadd.f32 %v3294_v4, %v9504_v18  ;;  %v9505_v18 = vld [vmem:[#allocation20_spill] sm:$0xff] }
 0x450   : > { %3104 = vmatmul.f32.gmra.mxu2 %v2933_v8  ;;  %3343 = vmatmul.f32.gmra.mxu3 %v3206_v50  ;;  %v2754_v14 = vpop.f32.mrf.mxu1  ;;  %v3543_v31 = vmax.f32 %v3479_v43, 0.0  ;;  %v2307_v50 = vadd.f32 %v8151_v55, %v7377_v7  ;;  %v9506_v43 = vmax.f32 %v9505_v18, 0.0 }
 0x451   : > { %v2755_v59 = vadd.f32 %v8229_v49, %v2754_v14 }
 0x452   : > { %3646 = vmatmul.f32.gmra.mxu0 %v3543_v31 }
 0x453   : > { %v8357_v45 = vadd.f32 %v2755_v59, %v2465_v6  ;;  %v3057_v47 = vpop.f32.mrf.mxu2  ;;  %v3296_v16 = vpop.f32.mrf.mxu3  ;;  %2801 = vmatmul.f32.gmra.mxu1 %v2596_v23  ;;  %v2468_v23 = vadd.f32 %v8016_v30, %v7643_v46  ;;  %v2597_v59 = vmax.f32 %v2307_v50, 0.0  ;;  %v9507_v50 = vld [vmem:[#allocation6_spill] sm:$0xff] }
 0x454   : > { %v3058_v63 = vadd.f32 %v3057_v47, %v8031_v37  ;;  %v3297_v4 = vadd.f32 %v3296_v16, %v8293_v58 }
 0x455   : > { %v9365_v20 = vmax.f32 %v8357_v45, 0.0 }
 0x456   : > { %v3207_v36 = vmax.f32 %v3058_v63, 0.0  ;;  %v3480_v14 = vadd.f32 %v3297_v4, %v9506_v43 }
 0x458   : > { %3107 = vmatmul.f32.gmra.mxu2 %v9365_v20  ;;  %3346 = vmatmul.f32.gmra.mxu3 %v3207_v36  ;;  %v2757_v31 = vpop.f32.mrf.mxu1  ;;  %v3544_v6 = vmax.f32 %v3480_v14, 0.0  ;;  %v2310_v36 = vadd.f32 %v8166_v24, %v7377_v7  ;;  %v8380_v14 = vpop.f32.mrf.mxu0 }
 0x459   : > { %v2758_v47 = vadd.f32 %v8229_v49, %v2757_v31  ;;  %v9508_v31 = vmax.f32 %v9507_v50, 0.0 }
 0x45a   : > { %3649 = vmatmul.f32.gmra.mxu0 %v3544_v6 }
 0x45b   : > { %v8373_v55 = vadd.f32 %v2758_v47, %v2468_v23  ;;  %v3060_v16 = vpop.f32.mrf.mxu2  ;;  %v3299_v63 = vpop.f32.mrf.mxu3  ;;  %2804 = vmatmul.f32.gmra.mxu1 %v2597_v59  ;;  %v2471_v47 = vadd.f32 %v8080_v51, %v7643_v46  ;;  %v9509_v51 = vld [vmem:[#allocation7_spill] sm:$0xff] }
 0x45c   : > { %v3061_v4 = vadd.f32 %v3060_v16, %v8031_v37  ;;  %v3300_v18 = vadd.f32 %v3299_v63, %v8293_v58  ;;  %v2598_v16 = vmax.f32 %v2310_v36, 0.0  ;;  %v9510_v36 = vmax.f32 %v9509_v51, 0.0 }
 0x45d   : > { %v9366_v43 = vmax.f32 %v8373_v55, 0.0 }
 0x45e   : > { %v3208_v30 = vmax.f32 %v3061_v4, 0.0  ;;  %v3481_v6 = vadd.f32 %v3300_v18, %v9508_v31 }
 0x460   : > { %3110 = vmatmul.f32.gmra.mxu2 %v9366_v43  ;;  %3349 = vmatmul.f32.gmra.mxu3 %v3208_v30  ;;  %v2760_v23 = vpop.f32.mrf.mxu1  ;;  %v3545_v59 = vmax.f32 %v3481_v6, 0.0  ;;  %v2313_v30 = vadd.f32 %v8181_v52, %v7377_v7 }
 0x461   : > { %v2761_v24 = vadd.f32 %v8229_v49, %v2760_v23  ;;  %v8398_v23 = vpop.f32.mrf.mxu0 }
 0x462   : > { %3652 = vmatmul.f32.gmra.mxu0 %v3545_v59 }
 0x463   : > { %v8389_v63 = vadd.f32 %v2761_v24, %v2471_v47  ;;  %v3063_v20 = vpop.f32.mrf.mxu2  ;;  %v3302_v4 = vpop.f32.mrf.mxu3  ;;  %2807 = vmatmul.f32.gmra.mxu1 %v2598_v16  ;;  %v2599_v16 = vmax.f32 %v2313_v30, 0.0 }
 0x464   : > { %v3064_v18 = vadd.f32 %v3063_v20, %v8031_v37  ;;  %v3303_v50 = vadd.f32 %v3302_v4, %v8293_v58  ;;  %v2474_v20 = vadd.f32 %v8103_v0, %v7643_v46  ;;  %v9511_v0 = vmax.f32 %v7812_v15, 0.0 }
 0x465   : > { %v2936_v31 = vmax.f32 %v8389_v63, 0.0 }
 0x466   : > { %v3209_v6 = vmax.f32 %v3064_v18, 0.0  ;;  %v3482_v43 = vadd.f32 %v3303_v50, %v9510_v36 }
 0x468   : > { %3113 = vmatmul.f32.gmra.mxu2 %v2936_v31  ;;  %3352 = vmatmul.f32.gmra.mxu3 %v3209_v6  ;;  %v2763_v59 = vpop.f32.mrf.mxu1  ;;  %v3546_v47 = vmax.f32 %v3482_v43, 0.0  ;;  %v2316_v6 = vadd.f32 %v8194_v10, %v7377_v7 }
 0x469   : > { %v2764_v52 = vadd.f32 %v8229_v49, %v2763_v59 }
 0x46a   : > { %3655 = vmatmul.f32.gmra.mxu0 %v3546_v47 }
 0x46b   : > { %v8405_v24 = vadd.f32 %v2764_v52, %v2474_v20  ;;  %v3066_v4 = vpop.f32.mrf.mxu2  ;;  %v3305_v18 = vpop.f32.mrf.mxu3  ;;  %2810 = vmatmul.f32.gmra.mxu1 %v2599_v16  ;;  %v2477_v20 = vadd.f32 %v8122_v3, %v7643_v46  ;;  %v2600_v16 = vmax.f32 %v2316_v6, 0.0 }
 0x46c   : > { %v3067_v50 = vadd.f32 %v3066_v4, %v8031_v37  ;;  %v3306_v51 = vadd.f32 %v3305_v18, %v8293_v58  ;;  %v8419_v4 = vpop.f32.mrf.mxu0 }
 0x46d   : > { %v9379_v43 = vmax.f32 %v8405_v24, 0.0 }
 0x46e   : > { %v3210_v36 = vmax.f32 %v3067_v50, 0.0  ;;  %v3483_v30 = vadd.f32 %v3306_v51, %v9511_v0  ;;  %v9512_v0 = vmax.f32 %v7831_v19, 0.0 }
 0x470   : > { %3116 = vmatmul.f32.gmra.mxu2 %v9379_v43  ;;  %3355 = vmatmul.f32.gmra.mxu3 %v3210_v36  ;;  %v2766_v59 = vpop.f32.mrf.mxu1  ;;  %v3547_v47 = vmax.f32 %v3483_v30, 0.0  ;;  %v2319_v36 = vadd.f32 %v8212_v53, %v7377_v7 }
 0x471   : > { %v2767_v52 = vadd.f32 %v8229_v49, %v2766_v59 }
 0x472   : > { %3658 = vmatmul.f32.gmra.mxu0 %v3547_v47 }
 0x473   : > { %v8421_v10 = vadd.f32 %v2767_v52, %v2477_v20  ;;  %v3069_v18 = vpop.f32.mrf.mxu2  ;;  %v3308_v15 = vpop.f32.mrf.mxu3  ;;  %2813 = vmatmul.f32.gmra.mxu1 %v2600_v16  ;;  %v2480_v20 = vadd.f32 %v8141_v35, %v7643_v46  ;;  %v2601_v16 = vmax.f32 %v2319_v36, 0.0 }
 0x474   : > { %v3070_v50 = vadd.f32 %v3069_v18, %v8031_v37  ;;  %v3309_v51 = vadd.f32 %v3308_v15, %v8293_v58  ;;  %v8437_v19 = vpop.f32.mrf.mxu0 }
 0x475   : > { %v9377_v3 = vmax.f32 %v8421_v10, 0.0 }
 0x476   : > { %v3211_v6 = vmax.f32 %v3070_v50, 0.0  ;;  %v3484_v30 = vadd.f32 %v3309_v51, %v9512_v0  ;;  %v9513_v0 = vld [vmem:[#allocation8_spill] sm:$0xff] }
 0x478   : > { %3119 = vmatmul.f32.gmra.mxu2 %v9377_v3  ;;  %3358 = vmatmul.f32.gmra.mxu3 %v3211_v6  ;;  %v2769_v59 = vpop.f32.mrf.mxu1  ;;  %v3548_v47 = vmax.f32 %v3484_v30, 0.0  ;;  %v2322_v6 = vadd.f32 %v8232_v39, %v7377_v7  ;;  %v9514_v30 = vmax.f32 %v9513_v0, 0.0 }
 0x479   : > { %v2770_v52 = vadd.f32 %v8229_v49, %v2769_v59 }
 0x47a   : > { %3661 = vmatmul.f32.gmra.mxu0 %v3548_v47 }
 0x47b   : > { %v8435_v53 = vadd.f32 %v2770_v52, %v2480_v20  ;;  %v3072_v18 = vpop.f32.mrf.mxu2  ;;  %v3311_v15 = vpop.f32.mrf.mxu3  ;;  %2816 = vmatmul.f32.gmra.mxu1 %v2601_v16  ;;  %v2483_v16 = vadd.f32 %v8159_v13, %v7643_v46  ;;  %v2602_v52 = vmax.f32 %v2322_v6, 0.0  ;;  %v9515_v6 = vmax.f32 %v7879_v5, 0.0 }
 0x47c   : > { %v3073_v50 = vadd.f32 %v3072_v18, %v8031_v37  ;;  %v3312_v51 = vadd.f32 %v3311_v15, %v8293_v58 }
 0x47d   : > { %v9376_v35 = vmax.f32 %v8435_v53, 0.0 }
 0x47e   : > { %v3212_v36 = vmax.f32 %v3073_v50, 0.0  ;;  %v3485_v59 = vadd.f32 %v3312_v51, %v9514_v30 }
 0x480   : > { %3122 = vmatmul.f32.gmra.mxu2 %v9376_v35  ;;  %3361 = vmatmul.f32.gmra.mxu3 %v3212_v36  ;;  %v2772_v47 = vpop.f32.mrf.mxu1  ;;  %v3549_v20 = vmax.f32 %v3485_v59, 0.0  ;;  %v2325_v36 = vadd.f32 %v8247_v60, %v7377_v7  ;;  %v8458_v59 = vpop.f32.mrf.mxu0 }
 0x481   : > { %v2773_v18 = vadd.f32 %v8229_v49, %v2772_v47 }
 0x482   : > { %3664 = vmatmul.f32.gmra.mxu0 %v3549_v20 }
 0x483   : > { %v8451_v39 = vadd.f32 %v2773_v18, %v2483_v16  ;;  %v3075_v15 = vpop.f32.mrf.mxu2  ;;  %v3314_v50 = vpop.f32.mrf.mxu3  ;;  %2819 = vmatmul.f32.gmra.mxu1 %v2602_v52  ;;  %v2486_v52 = vadd.f32 %v8179_v11, %v7643_v46  ;;  %v2603_v18 = vmax.f32 %v2325_v36, 0.0  ;;  %v9516_v11 = vmax.f32 %v7908_v25, 0.0 }
 0x484   : > { %v3076_v51 = vadd.f32 %v3075_v15, %v8031_v37  ;;  %v3315_v0 = vadd.f32 %v3314_v50, %v8293_v58 }
 0x485   : > { %v9375_v30 = vmax.f32 %v8451_v39, 0.0 }
 0x486   : > { %v3213_v13 = vmax.f32 %v3076_v51, 0.0  ;;  %v3486_v47 = vadd.f32 %v3315_v0, %v9515_v6 }
 0x488   : > { %3125 = vmatmul.f32.gmra.mxu2 %v9375_v30  ;;  %3364 = vmatmul.f32.gmra.mxu3 %v3213_v13  ;;  %v2775_v20 = vpop.f32.mrf.mxu1  ;;  %v3550_v16 = vmax.f32 %v3486_v47, 0.0  ;;  %v2328_v13 = vadd.f32 %v8262_v56, %v7377_v7 }
 0x489   : > { %v2776_v60 = vadd.f32 %v8229_v49, %v2775_v20  ;;  %v8476_v20 = vpop.f32.mrf.mxu0 }
 0x48a   : > { %3667 = vmatmul.f32.gmra.mxu0 %v3550_v16 }
 0x48b   : > { %v8467_v15 = vadd.f32 %v2776_v60, %v2486_v52  ;;  %v3078_v50 = vpop.f32.mrf.mxu2  ;;  %v3317_v51 = vpop.f32.mrf.mxu3  ;;  %2822 = vmatmul.f32.gmra.mxu1 %v2603_v18  ;;  %v2489_v18 = vadd.f32 %v8198_v54, %v7643_v46  ;;  %v2604_v60 = vmax.f32 %v2328_v13, 0.0  ;;  %v9517_v54 = vmax.f32 %v7931_v9, 0.0 }
 0x48c   : > { %v3079_v5 = vadd.f32 %v3078_v50, %v8031_v37  ;;  %v3318_v0 = vadd.f32 %v3317_v51, %v8293_v58 }
 0x48d   : > { %v9372_v6 = vmax.f32 %v8467_v15, 0.0 }
 0x48e   : > { %v3214_v47 = vmax.f32 %v3079_v5, 0.0  ;;  %v3487_v36 = vadd.f32 %v3318_v0, %v9516_v11 }
 0x490   : > { %3128 = vmatmul.f32.gmra.mxu2 %v9372_v6  ;;  %3367 = vmatmul.f32.gmra.mxu3 %v3214_v47  ;;  %v2778_v16 = vpop.f32.mrf.mxu1  ;;  %v3551_v52 = vmax.f32 %v3487_v36, 0.0  ;;  %v2331_v47 = vadd.f32 %v8275_v28, %v7377_v7 }
 0x491   : > { %v2779_v56 = vadd.f32 %v8229_v49, %v2778_v16 }
 0x492   : > { %3670 = vmatmul.f32.gmra.mxu0 %v3551_v52 }
 0x493   : > { %v8483_v50 = vadd.f32 %v2779_v56, %v2489_v18  ;;  %v3081_v51 = vpop.f32.mrf.mxu2  ;;  %v3320_v25 = vpop.f32.mrf.mxu3  ;;  %2825 = vmatmul.f32.gmra.mxu1 %v2604_v60  ;;  %v2492_v18 = vadd.f32 %v8220_v1, %v7643_v46  ;;  %v2605_v60 = vmax.f32 %v2331_v47, 0.0 }
 0x494   : > { %v3082_v5 = vadd.f32 %v3081_v51, %v8031_v37  ;;  %v3321_v0 = vadd.f32 %v3320_v25, %v8293_v58  ;;  %v8497_v51 = vpop.f32.mrf.mxu0 }
 0x495   : > { %v9369_v11 = vmax.f32 %v8483_v50, 0.0 }
 0x496   : > { %v3215_v36 = vmax.f32 %v3082_v5, 0.0  ;;  %v3488_v13 = vadd.f32 %v3321_v0, %v9517_v54  ;;  %v9518_v54 = vld [vmem:[#allocation9_spill] sm:$0xff] }
 0x497   : > { %v9519_v1 = vmax.f32 %v9518_v54, 0.0  ;;  %v9520_v54 = vld [vmem:[#allocation10_spill] sm:$0xff] }
 0x498   : > { %3131 = vmatmul.f32.gmra.mxu2 %v9369_v11  ;;  %3370 = vmatmul.f32.gmra.mxu3 %v3215_v36  ;;  %v2781_v16 = vpop.f32.mrf.mxu1  ;;  %v3552_v52 = vmax.f32 %v3488_v13, 0.0 }
 0x499   : > { %v2782_v56 = vadd.f32 %v8229_v49, %v2781_v16 }
 0x49a   : > { %3673 = vmatmul.f32.gmra.mxu0 %v3552_v52  ;;  %v2495_v52 = vadd.f32 %v8240_v21, %v7643_v46 }
 0x49b   : > { %v8499_v7 = vadd.f32 %v2782_v56, %v2492_v18  ;;  %v3084_v28 = vpop.f32.mrf.mxu2  ;;  %v3323_v9 = vpop.f32.mrf.mxu3  ;;  %2828 = vmatmul.f32.gmra.mxu1 %v2605_v60 }
 0x49c   : > { %v3085_v25 = vadd.f32 %v3084_v28, %v8031_v37  ;;  %v3324_v5 = vadd.f32 %v3323_v9, %v8293_v58  ;;  %v8516_v28 = vld [vmem:[%s9234_s9 + $0x5] ss:$0 sm:$0xff] }
 0x49d   : > { %v9367_v0 = vmax.f32 %v8499_v7, 0.0 }
 0x49e   : > { %v3216_v36 = vmax.f32 %v3085_v25, 0.0  ;;  %v3489_v47 = vadd.f32 %v3324_v5, %v9519_v1  ;;  %v8520_v5 = vpop.f32.mrf.mxu0  ;;  %v9521_v1 = vmax.f32 %v9520_v54, 0.0 }
 0x4a0   : > { %3134 = vmatmul.f32.gmra.mxu2 %v9367_v0  ;;  %3373 = vmatmul.f32.gmra.mxu3 %v3216_v36  ;;  %v2784_v13 = vpop.f32.mrf.mxu1  ;;  %v3553_v16 = vmax.f32 %v3489_v47, 0.0 }
 0x4a1   : > { %v2785_v18 = vadd.f32 %v8229_v49, %v2784_v13 }
 0x4a2   : > { %3676 = vmatmul.f32.gmra.mxu0 %v3553_v16 }
 0x4a3   : > { %v8511_v37 = vadd.f32 %v2785_v18, %v2495_v52  ;;  %v3087_v60 = vpop.f32.mrf.mxu2  ;;  %v3326_v56 = vpop.f32.mrf.mxu3  ;;  %v2498_v52 = vadd.f32 %v8260_v44, %v7643_v46 }
 0x4a4   : > { %v3088_v9 = vadd.f32 %v8516_v28, %v3087_v60  ;;  %v3327_v25 = vadd.f32 %v3326_v56, %v8293_v58 }
 0x4a5   : > { %v9368_v21 = vmax.f32 %v8511_v37, 0.0 }
 0x4a6   : > { %v3217_v36 = vmax.f32 %v3088_v9, 0.0  ;;  %v3490_v47 = vadd.f32 %v3327_v25, %v9521_v1  ;;  %v8537_v11 = vpop.f32.mrf.mxu0 }
 0x4a8   : > { %3137 = vmatmul.f32.gmra.mxu2 %v9368_v21  ;;  %3376 = vmatmul.f32.gmra.mxu3 %v3217_v36  ;;  %v2787_v13 = vpop.f32.mrf.mxu1  ;;  %v3554_v16 = vmax.f32 %v3490_v47, 0.0  ;;  %v9522_v36 = vld [vmem:[#allocation11_spill] sm:$0xff] }
 0x4a9   : > { %v2788_v18 = vadd.f32 %v8229_v49, %v2787_v13  ;;  %v9523_v21 = vmax.f32 %v9522_v36, 0.0 }
 0x4aa   : > { %3679 = vmatmul.f32.gmra.mxu0 %v3554_v16  ;;  %v2501_v16 = vadd.f32 %v8279_v33, %v7643_v46  ;;  %v9524_v33 = vmax.f32 %v8011_v40, 0.0 }
 0x4ab   : > { %v8530_v60 = vadd.f32 %v2788_v18, %v2498_v52  ;;  %v3090_v56 = vpop.f32.mrf.mxu2  ;;  %v3329_v0 = vpop.f32.mrf.mxu3 }
 0x4ac   : > { %v3091_v9 = vadd.f32 %v8516_v28, %v3090_v56  ;;  %v3330_v25 = vadd.f32 %v3329_v0, %v8293_v58 }
 0x4ad   : > { %v9370_v54 = vmax.f32 %v8530_v60, 0.0 }
 0x4ae   : > { %v3218_v1 = vmax.f32 %v3091_v9, 0.0  ;;  %v3491_v47 = vadd.f32 %v3330_v25, %v9523_v21 }
 0x4b0   : > { %3140 = vmatmul.f32.gmra.mxu2 %v9370_v54  ;;  %3379 = vmatmul.f32.gmra.mxu3 %v3218_v1  ;;  %v2790_v44 = vpop.f32.mrf.mxu1  ;;  %v3555_v13 = vmax.f32 %v3491_v47, 0.0  ;;  %v8552_v1 = vld [vmem:[%s9234_s9 + $0x7] ss:$0 sm:$0xff] }
 0x4b1   : > { %v2791_v52 = vadd.f32 %v8229_v49, %v2790_v44 }
 0x4b2   : > { %3682 = vmatmul.f32.gmra.mxu0 %v3555_v13 }
 0x4b3   : > { %v8544_v0 = vadd.f32 %v2791_v52, %v2501_v16  ;;  %v3093_v18 = vpop.f32.mrf.mxu2  ;;  %v3332_v56 = vpop.f32.mrf.mxu3 }
 0x4b4   : > { %v3094_v21 = vadd.f32 %v8516_v28, %v3093_v18  ;;  %v3333_v9 = vadd.f32 %v3332_v56, %v8293_v58  ;;  %v2504_v18 = vadd.f32 %v8302_v22, %v7643_v46 }
 0x4b5   : > { %v9371_v25 = vmax.f32 %v8544_v0, 0.0 }
 0x4b6   : > { %v3219_v36 = vmax.f32 %v3094_v21, 0.0  ;;  %v3492_v47 = vadd.f32 %v3333_v9, %v9524_v33 }
 0x4b7   : > { %v3638_v44 = vpop.f32.mrf.mxu0 }
 0x4b8   : > { %v3639_v13 = vadd.f32 %v3638_v44, %v8552_v1  ;;  %3143 = vmatmul.f32.gmra.mxu2 %v9371_v25  ;;  %3382 = vmatmul.f32.gmra.mxu3 %v3219_v36  ;;  %v2793_v16 = vpop.f32.mrf.mxu1  ;;  %v3556_v52 = vmax.f32 %v3492_v47, 0.0  ;;  %v9525_v47 = vmax.f32 %v8035_v61, 0.0 }
 0x4b9   : > { %v2794_v56 = vadd.f32 %v8229_v49, %v2793_v16 }
 0x4ba   : > { %v5516_v54 = vmul.f32 -1.442695, %v3639_v13  ;;  %3685 = vmatmul.f32.gmra.mxu0 %v3556_v52 }
 0x4bb   : > { %v8562_v21 = vadd.f32 %v2794_v56, %v2504_v18  ;;  %v3096_v40 = vpop.f32.mrf.mxu2  ;;  %v3335_v9 = vpop.f32.mrf.mxu3 }
 0x4bc   : > { %5655 = vpow2.f32 %v5516_v54  ;;  %v3097_v33 = vadd.f32 %v8516_v28, %v3096_v40  ;;  %v3336_v44 = vadd.f32 %v3335_v9, %v8293_v58  ;;  %v2507_v54 = vadd.f32 %v8320_v29, %v7643_v46 }
 0x4bd   : > { %v9374_v36 = vmax.f32 %v8562_v21, 0.0 }
 0x4be   : > { %v3220_v25 = vmax.f32 %v3097_v33, 0.0  ;;  %v3493_v6 = vadd.f32 %v3336_v44, %v9525_v47 }
 0x4bf   : > { %v3641_v22 = vpop.f32.mrf.mxu0 }
 0x4c0   : > { %v3642_v16 = vadd.f32 %v3641_v22, %v8552_v1  ;;  %3146 = vmatmul.f32.gmra.mxu2 %v9374_v36  ;;  %3385 = vmatmul.f32.gmra.mxu3 %v3220_v25  ;;  %v2796_v13 = vpop.f32.mrf.mxu1  ;;  %v3557_v52 = vmax.f32 %v3493_v6, 0.0  ;;  %v9526_v22 = vmax.f32 %v8048_v42, 0.0 }
 0x4c1   : > { %v2797_v18 = vadd.f32 %v8229_v49, %v2796_v13 }
 0x4c2   : > { %v5656_v56 = vpop.eup %5655  ;;  %v5517_v40 = vmul.f32 -1.442695, %v3642_v16  ;;  %3688 = vmatmul.f32.gmra.mxu0 %v3557_v52 }
 0x4c3   : > { %v8575_v9 = vadd.f32 1.0, %v5656_v56  ;;  %v8577_v61 = vadd.f32 %v2797_v18, %v2507_v54  ;;  %v3099_v33 = vpop.f32.mrf.mxu2  ;;  %v3338_v44 = vpop.f32.mrf.mxu3  ;;  %v2510_v56 = vadd.f32 %v8341_v27, %v7643_v46 }
 0x4c4   : > { %5657 = vpow2.f32 %v5517_v40  ;;  %v3100_v47 = vadd.f32 %v8516_v28, %v3099_v33  ;;  %v3339_v25 = vadd.f32 %v3338_v44, %v8293_v58 }
 0x4c5   : > { %5659 = vrcp.f32 %v8575_v9  ;;  %v9373_v29 = vmax.f32 %v8577_v61, 0.0  ;;  %vm4091_vm3 = vweird.f32 %v8575_v9 }
 0x4c6   : > { %v3221_v6 = vmax.f32 %v3100_v47, 0.0  ;;  %v3494_v16 = vadd.f32 %v3339_v25, %v9526_v22 }
 0x4c7   : > { %v3644_v13 = vpop.f32.mrf.mxu0 }
 0x4c8   : > { %v3645_v52 = vadd.f32 %v3644_v13, %v8552_v1  ;;  %3149 = vmatmul.f32.gmra.mxu2 %v9373_v29  ;;  %3388 = vmatmul.f32.gmra.mxu3 %v3221_v6  ;;  %v2799_v54 = vpop.f32.mrf.mxu1  ;;  %v3558_v18 = vmax.f32 %v3494_v16, 0.0 }
 0x4c9   : > { %v2800_v40 = vadd.f32 %v8229_v49, %v2799_v54 }
 0x4ca   : > { %v5658_v33 = vpop.eup %5657  ;;  %v5518_v44 = vmul.f32 -1.442695, %v3645_v52  ;;  %3691 = vmatmul.f32.gmra.mxu0 %v3558_v18 }
 0x4cb   : > { %v5660_v42 = vpop.eup %5659  ;;  %v8591_v47 = vadd.f32 1.0, %v5658_v33  ;;  %v8593_v25 = vadd.f32 %v2800_v40, %v2510_v56  ;;  %v3102_v22 = vpop.f32.mrf.mxu2  ;;  %v4095_v33 = vand.u32 2147483647, %v8575_v9  ;;  %v4097_v56 = vand.u32 2147483648, %v8575_v9 }
 0x4cc   : > { %v3341_v13 = vpop.f32.mrf.mxu3  ;;  %v4087_v6 = vmul.f32 %v5660_v42, %v8575_v9  ;;  %5661 = vpow2.f32 %v5518_v44  ;;  %v3103_v16 = vadd.f32 %v8516_v28, %v3102_v22  ;;  %vm4092_vm2 = vweird.f32 %v5660_v42 }
 0x4cd   : > { %5663 = vrcp.f32 %v8591_v47  ;;  %v9378_v52 = vmax.f32 %v8593_v25, 0.0  ;;  %v3342_v18 = vadd.f32 %v3341_v13, %v8293_v58  ;;  %v9527_v44 = vmax.f32 %v8061_v62, 0.0  ;;  %vm4093_vm4 = vmor %vm4091_vm3, %vm4092_vm2 }
 0x4ce   : > { %v4088_v27 = vsub.f32 1.0, %v4087_v6  ;;  %v3222_v54 = vmax.f32 %v3103_v16, 0.0  ;;  %v2513_v13 = vadd.f32 %v8359_v12, %v7643_v46  ;;  %vm4096_vm5 = vcmp.eq.f32.partialorder %v4095_v33, 8.507059e+37 }
 0x4cf   : > { %v3647_v40 = vpop.f32.mrf.mxu0  ;;  %v3495_v22 = vadd.f32 %v3342_v18, %v9527_v44  ;;  %v4098_v18 = vor.u32 1.1754944e-38, %v4097_v56  ;;  %v4110_v56 = vand.u32 2147483647, %v8591_v47  ;;  %vm4106_vm7 = vweird.f32 %v8591_v47 }
 0x4d0   : > { %v4089_v29 = vmul.f32 %v5660_v42, %v4088_v27  ;;  %v3648_v36 = vadd.f32 %v3647_v40, %v8552_v1  ;;  %3152 = vmatmul.f32.gmra.mxu2 %v9378_v52  ;;  %3391 = vmatmul.f32.gmra.mxu3 %v3222_v54  ;;  %v2802_v6 = vpop.f32.mrf.mxu1 }
 0x4d1   : > { %v2803_v16 = vadd.f32 %v8229_v49, %v2802_v6  ;;  %v3559_v3 = vmax.f32 %v3495_v22, 0.0  ;;  %vm4111_vm9 = vcmp.eq.f32.partialorder %v4110_v56, 8.507059e+37 }
 0x4d2   : > { %v5662_v30 = vpop.eup %5661  ;;  %v4090_v35 = vadd.f32 %v5660_v42, %v4089_v29  ;;  %v5519_v27 = vmul.f32 -1.442695, %v3648_v36 }
 0x4d3   : > { %v5664_v62 = vpop.eup %5663  ;;  %v8614_v40 = vadd.f32 1.0, %v5662_v30  ;;  %v8616_v44 = vadd.f32 %v2803_v16, %v2513_v13  ;;  %v3105_v54 = vpop.f32.mrf.mxu2  ;;  %3694 = vmatmul.f32.gmra.mxu0 %v3559_v3  ;;  %v2516_v13 = vadd.f32 %v8380_v14, %v7643_v46  ;;  %v9528_v16 = vmax.f32 %v8074_v17, 0.0 }
 0x4d4   : > { %v3344_v52 = vpop.f32.mrf.mxu3  ;;  %v4094_v43 = vsel %vm4093_vm4, %v5660_v42, %v4090_v35  ;;  %v4102_v12 = vmul.f32 %v5664_v62, %v8591_v47  ;;  %5665 = vpow2.f32 %v5519_v27  ;;  %v3106_v9 = vadd.f32 %v8516_v28, %v3105_v54 }
 0x4d5   : > { %v4099_v29 = vsel %vm4096_vm5, %v4098_v18, %v4094_v43  ;;  %5667 = vrcp.f32 %v8614_v40  ;;  %v9380_v30 = vmax.f32 %v8616_v44, 0.0  ;;  %v4112_v35 = vand.u32 2147483648, %v8591_v47 }
 0x4d6   : > { %5046 = vst [vmem:[%s8620_s20] sm:$0xff] %v4099_v29  ;;  %v4103_v36 = vsub.f32 1.0, %v4102_v12  ;;  %v3345_v42 = vadd.f32 %v3344_v52, %v8293_v58  ;;  %vm4107_vm6 = vweird.f32 %v5664_v62  ;;  %v3223_v43 = vmax.f32 %v3106_v9, 0.0 }
 0x4d7   : > { %v3650_v33 = vpop.f32.mrf.mxu0  ;;  %vm4108_vm8 = vmor %vm4106_vm7, %vm4107_vm6  ;;  %vm4121_vm11 = vweird.f32 %v8614_v40 }
 0x4d8   : > { %v4104_v3 = vmul.f32 %v5664_v62, %v4103_v36  ;;  %v3651_v22 = vadd.f32 %v3650_v33, %v8552_v1  ;;  %3155 = vmatmul.f32.gmra.mxu2 %v9380_v30  ;;  %v2805_v6 = vpop.f32.mrf.mxu1  ;;  %v3496_v27 = vadd.f32 %v3345_v42, %v9528_v16  ;;  %3394 = vmatmul.f32.gmra.mxu3 %v3223_v43  ;;  %v4113_v36 = vor.u32 1.1754944e-38, %v4112_v35 }
 0x4d9   : > { %v2806_v18 = vadd.f32 %v8229_v49, %v2805_v6  ;;  %v4127_v6 = vand.u32 2147483648, %v8614_v40 }
 0x4da   : > { %v5666_v54 = vpop.eup %5665  ;;  %v4105_v52 = vadd.f32 %v5664_v62, %v4104_v3  ;;  %v5520_v12 = vmul.f32 -1.442695, %v3651_v22  ;;  %v3560_v14 = vmax.f32 %v3496_v27, 0.0  ;;  %v4125_v22 = vand.u32 2147483647, %v8614_v40 }
 0x4db   : > { %v5668_v29 = vpop.eup %5667  ;;  %v8637_v9 = vadd.f32 1.0, %v5666_v54  ;;  %v8639_v33 = vadd.f32 %v2806_v18, %v2516_v13  ;;  %v3108_v30 = vpop.f32.mrf.mxu2  ;;  %v2519_v54 = vadd.f32 %v8398_v23, %v7643_v46  ;;  %v4128_v23 = vor.u32 1.1754944e-38, %v4127_v6 }
 0x4dc   : > { %v3347_v17 = vpop.f32.mrf.mxu3  ;;  %v4109_v42 = vsel %vm4108_vm8, %v5664_v62, %v4105_v52  ;;  %v4117_v49 = vmul.f32 %v5668_v29, %v8614_v40  ;;  %5669 = vpow2.f32 %v5520_v12  ;;  %3697 = vmatmul.f32.gmra.mxu0 %v3560_v14  ;;  %v3109_v43 = vadd.f32 %v8516_v28, %v3108_v30  ;;  %v8659_v12 = vld [vmem:[%s9234_s9 + $0x4] ss:$0 sm:$0xff] }
 0x4dd   : > { %v4114_v3 = vsel %vm4111_vm9, %v4113_v36, %v4109_v42  ;;  %5671 = vrcp.f32 %v8637_v9  ;;  %v2951_v35 = vmax.f32 %v8639_v33, 0.0  ;;  %v3348_v62 = vadd.f32 %v3347_v17, %v8293_v58 }
 0x4de   : > { %5047 = vst [vmem:[%s8620_s20 + $0x8] sm:$0xff] %v4114_v3  ;;  %v4118_v47 = vsub.f32 1.0, %v4117_v49  ;;  %vm4122_vm10 = vweird.f32 %v5668_v29  ;;  %v3224_v16 = vmax.f32 %v3109_v43, 0.0  ;;  %v9529_v30 = vmax.f32 %v8092_v48, 0.0 }
 0x4df   : > { %v3653_v56 = vpop.f32.mrf.mxu0  ;;  %vm4123_vm12 = vmor %vm4121_vm11, %vm4122_vm10  ;;  %vm4126_vm13 = vcmp.eq.f32.partialorder %v4125_v22, 8.507059e+37  ;;  %vm4136_vm15 = vweird.f32 %v8637_v9 }
 0x4e0   : > { %v4119_v13 = vmul.f32 %v5668_v29, %v4118_v47  ;;  %v3654_v27 = vadd.f32 %v3653_v56, %v8552_v1  ;;  %3158 = vmatmul.f32.gmra.mxu2 %v2951_v35  ;;  %v2808_v18 = vpop.f32.mrf.mxu1  ;;  %v3497_v52 = vadd.f32 %v3348_v62, %v9529_v30  ;;  %3397 = vmatmul.f32.gmra.mxu3 %v3224_v16 }
 0x4e1   : > { %v2809_v36 = vadd.f32 %v8659_v12, %v2808_v18  ;;  %v4140_v18 = vand.u32 2147483647, %v8637_v9 }
 0x4e2   : > { %v5670_v14 = vpop.eup %5669  ;;  %v4120_v17 = vadd.f32 %v5668_v29, %v4119_v13  ;;  %v5521_v42 = vmul.f32 -1.442695, %v3654_v27  ;;  %v3561_v47 = vmax.f32 %v3497_v52, 0.0 }
 0x4e3   : > { %v5672_v49 = vpop.eup %5671  ;;  %v8664_v48 = vadd.f32 1.0, %v5670_v14  ;;  %v8666_v3 = vadd.f32 %v2809_v36, %v2519_v54  ;;  %v3111_v43 = vpop.f32.mrf.mxu2  ;;  %v4142_v54 = vand.u32 2147483648, %v8637_v9  ;;  %vm4141_vm1 = vcmp.eq.f32.partialorder %v4140_v18, 8.507059e+37 }
 0x4e4   : > { %v3350_v62 = vpop.f32.mrf.mxu3  ;;  %v4124_v56 = vsel %vm4123_vm12, %v5668_v29, %v4120_v17  ;;  %v4132_v13 = vmul.f32 %v5672_v49, %v8637_v9  ;;  %5673 = vpow2.f32 %v5521_v42  ;;  %3700 = vmatmul.f32.gmra.mxu0 %v3561_v47  ;;  %v3112_v27 = vadd.f32 %v8516_v28, %v3111_v43 }
 0x4e5   : > { %v4129_v40 = vsel %vm4126_vm13, %v4128_v23, %v4124_v56  ;;  %5675 = vrcp.f32 %v8664_v48  ;;  %v2952_v6 = vmax.f32 %v8666_v3, 0.0  ;;  %v3351_v29 = vadd.f32 %v3350_v62, %v8293_v58 }
 0x4e6   : > { %5048 = vst [vmem:[%s8620_s20 + $0x10] sm:$0xff] %v4129_v40  ;;  %v4133_v16 = vsub.f32 1.0, %v4132_v13  ;;  %vm4137_vm14 = vweird.f32 %v5672_v49  ;;  %v3225_v52 = vmax.f32 %v3112_v27, 0.0  ;;  %v2522_v17 = vadd.f32 %v8419_v4, %v7643_v46 }
 0x4e7   : > { %v3656_v22 = vpop.f32.mrf.mxu0  ;;  %v9530_v42 = vmax.f32 %v8107_v32, 0.0  ;;  %vm4138_vm0 = vmor %vm4136_vm15, %vm4137_vm14  ;;  %v4143_v13 = vor.u32 1.1754944e-38, %v4142_v54  ;;  %vm4151_vm3 = vweird.f32 %v8664_v48 }
 0x4e8   : > { %v4134_v30 = vmul.f32 %v5672_v49, %v4133_v16  ;;  %v3657_v36 = vadd.f32 %v3656_v22, %v8552_v1  ;;  %3161 = vmatmul.f32.gmra.mxu2 %v2952_v6  ;;  %v2811_v14 = vpop.f32.mrf.mxu1  ;;  %3400 = vmatmul.f32.gmra.mxu3 %v3225_v52 }
 0x4e9   : > { %v3498_v23 = vadd.f32 %v3351_v29, %v9530_v42  ;;  %v2812_v47 = vadd.f32 %v8659_v12, %v2811_v14  ;;  %v4157_v14 = vand.u32 2147483648, %v8664_v48 }
 0x4ea   : > { %v5674_v43 = vpop.eup %5673  ;;  %v4135_v58 = vadd.f32 %v5672_v49, %v4134_v30  ;;  %v5522_v62 = vmul.f32 -1.442695, %v3657_v36  ;;  %v4155_v36 = vand.u32 2147483647, %v8664_v48 }
 0x4eb   : > { %v5676_v56 = vpop.eup %5675  ;;  %v8685_v40 = vadd.f32 1.0, %v5674_v43  ;;  %v8687_v16 = vadd.f32 %v2812_v47, %v2522_v17  ;;  %v3562_v4 = vmax.f32 %v3498_v23, 0.0  ;;  %v3114_v27 = vpop.f32.mrf.mxu2 }
 0x4ec   : > { %v3353_v32 = vpop.f32.mrf.mxu3  ;;  %v4139_v29 = vsel %vm4138_vm0, %v5672_v49, %v4135_v58  ;;  %v4147_v22 = vmul.f32 %v5676_v56, %v8664_v48  ;;  %5677 = vpow2.f32 %v5522_v62  ;;  %v3115_v52 = vadd.f32 %v8516_v28, %v3114_v27  ;;  %v8699_v49 = vld [vmem:[%s9234_s9 + $0x6] ss:$0 sm:$0xff] }
 0x4ed   : > { %v4144_v30 = vsel %vm4141_vm1, %v4143_v13, %v4139_v29  ;;  %5679 = vrcp.f32 %v8685_v40  ;;  %3703 = vmatmul.f32.gmra.mxu0 %v3562_v4  ;;  %v9381_v54 = vmax.f32 %v8687_v16, 0.0  ;;  %v3354_v18 = vadd.f32 %v8699_v49, %v3353_v32  ;;  %v9531_v62 = vld [vmem:[#allocation17_spill] sm:$0xff] }
 0x4ee   : > { %5049 = vst [vmem:[%s8620_s20 + $0x18] sm:$0xff] %v4144_v30  ;;  %v4148_v9 = vsub.f32 1.0, %v4147_v22  ;;  %vm4152_vm2 = vweird.f32 %v5676_v56  ;;  %v3226_v23 = vmax.f32 %v3115_v52, 0.0  ;;  %v2525_v58 = vadd.f32 %v8437_v19, %v7643_v46 }
 0x4ef   : > { %v3659_v17 = vpop.f32.mrf.mxu0  ;;  %v9532_v13 = vmax.f32 %v9531_v62, 0.0  ;;  %vm4153_vm4 = vmor %vm4151_vm3, %vm4152_vm2  ;;  %vm4156_vm5 = vcmp.eq.f32.partialorder %v4155_v36, 8.507059e+37  ;;  %vm4166_vm7 = vweird.f32 %v8685_v40 }
 0x4f0   : > { %v4149_v42 = vmul.f32 %v5676_v56, %v4148_v9  ;;  %v3660_v47 = vadd.f32 %v3659_v17, %v8552_v1  ;;  %3164 = vmatmul.f32.gmra.mxu2 %v9381_v54  ;;  %v2814_v43 = vpop.f32.mrf.mxu1  ;;  %3403 = vmatmul.f32.gmra.mxu3 %v3226_v23  ;;  %v4158_v9 = vor.u32 1.1754944e-38, %v4157_v14 }
 0x4f1   : > { %v3499_v4 = vadd.f32 %v3354_v18, %v9532_v13  ;;  %v2815_v27 = vadd.f32 %v8659_v12, %v2814_v43 }
 0x4f2   : > { %v5678_v29 = vpop.eup %5677  ;;  %v4150_v32 = vadd.f32 %v5676_v56, %v4149_v42  ;;  %v5523_v22 = vmul.f32 -1.442695, %v3660_v47  ;;  %v4170_v47 = vand.u32 2147483647, %v8685_v40 }
 0x4f3   : > { %v5680_v30 = vpop.eup %5679  ;;  %v8711_v52 = vadd.f32 1.0, %v5678_v29  ;;  %v8713_v17 = vadd.f32 %v2815_v27, %v2525_v58  ;;  %v3563_v19 = vmax.f32 %v3499_v4, 0.0  ;;  %v3117_v54 = vpop.f32.mrf.mxu2  ;;  %v4172_v58 = vand.u32 2147483648, %v8685_v40 }
 0x4f4   : > { %v3356_v62 = vpop.f32.mrf.mxu3  ;;  %v4154_v18 = vsel %vm4153_vm4, %v5676_v56, %v4150_v32  ;;  %v4162_v43 = vmul.f32 %v5680_v30, %v8685_v40  ;;  %5681 = vpow2.f32 %v5523_v22  ;;  %v3118_v23 = vadd.f32 %v8516_v28, %v3117_v54  ;;  %v9533_v54 = vld [vmem:[#allocation12_spill] sm:$0xff] }
 0x4f5   : > { %v4159_v42 = vsel %vm4156_vm5, %v4158_v9, %v4154_v18  ;;  %5683 = vrcp.f32 %v8711_v52  ;;  %3706 = vmatmul.f32.gmra.mxu0 %v3563_v19  ;;  %v9382_v14 = vmax.f32 %v8713_v17, 0.0  ;;  %v3357_v56 = vadd.f32 %v8699_v49, %v3356_v62 }
 0x4f6   : > { %5050 = vst [vmem:[%s8620_s20 + $0x20] sm:$0xff] %v4159_v42  ;;  %v4163_v48 = vsub.f32 1.0, %v4162_v43  ;;  %vm4167_vm6 = vweird.f32 %v5680_v30  ;;  %v3227_v4 = vmax.f32 %v3118_v23, 0.0  ;;  %v2528_v32 = vadd.f32 %v8458_v59, %v7643_v46 }
 0x4f7   : > { %v3662_v36 = vpop.f32.mrf.mxu0  ;;  %v9534_v22 = vmax.f32 %v9533_v54, 0.0  ;;  %vm4168_vm8 = vmor %vm4166_vm7, %vm4167_vm6  ;;  %vm4171_vm9 = vcmp.eq.f32.partialorder %v4170_v47, 8.507059e+37  ;;  %vm4181_vm11 = vweird.f32 %v8711_v52 }
 0x4f8   : > { %v4164_v13 = vmul.f32 %v5680_v30, %v4163_v48  ;;  %v3663_v27 = vadd.f32 %v3662_v36, %v8552_v1  ;;  %3167 = vmatmul.f32.gmra.mxu2 %v9382_v14  ;;  %v2817_v29 = vpop.f32.mrf.mxu1  ;;  %3406 = vmatmul.f32.gmra.mxu3 %v3227_v4  ;;  %v4173_v48 = vor.u32 1.1754944e-38, %v4172_v58 }
 0x4f9   : > { %v3500_v9 = vadd.f32 %v3357_v56, %v9534_v22  ;;  %v2818_v19 = vadd.f32 %v8659_v12, %v2817_v29 }
 0x4fa   : > { %v5682_v18 = vpop.eup %5681  ;;  %v4165_v62 = vadd.f32 %v5680_v30, %v4164_v13  ;;  %v5524_v43 = vmul.f32 -1.442695, %v3663_v27  ;;  %v4185_v27 = vand.u32 2147483647, %v8711_v52 }
 0x4fb   : > { %v5684_v42 = vpop.eup %5683  ;;  %v8732_v23 = vadd.f32 1.0, %v5682_v18  ;;  %v8734_v36 = vadd.f32 %v2818_v19, %v2528_v32  ;;  %v3564_v59 = vmax.f32 %v3500_v9, 0.0  ;;  %v3120_v14 = vpop.f32.mrf.mxu2  ;;  %v4187_v32 = vand.u32 2147483648, %v8711_v52 }
 0x4fc   : > { %v3359_v54 = vpop.f32.mrf.mxu3  ;;  %v4169_v56 = vsel %vm4168_vm8, %v5680_v30, %v4165_v62  ;;  %v4177_v29 = vmul.f32 %v5684_v42, %v8711_v52  ;;  %5685 = vpow2.f32 %v5524_v43  ;;  %v3121_v4 = vadd.f32 %v8516_v28, %v3120_v14  ;;  %v9535_v14 = vld [vmem:[#allocation18_spill] sm:$0xff] }
 0x4fd   : > { %v4174_v13 = vsel %vm4171_vm9, %v4173_v48, %v4169_v56  ;;  %5687 = vrcp.f32 %v8732_v23  ;;  %3709 = vmatmul.f32.gmra.mxu0 %v3564_v59  ;;  %v9383_v58 = vmax.f32 %v8734_v36, 0.0  ;;  %v3360_v30 = vadd.f32 %v8699_v49, %v3359_v54 }
 0x4fe   : > { %5051 = vst [vmem:[%s8620_s20 + $0x28] sm:$0xff] %v4174_v13  ;;  %v4178_v40 = vsub.f32 1.0, %v4177_v29  ;;  %vm4182_vm10 = vweird.f32 %v5684_v42  ;;  %v3228_v9 = vmax.f32 %v3121_v4, 0.0  ;;  %v2531_v62 = vadd.f32 %v8476_v20, %v7643_v46 }
 0x4ff   : > { %v3665_v47 = vpop.f32.mrf.mxu0  ;;  %v9536_v43 = vmax.f32 %v9535_v14, 0.0  ;;  %vm4183_vm12 = vmor %vm4181_vm11, %vm4182_vm10  ;;  %vm4186_vm13 = vcmp.eq.f32.partialorder %v4185_v27, 8.507059e+37  ;;  %vm4196_vm15 = vweird.f32 %v8732_v23 }
 0x500   : > { %v4179_v22 = vmul.f32 %v5684_v42, %v4178_v40  ;;  %v3666_v19 = vadd.f32 %v3665_v47, %v8552_v1  ;;  %3170 = vmatmul.f32.gmra.mxu2 %v9383_v58  ;;  %v2820_v18 = vpop.f32.mrf.mxu1  ;;  %3409 = vmatmul.f32.gmra.mxu3 %v3228_v9  ;;  %v4188_v40 = vor.u32 1.1754944e-38, %v4187_v32 }
 0x501   : > { %v3501_v48 = vadd.f32 %v3360_v30, %v9536_v43  ;;  %v2821_v59 = vadd.f32 %v8659_v12, %v2820_v18 }
 0x502   : > { %v5686_v56 = vpop.eup %5685  ;;  %v4180_v54 = vadd.f32 %v5684_v42, %v4179_v22  ;;  %v5525_v29 = vmul.f32 -1.442695, %v3666_v19  ;;  %v4200_v19 = vand.u32 2147483647, %v8732_v23 }
 0x503   : > { %v5688_v13 = vpop.eup %5687  ;;  %v8753_v4 = vadd.f32 1.0, %v5686_v56  ;;  %v8755_v47 = vadd.f32 %v2821_v59, %v2531_v62  ;;  %v3565_v20 = vmax.f32 %v3501_v48, 0.0  ;;  %v3123_v58 = vpop.f32.mrf.mxu2  ;;  %v4202_v62 = vand.u32 2147483648, %v8732_v23 }
 0x504   : > { %v3362_v14 = vpop.f32.mrf.mxu3  ;;  %v4184_v30 = vsel %vm4183_vm12, %v5684_v42, %v4180_v54  ;;  %v4192_v18 = vmul.f32 %v5688_v13, %v8732_v23  ;;  %5689 = vpow2.f32 %v5525_v29  ;;  %v3124_v9 = vadd.f32 %v8516_v28, %v3123_v58  ;;  %v9537_v58 = vld [vmem:[#allocation13_spill] sm:$0xff] }
 0x505   : > { %v4189_v22 = vsel %vm4186_vm13, %v4188_v40, %v4184_v30  ;;  %5691 = vrcp.f32 %v8753_v4  ;;  %3712 = vmatmul.f32.gmra.mxu0 %v3565_v20  ;;  %v9384_v32 = vmax.f32 %v8755_v47, 0.0  ;;  %v3363_v42 = vadd.f32 %v8699_v49, %v3362_v14 }
 0x506   : > { %5052 = vst [vmem:[%s8620_s20 + $0x30] sm:$0xff] %v4189_v22  ;;  %v4193_v52 = vsub.f32 1.0, %v4192_v18  ;;  %vm4197_vm14 = vweird.f32 %v5688_v13  ;;  %v3229_v48 = vmax.f32 %v3124_v9, 0.0  ;;  %v2534_v54 = vadd.f32 %v8497_v51, %v7643_v46 }
 0x507   : > { %v3668_v27 = vpop.f32.mrf.mxu0  ;;  %v9538_v29 = vmax.f32 %v9537_v58, 0.0  ;;  %vm4198_vm0 = vmor %vm4196_vm15, %vm4197_vm14  ;;  %vm4201_vm1 = vcmp.eq.f32.partialorder %v4200_v19, 8.507059e+37  ;;  %vm4211_vm3 = vweird.f32 %v8753_v4 }
 0x508   : > { %v4194_v43 = vmul.f32 %v5688_v13, %v4193_v52  ;;  %v3669_v59 = vadd.f32 %v3668_v27, %v8552_v1  ;;  %3173 = vmatmul.f32.gmra.mxu2 %v9384_v32  ;;  %v2823_v56 = vpop.f32.mrf.mxu1  ;;  %3412 = vmatmul.f32.gmra.mxu3 %v3229_v48  ;;  %v4203_v52 = vor.u32 1.1754944e-38, %v4202_v62 }
 0x509   : > { %v3502_v40 = vadd.f32 %v3363_v42, %v9538_v29  ;;  %v2824_v20 = vadd.f32 %v8659_v12, %v2823_v56 }
 0x50a   : > { %v5690_v30 = vpop.eup %5689  ;;  %v4195_v14 = vadd.f32 %v5688_v13, %v4194_v43  ;;  %v5526_v18 = vmul.f32 -1.442695, %v3669_v59  ;;  %v4215_v59 = vand.u32 2147483647, %v8753_v4 }
 0x50b   : > { %v5692_v22 = vpop.eup %5691  ;;  %v8774_v9 = vadd.f32 1.0, %v5690_v30  ;;  %v8776_v27 = vadd.f32 %v2824_v20, %v2534_v54  ;;  %v3566_v51 = vmax.f32 %v3502_v40, 0.0  ;;  %v3126_v32 = vpop.f32.mrf.mxu2  ;;  %v4217_v54 = vand.u32 2147483648, %v8753_v4 }
 0x50c   : > { %v3365_v58 = vpop.f32.mrf.mxu3  ;;  %v4199_v42 = vsel %vm4198_vm0, %v5688_v13, %v4195_v14  ;;  %v4207_v56 = vmul.f32 %v5692_v22, %v8753_v4  ;;  %5693 = vpow2.f32 %v5526_v18  ;;  %v3127_v48 = vadd.f32 %v8516_v28, %v3126_v32  ;;  %v9539_v32 = vld [vmem:[#allocation5_spill] sm:$0xff] }
 0x50d   : > { %v4204_v43 = vsel %vm4201_vm1, %v4203_v52, %v4199_v42  ;;  %5695 = vrcp.f32 %v8774_v9  ;;  %3715 = vmatmul.f32.gmra.mxu0 %v3566_v51  ;;  %v9385_v62 = vmax.f32 %v8776_v27, 0.0  ;;  %v3366_v13 = vadd.f32 %v8699_v49, %v3365_v58 }
 0x50e   : > { %5053 = vst [vmem:[%s8620_s20 + $0x38] sm:$0xff] %v4204_v43  ;;  %v4208_v23 = vsub.f32 1.0, %v4207_v56  ;;  %vm4212_vm2 = vweird.f32 %v5692_v22  ;;  %v3230_v40 = vmax.f32 %v3127_v48, 0.0  ;;  %v2537_v14 = vadd.f32 %v8520_v5, %v7643_v46 }
 0x50f   : > { %v3671_v19 = vpop.f32.mrf.mxu0  ;;  %v9540_v18 = vmax.f32 %v9539_v32, 0.0  ;;  %vm4213_vm4 = vmor %vm4211_vm3, %vm4212_vm2  ;;  %vm4216_vm5 = vcmp.eq.f32.partialorder %v4215_v59, 8.507059e+37  ;;  %vm4226_vm7 = vweird.f32 %v8774_v9 }
 0x510   : > { %v4209_v29 = vmul.f32 %v5692_v22, %v4208_v23  ;;  %v3672_v20 = vadd.f32 %v3671_v19, %v8552_v1  ;;  %3176 = vmatmul.f32.gmra.mxu2 %v9385_v62  ;;  %v2826_v30 = vpop.f32.mrf.mxu1  ;;  %3415 = vmatmul.f32.gmra.mxu3 %v3230_v40  ;;  %v4218_v23 = vor.u32 1.1754944e-38, %v4217_v54 }
 0x511   : > { %v3503_v52 = vadd.f32 %v3366_v13, %v9540_v18  ;;  %v2827_v51 = vadd.f32 %v8659_v12, %v2826_v30 }
 0x512   : > { %v5694_v42 = vpop.eup %5693  ;;  %v4210_v58 = vadd.f32 %v5692_v22, %v4209_v29  ;;  %v5527_v56 = vmul.f32 -1.442695, %v3672_v20  ;;  %v4230_v20 = vand.u32 2147483647, %v8774_v9 }
 0x513   : > { %v5696_v43 = vpop.eup %5695  ;;  %v8795_v48 = vadd.f32 1.0, %v5694_v42  ;;  %v8797_v19 = vadd.f32 %v2827_v51, %v2537_v14  ;;  %v3567_v5 = vmax.f32 %v3503_v52, 0.0  ;;  %v3129_v62 = vpop.f32.mrf.mxu2  ;;  %v4232_v14 = vand.u32 2147483648, %v8774_v9 }
 0x514   : > { %v3368_v32 = vpop.f32.mrf.mxu3  ;;  %v4214_v13 = vsel %vm4213_vm4, %v5692_v22, %v4210_v58  ;;  %v4222_v30 = vmul.f32 %v5696_v43, %v8774_v9  ;;  %5697 = vpow2.f32 %v5527_v56  ;;  %v3130_v40 = vadd.f32 %v8516_v28, %v3129_v62  ;;  %v9541_v62 = vld [vmem:[#allocation14_spill] sm:$0xff] }
 0x515   : > { %v4219_v29 = vsel %vm4216_vm5, %v4218_v23, %v4214_v13  ;;  %5699 = vrcp.f32 %v8795_v48  ;;  %3718 = vmatmul.f32.gmra.mxu0 %v3567_v5  ;;  %v2958_v54 = vmax.f32 %v8797_v19, 0.0  ;;  %v3369_v22 = vadd.f32 %v8699_v49, %v3368_v32 }
 0x516   : > { %5054 = vst [vmem:[%s8620_s20 + $0x40] sm:$0xff] %v4219_v29  ;;  %v4223_v4 = vsub.f32 1.0, %v4222_v30  ;;  %vm4227_vm6 = vweird.f32 %v5696_v43  ;;  %v3231_v52 = vmax.f32 %v3130_v40, 0.0  ;;  %v2540_v58 = vadd.f32 %v8537_v11, %v7643_v46 }
 0x517   : > { %v3674_v59 = vpop.f32.mrf.mxu0  ;;  %v9542_v56 = vmax.f32 %v9541_v62, 0.0  ;;  %vm4228_vm8 = vmor %vm4226_vm7, %vm4227_vm6  ;;  %vm4231_vm9 = vcmp.eq.f32.partialorder %v4230_v20, 8.507059e+37  ;;  %vm4241_vm11 = vweird.f32 %v8795_v48 }
 0x518   : > { %v4224_v18 = vmul.f32 %v5696_v43, %v4223_v4  ;;  %v3675_v51 = vadd.f32 %v3674_v59, %v8552_v1  ;;  %3179 = vmatmul.f32.gmra.mxu2 %v2958_v54  ;;  %v2829_v42 = vpop.f32.mrf.mxu1  ;;  %3418 = vmatmul.f32.gmra.mxu3 %v3231_v52  ;;  %v4233_v4 = vor.u32 1.1754944e-38, %v4232_v14 }
 0x519   : > { %v3504_v23 = vadd.f32 %v3369_v22, %v9542_v56  ;;  %v2830_v5 = vadd.f32 %v8659_v12, %v2829_v42  ;;  %v4247_v42 = vand.u32 2147483648, %v8795_v48 }
 0x51a   : > { %v5698_v13 = vpop.eup %5697  ;;  %v4225_v32 = vadd.f32 %v5696_v43, %v4224_v18  ;;  %v5528_v30 = vmul.f32 -1.442695, %v3675_v51  ;;  %v4245_v51 = vand.u32 2147483647, %v8795_v48 }
 0x51b   : > { %v5700_v29 = vpop.eup %5699  ;;  %v8816_v40 = vadd.f32 1.0, %v5698_v13  ;;  %v8818_v59 = vadd.f32 %v2830_v5, %v2540_v58  ;;  %v3568_v46 = vmax.f32 %v3504_v23, 0.0  ;;  %v3132_v11 = vpop.f32.mrf.mxu2  ;;  %v9543_v5 = vld [vmem:[#allocation15_spill] sm:$0xff] }
 0x51c   : > { %v3371_v62 = vpop.f32.mrf.mxu3  ;;  %v4229_v22 = vsel %vm4228_vm8, %v5696_v43, %v4225_v32  ;;  %v4237_v12 = vmul.f32 %v5700_v29, %v8795_v48  ;;  %5701 = vpow2.f32 %v5528_v30  ;;  %v3133_v52 = vadd.f32 %v8516_v28, %v3132_v11 }
 0x51d   : > { %v4234_v18 = vsel %vm4231_vm9, %v4233_v4, %v4229_v22  ;;  %5703 = vrcp.f32 %v8816_v40  ;;  %3721 = vmatmul.f32.gmra.mxu0 %v3568_v46  ;;  %v2959_v14 = vmax.f32 %v8818_v59, 0.0  ;;  %v3372_v43 = vadd.f32 %v8699_v49, %v3371_v62 }
 0x51e   : > { %5055 = vst [vmem:[%s8620_s20 + $0x48] sm:$0xff] %v4234_v18  ;;  %v4238_v9 = vsub.f32 1.0, %v4237_v12  ;;  %vm4242_vm10 = vweird.f32 %v5700_v29  ;;  %v3232_v56 = vmax.f32 %v3133_v52, 0.0  ;;  %v9544_v13 = vmax.f32 %v9543_v5, 0.0 }
 0x51f   : > { %v3677_v20 = vpop.f32.mrf.mxu0  ;;  %vm4243_vm12 = vmor %vm4241_vm11, %vm4242_vm10  ;;  %v4248_v62 = vor.u32 1.1754944e-38, %v4247_v42  ;;  %vm4246_vm13 = vcmp.eq.f32.partialorder %v4245_v51, 8.507059e+37  ;;  %vm4256_vm15 = vweird.f32 %v8816_v40 }
 0x520   : > { %v4239_v58 = vmul.f32 %v5700_v29, %v4238_v9  ;;  %v3678_v23 = vadd.f32 %v3677_v20, %v8552_v1  ;;  %3182 = vmatmul.f32.gmra.mxu2 %v2959_v14  ;;  %v3505_v32 = vadd.f32 %v3372_v43, %v9544_v13  ;;  %3421 = vmatmul.f32.gmra.mxu3 %v3232_v56  ;;  %v4260_v56 = vand.u32 2147483647, %v8816_v40  ;;  %v9545_v13 = vld [vmem:[#allocation16_spill] sm:$0xff] }
 0x522   : > { %v5702_v30 = vpop.eup %5701  ;;  %v4240_v4 = vadd.f32 %v5700_v29, %v4239_v58  ;;  %v5529_v46 = vmul.f32 -1.442695, %v3678_v23  ;;  %v3569_v12 = vmax.f32 %v3505_v32, 0.0  ;;  %v4262_v23 = vand.u32 2147483648, %v8816_v40 }
 0x523   : > { %v5704_v11 = vpop.eup %5703  ;;  %v8834_v22 = vadd.f32 1.0, %v5702_v30  ;;  %v3135_v18 = vpop.f32.mrf.mxu2  ;;  %v9546_v32 = vmax.f32 %v9545_v13, 0.0  ;;  %vm4261_vm1 = vcmp.eq.f32.partialorder %v4260_v56, 8.507059e+37 }
 0x524   : > { %v3374_v9 = vpop.f32.mrf.mxu3  ;;  %v4244_v52 = vsel %vm4243_vm12, %v5700_v29, %v4240_v4  ;;  %v4252_v20 = vmul.f32 %v5704_v11, %v8816_v40  ;;  %5705 = vpow2.f32 %v5529_v46  ;;  %v3136_v58 = vadd.f32 %v8516_v28, %v3135_v18 }
 0x525   : > { %v4249_v43 = vsel %vm4246_vm13, %v4248_v62, %v4244_v52  ;;  %5707 = vrcp.f32 %v8834_v22  ;;  %3724 = vmatmul.f32.gmra.mxu0 %v3569_v12  ;;  %v3375_v42 = vadd.f32 %v8699_v49, %v3374_v9  ;;  %vm4257_vm14 = vweird.f32 %v5704_v11 }
 0x526   : > { %5056 = vst [vmem:[%s8620_s20 + $0x50] sm:$0xff] %v4249_v43  ;;  %v4253_v48 = vsub.f32 1.0, %v4252_v20  ;;  %v3233_v51 = vmax.f32 %v3136_v58, 0.0  ;;  %vm4258_vm0 = vmor %vm4256_vm15, %vm4257_vm14  ;;  %v4263_v18 = vor.u32 1.1754944e-38, %v4262_v23  ;;  %vm4271_vm3 = vweird.f32 %v8834_v22 }
 0x527   : > { %v3680_v5 = vpop.f32.mrf.mxu0  ;;  %v3506_v30 = vadd.f32 %v3375_v42, %v9546_v32  ;;  %v8853_v42 = vld [vmem:[%s9234_s9 + $0x5] ss:$0 sm:$0xff]  ;;  %v4275_v32 = vand.u32 2147483647, %v8834_v22 }
 0x528   : > { %v4254_v29 = vmul.f32 %v5704_v11, %v4253_v48  ;;  %v3681_v4 = vadd.f32 %v3680_v5, %v8552_v1  ;;  %3424 = vmatmul.f32.gmra.mxu3 %v3233_v51 }
 0x529   : > { %v3570_v28 = vmax.f32 %v3506_v30, 0.0  ;;  %vm4276_vm5 = vcmp.eq.f32.partialorder %v4275_v32, 8.507059e+37 }
 0x52a   : > { %v5706_v46 = vpop.eup %5705  ;;  %v4255_v62 = vadd.f32 %v5704_v11, %v4254_v29  ;;  %v5530_v52 = vmul.f32 -1.442695, %v3681_v4  ;;  %v9547_v4 = vld [vmem:[#allocation21_spill] sm:$0xff] }
 0x52b   : > { %v5708_v12 = vpop.eup %5707  ;;  %v8847_v9 = vadd.f32 1.0, %v5706_v46  ;;  %v3138_v20 = vpop.f32.mrf.mxu2  ;;  %v9548_v46 = vmax.f32 %v9547_v4, 0.0  ;;  %v9549_v4 = vld [vmem:[#allocation22_spill] sm:$0xff] }
 0x52c   : > { %v3377_v43 = vpop.f32.mrf.mxu3  ;;  %v4259_v48 = vsel %vm4258_vm0, %v5704_v11, %v4255_v62  ;;  %v4267_v58 = vmul.f32 %v5708_v12, %v8834_v22  ;;  %v3139_v40 = vadd.f32 %v8853_v42, %v3138_v20  ;;  %v4277_v11 = vand.u32 2147483648, %v8834_v22 }
 0x52d   : > { %v4264_v5 = vsel %vm4261_vm1, %v4263_v18, %v4259_v48  ;;  %5709 = vrcp.f32 %v8847_v9  ;;  %3727 = vmatmul.f32.gmra.mxu0 %v3570_v28  ;;  %v3378_v56 = vadd.f32 %v8699_v49, %v3377_v43  ;;  %vm4272_vm2 = vweird.f32 %v5708_v12 }
 0x52e   : > { %5057 = vst [vmem:[%s8620_s20 + $0x58] sm:$0xff] %v4264_v5  ;;  %v4268_v23 = vsub.f32 1.0, %v4267_v58  ;;  %5711 = vpow2.f32 %v5530_v52  ;;  %v3234_v29 = vmax.f32 %v3139_v40, 0.0  ;;  %vm4273_vm4 = vmor %vm4271_vm3, %vm4272_vm2  ;;  %v4278_v20 = vor.u32 1.1754944e-38, %v4277_v11 }
 0x52f   : > { %v3683_v51 = vpop.f32.mrf.mxu0  ;;  %v3507_v62 = vadd.f32 %v3378_v56, %v9548_v46  ;;  %v4290_v11 = vand.u32 2147483647, %v8847_v9  ;;  %v9550_v46 = vmax.f32 %v9549_v4, 0.0  ;;  %vm4286_vm7 = vweird.f32 %v8847_v9 }
 0x530   : > { %v4269_v13 = vmul.f32 %v5708_v12, %v4268_v23  ;;  %v3684_v30 = vadd.f32 %v3683_v51, %v8552_v1  ;;  %3427 = vmatmul.f32.gmra.mxu3 %v3234_v29 }
 0x531   : > { %v3571_v43 = vmax.f32 %v3507_v62, 0.0  ;;  %vm4291_vm9 = vcmp.eq.f32.partialorder %v4290_v11, 8.507059e+37  ;;  %v9551_v11 = vld [vmem:[#allocation23_spill] sm:$0xff] }
 0x532   : > { %v4270_v18 = vadd.f32 %v5708_v12, %v4269_v13  ;;  %v5531_v28 = vmul.f32 -1.442695, %v3684_v30  ;;  %v4292_v13 = vand.u32 2147483648, %v8847_v9 }
 0x533   : > { %v5710_v52 = vpop.eup %5709  ;;  %v3141_v48 = vpop.f32.mrf.mxu2 }
 0x534   : > { %v3380_v58 = vpop.f32.mrf.mxu3  ;;  %v5712_v40 = vpop.eup %5711  ;;  %v4274_v5 = vsel %vm4273_vm4, %v5708_v12, %v4270_v18  ;;  %v4282_v1 = vmul.f32 %v5710_v52, %v8847_v9  ;;  %5713 = vpow2.f32 %v5531_v28  ;;  %v3142_v22 = vadd.f32 %v8853_v42, %v3141_v48  ;;  %v8876_v18 = vld [vmem:[%s9234_s9 + $0x7] ss:$0 sm:$0xff] }
 0x535   : > { %v4279_v23 = vsel %vm4276_vm5, %v4278_v20, %v4274_v5  ;;  %v4036_v56 = vadd.f32 1.0, %v5712_v40  ;;  %3730 = vmatmul.f32.gmra.mxu0 %v3571_v43  ;;  %v3381_v29 = vadd.f32 %v8699_v49, %v3380_v58  ;;  %vm4287_vm6 = vweird.f32 %v5710_v52 }
 0x536   : > { %5058 = vst [vmem:[%s8620_s20 + $0x60] sm:$0xff] %v4279_v23  ;;  %v4283_v51 = vsub.f32 1.0, %v4282_v1  ;;  %v3235_v30 = vmax.f32 %v3142_v22, 0.0  ;;  %vm4288_vm8 = vmor %vm4286_vm7, %vm4287_vm6  ;;  %v4293_v40 = vor.u32 1.1754944e-38, %v4292_v13  ;;  %v9552_v13 = vmax.f32 %v9551_v11, 0.0 }
 0x537   : > { %5715 = vrcp.f32 %v4036_v56  ;;  %v3686_v12 = vpop.f32.mrf.mxu0  ;;  %v3508_v62 = vadd.f32 %v3381_v29, %v9550_v46  ;;  %vm4301_vm11 = vweird.f32 %v4036_v56 }
 0x538   : > { %v4284_v32 = vmul.f32 %v5710_v52, %v4283_v51  ;;  %v3687_v28 = vadd.f32 %v8876_v18, %v3686_v12  ;;  %3430 = vmatmul.f32.gmra.mxu3 %v3235_v30 }
 0x539   : > { %v3572_v58 = vmax.f32 %v3508_v62, 0.0 }
 0x53a   : > { %v5714_v20 = vpop.eup %5713  ;;  %v4285_v43 = vadd.f32 %v5710_v52, %v4284_v32  ;;  %v5532_v48 = vmul.f32 -1.442695, %v3687_v28  ;;  %v4305_v28 = vand.u32 2147483647, %v4036_v56 }
 0x53b   : > { %v8881_v5 = vadd.f32 1.0, %v5714_v20  ;;  %v3144_v1 = vpop.f32.mrf.mxu2  ;;  %v4307_v20 = vand.u32 2147483648, %v4036_v56 }
 0x53c   : > { %v3383_v23 = vpop.f32.mrf.mxu3  ;;  %v4289_v22 = vsel %vm4288_vm8, %v5710_v52, %v4285_v43  ;;  %5717 = vpow2.f32 %v5532_v48  ;;  %v3145_v29 = vadd.f32 %v8853_v42, %v3144_v1  ;;  %vm4306_vm13 = vcmp.eq.f32.partialorder %v4305_v28, 8.507059e+37 }
 0x53d   : > { %v3384_v51 = vadd.f32 %v8699_v49, %v3383_v23  ;;  %v5716_v12 = vpop.eup %5715  ;;  %v4294_v9 = vsel %vm4291_vm9, %v4293_v40, %v4289_v22  ;;  %5719 = vrcp.f32 %v8881_v5  ;;  %3733 = vmatmul.f32.gmra.mxu0 %v3572_v58  ;;  %vm4316_vm15 = vweird.f32 %v8881_v5 }
 0x53e   : > { %5059 = vst [vmem:[%s8620_s20 + $0x68] sm:$0xff] %v4294_v9  ;;  %v4297_v32 = vmul.f32 %v5716_v12, %v4036_v56  ;;  %v3236_v30 = vmax.f32 %v3145_v29, 0.0  ;;  %vm4302_vm10 = vweird.f32 %v5716_v12  ;;  %v4320_v56 = vand.u32 2147483647, %v8881_v5 }
 0x53f   : > { %v3509_v4 = vadd.f32 %v3384_v51, %v9552_v13  ;;  %v3689_v46 = vpop.f32.mrf.mxu0  ;;  %vm4303_vm12 = vmor %vm4301_vm11, %vm4302_vm10 }
 0x540   : > { %v4298_v62 = vsub.f32 1.0, %v4297_v32  ;;  %v3690_v52 = vadd.f32 %v8876_v18, %v3689_v46  ;;  %3433 = vmatmul.f32.gmra.mxu3 %v3236_v30  ;;  %v4308_v32 = vor.u32 1.1754944e-38, %v4307_v20  ;;  %v9553_v20 = vmax.f32 %v8295_v41, 0.0 }
 0x541   : > { %v3573_v43 = vmax.f32 %v3509_v4, 0.0  ;;  %vm4321_vm1 = vcmp.eq.f32.partialorder %v4320_v56, 8.507059e+37 }
 0x542   : > { %v5718_v48 = vpop.eup %5717  ;;  %v4299_v1 = vmul.f32 %v5716_v12, %v4298_v62  ;;  %v5533_v40 = vmul.f32 -1.442695, %v3690_v52  ;;  %v4322_v62 = vand.u32 2147483648, %v8881_v5 }
 0x543   : > { %v5720_v23 = vpop.eup %5719  ;;  %v8890_v58 = vadd.f32 1.0, %v5718_v48  ;;  %v3147_v22 = vpop.f32.mrf.mxu2 }
 0x544   : > { %v3386_v29 = vpop.f32.mrf.mxu3  ;;  %v4300_v9 = vadd.f32 %v5716_v12, %v4299_v1  ;;  %v4312_v51 = vmul.f32 %v5720_v23, %v8881_v5  ;;  %5721 = vpow2.f32 %v5533_v40  ;;  %v3148_v30 = vadd.f32 %v8853_v42, %v3147_v22 }
 0x545   : > { %5723 = vrcp.f32 %v8890_v58  ;;  %3736 = vmatmul.f32.gmra.mxu0 %v3573_v43  ;;  %v3387_v4 = vadd.f32 %v8699_v49, %v3386_v29  ;;  %vm4317_vm14 = vweird.f32 %v5720_v23  ;;  %vm4331_vm3 = vweird.f32 %v8890_v58 }
 0x546   : > { %v4304_v11 = vsel %vm4303_vm12, %v5716_v12, %v4300_v9  ;;  %v4313_v13 = vsub.f32 1.0, %v4312_v51  ;;  %v3237_v28 = vmax.f32 %v3148_v30, 0.0  ;;  %vm4318_vm0 = vmor %vm4316_vm15, %vm4317_vm14  ;;  %v4323_v51 = vor.u32 1.1754944e-38, %v4322_v62 }
 0x547   : > { %v4309_v46 = vsel %vm4306_vm13, %v4308_v32, %v4304_v11  ;;  %v3692_v52 = vpop.f32.mrf.mxu0  ;;  %v3510_v1 = vadd.f32 %v3387_v4, %v9553_v20  ;;  %v4335_v62 = vand.u32 2147483647, %v8890_v58 }
 0x548   : > { %5060 = vst [vmem:[%s8620_s20 + $0x70] sm:$0xff] %v4309_v46  ;;  %v4314_v48 = vmul.f32 %v5720_v23, %v4313_v13  ;;  %v3693_v12 = vadd.f32 %v8876_v18, %v3692_v52  ;;  %3436 = vmatmul.f32.gmra.mxu3 %v3237_v28 }
 0x549   : > { %v3574_v29 = vmax.f32 %v3510_v1, 0.0  ;;  %vm4336_vm5 = vcmp.eq.f32.partialorder %v4335_v62, 8.507059e+37 }
 0x54a   : > { %v5722_v43 = vpop.eup %5721  ;;  %v4315_v40 = vadd.f32 %v5720_v23, %v4314_v48  ;;  %v5534_v22 = vmul.f32 -1.442695, %v3693_v12  ;;  %v4337_v48 = vand.u32 2147483648, %v8890_v58 }
 0x54b   : > { %v5724_v9 = vpop.eup %5723  ;;  %v8904_v32 = vadd.f32 1.0, %v5722_v43  ;;  %v3150_v11 = vpop.f32.mrf.mxu2 }
 0x54c   : > { %v3389_v13 = vpop.f32.mrf.mxu3  ;;  %v4319_v41 = vsel %vm4318_vm0, %v5720_v23, %v4315_v40  ;;  %v4327_v30 = vmul.f32 %v5724_v9, %v8890_v58  ;;  %5725 = vpow2.f32 %v5534_v22  ;;  %v3151_v46 = vadd.f32 %v8853_v42, %v3150_v11 }
 0x54d   : > { %v4324_v4 = vsel %vm4321_vm1, %v4323_v51, %v4319_v41  ;;  %5727 = vrcp.f32 %v8904_v32  ;;  %3739 = vmatmul.f32.gmra.mxu0 %v3574_v29  ;;  %v3390_v52 = vadd.f32 %v8699_v49, %v3389_v13  ;;  %vm4332_vm2 = vweird.f32 %v5724_v9 }
 0x54e   : > { %5061 = vst [vmem:[%s8620_s20 + $0x78] sm:$0xff] %v4324_v4  ;;  %v4328_v5 = vsub.f32 1.0, %v4327_v30  ;;  %v3238_v23 = vmax.f32 %v3151_v46, 0.0  ;;  %vm4333_vm4 = vmor %vm4331_vm3, %vm4332_vm2  ;;  %v4338_v29 = vor.u32 1.1754944e-38, %v4337_v48  ;;  %vm4346_vm7 = vweird.f32 %v8904_v32 }
 0x54f   : > { %v3511_v56 = vadd.f32 %v3390_v52, %v2931_v57 }
 0x550   : > { %v4329_v28 = vmul.f32 %v5724_v9, %v4328_v5  ;;  %v3695_v20 = vpop.f32.mrf.mxu0  ;;  %3439 = vmatmul.f32.gmra.mxu3 %v3238_v23  ;;  %v4352_v5 = vand.u32 2147483648, %v8904_v32 }
 0x551   : > { %v3696_v43 = vadd.f32 %v8876_v18, %v3695_v20  ;;  %v3575_v40 = vmax.f32 %v3511_v56, 0.0 }
 0x552   : > { %v5726_v1 = vpop.eup %5725  ;;  %v4330_v12 = vadd.f32 %v5724_v9, %v4329_v28  ;;  %v4353_v20 = vor.u32 1.1754944e-38, %v4352_v5 }
 0x553   : > { %v5728_v22 = vpop.eup %5727  ;;  %v8917_v51 = vadd.f32 1.0, %v5726_v1  ;;  %v3153_v11 = vpop.f32.mrf.mxu2  ;;  %v5535_v57 = vmul.f32 -1.442695, %v3696_v43 }
 0x554   : > { %v3392_v13 = vpop.f32.mrf.mxu3  ;;  %v4334_v41 = vsel %vm4333_vm4, %v5724_v9, %v4330_v12  ;;  %v4342_v26 = vmul.f32 %v5728_v22, %v8904_v32  ;;  %v3154_v4 = vadd.f32 %v8853_v42, %v3153_v11  ;;  %vm4347_vm6 = vweird.f32 %v5728_v22 }
 0x555   : > { %v4339_v30 = vsel %vm4336_vm5, %v4338_v29, %v4334_v41  ;;  %5729 = vrcp.f32 %v8917_v51  ;;  %3742 = vmatmul.f32.gmra.mxu0 %v3575_v40  ;;  %v3393_v46 = vadd.f32 %v8699_v49, %v3392_v13  ;;  %v4350_v9 = vand.u32 2147483647, %v8904_v32  ;;  %vm4348_vm8 = vmor %vm4346_vm7, %vm4347_vm6 }
 0x556   : > { %5062 = vst [vmem:[%s8620_s20 + $0x80] sm:$0xff] %v4339_v30  ;;  %v4343_v58 = vsub.f32 1.0, %v4342_v26  ;;  %5731 = vpow2.f32 %v5535_v57  ;;  %v3239_v62 = vmax.f32 %v3154_v4, 0.0  ;;  %v4367_v4 = vand.u32 2147483648, %v8917_v51 }
 0x557   : > { %v3512_v48 = vadd.f32 %v3393_v46, %v2932_v34  ;;  %vm4351_vm9 = vcmp.eq.f32.partialorder %v4350_v9, 8.507059e+37  ;;  %vm4361_vm11 = vweird.f32 %v8917_v51 }
 0x558   : > { %v4344_v52 = vmul.f32 %v5728_v22, %v4343_v58  ;;  %3442 = vmatmul.f32.gmra.mxu3 %v3239_v62  ;;  %v4365_v58 = vand.u32 2147483647, %v8917_v51  ;;  %v4368_v62 = vor.u32 1.1754944e-38, %v4367_v4 }
 0x559   : > { %v3698_v23 = vpop.f32.mrf.mxu0  ;;  %v3576_v12 = vmax.f32 %v3512_v48, 0.0 }
 0x55a   : > { %v4345_v28 = vadd.f32 %v5728_v22, %v4344_v52  ;;  %v3699_v1 = vadd.f32 %v8876_v18, %v3698_v23  ;;  %vm4366_vm13 = vcmp.eq.f32.partialorder %v4365_v58, 8.507059e+37 }
 0x55b   : > { %v5730_v56 = vpop.eup %5729  ;;  %v3156_v43 = vpop.f32.mrf.mxu2 }
 0x55c   : > { %v5732_v40 = vpop.eup %5731  ;;  %v4349_v29 = vsel %vm4348_vm8, %v5728_v22, %v4345_v28  ;;  %v4357_v11 = vmul.f32 %v5730_v56, %v8917_v51  ;;  %v3157_v38 = vadd.f32 %v8853_v42, %v3156_v43  ;;  %v5536_v32 = vmul.f32 -1.442695, %v3699_v1  ;;  %v3395_v41 = vpop.f32.mrf.mxu3 }
 0x55d   : > { %v4354_v34 = vsel %vm4351_vm9, %v4353_v20, %v4349_v29  ;;  %v4041_v13 = vadd.f32 1.0, %v5732_v40  ;;  %3745 = vmatmul.f32.gmra.mxu0 %v3576_v12  ;;  %v3396_v30 = vadd.f32 %v8699_v49, %v3395_v41  ;;  %vm4362_vm10 = vweird.f32 %v5730_v56 }
 0x55e   : > { %5063 = vst [vmem:[%s8620_s20 + $0x88] sm:$0xff] %v4354_v34  ;;  %v4358_v26 = vsub.f32 1.0, %v4357_v11  ;;  %v3240_v57 = vmax.f32 %v3157_v38, 0.0  ;;  %vm4363_vm12 = vmor %vm4361_vm11, %vm4362_vm10 }
 0x55f   : > { %5733 = vrcp.f32 %v4041_v13  ;;  %v3513_v5 = vadd.f32 %v3396_v30, %v2933_v8  ;;  %v4382_v41 = vand.u32 2147483648, %v4041_v13  ;;  %vm4376_vm15 = vweird.f32 %v4041_v13 }
 0x560   : > { %v4359_v22 = vmul.f32 %v5730_v56, %v4358_v26  ;;  %5735 = vpow2.f32 %v5536_v32  ;;  %3445 = vmatmul.f32.gmra.mxu3 %v3240_v57  ;;  %v4380_v32 = vand.u32 2147483647, %v4041_v13 }
 0x561   : > { %v3701_v52 = vpop.f32.mrf.mxu0  ;;  %v3577_v9 = vmax.f32 %v3513_v5, 0.0 }
 0x562   : > { %v4360_v46 = vadd.f32 %v5730_v56, %v4359_v22  ;;  %v3702_v48 = vadd.f32 %v8876_v18, %v3701_v52  ;;  %vm4381_vm1 = vcmp.eq.f32.partialorder %v4380_v32, 8.507059e+37 }
 0x563   : > { %v3159_v28 = vpop.f32.mrf.mxu2 }
 0x564   : > { %v4364_v23 = vsel %vm4363_vm12, %v5730_v56, %v4360_v46  ;;  %v3160_v20 = vadd.f32 %v8853_v42, %v3159_v28  ;;  %v5537_v2 = vmul.f32 -1.442695, %v3702_v48  ;;  %v3398_v8 = vpop.f32.mrf.mxu3  ;;  %v9554_v56 = vmax.f32 %v8357_v45, 0.0  ;;  %v8955_v28 = vld [vmem:[%s9234_s9 + $0x6] ss:$0 sm:$0xff] }
 0x565   : > { %v5734_v1 = vpop.eup %5733  ;;  %v4369_v12 = vsel %vm4366_vm13, %v4368_v62, %v4364_v23  ;;  %3748 = vmatmul.f32.gmra.mxu0 %v3577_v9  ;;  %v3399_v29 = vadd.f32 %v8699_v49, %v3398_v8  ;;  %v4383_v45 = vor.u32 1.1754944e-38, %v4382_v41 }
 0x566   : > { %v5736_v43 = vpop.eup %5735  ;;  %5064 = vst [vmem:[%s8620_s20 + $0x90] sm:$0xff] %v4369_v12  ;;  %v4372_v51 = vmul.f32 %v5734_v1, %v4041_v13  ;;  %v3241_v40 = vmax.f32 %v3160_v20, 0.0  ;;  %5737 = vpow2.f32 %v5537_v2  ;;  %vm4377_vm14 = vweird.f32 %v5734_v1 }
 0x567   : > { %v8943_v11 = vadd.f32 1.0, %v5736_v43  ;;  %v3514_v34 = vadd.f32 %v3399_v29, %v9554_v56  ;;  %vm4378_vm0 = vmor %vm4376_vm15, %vm4377_vm14 }
 0x568   : > { %v4373_v38 = vsub.f32 1.0, %v4372_v51  ;;  %3448 = vmatmul.f32.gmra.mxu3 %v3241_v40 }
 0x569   : > { %5739 = vrcp.f32 %v8943_v11  ;;  %v3578_v30 = vmax.f32 %v3514_v34, 0.0  ;;  %v4397_v51 = vand.u32 2147483648, %v8943_v11  ;;  %v4395_v34 = vand.u32 2147483647, %v8943_v11 }
 0x56a   : > { %v4374_v26 = vmul.f32 %v5734_v1, %v4373_v38  ;;  %v3704_v57 = vpop.f32.mrf.mxu0  ;;  %vm4391_vm3 = vweird.f32 %v8943_v11 }
 0x56b   : > { %v3705_v58 = vadd.f32 %v8876_v18, %v3704_v57  ;;  %v3162_v4 = vpop.f32.mrf.mxu2  ;;  %vm4396_vm5 = vcmp.eq.f32.partialorder %v4395_v34, 8.507059e+37 }
 0x56c   : > { %v4375_v49 = vadd.f32 %v5734_v1, %v4374_v26  ;;  %v3163_v22 = vadd.f32 %v8853_v42, %v3162_v4  ;;  %v5738_v5 = vpop.eup %5737  ;;  %v3401_v52 = vpop.f32.mrf.mxu3 }
 0x56d   : > { %v5538_v46 = vmul.f32 -1.442695, %v3705_v58  ;;  %3751 = vmatmul.f32.gmra.mxu0 %v3578_v30  ;;  %v8950_v62 = vadd.f32 1.0, %v5738_v5  ;;  %v3402_v13 = vadd.f32 %v8955_v28, %v3401_v52 }
 0x56e   : > { %v4379_v9 = vsel %vm4378_vm0, %v5734_v1, %v4375_v49  ;;  %v3242_v48 = vmax.f32 %v3163_v22, 0.0  ;;  %v9555_v1 = vmax.f32 %v8373_v55, 0.0  ;;  %v4398_v22 = vor.u32 1.1754944e-38, %v4397_v51 }
 0x56f   : > { %v5740_v23 = vpop.eup %5739  ;;  %v4384_v20 = vsel %vm4381_vm1, %v4383_v45, %v4379_v9  ;;  %5741 = vpow2.f32 %v5538_v46  ;;  %v4410_v9 = vand.u32 2147483647, %v8950_v62  ;;  %vm4406_vm7 = vweird.f32 %v8950_v62 }
 0x570   : > { %5065 = vst [vmem:[%s8620_s20 + $0x98] sm:$0xff] %v4384_v20  ;;  %v4387_v12 = vmul.f32 %v5740_v23, %v8943_v11  ;;  %5743 = vrcp.f32 %v8950_v62  ;;  %v3515_v2 = vadd.f32 %v3402_v13, %v9555_v1  ;;  %3451 = vmatmul.f32.gmra.mxu3 %v3242_v48  ;;  %vm4392_vm2 = vweird.f32 %v5740_v23 }
 0x571   : > { %vm4393_vm4 = vmor %vm4391_vm3, %vm4392_vm2  ;;  %v4412_v48 = vand.u32 2147483648, %v8950_v62  ;;  %vm4411_vm9 = vcmp.eq.f32.partialorder %v4410_v9, 8.507059e+37 }
 0x572   : > { %v4388_v8 = vsub.f32 1.0, %v4387_v12  ;;  %v3707_v43 = vpop.f32.mrf.mxu0  ;;  %v3579_v29 = vmax.f32 %v3515_v2, 0.0 }
 0x573   : > { %v3708_v40 = vadd.f32 %v8876_v18, %v3707_v43  ;;  %v3165_v38 = vpop.f32.mrf.mxu2 }
 0x574   : > { %v4389_v56 = vmul.f32 %v5740_v23, %v4388_v8  ;;  %v3166_v32 = vadd.f32 %v8853_v42, %v3165_v38  ;;  %v3404_v26 = vpop.f32.mrf.mxu3 }
 0x575   : > { %v5742_v41 = vpop.eup %5741  ;;  %v5539_v55 = vmul.f32 -1.442695, %v3708_v40  ;;  %3754 = vmatmul.f32.gmra.mxu0 %v3579_v29  ;;  %v3405_v49 = vadd.f32 %v8955_v28, %v3404_v26  ;;  %v4413_v40 = vor.u32 1.1754944e-38, %v4412_v48 }
 0x576   : > { %v5744_v57 = vpop.eup %5743  ;;  %v4390_v30 = vadd.f32 %v5740_v23, %v4389_v56  ;;  %v8968_v58 = vadd.f32 1.0, %v5742_v41  ;;  %v3243_v4 = vmax.f32 %v3166_v32, 0.0 }
 0x577   : > { %v4402_v5 = vmul.f32 %v5744_v57, %v8950_v62  ;;  %5745 = vpow2.f32 %v5539_v55  ;;  %v3516_v52 = vadd.f32 %v3405_v49, %v2936_v31  ;;  %vm4407_vm6 = vweird.f32 %v5744_v57 }
 0x578   : > { %v4394_v45 = vsel %vm4393_vm4, %v5740_v23, %v4390_v30  ;;  %5747 = vrcp.f32 %v8968_v58  ;;  %3454 = vmatmul.f32.gmra.mxu3 %v3243_v4  ;;  %vm4408_vm8 = vmor %vm4406_vm7, %vm4407_vm6  ;;  %v9556_v55 = vmax.f32 %v8405_v24, 0.0  ;;  %v4425_v30 = vand.u32 2147483647, %v8968_v58 }
 0x579   : > { %v4399_v11 = vsel %vm4396_vm5, %v4398_v22, %v4394_v45  ;;  %v4403_v46 = vsub.f32 1.0, %v4402_v5  ;;  %v3580_v23 = vmax.f32 %v3516_v52, 0.0  ;;  %v4427_v4 = vand.u32 2147483648, %v8968_v58 }
 0x57a   : > { %5066 = vst [vmem:[%s8620_s20 + $0xa0] sm:$0xff] %v4399_v11  ;;  %v3710_v13 = vpop.f32.mrf.mxu0  ;;  %vm4421_vm11 = vweird.f32 %v8968_v58  ;;  %vm4426_vm13 = vcmp.eq.f32.partialorder %v4425_v30, 8.507059e+37 }
 0x57b   : > { %v4404_v20 = vmul.f32 %v5744_v57, %v4403_v46  ;;  %v3711_v12 = vadd.f32 %v8876_v18, %v3710_v13  ;;  %v3168_v1 = vpop.f32.mrf.mxu2  ;;  %v4428_v13 = vor.u32 1.1754944e-38, %v4427_v4 }
 0x57c   : > { %v3169_v2 = vadd.f32 %v8853_v42, %v3168_v1  ;;  %v3407_v31 = vpop.f32.mrf.mxu3 }
 0x57d   : > { %v5746_v8 = vpop.eup %5745  ;;  %v4405_v43 = vadd.f32 %v5744_v57, %v4404_v20  ;;  %v5540_v63 = vmul.f32 -1.442695, %v3711_v12  ;;  %3757 = vmatmul.f32.gmra.mxu0 %v3580_v23  ;;  %v3408_v56 = vadd.f32 %v8955_v28, %v3407_v31 }
 0x57e   : > { %v5748_v51 = vpop.eup %5747  ;;  %v8981_v29 = vadd.f32 1.0, %v5746_v8  ;;  %v3244_v38 = vmax.f32 %v3169_v2, 0.0 }
 0x57f   : > { %v4409_v34 = vsel %vm4408_vm8, %v5744_v57, %v4405_v43  ;;  %v4417_v32 = vmul.f32 %v5748_v51, %v8968_v58  ;;  %5749 = vpow2.f32 %v5540_v63  ;;  %v3517_v26 = vadd.f32 %v3408_v56, %v9556_v55 }
 0x580   : > { %v4414_v41 = vsel %vm4411_vm9, %v4413_v40, %v4409_v34  ;;  %5751 = vrcp.f32 %v8981_v29  ;;  %3457 = vmatmul.f32.gmra.mxu3 %v3244_v38  ;;  %vm4422_vm10 = vweird.f32 %v5748_v51  ;;  %v9557_v43 = vmax.f32 %v8421_v10, 0.0 }
 0x581   : > { %5067 = vst [vmem:[%s8620_s20 + $0xa8] sm:$0xff] %v4414_v41  ;;  %v4418_v62 = vsub.f32 1.0, %v4417_v32  ;;  %v3581_v57 = vmax.f32 %v3517_v26, 0.0  ;;  %vm4423_vm12 = vmor %vm4421_vm11, %vm4422_vm10  ;;  %v4440_v31 = vand.u32 2147483647, %v8981_v29  ;;  %v4442_v40 = vand.u32 2147483648, %v8981_v29 }
 0x582   : > { %v3713_v49 = vpop.f32.mrf.mxu0  ;;  %vm4436_vm15 = vweird.f32 %v8981_v29 }
 0x583   : > { %v4419_v22 = vmul.f32 %v5748_v51, %v4418_v62  ;;  %v3714_v5 = vadd.f32 %v8876_v18, %v3713_v49  ;;  %v3171_v45 = vpop.f32.mrf.mxu2  ;;  %v4443_v4 = vor.u32 1.1754944e-38, %v4442_v40  ;;  %vm4441_vm1 = vcmp.eq.f32.partialorder %v4440_v31, 8.507059e+37 }
 0x584   : > { %v3172_v11 = vadd.f32 %v8853_v42, %v3171_v45  ;;  %v3410_v9 = vpop.f32.mrf.mxu3 }
 0x585   : > { %v5750_v46 = vpop.eup %5749  ;;  %v4420_v52 = vadd.f32 %v5748_v51, %v4419_v22  ;;  %v5541_v24 = vmul.f32 -1.442695, %v3714_v5  ;;  %3760 = vmatmul.f32.gmra.mxu0 %v3581_v57  ;;  %v3411_v23 = vadd.f32 %v8955_v28, %v3410_v9 }
 0x586   : > { %v5752_v48 = vpop.eup %5751  ;;  %v8994_v20 = vadd.f32 1.0, %v5750_v46  ;;  %v3245_v12 = vmax.f32 %v3172_v11, 0.0  ;;  %v9558_v46 = vmax.f32 %v8435_v53, 0.0 }
 0x587   : > { %v4424_v1 = vsel %vm4423_vm12, %v5748_v51, %v4420_v52  ;;  %v4432_v2 = vmul.f32 %v5752_v48, %v8981_v29  ;;  %5753 = vpow2.f32 %v5541_v24  ;;  %v3518_v63 = vadd.f32 %v3411_v23, %v9557_v43 }
 0x588   : > { %v4429_v8 = vsel %vm4426_vm13, %v4428_v13, %v4424_v1  ;;  %5755 = vrcp.f32 %v8994_v20  ;;  %3460 = vmatmul.f32.gmra.mxu3 %v3245_v12  ;;  %vm4437_vm14 = vweird.f32 %v5752_v48  ;;  %v4455_v24 = vand.u32 2147483647, %v8994_v20 }
 0x589   : > { %5068 = vst [vmem:[%s8620_s20 + $0xb0] sm:$0xff] %v4429_v8  ;;  %v4433_v58 = vsub.f32 1.0, %v4432_v2  ;;  %v3582_v51 = vmax.f32 %v3518_v63, 0.0  ;;  %vm4438_vm0 = vmor %vm4436_vm15, %vm4437_vm14  ;;  %v4457_v9 = vand.u32 2147483648, %v8994_v20  ;;  %vm4451_vm3 = vweird.f32 %v8994_v20 }
 0x58a   : > { %v3716_v38 = vpop.f32.mrf.mxu0  ;;  %vm4456_vm5 = vcmp.eq.f32.partialorder %v4455_v24, 8.507059e+37 }
 0x58b   : > { %v4434_v56 = vmul.f32 %v5752_v48, %v4433_v58  ;;  %v3717_v34 = vadd.f32 %v8876_v18, %v3716_v38  ;;  %v3174_v32 = vpop.f32.mrf.mxu2  ;;  %v4458_v31 = vor.u32 1.1754944e-38, %v4457_v9 }
 0x58c   : > { %v3175_v41 = vadd.f32 %v8853_v42, %v3174_v32  ;;  %v3413_v26 = vpop.f32.mrf.mxu3 }
 0x58d   : > { %v5754_v62 = vpop.eup %5753  ;;  %v4435_v55 = vadd.f32 %v5752_v48, %v4434_v56  ;;  %v5542_v10 = vmul.f32 -1.442695, %v3717_v34  ;;  %3763 = vmatmul.f32.gmra.mxu0 %v3582_v51  ;;  %v3414_v57 = vadd.f32 %v8955_v28, %v3413_v26 }
 0x58e   : > { %v5756_v30 = vpop.eup %5755  ;;  %v9007_v49 = vadd.f32 1.0, %v5754_v62  ;;  %v3246_v22 = vmax.f32 %v3175_v41, 0.0  ;;  %v9559_v41 = vmax.f32 %v8451_v39, 0.0 }
 0x58f   : > { %v4439_v5 = vsel %vm4438_vm0, %v5752_v48, %v4435_v55  ;;  %v4447_v45 = vmul.f32 %v5756_v30, %v8994_v20  ;;  %5757 = vpow2.f32 %v5542_v10  ;;  %v3519_v52 = vadd.f32 %v3414_v57, %v9558_v46 }
 0x590   : > { %v4444_v11 = vsel %vm4441_vm1, %v4443_v4, %v4439_v5  ;;  %5759 = vrcp.f32 %v9007_v49  ;;  %3463 = vmatmul.f32.gmra.mxu3 %v3246_v22  ;;  %vm4452_vm2 = vweird.f32 %v5756_v30  ;;  %v4470_v55 = vand.u32 2147483647, %v9007_v49 }
 0x591   : > { %5069 = vst [vmem:[%s8620_s20 + $0xb8] sm:$0xff] %v4444_v11  ;;  %v4448_v29 = vsub.f32 1.0, %v4447_v45  ;;  %v3583_v48 = vmax.f32 %v3519_v52, 0.0  ;;  %vm4453_vm4 = vmor %vm4451_vm3, %vm4452_vm2  ;;  %v4472_v10 = vand.u32 2147483648, %v9007_v49  ;;  %vm4466_vm7 = vweird.f32 %v9007_v49 }
 0x592   : > { %v3719_v13 = vpop.f32.mrf.mxu0  ;;  %vm4471_vm9 = vcmp.eq.f32.partialorder %v4470_v55, 8.507059e+37 }
 0x593   : > { %v4449_v12 = vmul.f32 %v5756_v30, %v4448_v29  ;;  %v3720_v23 = vadd.f32 %v8876_v18, %v3719_v13  ;;  %v3177_v1 = vpop.f32.mrf.mxu2  ;;  %v4473_v52 = vor.u32 1.1754944e-38, %v4472_v10 }
 0x594   : > { %v3178_v2 = vadd.f32 %v8853_v42, %v3177_v1  ;;  %v3416_v43 = vpop.f32.mrf.mxu3  ;;  %v9560_v1 = vmax.f32 %v8467_v15, 0.0 }
 0x595   : > { %v5758_v8 = vpop.eup %5757  ;;  %v4450_v58 = vadd.f32 %v5756_v30, %v4449_v12  ;;  %v5543_v53 = vmul.f32 -1.442695, %v3720_v23  ;;  %3766 = vmatmul.f32.gmra.mxu0 %v3583_v48  ;;  %v3417_v56 = vadd.f32 %v8955_v28, %v3416_v43 }
 0x596   : > { %v5760_v63 = vpop.eup %5759  ;;  %v9020_v40 = vadd.f32 1.0, %v5758_v8  ;;  %v3247_v38 = vmax.f32 %v3178_v2, 0.0 }
 0x597   : > { %v4454_v51 = vsel %vm4453_vm4, %v5756_v30, %v4450_v58  ;;  %v4462_v34 = vmul.f32 %v5760_v63, %v9007_v49  ;;  %5761 = vpow2.f32 %v5543_v53  ;;  %v3520_v62 = vadd.f32 %v3417_v56, %v9559_v41 }
 0x598   : > { %v4459_v32 = vsel %vm4456_vm5, %v4458_v31, %v4454_v51  ;;  %5763 = vrcp.f32 %v9020_v40  ;;  %3466 = vmatmul.f32.gmra.mxu3 %v3247_v38  ;;  %vm4467_vm6 = vweird.f32 %v5760_v63  ;;  %v4485_v8 = vand.u32 2147483647, %v9020_v40 }
 0x599   : > { %5070 = vst [vmem:[%s8620_s20 + $0xc0] sm:$0xff] %v4459_v32  ;;  %v4463_v20 = vsub.f32 1.0, %v4462_v34  ;;  %v3584_v30 = vmax.f32 %v3520_v62, 0.0  ;;  %vm4468_vm8 = vmor %vm4466_vm7, %vm4467_vm6  ;;  %v4487_v58 = vand.u32 2147483648, %v9020_v40  ;;  %vm4481_vm11 = vweird.f32 %v9020_v40 }
 0x59a   : > { %v3722_v26 = vpop.f32.mrf.mxu0  ;;  %vm4486_vm13 = vcmp.eq.f32.partialorder %v4485_v8, 8.507059e+37 }
 0x59b   : > { %v4464_v4 = vmul.f32 %v5760_v63, %v4463_v20  ;;  %v3723_v22 = vadd.f32 %v8876_v18, %v3722_v26  ;;  %v3180_v57 = vpop.f32.mrf.mxu2  ;;  %v4488_v41 = vor.u32 1.1754944e-38, %v4487_v58  ;;  %v9562_v58 = vmax.f32 %v8499_v7, 0.0 }
 0x59c   : > { %v3181_v5 = vadd.f32 %v8853_v42, %v3180_v57  ;;  %v3419_v29 = vpop.f32.mrf.mxu3 }
 0x59d   : > { %v5762_v45 = vpop.eup %5761  ;;  %v4465_v11 = vadd.f32 %v5760_v63, %v4464_v4  ;;  %v5544_v39 = vmul.f32 -1.442695, %v3723_v22  ;;  %3769 = vmatmul.f32.gmra.mxu0 %v3584_v30  ;;  %v3420_v13 = vadd.f32 %v8955_v28, %v3419_v29  ;;  %v9561_v30 = vmax.f32 %v8483_v50, 0.0 }
 0x59e   : > { %v5764_v46 = vpop.eup %5763  ;;  %v9033_v24 = vadd.f32 1.0, %v5762_v45  ;;  %v3248_v9 = vmax.f32 %v3181_v5, 0.0 }
 0x59f   : > { %v4469_v12 = vsel %vm4468_vm8, %v5760_v63, %v4465_v11  ;;  %v4477_v48 = vmul.f32 %v5764_v46, %v9020_v40  ;;  %5765 = vpow2.f32 %v5544_v39  ;;  %v3521_v2 = vadd.f32 %v3420_v13, %v9560_v1 }
 0x5a0   : > { %v4474_v23 = vsel %vm4471_vm9, %v4473_v52, %v4469_v12  ;;  %5767 = vrcp.f32 %v9033_v24  ;;  %3469 = vmatmul.f32.gmra.mxu3 %v3248_v9  ;;  %vm4482_vm10 = vweird.f32 %v5764_v46  ;;  %v4500_v57 = vand.u32 2147483647, %v9033_v24 }
 0x5a1   : > { %5071 = vst [vmem:[%s8620_s20 + $0xc8] sm:$0xff] %v4474_v23  ;;  %v4478_v49 = vsub.f32 1.0, %v4477_v48  ;;  %v3585_v63 = vmax.f32 %v3521_v2, 0.0  ;;  %vm4483_vm12 = vmor %vm4481_vm11, %vm4482_vm10  ;;  %v4502_v5 = vand.u32 2147483648, %v9033_v24  ;;  %vm4496_vm15 = vweird.f32 %v9033_v24 }
 0x5a2   : > { %v3725_v53 = vpop.f32.mrf.mxu0  ;;  %vm4501_vm1 = vcmp.eq.f32.partialorder %v4500_v57, 8.507059e+37 }
 0x5a3   : > { %v4479_v43 = vmul.f32 %v5764_v46, %v4478_v49  ;;  %v3726_v31 = vadd.f32 %v8876_v18, %v3725_v53  ;;  %v3183_v38 = vpop.f32.mrf.mxu2  ;;  %v4503_v12 = vor.u32 1.1754944e-38, %v4502_v5 }
 0x5a4   : > { %v3184_v56 = vadd.f32 %v8853_v42, %v3183_v38  ;;  %v3422_v32 = vpop.f32.mrf.mxu3 }
 0x5a5   : > { %v5766_v51 = vpop.eup %5765  ;;  %v4480_v34 = vadd.f32 %v5764_v46, %v4479_v43  ;;  %v5545_v15 = vmul.f32 -1.442695, %v3726_v31  ;;  %3772 = vmatmul.f32.gmra.mxu0 %v3585_v63  ;;  %v3423_v10 = vadd.f32 %v8955_v28, %v3422_v32 }
 0x5a6   : > { %v5768_v20 = vpop.eup %5767  ;;  %v4050_v62 = vadd.f32 1.0, %v5766_v51  ;;  %v3249_v55 = vmax.f32 %v3184_v56, 0.0 }
 0x5a7   : > { %v4484_v26 = vsel %vm4483_vm12, %v5764_v46, %v4480_v34  ;;  %v4492_v4 = vmul.f32 %v5768_v20, %v9033_v24  ;;  %5769 = vpow2.f32 %v5545_v15  ;;  %v3522_v22 = vadd.f32 %v3423_v10, %v9561_v30 }
 0x5a8   : > { %v4489_v42 = vsel %vm4486_vm13, %v4488_v41, %v4484_v26  ;;  %5771 = vrcp.f32 %v4050_v62  ;;  %3472 = vmatmul.f32.gmra.mxu3 %v3249_v55  ;;  %vm4497_vm14 = vweird.f32 %v5768_v20  ;;  %v4515_v53 = vand.u32 2147483647, %v4050_v62 }
 0x5a9   : > { %5072 = vst [vmem:[%s8620_s20 + $0xd0] sm:$0xff] %v4489_v42  ;;  %v4493_v40 = vsub.f32 1.0, %v4492_v4  ;;  %v3586_v39 = vmax.f32 %v3522_v22, 0.0  ;;  %vm4498_vm0 = vmor %vm4496_vm15, %vm4497_vm14  ;;  %v4517_v43 = vand.u32 2147483648, %v4050_v62  ;;  %vm4511_vm3 = vweird.f32 %v4050_v62 }
 0x5aa   : > { %v3728_v45 = vpop.f32.mrf.mxu0  ;;  %vm4516_vm5 = vcmp.eq.f32.partialorder %v4515_v53, 8.507059e+37 }
 0x5ab   : > { %v4494_v11 = vmul.f32 %v5768_v20, %v4493_v40  ;;  %v3729_v29 = vadd.f32 %v8876_v18, %v3728_v45  ;;  %v4518_v41 = vor.u32 1.1754944e-38, %v4517_v43  ;;  %v9563_v40 = vmax.f32 %v8511_v37, 0.0  ;;  %v9072_v43 = vld [vmem:[%s9234_s9 + $0x7] ss:$0 sm:$0xff] }
 0x5ac   : > { %v3425_v50 = vpop.f32.mrf.mxu3 }
 0x5ad   : > { %v5770_v46 = vpop.eup %5769  ;;  %v4495_v52 = vadd.f32 %v5768_v20, %v4494_v11  ;;  %v5546_v9 = vmul.f32 -1.442695, %v3729_v29  ;;  %3775 = vmatmul.f32.gmra.mxu0 %v3586_v39  ;;  %v3426_v23 = vadd.f32 %v8955_v28, %v3425_v50 }
 0x5ae   : > { %v5772_v13 = vpop.eup %5771  ;;  %v4051_v48 = vadd.f32 1.0, %v5770_v46 }
 0x5af   : > { %v4499_v49 = vsel %vm4498_vm0, %v5768_v20, %v4495_v52  ;;  %v4507_v1 = vmul.f32 %v5772_v13, %v4050_v62  ;;  %5773 = vpow2.f32 %v5546_v9  ;;  %v3523_v24 = vadd.f32 %v3426_v23, %v9562_v58 }
 0x5b0   : > { %v4504_v2 = vsel %vm4501_vm1, %v4503_v12, %v4499_v49  ;;  %5775 = vrcp.f32 %v4051_v48  ;;  %vm4512_vm2 = vweird.f32 %v5772_v13  ;;  %v4530_v30 = vand.u32 2147483647, %v4051_v48 }
 0x5b1   : > { %5073 = vst [vmem:[%s8620_s20 + $0xd8] sm:$0xff] %v4504_v2  ;;  %v4508_v8 = vsub.f32 1.0, %v4507_v1  ;;  %v3587_v38 = vmax.f32 %v3523_v24, 0.0  ;;  %vm4513_vm4 = vmor %vm4511_vm3, %vm4512_vm2  ;;  %v4532_v22 = vand.u32 2147483648, %v4051_v48  ;;  %vm4526_vm7 = vweird.f32 %v4051_v48 }
 0x5b2   : > { %v3731_v63 = vpop.f32.mrf.mxu0  ;;  %vm4531_vm9 = vcmp.eq.f32.partialorder %v4530_v30, 8.507059e+37  ;;  %v9564_v1 = vmax.f32 %v8530_v60, 0.0 }
 0x5b3   : > { %v4509_v31 = vmul.f32 %v5772_v13, %v4508_v8  ;;  %v3732_v56 = vadd.f32 %v8876_v18, %v3731_v63  ;;  %v4533_v50 = vor.u32 1.1754944e-38, %v4532_v22 }
 0x5b4   : > { %v3428_v32 = vpop.f32.mrf.mxu3 }
 0x5b5   : > { %v5774_v51 = vpop.eup %5773  ;;  %v4510_v34 = vadd.f32 %v5772_v13, %v4509_v31  ;;  %v5547_v15 = vmul.f32 -1.442695, %v3732_v56  ;;  %3778 = vmatmul.f32.gmra.mxu0 %v3587_v38  ;;  %v3429_v55 = vadd.f32 %v8955_v28, %v3428_v32 }
 0x5b6   : > { %v5776_v20 = vpop.eup %5775  ;;  %v4052_v7 = vadd.f32 1.0, %v5774_v51 }
 0x5b7   : > { %v4514_v10 = vsel %vm4513_vm4, %v5772_v13, %v4510_v34  ;;  %v4522_v26 = vmul.f32 %v5776_v20, %v4051_v48  ;;  %5777 = vpow2.f32 %v5547_v15  ;;  %v3524_v62 = vadd.f32 %v3429_v55, %v9563_v40 }
 0x5b8   : > { %v4519_v4 = vsel %vm4516_vm5, %v4518_v41, %v4514_v10  ;;  %5779 = vrcp.f32 %v4052_v7  ;;  %vm4527_vm6 = vweird.f32 %v5776_v20  ;;  %v4545_v2 = vand.u32 2147483647, %v4052_v7 }
 0x5b9   : > { %5074 = vst [vmem:[%s8620_s20 + $0xe0] sm:$0xff] %v4519_v4  ;;  %v4523_v42 = vsub.f32 1.0, %v4522_v26  ;;  %v3588_v45 = vmax.f32 %v3524_v62, 0.0  ;;  %vm4528_vm8 = vmor %vm4526_vm7, %vm4527_vm6  ;;  %v4547_v8 = vand.u32 2147483648, %v4052_v7  ;;  %vm4541_vm11 = vweird.f32 %v4052_v7 }
 0x5ba   : > { %v3734_v57 = vpop.f32.mrf.mxu0  ;;  %vm4546_vm13 = vcmp.eq.f32.partialorder %v4545_v2, 8.507059e+37  ;;  %v9565_v26 = vmax.f32 %v8544_v0, 0.0 }
 0x5bb   : > { %v4524_v5 = vmul.f32 %v5776_v20, %v4523_v42  ;;  %v3735_v11 = vadd.f32 %v8876_v18, %v3734_v57  ;;  %v4548_v34 = vor.u32 1.1754944e-38, %v4547_v8 }
 0x5bc   : > { %v3431_v52 = vpop.f32.mrf.mxu3 }
 0x5bd   : > { %v5778_v39 = vpop.eup %5777  ;;  %v4525_v29 = vadd.f32 %v5776_v20, %v4524_v5  ;;  %v5548_v46 = vmul.f32 -1.442695, %v3735_v11  ;;  %3781 = vmatmul.f32.gmra.mxu0 %v3588_v45  ;;  %v3432_v13 = vadd.f32 %v8955_v28, %v3431_v52 }
 0x5be   : > { %v5780_v9 = vpop.eup %5779  ;;  %v4053_v37 = vadd.f32 1.0, %v5778_v39 }
 0x5bf   : > { %v4529_v12 = vsel %vm4528_vm8, %v5776_v20, %v4525_v29  ;;  %v4537_v23 = vmul.f32 %v5780_v9, %v4052_v7  ;;  %5781 = vpow2.f32 %v5548_v46  ;;  %v3525_v48 = vadd.f32 %v3432_v13, %v9564_v1 }
 0x5c0   : > { %v4534_v49 = vsel %vm4531_vm9, %v4533_v50, %v4529_v12  ;;  %5783 = vrcp.f32 %v4053_v37  ;;  %vm4542_vm10 = vweird.f32 %v5780_v9  ;;  %v4560_v4 = vand.u32 2147483647, %v4053_v37 }
 0x5c1   : > { %5075 = vst [vmem:[%s8620_s20 + $0xe8] sm:$0xff] %v4534_v49  ;;  %v4538_v18 = vsub.f32 1.0, %v4537_v23  ;;  %v3589_v53 = vmax.f32 %v3525_v48, 0.0  ;;  %vm4543_vm12 = vmor %vm4541_vm11, %vm4542_vm10  ;;  %v4562_v42 = vand.u32 2147483648, %v4053_v37  ;;  %vm4556_vm15 = vweird.f32 %v4053_v37 }
 0x5c2   : > { %v3737_v58 = vpop.f32.mrf.mxu0  ;;  %vm4561_vm1 = vcmp.eq.f32.partialorder %v4560_v4, 8.507059e+37  ;;  %v9566_v12 = vmax.f32 %v8562_v21, 0.0 }
 0x5c3   : > { %v4539_v24 = vmul.f32 %v5780_v9, %v4538_v18  ;;  %v3738_v63 = vadd.f32 %v9072_v43, %v3737_v58  ;;  %v4563_v29 = vor.u32 1.1754944e-38, %v4562_v42 }
 0x5c4   : > { %v3434_v60 = vpop.f32.mrf.mxu3 }
 0x5c5   : > { %v5782_v31 = vpop.eup %5781  ;;  %v4540_v38 = vadd.f32 %v5780_v9, %v4539_v24  ;;  %v5549_v56 = vmul.f32 -1.442695, %v3738_v63  ;;  %3784 = vmatmul.f32.gmra.mxu0 %v3589_v53  ;;  %v3435_v32 = vadd.f32 %v8955_v28, %v3434_v60 }
 0x5c6   : > { %v5784_v51 = vpop.eup %5783  ;;  %v4054_v15 = vadd.f32 1.0, %v5782_v31 }
 0x5c7   : > { %v4544_v20 = vsel %vm4543_vm12, %v5780_v9, %v4540_v38  ;;  %v4552_v41 = vmul.f32 %v5784_v51, %v4053_v37  ;;  %5785 = vpow2.f32 %v5549_v56  ;;  %v3526_v7 = vadd.f32 %v3435_v32, %v9565_v26 }
 0x5c8   : > { %v4549_v55 = vsel %vm4546_vm13, %v4548_v34, %v4544_v20  ;;  %5787 = vrcp.f32 %v4054_v15  ;;  %vm4557_vm14 = vweird.f32 %v5784_v51  ;;  %v4575_v23 = vand.u32 2147483647, %v4054_v15 }
 0x5c9   : > { %5076 = vst [vmem:[%s8620_s20 + $0xf0] sm:$0xff] %v4549_v55  ;;  %v4553_v10 = vsub.f32 1.0, %v4552_v41  ;;  %v3590_v30 = vmax.f32 %v3526_v7, 0.0  ;;  %vm4558_vm0 = vmor %vm4556_vm15, %vm4557_vm14  ;;  %v4577_v49 = vand.u32 2147483648, %v4054_v15  ;;  %vm4571_vm3 = vweird.f32 %v4054_v15 }
 0x5ca   : > { %v3740_v40 = vpop.f32.mrf.mxu0  ;;  %vm4576_vm5 = vcmp.eq.f32.partialorder %v4575_v23, 8.507059e+37  ;;  %v9567_v32 = vmax.f32 %v8577_v61, 0.0 }
 0x5cb   : > { %v4554_v62 = vmul.f32 %v5784_v51, %v4553_v10  ;;  %v3741_v22 = vadd.f32 %v9072_v43, %v3740_v40  ;;  %v4578_v31 = vor.u32 1.1754944e-38, %v4577_v49 }
 0x5cc   : > { %v3437_v11 = vpop.f32.mrf.mxu3 }
 0x5cd   : > { %v5786_v57 = vpop.eup %5785  ;;  %v4555_v5 = vadd.f32 %v5784_v51, %v4554_v62  ;;  %v5550_v45 = vmul.f32 -1.442695, %v3741_v22  ;;  %3787 = vmatmul.f32.gmra.mxu0 %v3590_v30  ;;  %v3438_v46 = vadd.f32 %v8955_v28, %v3437_v11 }
 0x5ce   : > { %v5788_v39 = vpop.eup %5787  ;;  %v4055_v0 = vadd.f32 1.0, %v5786_v57 }
 0x5cf   : > { %v4559_v52 = vsel %vm4558_vm0, %v5784_v51, %v4555_v5  ;;  %v4567_v9 = vmul.f32 %v5788_v39, %v4054_v15  ;;  %5789 = vpow2.f32 %v5550_v45  ;;  %v3527_v37 = vadd.f32 %v3438_v46, %v9566_v12 }
 0x5d0   : > { %v4564_v50 = vsel %vm4561_vm1, %v4563_v29, %v4559_v52  ;;  %5791 = vrcp.f32 %v4055_v0  ;;  %vm4572_vm2 = vweird.f32 %v5788_v39  ;;  %v4590_v20 = vand.u32 2147483647, %v4055_v0 }
 0x5d1   : > { %5077 = vst [vmem:[%s8620_s20 + $0xf8] sm:$0xff] %v4564_v50  ;;  %v4568_v13 = vsub.f32 1.0, %v4567_v9  ;;  %v3591_v48 = vmax.f32 %v3527_v37, 0.0  ;;  %vm4573_vm4 = vmor %vm4571_vm3, %vm4572_vm2  ;;  %v4592_v41 = vand.u32 2147483648, %v4055_v0  ;;  %vm4586_vm7 = vweird.f32 %v4055_v0 }
 0x5d2   : > { %v3743_v18 = vpop.f32.mrf.mxu0  ;;  %vm4591_vm9 = vcmp.eq.f32.partialorder %v4590_v20, 8.507059e+37  ;;  %v9568_v29 = vmax.f32 %v8593_v25, 0.0 }
 0x5d3   : > { %v4569_v1 = vmul.f32 %v5788_v39, %v4568_v13  ;;  %v3744_v2 = vadd.f32 %v9072_v43, %v3743_v18  ;;  %v4593_v22 = vor.u32 1.1754944e-38, %v4592_v41 }
 0x5d4   : > { %v3440_v53 = vpop.f32.mrf.mxu3 }
 0x5d5   : > { %v5790_v8 = vpop.eup %5789  ;;  %v4570_v58 = vadd.f32 %v5788_v39, %v4569_v1  ;;  %v5551_v24 = vmul.f32 -1.442695, %v3744_v2  ;;  %3790 = vmatmul.f32.gmra.mxu0 %v3591_v48  ;;  %v3441_v38 = vadd.f32 %v8955_v28, %v3440_v53 }
 0x5d6   : > { %v5792_v63 = vpop.eup %5791  ;;  %v4056_v21 = vadd.f32 1.0, %v5790_v8 }
 0x5d7   : > { %v4574_v56 = vsel %vm4573_vm4, %v5788_v39, %v4570_v58  ;;  %v4582_v60 = vmul.f32 %v5792_v63, %v4055_v0  ;;  %5793 = vpow2.f32 %v5551_v24  ;;  %v3528_v15 = vadd.f32 %v3441_v38, %v9567_v32 }
 0x5d8   : > { %v4579_v51 = vsel %vm4576_vm5, %v4578_v31, %v4574_v56  ;;  %5795 = vrcp.f32 %v4056_v21  ;;  %vm4587_vm6 = vweird.f32 %v5792_v63  ;;  %v4605_v46 = vand.u32 2147483647, %v4056_v21 }
 0x5d9   : > { %5078 = vst [vmem:[%s8620_s20 + $0x100] sm:$0xff] %v4579_v51  ;;  %v4583_v34 = vsub.f32 1.0, %v4582_v60  ;;  %v3592_v26 = vmax.f32 %v3528_v15, 0.0  ;;  %vm4588_vm8 = vmor %vm4586_vm7, %vm4587_vm6  ;;  %v4607_v52 = vand.u32 2147483648, %v4056_v21  ;;  %vm4601_vm11 = vweird.f32 %v4056_v21 }
 0x5da   : > { %v3746_v55 = vpop.f32.mrf.mxu0  ;;  %vm4606_vm13 = vcmp.eq.f32.partialorder %v4605_v46, 8.507059e+37 }
 0x5db   : > { %v4584_v10 = vmul.f32 %v5792_v63, %v4583_v34  ;;  %v3747_v7 = vadd.f32 %v9072_v43, %v3746_v55  ;;  %v4608_v48 = vor.u32 1.1754944e-38, %v4607_v52 }
 0x5dc   : > { %v3443_v62 = vpop.f32.mrf.mxu3 }
 0x5dd   : > { %v5794_v4 = vpop.eup %5793  ;;  %v4585_v42 = vadd.f32 %v5792_v63, %v4584_v10  ;;  %v5552_v40 = vmul.f32 -1.442695, %v3747_v7  ;;  %3793 = vmatmul.f32.gmra.mxu0 %v3592_v26  ;;  %v3444_v57 = vadd.f32 %v8955_v28, %v3443_v62 }
 0x5de   : > { %v5796_v30 = vpop.eup %5795  ;;  %v4057_v61 = vadd.f32 1.0, %v5794_v4 }
 0x5df   : > { %v4589_v5 = vsel %vm4588_vm8, %v5792_v63, %v4585_v42  ;;  %v4597_v45 = vmul.f32 %v5796_v30, %v4056_v21  ;;  %5797 = vpow2.f32 %v5552_v40  ;;  %v3529_v0 = vadd.f32 %v3444_v57, %v9568_v29 }
 0x5e0   : > { %v4594_v11 = vsel %vm4591_vm9, %v4593_v22, %v4589_v5  ;;  %5799 = vrcp.f32 %v4057_v61  ;;  %vm4602_vm10 = vweird.f32 %v5796_v30  ;;  %v9569_v63 = vmax.f32 %v8616_v44, 0.0 }
 0x5e1   : > { %5079 = vst [vmem:[%s8620_s20 + $0x108] sm:$0xff] %v4594_v11  ;;  %v4598_v39 = vsub.f32 1.0, %v4597_v45  ;;  %v3593_v13 = vmax.f32 %v3529_v0, 0.0  ;;  %vm4603_vm12 = vmor %vm4601_vm11, %vm4602_vm10  ;;  %v4620_v21 = vand.u32 2147483647, %v4057_v61  ;;  %v4622_v38 = vand.u32 2147483648, %v4057_v61 }
 0x5e2   : > { %v3749_v9 = vpop.f32.mrf.mxu0  ;;  %vm4616_vm15 = vweird.f32 %v4057_v61 }
 0x5e3   : > { %v4599_v50 = vmul.f32 %v5796_v30, %v4598_v39  ;;  %v3750_v12 = vadd.f32 %v9072_v43, %v3749_v9  ;;  %v4623_v10 = vor.u32 1.1754944e-38, %v4622_v38  ;;  %vm4621_vm1 = vcmp.eq.f32.partialorder %v4620_v21, 8.507059e+37 }
 0x5e4   : > { %v3446_v18 = vpop.f32.mrf.mxu3 }
 0x5e5   : > { %v5798_v37 = vpop.eup %5797  ;;  %v4600_v23 = vadd.f32 %v5796_v30, %v4599_v50  ;;  %v5553_v49 = vmul.f32 -1.442695, %v3750_v12  ;;  %3796 = vmatmul.f32.gmra.mxu0 %v3593_v13  ;;  %v3447_v2 = vadd.f32 %v8955_v28, %v3446_v18 }
 0x5e6   : > { %v5800_v1 = vpop.eup %5799  ;;  %v4058_v25 = vadd.f32 1.0, %v5798_v37 }
 0x5e7   : > { %v4604_v8 = vsel %vm4603_vm12, %v5796_v30, %v4600_v23  ;;  %v4612_v58 = vmul.f32 %v5800_v1, %v4057_v61  ;;  %5801 = vpow2.f32 %v5553_v49  ;;  %v3530_v31 = vadd.f32 %v3447_v2, %v9569_v63 }
 0x5e8   : > { %v4609_v24 = vsel %vm4606_vm13, %v4608_v48, %v4604_v8  ;;  %5803 = vrcp.f32 %v4058_v25  ;;  %vm4617_vm14 = vweird.f32 %v5800_v1  ;;  %v4635_v30 = vand.u32 2147483647, %v4058_v25 }
 0x5e9   : > { %5080 = vst [vmem:[%s8620_s20 + $0x110] sm:$0xff] %v4609_v24  ;;  %v4613_v53 = vsub.f32 1.0, %v4612_v58  ;;  %v3594_v51 = vmax.f32 %v3530_v31, 0.0  ;;  %vm4618_vm0 = vmor %vm4616_vm15, %vm4617_vm14  ;;  %v4637_v22 = vand.u32 2147483648, %v4058_v25  ;;  %vm4631_vm3 = vweird.f32 %v4058_v25 }
 0x5ea   : > { %v3752_v56 = vpop.f32.mrf.mxu0  ;;  %vm4636_vm5 = vcmp.eq.f32.partialorder %v4635_v30, 8.507059e+37 }
 0x5eb   : > { %v4614_v60 = vmul.f32 %v5800_v1, %v4613_v53  ;;  %v3753_v34 = vadd.f32 %v9072_v43, %v3752_v56  ;;  %v4638_v52 = vor.u32 1.1754944e-38, %v4637_v22 }
 0x5ec   : > { %v3449_v41 = vpop.f32.mrf.mxu3 }
 0x5ed   : > { %v5802_v32 = vpop.eup %5801  ;;  %v4615_v15 = vadd.f32 %v5800_v1, %v4614_v60  ;;  %v5554_v20 = vmul.f32 -1.442695, %v3753_v34  ;;  %3799 = vmatmul.f32.gmra.mxu0 %v3594_v51  ;;  %v3450_v26 = vadd.f32 %v8955_v28, %v3449_v41  ;;  %v9570_v60 = vmax.f32 %v8687_v16, 0.0 }
 0x5ee   : > { %v5804_v55 = vpop.eup %5803  ;;  %v4059_v44 = vadd.f32 1.0, %v5802_v32 }
 0x5ef   : > { %v4619_v7 = vsel %vm4618_vm0, %v5800_v1, %v4615_v15  ;;  %v4627_v4 = vmul.f32 %v5804_v55, %v4058_v25  ;;  %5805 = vpow2.f32 %v5554_v20  ;;  %v3531_v62 = vadd.f32 %v3450_v26, %v2951_v35 }
 0x5f0   : > { %v4624_v42 = vsel %vm4621_vm1, %v4623_v10, %v4619_v7  ;;  %5807 = vrcp.f32 %v4059_v44  ;;  %vm4632_vm2 = vweird.f32 %v5804_v55  ;;  %v4650_v23 = vand.u32 2147483647, %v4059_v44 }
 0x5f1   : > { %5081 = vst [vmem:[%s8620_s20 + $0x118] sm:$0xff] %v4624_v42  ;;  %v4628_v40 = vsub.f32 1.0, %v4627_v4  ;;  %v3595_v5 = vmax.f32 %v3531_v62, 0.0  ;;  %vm4633_vm4 = vmor %vm4631_vm3, %vm4632_vm2  ;;  %v4652_v49 = vand.u32 2147483648, %v4059_v44  ;;  %vm4646_vm7 = vweird.f32 %v4059_v44 }
 0x5f2   : > { %v3755_v61 = vpop.f32.mrf.mxu0  ;;  %vm4651_vm9 = vcmp.eq.f32.partialorder %v4650_v23, 8.507059e+37 }
 0x5f3   : > { %v4629_v57 = vmul.f32 %v5804_v55, %v4628_v40  ;;  %v3756_v45 = vadd.f32 %v9072_v43, %v3755_v61  ;;  %v4653_v53 = vor.u32 1.1754944e-38, %v4652_v49 }
 0x5f4   : > { %v3452_v0 = vpop.f32.mrf.mxu3 }
 0x5f5   : > { %v5806_v11 = vpop.eup %5805  ;;  %v4630_v39 = vadd.f32 %v5804_v55, %v4629_v57  ;;  %v5555_v29 = vmul.f32 -1.442695, %v3756_v45  ;;  %3802 = vmatmul.f32.gmra.mxu0 %v3595_v5  ;;  %v3453_v35 = vadd.f32 %v8955_v28, %v3452_v0  ;;  %v9571_v57 = vmax.f32 %v8713_v17, 0.0 }
 0x5f6   : > { %v5808_v46 = vpop.eup %5807  ;;  %v4060_v33 = vadd.f32 1.0, %v5806_v11 }
 0x5f7   : > { %v4634_v9 = vsel %vm4633_vm4, %v5804_v55, %v4630_v39  ;;  %v4642_v50 = vmul.f32 %v5808_v46, %v4059_v44  ;;  %5809 = vpow2.f32 %v5555_v29  ;;  %v3532_v37 = vadd.f32 %v3453_v35, %v2952_v6  ;;  %v9113_v6 = vld [vmem:[%s9234_s9 + $0x6] ss:$0 sm:$0xff] }
 0x5f8   : > { %v4639_v13 = vsel %vm4636_vm5, %v4638_v52, %v4634_v9  ;;  %5811 = vrcp.f32 %v4060_v33  ;;  %vm4647_vm6 = vweird.f32 %v5808_v46  ;;  %v4665_v34 = vand.u32 2147483647, %v4060_v33 }
 0x5f9   : > { %5082 = vst [vmem:[%s8620_s20 + $0x120] sm:$0xff] %v4639_v13  ;;  %v4643_v12 = vsub.f32 1.0, %v4642_v50  ;;  %v3596_v48 = vmax.f32 %v3532_v37, 0.0  ;;  %vm4648_vm8 = vmor %vm4646_vm7, %vm4647_vm6  ;;  %v4667_v32 = vand.u32 2147483648, %v4060_v33  ;;  %vm4661_vm11 = vweird.f32 %v4060_v33 }
 0x5fa   : > { %v3758_v18 = vpop.f32.mrf.mxu0  ;;  %vm4666_vm13 = vcmp.eq.f32.partialorder %v4665_v34, 8.507059e+37 }
 0x5fb   : > { %v4644_v1 = vmul.f32 %v5808_v46, %v4643_v12  ;;  %v3759_v25 = vadd.f32 %v9072_v43, %v3758_v18  ;;  %v4668_v42 = vor.u32 1.1754944e-38, %v4667_v32 }
 0x5fc   : > { %v3455_v58 = vpop.f32.mrf.mxu3 }
 0x5fd   : > { %v5810_v28 = vpop.eup %5809  ;;  %v4645_v2 = vadd.f32 %v5808_v46, %v4644_v1  ;;  %v5556_v8 = vmul.f32 -1.442695, %v3759_v25  ;;  %3805 = vmatmul.f32.gmra.mxu0 %v3596_v48  ;;  %v3456_v63 = vadd.f32 %v9113_v6, %v3455_v58  ;;  %v9572_v1 = vmax.f32 %v8734_v36, 0.0 }
 0x5fe   : > { %v5812_v24 = vpop.eup %5811  ;;  %v4061_v3 = vadd.f32 1.0, %v5810_v28 }
 0x5ff   : > { %v4649_v31 = vsel %vm4648_vm8, %v5808_v46, %v4645_v2  ;;  %v4657_v21 = vmul.f32 %v5812_v24, %v4060_v33  ;;  %5813 = vpow2.f32 %v5556_v8  ;;  %v3533_v51 = vadd.f32 %v3456_v63, %v9570_v60 }
 0x600   : > { %v4654_v38 = vsel %vm4651_vm9, %v4653_v53, %v4649_v31  ;;  %5815 = vrcp.f32 %v4061_v3  ;;  %vm4662_vm10 = vweird.f32 %v5812_v24  ;;  %v4680_v45 = vand.u32 2147483647, %v4061_v3 }
 0x601   : > { %5083 = vst [vmem:[%s8620_s20 + $0x128] sm:$0xff] %v4654_v38  ;;  %v4658_v56 = vsub.f32 1.0, %v4657_v21  ;;  %v3597_v41 = vmax.f32 %v3533_v51, 0.0  ;;  %vm4663_vm12 = vmor %vm4661_vm11, %vm4662_vm10  ;;  %v4682_v11 = vand.u32 2147483648, %v4061_v3  ;;  %vm4676_vm15 = vweird.f32 %v4061_v3 }
 0x602   : > { %v3761_v15 = vpop.f32.mrf.mxu0  ;;  %vm4681_vm1 = vcmp.eq.f32.partialorder %v4680_v45, 8.507059e+37 }
 0x603   : > { %v4659_v20 = vmul.f32 %v5812_v24, %v4658_v56  ;;  %v3762_v55 = vadd.f32 %v9072_v43, %v3761_v15  ;;  %v4683_v13 = vor.u32 1.1754944e-38, %v4682_v11  ;;  %v9573_v15 = vmax.f32 %v8755_v47, 0.0 }
 0x604   : > { %v3458_v7 = vpop.f32.mrf.mxu3  ;;  %v9574_v11 = vmax.f32 %v8776_v27, 0.0 }
 0x605   : > { %v5814_v10 = vpop.eup %5813  ;;  %v4660_v44 = vadd.f32 %v5812_v24, %v4659_v20  ;;  %v5557_v26 = vmul.f32 -1.442695, %v3762_v55  ;;  %3808 = vmatmul.f32.gmra.mxu0 %v3597_v41  ;;  %v3459_v40 = vadd.f32 %v9113_v6, %v3458_v7 }
 0x606   : > { %v5816_v4 = vpop.eup %5815  ;;  %v4062_v16 = vadd.f32 1.0, %v5814_v10 }
 0x607   : > { %v4664_v62 = vsel %vm4663_vm12, %v5812_v24, %v4660_v44  ;;  %v4672_v30 = vmul.f32 %v5816_v4, %v4061_v3  ;;  %5817 = vpow2.f32 %v5557_v26  ;;  %v3534_v5 = vadd.f32 %v3459_v40, %v9571_v57 }
 0x608   : > { %v4669_v22 = vsel %vm4666_vm13, %v4668_v42, %v4664_v62  ;;  %5819 = vrcp.f32 %v4062_v16  ;;  %vm4677_vm14 = vweird.f32 %v5816_v4  ;;  %v4695_v25 = vand.u32 2147483647, %v4062_v16 }
 0x609   : > { %5084 = vst [vmem:[%s8620_s20 + $0x130] sm:$0xff] %v4669_v22  ;;  %v4673_v61 = vsub.f32 1.0, %v4672_v30  ;;  %v3598_v0 = vmax.f32 %v3534_v5, 0.0  ;;  %vm4678_vm0 = vmor %vm4676_vm15, %vm4677_vm14  ;;  %v4697_v28 = vand.u32 2147483648, %v4062_v16  ;;  %vm4691_vm3 = vweird.f32 %v4062_v16 }
 0x60a   : > { %v3764_v39 = vpop.f32.mrf.mxu0  ;;  %vm4696_vm5 = vcmp.eq.f32.partialorder %v4695_v25, 8.507059e+37 }
 0x60b   : > { %v4674_v29 = vmul.f32 %v5816_v4, %v4673_v61  ;;  %v3765_v46 = vadd.f32 %v9072_v43, %v3764_v39  ;;  %v4698_v38 = vor.u32 1.1754944e-38, %v4697_v28 }
 0x60c   : > { %v3461_v9 = vpop.f32.mrf.mxu3 }
 0x60d   : > { %v5818_v52 = vpop.eup %5817  ;;  %v4675_v33 = vadd.f32 %v5816_v4, %v4674_v29  ;;  %v5558_v35 = vmul.f32 -1.442695, %v3765_v46  ;;  %3811 = vmatmul.f32.gmra.mxu0 %v3598_v0  ;;  %v3462_v12 = vadd.f32 %v9113_v6, %v3461_v9 }
 0x60e   : > { %v5820_v50 = vpop.eup %5819  ;;  %v4063_v17 = vadd.f32 1.0, %v5818_v52 }
 0x60f   : > { %v4679_v37 = vsel %vm4678_vm0, %v5816_v4, %v4675_v33  ;;  %v4687_v23 = vmul.f32 %v5820_v50, %v4062_v16  ;;  %5821 = vpow2.f32 %v5558_v35  ;;  %v3535_v48 = vadd.f32 %v3462_v12, %v9572_v1 }
 0x610   : > { %v4684_v49 = vsel %vm4681_vm1, %v4683_v13, %v4679_v37  ;;  %5823 = vrcp.f32 %v4063_v17  ;;  %vm4692_vm2 = vweird.f32 %v5820_v50  ;;  %v4710_v41 = vand.u32 2147483647, %v4063_v17 }
 0x611   : > { %5085 = vst [vmem:[%s8620_s20 + $0x138] sm:$0xff] %v4684_v49  ;;  %v4688_v18 = vsub.f32 1.0, %v4687_v23  ;;  %v3599_v58 = vmax.f32 %v3535_v48, 0.0  ;;  %vm4693_vm4 = vmor %vm4691_vm3, %vm4692_vm2  ;;  %v4712_v55 = vand.u32 2147483648, %v4063_v17  ;;  %vm4706_vm7 = vweird.f32 %v4063_v17 }
 0x612   : > { %v3767_v2 = vpop.f32.mrf.mxu0  ;;  %vm4711_vm9 = vcmp.eq.f32.partialorder %v4710_v41, 8.507059e+37 }
 0x613   : > { %v4689_v8 = vmul.f32 %v5820_v50, %v4688_v18  ;;  %v3768_v24 = vadd.f32 %v9072_v43, %v3767_v2  ;;  %v4713_v30 = vor.u32 1.1754944e-38, %v4712_v55 }
 0x614   : > { %v3464_v31 = vpop.f32.mrf.mxu3 }
 0x615   : > { %v5822_v53 = vpop.eup %5821  ;;  %v4690_v3 = vadd.f32 %v5820_v50, %v4689_v8  ;;  %v5559_v63 = vmul.f32 -1.442695, %v3768_v24  ;;  %3814 = vmatmul.f32.gmra.mxu0 %v3599_v58  ;;  %v3465_v56 = vadd.f32 %v9113_v6, %v3464_v31 }
 0x616   : > { %v5824_v21 = vpop.eup %5823  ;;  %v4064_v36 = vadd.f32 1.0, %v5822_v53 }
 0x617   : > { %v4694_v60 = vsel %vm4693_vm4, %v5820_v50, %v4690_v3  ;;  %v4702_v51 = vmul.f32 %v5824_v21, %v4063_v17  ;;  %5825 = vpow2.f32 %v5559_v63  ;;  %v3536_v20 = vadd.f32 %v3465_v56, %v9573_v15 }
 0x618   : > { %v4699_v34 = vsel %vm4696_vm5, %v4698_v38, %v4694_v60  ;;  %5827 = vrcp.f32 %v4064_v36  ;;  %vm4707_vm6 = vweird.f32 %v5824_v21  ;;  %v4725_v29 = vand.u32 2147483647, %v4064_v36 }
 0x619   : > { %5086 = vst [vmem:[%s8620_s20 + $0x140] sm:$0xff] %v4699_v34  ;;  %v4703_v32 = vsub.f32 1.0, %v4702_v51  ;;  %v3600_v26 = vmax.f32 %v3536_v20, 0.0  ;;  %vm4708_vm8 = vmor %vm4706_vm7, %vm4707_vm6  ;;  %v4727_v0 = vand.u32 2147483648, %v4064_v36  ;;  %vm4721_vm11 = vweird.f32 %v4064_v36 }
 0x61a   : > { %v3770_v10 = vpop.f32.mrf.mxu0  ;;  %vm4726_vm13 = vcmp.eq.f32.partialorder %v4725_v29, 8.507059e+37 }
 0x61b   : > { %v4704_v44 = vmul.f32 %v5824_v21, %v4703_v32  ;;  %v3771_v7 = vadd.f32 %v9072_v43, %v3770_v10  ;;  %v4728_v37 = vor.u32 1.1754944e-38, %v4727_v0 }
 0x61c   : > { %v3467_v40 = vpop.f32.mrf.mxu3 }
 0x61d   : > { %v5826_v4 = vpop.eup %5825  ;;  %v4705_v42 = vadd.f32 %v5824_v21, %v4704_v44  ;;  %v5560_v16 = vmul.f32 -1.442695, %v3771_v7  ;;  %3817 = vmatmul.f32.gmra.mxu0 %v3600_v26  ;;  %v3468_v22 = vadd.f32 %v9113_v6, %v3467_v40 }
 0x61e   : > { %v5828_v62 = vpop.eup %5827  ;;  %v4065_v47 = vadd.f32 1.0, %v5826_v4 }
 0x61f   : > { %v4709_v61 = vsel %vm4708_vm8, %v5824_v21, %v4705_v42  ;;  %v4717_v57 = vmul.f32 %v5828_v62, %v4064_v36  ;;  %5829 = vpow2.f32 %v5560_v16  ;;  %v3537_v39 = vadd.f32 %v3468_v22, %v9574_v11 }
 0x620   : > { %v4714_v5 = vsel %vm4711_vm9, %v4713_v30, %v4709_v61  ;;  %5831 = vrcp.f32 %v4065_v47  ;;  %vm4722_vm10 = vweird.f32 %v5828_v62  ;;  %v4740_v28 = vand.u32 2147483647, %v4065_v47 }
 0x621   : > { %5087 = vst [vmem:[%s8620_s20 + $0x148] sm:$0xff] %v4714_v5  ;;  %v4718_v45 = vsub.f32 1.0, %v4717_v57  ;;  %v3601_v33 = vmax.f32 %v3537_v39, 0.0  ;;  %vm4723_vm12 = vmor %vm4721_vm11, %vm4722_vm10  ;;  %v4742_v2 = vand.u32 2147483648, %v4065_v47  ;;  %vm4736_vm15 = vweird.f32 %v4065_v47 }
 0x622   : > { %v3773_v46 = vpop.f32.mrf.mxu0  ;;  %vm4741_vm1 = vcmp.eq.f32.partialorder %v4740_v28, 8.507059e+37 }
 0x623   : > { %v4719_v52 = vmul.f32 %v5828_v62, %v4718_v45  ;;  %v3774_v35 = vadd.f32 %v9072_v43, %v3773_v46  ;;  %v4743_v36 = vor.u32 1.1754944e-38, %v4742_v2 }
 0x624   : > { %v3470_v17 = vpop.f32.mrf.mxu3 }
 0x625   : > { %v5830_v9 = vpop.eup %5829  ;;  %v4720_v50 = vadd.f32 %v5828_v62, %v4719_v52  ;;  %v5561_v13 = vmul.f32 -1.442695, %v3774_v35  ;;  %3820 = vmatmul.f32.gmra.mxu0 %v3601_v33  ;;  %v3471_v23 = vadd.f32 %v9113_v6, %v3470_v17 }
 0x626   : > { %v5832_v12 = vpop.eup %5831  ;;  %v4066_v27 = vadd.f32 1.0, %v5830_v9 }
 0x627   : > { %v4724_v49 = vsel %vm4723_vm12, %v5828_v62, %v4720_v50  ;;  %v4732_v18 = vmul.f32 %v5832_v12, %v4065_v47  ;;  %5833 = vpow2.f32 %v5561_v13  ;;  %v3538_v25 = vadd.f32 %v3471_v23, %v2958_v54 }
 0x628   : > { %v4729_v1 = vsel %vm4726_vm13, %v4728_v37, %v4724_v49  ;;  %5835 = vrcp.f32 %v4066_v27  ;;  %vm4737_vm14 = vweird.f32 %v5832_v12  ;;  %v4755_v15 = vand.u32 2147483647, %v4066_v27 }
 0x629   : > { %5088 = vst [vmem:[%s8620_s20 + $0x150] sm:$0xff] %v4729_v1  ;;  %v4733_v48 = vsub.f32 1.0, %v4732_v18  ;;  %v3602_v24 = vmax.f32 %v3538_v25, 0.0  ;;  %vm4738_vm0 = vmor %vm4736_vm15, %vm4737_vm14  ;;  %v4757_v20 = vand.u32 2147483648, %v4066_v27  ;;  %vm4751_vm3 = vweird.f32 %v4066_v27 }
 0x62a   : > { %v3776_v8 = vpop.f32.mrf.mxu0  ;;  %vm4756_vm5 = vcmp.eq.f32.partialorder %v4755_v15, 8.507059e+37 }
 0x62b   : > { %v4734_v58 = vmul.f32 %v5832_v12, %v4733_v48  ;;  %v3777_v53 = vadd.f32 %v9072_v43, %v3776_v8  ;;  %v4758_v42 = vor.u32 1.1754944e-38, %v4757_v20 }
 0x62c   : > { %v3473_v21 = vpop.f32.mrf.mxu3 }
 0x62d   : > { %v5834_v3 = vpop.eup %5833  ;;  %v4735_v63 = vadd.f32 %v5832_v12, %v4734_v58  ;;  %v5562_v31 = vmul.f32 -1.442695, %v3777_v53  ;;  %3823 = vmatmul.f32.gmra.mxu0 %v3602_v24  ;;  %v3474_v54 = vadd.f32 %v9113_v6, %v3473_v21 }
 0x62e   : > { %v5836_v38 = vpop.eup %5835  ;;  %v4067_v19 = vadd.f32 1.0, %v5834_v3 }
 0x62f   : > { %v4739_v56 = vsel %vm4738_vm0, %v5832_v12, %v4735_v63  ;;  %v4747_v60 = vmul.f32 %v5836_v38, %v4066_v27  ;;  %5837 = vpow2.f32 %v5562_v31  ;;  %v3539_v32 = vadd.f32 %v3474_v54, %v2959_v14 }
 0x630   : > { %v4744_v51 = vsel %vm4741_vm1, %v4743_v36, %v4739_v56  ;;  %5839 = vrcp.f32 %v4067_v19  ;;  %vm4752_vm2 = vweird.f32 %v5836_v38  ;;  %v4772_v30 = vand.u32 2147483648, %v4067_v19 }
 0x631   : > { %5089 = vst [vmem:[%s8620_s20 + $0x158] sm:$0xff] %v4744_v51  ;;  %v4748_v34 = vsub.f32 1.0, %v4747_v60  ;;  %v3603_v10 = vmax.f32 %v3539_v32, 0.0  ;;  %vm4753_vm4 = vmor %vm4751_vm3, %vm4752_vm2  ;;  %v4770_v61 = vand.u32 2147483647, %v4067_v19  ;;  %vm4766_vm7 = vweird.f32 %v4067_v19 }
 0x632   : > { %v3779_v41 = vpop.f32.mrf.mxu0  ;;  %v4773_v29 = vor.u32 1.1754944e-38, %v4772_v30 }
 0x633   : > { %v4749_v55 = vmul.f32 %v5836_v38, %v4748_v34  ;;  %v3780_v44 = vadd.f32 %v9072_v43, %v3779_v41  ;;  %3826 = vmatmul.f32.vlgmr.msrb.gmra.mxu3 %v3603_v10  ;;  %vm4771_vm9 = vcmp.eq.f32.partialorder %v4770_v61, 8.507059e+37 }
 0x635   : > { %v5838_v6 = vpop.eup %5837  ;;  %v4750_v26 = vadd.f32 %v5836_v38, %v4749_v55  ;;  %v5563_v7 = vmul.f32 -1.442695, %v3780_v44 }
 0x636   : > { %v5840_v4 = vpop.eup %5839  ;;  %v4068_v16 = vadd.f32 1.0, %v5838_v6 }
 0x637   : > { %v4754_v59 = vsel %vm4753_vm4, %v5836_v38, %v4750_v26  ;;  %v4762_v14 = vmul.f32 %v5840_v4, %v4067_v19  ;;  %5841 = vpow2.f32 %v5563_v7  ;;  %vm4767_vm6 = vweird.f32 %v5840_v4 }
 0x638   : > { %v4759_v40 = vsel %vm4756_vm5, %v4758_v42, %v4754_v59  ;;  %5843 = vrcp.f32 %v4068_v16  ;;  %vm4768_vm8 = vmor %vm4766_vm7, %vm4767_vm6  ;;  %v4787_v9 = vand.u32 2147483648, %v4068_v16  ;;  %v4785_v17 = vand.u32 2147483647, %v4068_v16 }
 0x639   : > { %5090 = vst [vmem:[%s8620_s20 + $0x160] sm:$0xff] %v4759_v40  ;;  %v4763_v62 = vsub.f32 1.0, %v4762_v14  ;;  %vm4781_vm11 = vweird.f32 %v4068_v16 }
 0x63a   : > { %v3782_v47 = vpop.f32.mrf.mxu0  ;;  %v4788_v18 = vor.u32 1.1754944e-38, %v4787_v9  ;;  %vm4786_vm13 = vcmp.eq.f32.partialorder %v4785_v17, 8.507059e+37 }
 0x63b   : > { %v4764_v22 = vmul.f32 %v5840_v4, %v4763_v62  ;;  %v3783_v57 = vadd.f32 %v9072_v43, %v3782_v47 }
 0x63d   : > { %v5842_v5 = vpop.eup %5841  ;;  %v4765_v45 = vadd.f32 %v5840_v4, %v4764_v22  ;;  %v5564_v11 = vmul.f32 -1.442695, %v3783_v57 }
 0x63e   : > { %v5844_v39 = vpop.eup %5843  ;;  %v4069_v0 = vadd.f32 1.0, %v5842_v5 }
 0x63f   : > { %v4769_v46 = vsel %vm4768_vm8, %v5840_v4, %v4765_v45  ;;  %v4777_v52 = vmul.f32 %v5844_v39, %v4068_v16  ;;  %5845 = vpow2.f32 %v5564_v11  ;;  %vm4782_vm10 = vweird.f32 %v5844_v39 }
 0x640   : > { %v4774_v33 = vsel %vm4771_vm9, %v4773_v29, %v4769_v46  ;;  %5847 = vrcp.f32 %v4069_v0  ;;  %vm4783_vm12 = vmor %vm4781_vm11, %vm4782_vm10  ;;  %v4802_v8 = vand.u32 2147483648, %v4069_v0  ;;  %v4800_v53 = vand.u32 2147483647, %v4069_v0 }
 0x641   : > { %5091 = vst [vmem:[%s8620_s20 + $0x168] sm:$0xff] %v4774_v33  ;;  %v4778_v35 = vsub.f32 1.0, %v4777_v52  ;;  %vm4796_vm15 = vweird.f32 %v4069_v0 }
 0x642   : > { %v3785_v50 = vpop.f32.mrf.mxu0  ;;  %v4803_v36 = vor.u32 1.1754944e-38, %v4802_v8  ;;  %vm4801_vm1 = vcmp.eq.f32.partialorder %v4800_v53, 8.507059e+37  ;;  %v9166_v8 = vld [vmem:[%s9234_s9 + $0x7] ss:$0 sm:$0xff] }
 0x643   : > { %v4779_v13 = vmul.f32 %v5844_v39, %v4778_v35  ;;  %v3786_v12 = vadd.f32 %v9072_v43, %v3785_v50 }
 0x645   : > { %v5846_v37 = vpop.eup %5845  ;;  %v4780_v27 = vadd.f32 %v5844_v39, %v4779_v13  ;;  %v5565_v23 = vmul.f32 -1.442695, %v3786_v12 }
 0x646   : > { %v5848_v49 = vpop.eup %5847  ;;  %v4070_v1 = vadd.f32 1.0, %v5846_v37 }
 0x647   : > { %v4784_v48 = vsel %vm4783_vm12, %v5844_v39, %v4780_v27  ;;  %v4792_v25 = vmul.f32 %v5848_v49, %v4069_v0  ;;  %5849 = vpow2.f32 %v5565_v23  ;;  %vm4797_vm14 = vweird.f32 %v5848_v49 }
 0x648   : > { %v4789_v28 = vsel %vm4786_vm13, %v4788_v18, %v4784_v48  ;;  %5851 = vrcp.f32 %v4070_v1  ;;  %vm4798_vm0 = vmor %vm4796_vm15, %vm4797_vm14  ;;  %v4817_v34 = vand.u32 2147483648, %v4070_v1  ;;  %v4815_v20 = vand.u32 2147483647, %v4070_v1 }
 0x649   : > { %5092 = vst [vmem:[%s8620_s20 + $0x170] sm:$0xff] %v4789_v28  ;;  %v4793_v2 = vsub.f32 1.0, %v4792_v25  ;;  %vm4811_vm3 = vweird.f32 %v4070_v1 }
 0x64a   : > { %v3788_v58 = vpop.f32.mrf.mxu0  ;;  %v4818_v26 = vor.u32 1.1754944e-38, %v4817_v34  ;;  %vm4816_vm5 = vcmp.eq.f32.partialorder %v4815_v20, 8.507059e+37 }
 0x64b   : > { %v4794_v24 = vmul.f32 %v5848_v49, %v4793_v2  ;;  %v3789_v3 = vadd.f32 %v9072_v43, %v3788_v58 }
 0x64d   : > { %v5850_v63 = vpop.eup %5849  ;;  %v4795_v31 = vadd.f32 %v5848_v49, %v4794_v24  ;;  %v5566_v21 = vmul.f32 -1.442695, %v3789_v3 }
 0x64e   : > { %v5852_v38 = vpop.eup %5851  ;;  %v4071_v19 = vadd.f32 1.0, %v5850_v63 }
 0x64f   : > { %v4799_v54 = vsel %vm4798_vm0, %v5848_v49, %v4795_v31  ;;  %v4807_v56 = vmul.f32 %v5852_v38, %v4070_v1  ;;  %5853 = vpow2.f32 %v5566_v21  ;;  %vm4812_vm2 = vweird.f32 %v5852_v38 }
 0x650   : > { %v4804_v60 = vsel %vm4801_vm1, %v4803_v36, %v4799_v54  ;;  %5855 = vrcp.f32 %v4071_v19  ;;  %vm4813_vm4 = vmor %vm4811_vm3, %vm4812_vm2  ;;  %v4832_v14 = vand.u32 2147483648, %v4071_v19  ;;  %v4830_v30 = vand.u32 2147483647, %v4071_v19 }
 0x651   : > { %5093 = vst [vmem:[%s8620_s20 + $0x178] sm:$0xff] %v4804_v60  ;;  %v4808_v51 = vsub.f32 1.0, %v4807_v56  ;;  %vm4826_vm7 = vweird.f32 %v4071_v19 }
 0x652   : > { %v3791_v32 = vpop.f32.mrf.mxu0  ;;  %v4833_v45 = vor.u32 1.1754944e-38, %v4832_v14  ;;  %vm4831_vm9 = vcmp.eq.f32.partialorder %v4830_v30, 8.507059e+37 }
 0x653   : > { %v4809_v15 = vmul.f32 %v5852_v38, %v4808_v51  ;;  %v3792_v41 = vadd.f32 %v9072_v43, %v3791_v32 }
 0x655   : > { %v5854_v55 = vpop.eup %5853  ;;  %v4810_v10 = vadd.f32 %v5852_v38, %v4809_v15  ;;  %v5567_v44 = vmul.f32 -1.442695, %v3792_v41 }
 0x656   : > { %v5856_v6 = vpop.eup %5855  ;;  %v4072_v7 = vadd.f32 1.0, %v5854_v55 }
 0x657   : > { %v4814_v4 = vsel %vm4813_vm4, %v5852_v38, %v4810_v10  ;;  %v4822_v42 = vmul.f32 %v5856_v6, %v4071_v19  ;;  %5857 = vpow2.f32 %v5567_v44  ;;  %vm4827_vm6 = vweird.f32 %v5856_v6 }
 0x658   : > { %v4819_v16 = vsel %vm4816_vm5, %v4818_v26, %v4814_v4  ;;  %5859 = vrcp.f32 %v4072_v7  ;;  %vm4828_vm8 = vmor %vm4826_vm7, %vm4827_vm6  ;;  %v4847_v52 = vand.u32 2147483648, %v4072_v7  ;;  %v4845_v9 = vand.u32 2147483647, %v4072_v7 }
 0x659   : > { %5094 = vst [vmem:[%s8620_s20 + $0x180] sm:$0xff] %v4819_v16  ;;  %v4823_v59 = vsub.f32 1.0, %v4822_v42  ;;  %vm4841_vm11 = vweird.f32 %v4072_v7 }
 0x65a   : > { %v3794_v40 = vpop.f32.mrf.mxu0  ;;  %v4848_v27 = vor.u32 1.1754944e-38, %v4847_v52  ;;  %vm4846_vm13 = vcmp.eq.f32.partialorder %v4845_v9, 8.507059e+37 }
 0x65b   : > { %v4824_v62 = vmul.f32 %v5856_v6, %v4823_v59  ;;  %v3795_v47 = vadd.f32 %v9072_v43, %v3794_v40 }
 0x65d   : > { %v5858_v22 = vpop.eup %5857  ;;  %v4825_v61 = vadd.f32 %v5856_v6, %v4824_v62  ;;  %v5568_v57 = vmul.f32 -1.442695, %v3795_v47 }
 0x65e   : > { %v5860_v5 = vpop.eup %5859  ;;  %v4073_v11 = vadd.f32 1.0, %v5858_v22 }
 0x65f   : > { %v4829_v39 = vsel %vm4828_vm8, %v5856_v6, %v4825_v61  ;;  %v4837_v29 = vmul.f32 %v5860_v5, %v4072_v7  ;;  %5861 = vpow2.f32 %v5568_v57  ;;  %vm4842_vm10 = vweird.f32 %v5860_v5 }
 0x660   : > { %v4834_v0 = vsel %vm4831_vm9, %v4833_v45, %v4829_v39  ;;  %5863 = vrcp.f32 %v4073_v11  ;;  %vm4843_vm12 = vmor %vm4841_vm11, %vm4842_vm10  ;;  %v4862_v25 = vand.u32 2147483648, %v4073_v11  ;;  %vm4856_vm15 = vweird.f32 %v4073_v11 }
 0x661   : > { %5095 = vst [vmem:[%s8620_s20 + $0x188] sm:$0xff] %v4834_v0  ;;  %v4838_v46 = vsub.f32 1.0, %v4837_v29 }
 0x662   : > { %v3797_v33 = vpop.f32.mrf.mxu0  ;;  %v4863_v31 = vor.u32 1.1754944e-38, %v4862_v25 }
 0x663   : > { %v4839_v35 = vmul.f32 %v5860_v5, %v4838_v46  ;;  %v3798_v50 = vadd.f32 %v9072_v43, %v3797_v33  ;;  %v4860_v43 = vand.u32 2147483647, %v4073_v11 }
 0x665   : > { %v5862_v13 = vpop.eup %5861  ;;  %v4840_v17 = vadd.f32 %v5860_v5, %v4839_v35  ;;  %v5569_v12 = vmul.f32 -1.442695, %v3798_v50  ;;  %vm4861_vm1 = vcmp.eq.f32.partialorder %v4860_v43, 8.507059e+37 }
 0x666   : > { %v5864_v37 = vpop.eup %5863  ;;  %v4074_v23 = vadd.f32 1.0, %v5862_v13 }
 0x667   : > { %v4844_v49 = vsel %vm4843_vm12, %v5860_v5, %v4840_v17  ;;  %v4852_v18 = vmul.f32 %v5864_v37, %v4073_v11  ;;  %5865 = vpow2.f32 %v5569_v12  ;;  %vm4857_vm14 = vweird.f32 %v5864_v37 }
 0x668   : > { %v4849_v1 = vsel %vm4846_vm13, %v4848_v27, %v4844_v49  ;;  %5867 = vrcp.f32 %v4074_v23  ;;  %vm4858_vm0 = vmor %vm4856_vm15, %vm4857_vm14  ;;  %v4877_v56 = vand.u32 2147483648, %v4074_v23  ;;  %v4875_v34 = vand.u32 2147483647, %v4074_v23 }
 0x669   : > { %5096 = vst [vmem:[%s8620_s20 + $0x190] sm:$0xff] %v4849_v1  ;;  %v4853_v48 = vsub.f32 1.0, %v4852_v18  ;;  %vm4871_vm3 = vweird.f32 %v4074_v23 }
 0x66a   : > { %v3800_v28 = vpop.f32.mrf.mxu0  ;;  %v4878_v10 = vor.u32 1.1754944e-38, %v4877_v56  ;;  %vm4876_vm5 = vcmp.eq.f32.partialorder %v4875_v34, 8.507059e+37 }
 0x66b   : > { %v4854_v2 = vmul.f32 %v5864_v37, %v4853_v48  ;;  %v3801_v58 = vadd.f32 %v9166_v8, %v3800_v28 }
 0x66d   : > { %v5866_v24 = vpop.eup %5865  ;;  %v4855_v53 = vadd.f32 %v5864_v37, %v4854_v2  ;;  %v5570_v3 = vmul.f32 -1.442695, %v3801_v58 }
 0x66e   : > { %v5868_v63 = vpop.eup %5867  ;;  %v4075_v21 = vadd.f32 1.0, %v5866_v24 }
 0x66f   : > { %v4859_v38 = vsel %vm4858_vm0, %v5864_v37, %v4855_v53  ;;  %v4867_v36 = vmul.f32 %v5868_v63, %v4074_v23  ;;  %5869 = vpow2.f32 %v5570_v3  ;;  %vm4872_vm2 = vweird.f32 %v5868_v63 }
 0x670   : > { %v4864_v19 = vsel %vm4861_vm1, %v4863_v31, %v4859_v38  ;;  %5871 = vrcp.f32 %v4075_v21  ;;  %vm4873_vm4 = vmor %vm4871_vm3, %vm4872_vm2  ;;  %v4892_v42 = vand.u32 2147483648, %v4075_v21  ;;  %v4890_v14 = vand.u32 2147483647, %v4075_v21 }
 0x671   : > { %5097 = vst [vmem:[%s8620_s20 + $0x198] sm:$0xff] %v4864_v19  ;;  %v4868_v54 = vsub.f32 1.0, %v4867_v36  ;;  %vm4886_vm7 = vweird.f32 %v4075_v21 }
 0x672   : > { %v3803_v60 = vpop.f32.mrf.mxu0  ;;  %v4893_v61 = vor.u32 1.1754944e-38, %v4892_v42  ;;  %vm4891_vm9 = vcmp.eq.f32.partialorder %v4890_v14, 8.507059e+37 }
 0x673   : > { %v4869_v51 = vmul.f32 %v5868_v63, %v4868_v54  ;;  %v3804_v32 = vadd.f32 %v9166_v8, %v3803_v60 }
 0x675   : > { %v5870_v15 = vpop.eup %5869  ;;  %v4870_v20 = vadd.f32 %v5868_v63, %v4869_v51  ;;  %v5571_v41 = vmul.f32 -1.442695, %v3804_v32 }
 0x676   : > { %v5872_v55 = vpop.eup %5871  ;;  %v4076_v44 = vadd.f32 1.0, %v5870_v15 }
 0x677   : > { %v4874_v6 = vsel %vm4873_vm4, %v5868_v63, %v4870_v20  ;;  %v4882_v26 = vmul.f32 %v5872_v55, %v4075_v21  ;;  %5873 = vpow2.f32 %v5571_v41  ;;  %vm4887_vm6 = vweird.f32 %v5872_v55 }
 0x678   : > { %v4879_v7 = vsel %vm4876_vm5, %v4878_v10, %v4874_v6  ;;  %5875 = vrcp.f32 %v4076_v44  ;;  %vm4888_vm8 = vmor %vm4886_vm7, %vm4887_vm6  ;;  %v4907_v29 = vand.u32 2147483648, %v4076_v44  ;;  %v4905_v52 = vand.u32 2147483647, %v4076_v44 }
 0x679   : > { %5098 = vst [vmem:[%s8620_s20 + $0x1a0] sm:$0xff] %v4879_v7  ;;  %v4883_v4 = vsub.f32 1.0, %v4882_v26  ;;  %vm4901_vm11 = vweird.f32 %v4076_v44 }
 0x67a   : > { %v3806_v16 = vpop.f32.mrf.mxu0  ;;  %v4908_v17 = vor.u32 1.1754944e-38, %v4907_v29  ;;  %vm4906_vm13 = vcmp.eq.f32.partialorder %v4905_v52, 8.507059e+37 }
 0x67b   : > { %v4884_v59 = vmul.f32 %v5872_v55, %v4883_v4  ;;  %v3807_v40 = vadd.f32 %v9166_v8, %v3806_v16 }
 0x67d   : > { %v5874_v62 = vpop.eup %5873  ;;  %v4885_v30 = vadd.f32 %v5872_v55, %v4884_v59  ;;  %v5572_v47 = vmul.f32 -1.442695, %v3807_v40 }
 0x67e   : > { %v5876_v22 = vpop.eup %5875  ;;  %v4077_v57 = vadd.f32 1.0, %v5874_v62 }
 0x67f   : > { %v4889_v5 = vsel %vm4888_vm8, %v5872_v55, %v4885_v30  ;;  %v4897_v45 = vmul.f32 %v5876_v22, %v4076_v44  ;;  %5877 = vpow2.f32 %v5572_v47  ;;  %vm4902_vm10 = vweird.f32 %v5876_v22 }
 0x680   : > { %v4894_v11 = vsel %vm4891_vm9, %v4893_v61, %v4889_v5  ;;  %5879 = vrcp.f32 %v4077_v57  ;;  %vm4903_vm12 = vmor %vm4901_vm11, %vm4902_vm10  ;;  %v4922_v18 = vand.u32 2147483648, %v4077_v57  ;;  %v4920_v25 = vand.u32 2147483647, %v4077_v57 }
 0x681   : > { %5099 = vst [vmem:[%s8620_s20 + $0x1a8] sm:$0xff] %v4894_v11  ;;  %v4898_v39 = vsub.f32 1.0, %v4897_v45  ;;  %vm4916_vm15 = vweird.f32 %v4077_v57 }
 0x682   : > { %v3809_v0 = vpop.f32.mrf.mxu0  ;;  %v4923_v53 = vor.u32 1.1754944e-38, %v4922_v18  ;;  %vm4921_vm1 = vcmp.eq.f32.partialorder %v4920_v25, 8.507059e+37 }
 0x683   : > { %v4899_v46 = vmul.f32 %v5876_v22, %v4898_v39  ;;  %v3810_v33 = vadd.f32 %v9166_v8, %v3809_v0 }
 0x685   : > { %v5878_v35 = vpop.eup %5877  ;;  %v4900_v9 = vadd.f32 %v5876_v22, %v4899_v46  ;;  %v5573_v50 = vmul.f32 -1.442695, %v3810_v33 }
 0x686   : > { %v5880_v13 = vpop.eup %5879  ;;  %v4078_v12 = vadd.f32 1.0, %v5878_v35 }
 0x687   : > { %v4904_v37 = vsel %vm4903_vm12, %v5876_v22, %v4900_v9  ;;  %v4912_v27 = vmul.f32 %v5880_v13, %v4077_v57  ;;  %5881 = vpow2.f32 %v5573_v50  ;;  %vm4917_vm14 = vweird.f32 %v5880_v13 }
 0x688   : > { %v4909_v23 = vsel %vm4906_vm13, %v4908_v17, %v4904_v37  ;;  %5883 = vrcp.f32 %v4078_v12  ;;  %vm4918_vm0 = vmor %vm4916_vm15, %vm4917_vm14  ;;  %v4937_v36 = vand.u32 2147483648, %v4078_v12  ;;  %v4935_v56 = vand.u32 2147483647, %v4078_v12 }
 0x689   : > { %5100 = vst [vmem:[%s8620_s20 + $0x1b0] sm:$0xff] %v4909_v23  ;;  %v4913_v49 = vsub.f32 1.0, %v4912_v27  ;;  %vm4931_vm3 = vweird.f32 %v4078_v12 }
 0x68a   : > { %v3812_v1 = vpop.f32.mrf.mxu0  ;;  %v4938_v20 = vor.u32 1.1754944e-38, %v4937_v36  ;;  %vm4936_vm5 = vcmp.eq.f32.partialorder %v4935_v56, 8.507059e+37 }
 0x68b   : > { %v4914_v48 = vmul.f32 %v5880_v13, %v4913_v49  ;;  %v3813_v28 = vadd.f32 %v9166_v8, %v3812_v1 }
 0x68d   : > { %v5882_v2 = vpop.eup %5881  ;;  %v4915_v43 = vadd.f32 %v5880_v13, %v4914_v48  ;;  %v5574_v58 = vmul.f32 -1.442695, %v3813_v28 }
 0x68e   : > { %v5884_v24 = vpop.eup %5883  ;;  %v4079_v3 = vadd.f32 1.0, %v5882_v2 }
 0x68f   : > { %v4919_v63 = vsel %vm4918_vm0, %v5880_v13, %v4915_v43  ;;  %v4927_v31 = vmul.f32 %v5884_v24, %v4078_v12  ;;  %5885 = vpow2.f32 %v5574_v58  ;;  %vm4932_vm2 = vweird.f32 %v5884_v24 }
 0x690   : > { %v4924_v21 = vsel %vm4921_vm1, %v4923_v53, %v4919_v63  ;;  %5887 = vrcp.f32 %v4079_v3  ;;  %vm4933_vm4 = vmor %vm4931_vm3, %vm4932_vm2  ;;  %v4952_v26 = vand.u32 2147483648, %v4079_v3  ;;  %v4950_v42 = vand.u32 2147483647, %v4079_v3 }
 0x691   : > { %5101 = vst [vmem:[%s8620_s20 + $0x1b8] sm:$0xff] %v4924_v21  ;;  %v4928_v38 = vsub.f32 1.0, %v4927_v31  ;;  %vm4946_vm7 = vweird.f32 %v4079_v3 }
 0x692   : > { %v3815_v19 = vpop.f32.mrf.mxu0  ;;  %v4953_v30 = vor.u32 1.1754944e-38, %v4952_v26  ;;  %vm4951_vm9 = vcmp.eq.f32.partialorder %v4950_v42, 8.507059e+37 }
 0x693   : > { %v4929_v54 = vmul.f32 %v5884_v24, %v4928_v38  ;;  %v3816_v60 = vadd.f32 %v9166_v8, %v3815_v19 }
 0x695   : > { %v5886_v51 = vpop.eup %5885  ;;  %v4930_v34 = vadd.f32 %v5884_v24, %v4929_v54  ;;  %v5575_v32 = vmul.f32 -1.442695, %v3816_v60 }
 0x696   : > { %v5888_v15 = vpop.eup %5887  ;;  %v4080_v41 = vadd.f32 1.0, %v5886_v51 }
 0x697   : > { %v4934_v55 = vsel %vm4933_vm4, %v5884_v24, %v4930_v34  ;;  %v4942_v10 = vmul.f32 %v5888_v15, %v4079_v3  ;;  %5889 = vpow2.f32 %v5575_v32  ;;  %vm4947_vm6 = vweird.f32 %v5888_v15 }
 0x698   : > { %v4939_v44 = vsel %vm4936_vm5, %v4938_v20, %v4934_v55  ;;  %5891 = vrcp.f32 %v4080_v41  ;;  %vm4948_vm8 = vmor %vm4946_vm7, %vm4947_vm6  ;;  %v4967_v45 = vand.u32 2147483648, %v4080_v41  ;;  %v4965_v29 = vand.u32 2147483647, %v4080_v41 }
 0x699   : > { %5102 = vst [vmem:[%s8620_s20 + $0x1c0] sm:$0xff] %v4939_v44  ;;  %v4943_v6 = vsub.f32 1.0, %v4942_v10  ;;  %vm4961_vm11 = vweird.f32 %v4080_v41 }
 0x69a   : > { %v3818_v7 = vpop.f32.mrf.mxu0  ;;  %v4968_v9 = vor.u32 1.1754944e-38, %v4967_v45  ;;  %vm4966_vm13 = vcmp.eq.f32.partialorder %v4965_v29, 8.507059e+37 }
 0x69b   : > { %v4944_v4 = vmul.f32 %v5888_v15, %v4943_v6  ;;  %v3819_v16 = vadd.f32 %v9166_v8, %v3818_v7 }
 0x69d   : > { %v5890_v59 = vpop.eup %5889  ;;  %v4945_v14 = vadd.f32 %v5888_v15, %v4944_v4  ;;  %v5576_v40 = vmul.f32 -1.442695, %v3819_v16 }
 0x69e   : > { %v5892_v62 = vpop.eup %5891  ;;  %v4081_v47 = vadd.f32 1.0, %v5890_v59 }
 0x69f   : > { %v4949_v22 = vsel %vm4948_vm8, %v5888_v15, %v4945_v14  ;;  %v4957_v61 = vmul.f32 %v5892_v62, %v4080_v41  ;;  %5893 = vpow2.f32 %v5576_v40  ;;  %vm4962_vm10 = vweird.f32 %v5892_v62 }
 0x6a0   : > { %v4954_v57 = vsel %vm4951_vm9, %v4953_v30, %v4949_v22  ;;  %5895 = vrcp.f32 %v4081_v47  ;;  %vm4963_vm12 = vmor %vm4961_vm11, %vm4962_vm10  ;;  %v4982_v27 = vand.u32 2147483648, %v4081_v47  ;;  %v4980_v18 = vand.u32 2147483647, %v4081_v47 }
 0x6a1   : > { %5103 = vst [vmem:[%s8620_s20 + $0x1c8] sm:$0xff] %v4954_v57  ;;  %v4958_v5 = vsub.f32 1.0, %v4957_v61  ;;  %vm4976_vm15 = vweird.f32 %v4081_v47 }
 0x6a2   : > { %v3821_v11 = vpop.f32.mrf.mxu0  ;;  %v4983_v43 = vor.u32 1.1754944e-38, %v4982_v27  ;;  %vm4981_vm1 = vcmp.eq.f32.partialorder %v4980_v18, 8.507059e+37 }
 0x6a3   : > { %v4959_v39 = vmul.f32 %v5892_v62, %v4958_v5  ;;  %v3822_v0 = vadd.f32 %v9166_v8, %v3821_v11 }
 0x6a5   : > { %v5894_v46 = vpop.eup %5893  ;;  %v4960_v52 = vadd.f32 %v5892_v62, %v4959_v39  ;;  %v5577_v33 = vmul.f32 -1.442695, %v3822_v0 }
 0x6a6   : > { %v5896_v35 = vpop.eup %5895  ;;  %v4082_v50 = vadd.f32 1.0, %v5894_v46 }
 0x6a7   : > { %v4964_v13 = vsel %vm4963_vm12, %v5892_v62, %v4960_v52  ;;  %v4972_v17 = vmul.f32 %v5896_v35, %v4081_v47  ;;  %5897 = vpow2.f32 %v5577_v33  ;;  %vm4977_vm14 = vweird.f32 %v5896_v35 }
 0x6a8   : > { %v4969_v12 = vsel %vm4966_vm13, %v4968_v9, %v4964_v13  ;;  %5899 = vrcp.f32 %v4082_v50  ;;  %vm4978_vm0 = vmor %vm4976_vm15, %vm4977_vm14  ;;  %v4997_v31 = vand.u32 2147483648, %v4082_v50  ;;  %v4995_v38 = vand.u32 2147483647, %v4082_v50 }
 0x6a9   : > { %5104 = vst [vmem:[%s8620_s20 + $0x1d0] sm:$0xff] %v4969_v12  ;;  %v4973_v37 = vsub.f32 1.0, %v4972_v17  ;;  %vm4991_vm3 = vweird.f32 %v4082_v50 }
 0x6aa   : > { %v3824_v23 = vpop.f32.mrf.mxu0  ;;  %v4998_v56 = vor.u32 1.1754944e-38, %v4997_v31  ;;  %vm4996_vm5 = vcmp.eq.f32.partialorder %v4995_v38, 8.507059e+37 }
 0x6ab   : > { %v4974_v49 = vmul.f32 %v5896_v35, %v4973_v37  ;;  %v3825_v1 = vadd.f32 %v9166_v8, %v3824_v23 }
 0x6ad   : > { %v5898_v48 = vpop.eup %5897  ;;  %v4975_v25 = vadd.f32 %v5896_v35, %v4974_v49  ;;  %v5578_v28 = vmul.f32 -1.442695, %v3825_v1 }
 0x6ae   : > { %v5900_v2 = vpop.eup %5899  ;;  %v4083_v58 = vadd.f32 1.0, %v5898_v48 }
 0x6af   : > { %v4979_v24 = vsel %vm4978_vm0, %v5896_v35, %v4975_v25  ;;  %v4987_v53 = vmul.f32 %v5900_v2, %v4082_v50  ;;  %5901 = vpow2.f32 %v5578_v28  ;;  %vm4992_vm2 = vweird.f32 %v5900_v2 }
 0x6b0   : > { %v4984_v3 = vsel %vm4981_vm1, %v4983_v43, %v4979_v24  ;;  %5903 = vrcp.f32 %v4083_v58  ;;  %vm4993_vm4 = vmor %vm4991_vm3, %vm4992_vm2  ;;  %v5012_v55 = vand.u32 2147483648, %v4083_v58  ;;  %v5010_v44 = vand.u32 2147483647, %v4083_v58 }
 0x6b1   : > { %5105 = vst [vmem:[%s8620_s20 + $0x1d8] sm:$0xff] %v4984_v3  ;;  %v4988_v63 = vsub.f32 1.0, %v4987_v53  ;;  %vm5006_vm7 = vweird.f32 %v4083_v58 }
 0x6b2   : > { %v5013_v4 = vor.u32 1.1754944e-38, %v5012_v55  ;;  %vm5011_vm9 = vcmp.eq.f32.partialorder %v5010_v44, 8.507059e+37 }
 0x6b3   : > { %v4989_v21 = vmul.f32 %v5900_v2, %v4988_v63 }
 0x6b5   : > { %v5902_v36 = vpop.eup %5901  ;;  %v4990_v19 = vadd.f32 %v5900_v2, %v4989_v21 }
 0x6b6   : > { %v5904_v54 = vpop.eup %5903  ;;  %v4084_v60 = vadd.f32 1.0, %v5902_v36  ;;  %v3827_v15 = vpop.f32.mrf.mxu3 }
 0x6b7   : > { %v4994_v51 = vsel %vm4993_vm4, %v5900_v2, %v4990_v19  ;;  %v5002_v34 = vmul.f32 %v5904_v54, %v4083_v58  ;;  %v3828_v41 = vadd.f32 %v9166_v8, %v3827_v15  ;;  %vm5007_vm6 = vweird.f32 %v5904_v54 }
 0x6b8   : > { %v4999_v32 = vsel %vm4996_vm5, %v4998_v56, %v4994_v51  ;;  %5905 = vrcp.f32 %v4084_v60  ;;  %vm5008_vm8 = vmor %vm5006_vm7, %vm5007_vm6  ;;  %v5027_v8 = vand.u32 2147483648, %v4084_v60  ;;  %v5025_v30 = vand.u32 2147483647, %v4084_v60 }
 0x6b9   : > { %5106 = vst [vmem:[%s8620_s20 + $0x1e0] sm:$0xff] %v4999_v32  ;;  %v5003_v20 = vsub.f32 1.0, %v5002_v34  ;;  %v5579_v6 = vmul.f32 -1.442695, %v3828_v41  ;;  %vm5021_vm11 = vweird.f32 %v4084_v60 }
 0x6ba   : > { %v5028_v61 = vor.u32 1.1754944e-38, %v5027_v8  ;;  %vm5026_vm13 = vcmp.eq.f32.partialorder %v5025_v30, 8.507059e+37 }
 0x6bb   : > { %v5004_v10 = vmul.f32 %v5904_v54, %v5003_v20  ;;  %5907 = vpow2.f32 %v5579_v6 }
 0x6bd   : > { %v5005_v26 = vadd.f32 %v5904_v54, %v5004_v10 }
 0x6be   : > { %v5906_v7 = vpop.eup %5905 }
 0x6bf   : > { %v5009_v42 = vsel %vm5008_vm8, %v5904_v54, %v5005_v26  ;;  %v5017_v16 = vmul.f32 %v5906_v7, %v4084_v60  ;;  %vm5022_vm10 = vweird.f32 %v5906_v7 }
 0x6c0   : > { %v5014_v59 = vsel %vm5011_vm9, %v5013_v4, %v5009_v42  ;;  %vm5023_vm12 = vmor %vm5021_vm11, %vm5022_vm10 }
 0x6c1   : > { %5107 = vst [vmem:[%s8620_s20 + $0x1e8] sm:$0xff] %v5014_v59  ;;  %v5018_v14 = vsub.f32 1.0, %v5017_v16  ;;  %v5908_v40 = vpop.eup %5907 }
 0x6c2   : > { %v4085_v47 = vadd.f32 1.0, %v5908_v40 }
 0x6c3   : > { %v5019_v62 = vmul.f32 %v5906_v7, %v5018_v14 }
 0x6c4   : > { %5909 = vrcp.f32 %v4085_v47  ;;  %v5042_v29 = vand.u32 2147483648, %v4085_v47  ;;  %v5040_v46 = vand.u32 2147483647, %v4085_v47  ;;  %vm5036_vm15 = vweird.f32 %v4085_v47 }
 0x6c5   : > { %v5020_v22 = vadd.f32 %v5906_v7, %v5019_v62 }
 0x6c6   : > { %v5043_v33 = vor.u32 1.1754944e-38, %v5042_v29  ;;  %vm5041_vm1 = vcmp.eq.f32.partialorder %v5040_v46, 8.507059e+37 }
 0x6c7   : > { %v5024_v57 = vsel %vm5023_vm12, %v5906_v7, %v5020_v22 }
 0x6c8   : > { %v5029_v5 = vsel %vm5026_vm13, %v5028_v61, %v5024_v57 }
 0x6c9   : > { %5108 = vst [vmem:[%s8620_s20 + $0x1f0] sm:$0xff] %v5029_v5 }
 0x6ca   : > { %v5910_v45 = vpop.eup %5909 }
 0x6cb   : > { %v5032_v11 = vmul.f32 %v5910_v45, %v4085_v47  ;;  %vm5037_vm14 = vweird.f32 %v5910_v45 }
 0x6cc   : > { %vm5038_vm0 = vmor %vm5036_vm15, %vm5037_vm14 }
 0x6cd   : > { %v5033_v39 = vsub.f32 1.0, %v5032_v11 }
 0x6cf   : > { %v5034_v0 = vmul.f32 %v5910_v45, %v5033_v39 }
 0x6d1   : > { %v5035_v52 = vadd.f32 %v5910_v45, %v5034_v0 }
 0x6d3   : > { %v5039_v35 = vsel %vm5038_vm0, %v5910_v45, %v5035_v52 }
 0x6d4   : > { %v5044_v9 = vsel %vm5041_vm1, %v5043_v33, %v5039_v35 }
 0x6d5   : > { %5109 = vst [vmem:[%s8620_s20 + $0x1f8] sm:$0xff] %v5044_v9 }
 0x6d6   : > { %5956 = shalt.err (!%p5953_p3)
}
 0x6d7   : > { %s5993_s12 = smov 128   ;;  %s5994_s20 = smov 8  }
 0x6d8   : > { %5614 = dma.vmem_to_hbm [thread:$0]  (%p6088_p5), %s5124_s27, 8192, %s5126_s26, %s5111_s17, %s5993_s12, %s5993_s12, %s5994_s20  }
 0x6d9 PF: > { %p5620_p4 = scmp.ge.s32.totalorder %s5991_s16, 2  ;;  %s5140_s30 = sand.u32 1, %s5979_s13  }
 0x6da   : > { %s5141_s11 = scalar_lea.sflag [#allocation3], %s5140_s30 }
 0x6db   : > { %p5617_p7 = pnand %p5620_p4, %p6092_p6 }
 0x6dd   : > { %p5618_p8 = pneg %p5617_p7 }
 0x6df   : > { %5974 = dma.done.wait (%p5618_p8), %s5141_s11, 8192  }
 0x6e0   : > { %5976 = vsyncadd (%p5618_p8), %s5141_s11, 4294959104  ;;  %p20_p9 = scmp.ge.s32.totalorder %s6075_s19, 10   ;;  %s9575_s13 = smov %s5983_s14 }
 0x6e1   : > { %s9576_s14 = smov %s5987_s15  ;;  %s9577_s15 = smov %s6086_s22 }
 0x6e2   : > { %s9578_s16 = smov %s6075_s19  ;;  %22 = sbr.rel (!%p20_p9) target bundleno = 3 (0x3), region = 96 }
 0x6e7   :  { %5147 = vsyncpa [#allocation3], 1 }
 0x6e8   :  { %5149 = vsyncpa [#allocation3 + $0x1], 1 }

</bundles_post_ra>
